<compile_context>
chip_gen: v6e
topology: v6e:2x2x1
jax: 0.10.0
libtpu: 0.0.40
codegen_flags: <defaults>
</compile_context>

<pallas_src>
import functools

import jax
import jax.numpy as jnp
from jax.experimental import pallas as pl
from jax.experimental.pallas import tpu as pltpu

EPS = 1e-5
NEG_SLOPE = 0.01          # nn.LeakyReLU default

# ------------------------- synthetic model config --------------------------
# Mirrors the module's __init__ contract at small shapes: spatial collapses to
# 1 after the encoders, RNN input sizes match the final channel counts, and
# the classifier input is 256 + 256 = 512.
N_FRAMES = 8
IMG_H, IMG_W = 16, 16
IMG_FEATURES = [4, 8, 16]
IMG_KERNELS = [(4, 4), (3, 3), (3, 3)]     # 16 -> 7 -> 3 -> 1
IMG_STRIDE = 2

AUD_LEN = 32
AUD_FEATURES = [1, 4, 8]
AUD_KERNELS = [8, 5, 5]                    # 32 -> 13 -> 5 -> 1
AUD_STRIDE = 2

HIDDEN = 256              # per-RNN hidden; 256 + 256 = 512 classifier input


# ===========================================================================
# The single fused kernel.
# ===========================================================================
def _build_fused_kernel(img_counts, aud_counts, t_steps):
    """img_counts / aud_counts: per-layer N*spatial element counts (static)."""
    n_img, n_aud = len(img_counts), len(aud_counts)

    def kernel(*refs):
        # ----- parse the flat ref list (structure is static) ----------------
        idx = 0
        frames_ref = refs[idx]; idx += 1            # [T, Cin0*H*W]
        audio_ref = refs[idx]; idx += 1             # [T, Cin0*L]
        img_layers = []
        for _ in range(n_img):
            img_layers.append(refs[idx:idx + 5]); idx += 5
        aud_layers = []
        for _ in range(n_aud):
            aud_layers.append(refs[idx:idx + 5]); idx += 5
        (wif_ref, whf_ref, bf_ref,
         wia_ref, wha_ref, ba_ref,
         wcf_ref, wca_ref, bc_ref) = refs[idx:idx + 9]; idx += 9
        o_ref = refs[idx]; idx += 1                 # [T, 1]
        fz_sc = refs[idx]; idx += 1                 # [T, HIDDEN] scratch
        az_sc = refs[idx]                           # [T, HIDDEN] scratch

        def conv_bn_lrelu(x, layer, cnt):
            # layer = (M, G, GT, gamma_b, beta_b)
            m_ref, g_ref, gt_ref, gamma_ref, beta_ref = layer
            inv_cnt = 1.0 / cnt
            # Conv as one dense matmul on the [T, Cin*Sin] slab.
            y = jnp.dot(x, m_ref[...], preferred_element_type=jnp.float32)
            # Train-mode BatchNorm (biased variance) over N*spatial per channel.
            col_sum = jnp.sum(y, axis=0, keepdims=True)                     # [1, D]
            mean_c = jnp.dot(col_sum, g_ref[...],
                             preferred_element_type=jnp.float32) * inv_cnt  # [1, C]
            mean_b = jnp.dot(mean_c, gt_ref[...],
                             preferred_element_type=jnp.float32)            # [1, D]
            d = y - mean_b
            var_c = jnp.dot(jnp.sum(d * d, axis=0, keepdims=True), g_ref[...],
                            preferred_element_type=jnp.float32) * inv_cnt   # [1, C]
            inv_std_b = jnp.dot(jax.lax.rsqrt(var_c + EPS), gt_ref[...],
                                preferred_element_type=jnp.float32)         # [1, D]
            z = d * inv_std_b * gamma_ref[...] + beta_ref[...]
            return jnp.where(z >= 0, z, NEG_SLOPE * z)                      # LeakyReLU

        # ----- image encoder -------------------------------------------------
        x = frames_ref[...]
        for l in range(n_img):
            x = conv_bn_lrelu(x, img_layers[l], img_counts[l])
        fx = x                                        # [T, C_img] (spatial collapsed to 1)

        # ----- audio encoder -------------------------------------------------
        a = audio_ref[...]
        for l in range(n_aud):
            a = conv_bn_lrelu(a, aud_layers[l], aud_counts[l])
        ax = a                                        # [T, C_aud]

        # ----- nn.RNN (tanh), unbatched [T, D] input, h0 = 0 -----------------
        # Input projections hoisted out of the serial recurrence loop.
        proj_f = jnp.dot(fx, wif_ref[...], preferred_element_type=jnp.float32) + bf_ref[...]
        proj_a = jnp.dot(ax, wia_ref[...], preferred_element_type=jnp.float32) + ba_ref[...]

        hf = jnp.zeros((1, HIDDEN), jnp.float32)
        ha = jnp.zeros((1, HIDDEN), jnp.float32)
        for t in range(t_steps):
            hf = jnp.tanh(proj_f[t:t + 1, :]
                          + jnp.dot(hf, whf_ref[...], preferred_element_type=jnp.float32))
            ha = jnp.tanh(proj_a[t:t + 1, :]
                          + jnp.dot(ha, wha_ref[...], preferred_element_type=jnp.float32))
            fz_sc[pl.ds(t, 1), :] = hf
            az_sc[pl.ds(t, 1), :] = ha

        # cat(frames_z, audio_z) @ W.T + b == fz @ W[:, :H].T + az @ W[:, H:].T + b
        logit = (jnp.dot(fz_sc[...], wcf_ref[...], preferred_element_type=jnp.float32)
                 + jnp.dot(az_sc[...], wca_ref[...], preferred_element_type=jnp.float32)
                 + bc_ref[...])
        o_ref[...] = 1.0 / (1.0 + jnp.exp(-logit))    # Sigmoid

    return kernel


def video_discriminator_forward(frames, audio, flat_params, *, img_spatial, aud_spatial):
    n = frames.shape[0]
    frames_flat = frames.reshape(n, -1)                        # NCHW channel-major flatten
    audio_flat = jnp.squeeze(audio, axis=0).reshape(n, -1)     # audio.squeeze(0), NCL flatten
    img_counts = tuple(float(n * s) for s in img_spatial)
    aud_counts = tuple(float(n * s) for s in aud_spatial)
    kernel = _build_fused_kernel(img_counts, aud_counts, n)
    n_inputs = 2 + len(flat_params)
    return pl.pallas_call(
        kernel,
        out_shape=jax.ShapeDtypeStruct((n, 1), jnp.float32),
        in_specs=[pl.BlockSpec(memory_space=pltpu.MemorySpace.VMEM)] * n_inputs,
        out_specs=pl.BlockSpec(memory_space=pltpu.MemorySpace.VMEM),
        scratch_shapes=[pltpu.VMEM((n, HIDDEN), jnp.float32),
                        pltpu.VMEM((n, HIDDEN), jnp.float32)],
    )(frames_flat, audio_flat, *flat_params)


# ===========================================================================
# Host-side (one-time) parameter preprocessing.
# ===========================================================================
def _conv2d_as_matrix(w, h, wdt, stride):
    """Dense linear map of a VALID stride-s Conv2d: [Cin*H*W, Cout*Ho*Wo]."""
    cout, cin, kh, kw = w.shape
    ho = (h - kh) // stride + 1
    wo = (wdt - kw) // stride + 1
    co, ci, di, dj, oh, ow = jnp.meshgrid(
        jnp.arange(cout), jnp.arange(cin), jnp.arange(kh), jnp.arange(kw),
        jnp.arange(ho), jnp.arange(wo), indexing="ij")
    rows = (ci * h + oh * stride + di) * wdt + (ow * stride + dj)   # input  (ci, ih, iw)
    cols = (co * ho + oh) * wo + ow                                 # output (co, oh, ow)
    m = jnp.zeros((cin * h * wdt, cout * ho * wo), jnp.float32)
    m = m.at[rows.ravel(), cols.ravel()].add(w[co, ci, di, dj].ravel())
    return m, ho, wo


def _conv1d_as_matrix(w, length, stride):
    """Dense linear map of a VALID stride-s Conv1d: [Cin*L, Cout*Lo]."""
    cout, cin, k = w.shape
    lo = (length - k) // stride + 1
    co, ci, dk, ol = jnp.meshgrid(
        jnp.arange(cout), jnp.arange(cin), jnp.arange(k), jnp.arange(lo), indexing="ij")
    rows = ci * length + ol * stride + dk
    cols = co * lo + ol
    m = jnp.zeros((cin * length, cout * lo), jnp.float32)
    m = m.at[rows.ravel(), cols.ravel()].add(w[co, ci, dk].ravel())
    return m, lo


def _bn_aux(cout, spatial, gamma, beta):
    """Indicator matrices + broadcast BN affine params for channel-major cols."""
    g = jnp.repeat(jnp.eye(cout, dtype=jnp.float32), spatial, axis=0)   # [C*S, C]
    gt = jnp.transpose(g)                                               # [C, C*S]
    gamma_b = jnp.repeat(gamma, spatial)[None, :]                       # [1, C*S]
    beta_b = jnp.repeat(beta, spatial)[None, :]
    return g, gt, gamma_b, beta_b


def prepare_kernel_inputs(params):
    flat, img_spatial, aud_spatial = [], [], []
    h, w = IMG_H, IMG_W
    for lp in params["img_layers"]:
        m, ho, wo = _conv2d_as_matrix(lp["w"], h, w, IMG_STRIDE)
        s = ho * wo
        flat += [m, *_bn_aux(lp["w"].shape[0], s, lp["gamma"], lp["beta"])]
        img_spatial.append(s)
        h, w = ho, wo
    length = AUD_LEN
    for lp in params["aud_layers"]:
        m, lo = _conv1d_as_matrix(lp["w"], length, AUD_STRIDE)
        flat += [m, *_bn_aux(lp["w"].shape[0], lo, lp["gamma"], lp["beta"])]
        aud_spatial.append(lo)
        length = lo
    hd = params["head"]
    flat += [hd["wif"], hd["whf"], hd["bf"], hd["wia"], hd["wha"], hd["ba"],
             hd["wcf"], hd["wca"], hd["bc"]]
    return flat, tuple(img_spatial), tuple(aud_spatial)


# ------------------------------ parameters ----------------------------------
def init_params(key):
    keys = iter(jax.random.split(key, 32))

    def conv_params(cin, cout, ksize):
        fan = cin
        for k in ksize:
            fan *= int(k)
        # NOTE: conv bias omitted on purpose — train-mode BatchNorm's mean
        # subtraction cancels a per-channel bias exactly (dead work).
        w = jax.random.normal(next(keys), (cout, cin, *ksize), jnp.float32) / jnp.sqrt(float(fan))
        gamma = 1.0 + 0.01 * jax.random.normal(next(keys), (cout,), jnp.float32)
        beta = 0.01 * jax.random.normal(next(keys), (cout,), jnp.float32)
        return dict(w=w, gamma=gamma, beta=beta)

    def out_channels(features, i):
        return features[i + 1] if i != len(features) - 1 else features[i]

    img_layers = [conv_params(IMG_FEATURES[i], out_channels(IMG_FEATURES, i), IMG_KERNELS[i])
                  for i in range(len(IMG_FEATURES))]
    aud_layers = [conv_params(AUD_FEATURES[i], out_channels(AUD_FEATURES, i), (AUD_KERNELS[i],))
                  for i in range(len(AUD_FEATURES))]

    def rnn_params(din, h):
        w_ih = jax.random.normal(next(keys), (h, din), jnp.float32) / jnp.sqrt(float(din))
        w_hh = jax.random.normal(next(keys), (h, h), jnp.float32) / jnp.sqrt(float(h))
        b_ih = 0.01 * jax.random.normal(next(keys), (h,), jnp.float32)
        b_hh = 0.01 * jax.random.normal(next(keys), (h,), jnp.float32)
        return w_ih.T, w_hh.T, (b_ih + b_hh).reshape(1, h)

    img_rnn_in = out_channels(IMG_FEATURES, len(IMG_FEATURES) - 1)   # 16
    aud_rnn_in = out_channels(AUD_FEATURES, len(AUD_FEATURES) - 1)   # 8
    wif, whf, bf = rnn_params(img_rnn_in, HIDDEN)
    wia, wha, ba = rnn_params(aud_rnn_in, HIDDEN)

    w_cls = jax.random.normal(next(keys), (1, 2 * HIDDEN), jnp.float32) / jnp.sqrt(2.0 * HIDDEN)
    b_cls = 0.01 * jax.random.normal(next(keys), (1,), jnp.float32)
    head = dict(wif=wif, whf=whf, bf=bf, wia=wia, wha=wha, ba=ba,
                wcf=w_cls[:, :HIDDEN].T, wca=w_cls[:, HIDDEN:].T,
                bc=b_cls.reshape(1, 1))
    return dict(img_layers=img_layers, aud_layers=aud_layers, head=head)


# --------------------- pure-JAX (non-Pallas) reference ----------------------
def reference_forward(frames, audio, params):
    prec = jax.lax.Precision.HIGHEST

    def bn_lrelu(y, gamma, beta, axes):
        mean = jnp.mean(y, axis=axes, keepdims=True)
        var = jnp.mean((y - mean) ** 2, axis=axes, keepdims=True)   # biased variance
        shape = [1] * y.ndim
        shape[1] = -1
        z = (y - mean) * jax.lax.rsqrt(var + EPS) * gamma.reshape(shape) + beta.reshape(shape)
        return jnp.where(z >= 0, z, NEG_SLOPE * z)

    x = frames
    for lp in params["img_layers"]:
        y = jax.lax.conv_general_dilated(
            x, lp["w"], window_strides=(IMG_STRIDE, IMG_STRIDE), padding="VALID",
            dimension_numbers=("NCHW", "OIHW", "NCHW"), precision=prec)
        x = bn_lrelu(y, lp["gamma"], lp["beta"], (0, 2, 3))
    fx = x.reshape(x.shape[0], x.shape[1])

    a = jnp.squeeze(audio, axis=0)
    for lp in params["aud_layers"]:
        y = jax.lax.conv_general_dilated(
            a[:, :, None, :], lp["w"][:, :, None, :], window_strides=(1, AUD_STRIDE),
            padding="VALID", dimension_numbers=("NCHW", "OIHW", "NCHW"),
            precision=prec)[:, :, 0, :]
        a = bn_lrelu(y, lp["gamma"], lp["beta"], (0, 2))
    ax = a.reshape(a.shape[0], a.shape[1])

    hd = params["head"]

    def rnn(xseq, wih, whh, b):
        h = jnp.zeros((1, HIDDEN), jnp.float32)
        outs = []
        for t in range(xseq.shape[0]):
            h = jnp.tanh(jnp.dot(xseq[t:t + 1], wih, precision=prec)
                         + jnp.dot(h, whh, precision=prec) + b)
            outs.append(h)
        return jnp.concatenate(outs, axis=0)

    fz = rnn(fx, hd["wif"], hd["whf"], hd["bf"])
    az = rnn(ax, hd["wia"], hd["wha"], hd["ba"])
    logit = (jnp.dot(fz, hd["wcf"], precision=prec)
             + jnp.dot(az, hd["wca"], precision=prec) + hd["bc"])
    return 1.0 / (1.0 + jnp.exp(-logit))


# ------------------------------------ main ----------------------------------
if __name__ == "__main__":
    key = jax.random.PRNGKey(0)
    k_frames, k_audio, k_params = jax.random.split(key, 3)

    frames = jax.random.normal(
        k_frames, (N_FRAMES, IMG_FEATURES[0], IMG_H, IMG_W), jnp.float32)
    audio = jax.random.normal(
        k_audio, (1, N_FRAMES, AUD_FEATURES[0], AUD_LEN), jnp.float32)

    params = init_params(k_params)
    flat_params, img_spatial, aud_spatial = prepare_kernel_inputs(params)

    fwd = jax.jit(functools.partial(video_discriminator_forward,
                                    img_spatial=img_spatial, aud_spatial=aud_spatial))
    out = jax.block_until_ready(fwd(frames, audio, flat_params))

    assert out.shape == (N_FRAMES, 1), out.shape
    assert bool(jnp.all(jnp.isfinite(out)))
    assert bool(jnp.all((out > 0.0) & (out < 1.0)))          # sigmoid range

    ref = reference_forward(frames, audio, params)
    max_diff = float(jnp.max(jnp.abs(out - ref)))
    assert max_diff < 1e-2, f"kernel/reference mismatch: max|diff|={max_diff}"

    print("KERNEL_OK")
</pallas_src>

<mosaic_0001>
module attributes {stable_mosaic.version = 11 : i64} {
  func.func @kernel(%arg0: memref<8x1024xf32, #tpu.memory_space<vmem>>, %arg1: memref<8x32xf32, #tpu.memory_space<vmem>>, %arg2: memref<1024x392xf32, #tpu.memory_space<vmem>>, %arg3: memref<392x8xf32, #tpu.memory_space<vmem>>, %arg4: memref<8x392xf32, #tpu.memory_space<vmem>>, %arg5: memref<1x392xf32, #tpu.memory_space<vmem>>, %arg6: memref<1x392xf32, #tpu.memory_space<vmem>>, %arg7: memref<392x144xf32, #tpu.memory_space<vmem>>, %arg8: memref<144x16xf32, #tpu.memory_space<vmem>>, %arg9: memref<16x144xf32, #tpu.memory_space<vmem>>, %arg10: memref<1x144xf32, #tpu.memory_space<vmem>>, %arg11: memref<1x144xf32, #tpu.memory_space<vmem>>, %arg12: memref<144x16xf32, #tpu.memory_space<vmem>>, %arg13: memref<16x16xf32, #tpu.memory_space<vmem>>, %arg14: memref<16x16xf32, #tpu.memory_space<vmem>>, %arg15: memref<1x16xf32, #tpu.memory_space<vmem>>, %arg16: memref<1x16xf32, #tpu.memory_space<vmem>>, %arg17: memref<32x52xf32, #tpu.memory_space<vmem>>, %arg18: memref<52x4xf32, #tpu.memory_space<vmem>>, %arg19: memref<4x52xf32, #tpu.memory_space<vmem>>, %arg20: memref<1x52xf32, #tpu.memory_space<vmem>>, %arg21: memref<1x52xf32, #tpu.memory_space<vmem>>, %arg22: memref<52x40xf32, #tpu.memory_space<vmem>>, %arg23: memref<40x8xf32, #tpu.memory_space<vmem>>, %arg24: memref<8x40xf32, #tpu.memory_space<vmem>>, %arg25: memref<1x40xf32, #tpu.memory_space<vmem>>, %arg26: memref<1x40xf32, #tpu.memory_space<vmem>>, %arg27: memref<40x8xf32, #tpu.memory_space<vmem>>, %arg28: memref<8x8xf32, #tpu.memory_space<vmem>>, %arg29: memref<8x8xf32, #tpu.memory_space<vmem>>, %arg30: memref<1x8xf32, #tpu.memory_space<vmem>>, %arg31: memref<1x8xf32, #tpu.memory_space<vmem>>, %arg32: memref<16x256xf32, #tpu.memory_space<vmem>>, %arg33: memref<256x256xf32, #tpu.memory_space<vmem>>, %arg34: memref<1x256xf32, #tpu.memory_space<vmem>>, %arg35: memref<8x256xf32, #tpu.memory_space<vmem>>, %arg36: memref<256x256xf32, #tpu.memory_space<vmem>>, %arg37: memref<1x256xf32, #tpu.memory_space<vmem>>, %arg38: memref<256x1xf32, #tpu.memory_space<vmem>>, %arg39: memref<256x1xf32, #tpu.memory_space<vmem>>, %arg40: memref<1x1xf32, #tpu.memory_space<vmem>>, %arg41: memref<8x1xf32, #tpu.memory_space<vmem>>, %arg42: memref<8x256xf32, #tpu.memory_space<vmem>>, %arg43: memref<8x256xf32, #tpu.memory_space<vmem>>) attributes {dimension_semantics = [], scalar_prefetch = 0 : i64, scratch_operands = 2 : i64, tpu.core_type = #tpu.core_type<tc>} {
    %c0 = arith.constant 0 : index
    %c0_0 = arith.constant 0 : index
    %0 = vector.load %arg0[%c0, %c0_0] : memref<8x1024xf32, #tpu.memory_space<vmem>>, vector<8x1024xf32>
    %c0_1 = arith.constant 0 : index
    %c0_2 = arith.constant 0 : index
    %1 = vector.load %arg2[%c0_1, %c0_2] : memref<1024x392xf32, #tpu.memory_space<vmem>>, vector<1024x392xf32>
    %cst = arith.constant dense<0.000000e+00> : vector<8x392xf32>
    %2 = tpu.matmul %0, %1, %cst {dimension_numbers = #tpu.dot_dimension_numbers<[1], [0], [0], [1], [0, 0, 1, 1], [], []>} : vector<8x1024xf32>, vector<1024x392xf32>, vector<8x392xf32> -> vector<8x392xf32>
    %cst_3 = arith.constant dense<0.000000e+00> : vector<392xf32>
    %3 = vector.multi_reduction <add>, %2, %cst_3 [0] : vector<8x392xf32> to vector<392xf32>
    %4 = vector.shape_cast %3 : vector<392xf32> to vector<1x392xf32>
    %c0_4 = arith.constant 0 : index
    %c0_5 = arith.constant 0 : index
    %5 = vector.load %arg3[%c0_4, %c0_5] : memref<392x8xf32, #tpu.memory_space<vmem>>, vector<392x8xf32>
    %cst_6 = arith.constant dense<0.000000e+00> : vector<1x8xf32>
    %6 = tpu.matmul %4, %5, %cst_6 {dimension_numbers = #tpu.dot_dimension_numbers<[1], [0], [0], [1], [0, 0, 1, 1], [], []>} : vector<1x392xf32>, vector<392x8xf32>, vector<1x8xf32> -> vector<1x8xf32>
    %cst_7 = arith.constant 0.00255102036 : f32
    %7 = vector.broadcast %cst_7 : f32 to vector<1x8xf32>
    %8 = arith.mulf %6, %7 : vector<1x8xf32>
    %c0_8 = arith.constant 0 : index
    %c0_9 = arith.constant 0 : index
    %9 = vector.load %arg4[%c0_8, %c0_9] : memref<8x392xf32, #tpu.memory_space<vmem>>, vector<8x392xf32>
    %cst_10 = arith.constant dense<0.000000e+00> : vector<1x392xf32>
    %10 = tpu.matmul %8, %9, %cst_10 {dimension_numbers = #tpu.dot_dimension_numbers<[1], [0], [0], [1], [0, 0, 1, 1], [], []>} : vector<1x8xf32>, vector<8x392xf32>, vector<1x392xf32> -> vector<1x392xf32>
    %11 = vector.broadcast %10 : vector<1x392xf32> to vector<8x392xf32>
    %12 = arith.subf %2, %11 : vector<8x392xf32>
    %13 = arith.mulf %12, %12 : vector<8x392xf32>
    %cst_11 = arith.constant dense<0.000000e+00> : vector<392xf32>
    %14 = vector.multi_reduction <add>, %13, %cst_11 [0] : vector<8x392xf32> to vector<392xf32>
    %15 = vector.shape_cast %14 : vector<392xf32> to vector<1x392xf32>
    %c0_12 = arith.constant 0 : index
    %c0_13 = arith.constant 0 : index
    %16 = vector.load %arg3[%c0_12, %c0_13] : memref<392x8xf32, #tpu.memory_space<vmem>>, vector<392x8xf32>
    %cst_14 = arith.constant dense<0.000000e+00> : vector<1x8xf32>
    %17 = tpu.matmul %15, %16, %cst_14 {dimension_numbers = #tpu.dot_dimension_numbers<[1], [0], [0], [1], [0, 0, 1, 1], [], []>} : vector<1x392xf32>, vector<392x8xf32>, vector<1x8xf32> -> vector<1x8xf32>
    %cst_15 = arith.constant 0.00255102036 : f32
    %18 = vector.broadcast %cst_15 : f32 to vector<1x8xf32>
    %19 = arith.mulf %17, %18 : vector<1x8xf32>
    %cst_16 = arith.constant 9.99999974E-6 : f32
    %20 = vector.broadcast %cst_16 : f32 to vector<1x8xf32>
    %21 = arith.addf %19, %20 : vector<1x8xf32>
    %22 = math.rsqrt %21 : vector<1x8xf32>
    %c0_17 = arith.constant 0 : index
    %c0_18 = arith.constant 0 : index
    %23 = vector.load %arg4[%c0_17, %c0_18] : memref<8x392xf32, #tpu.memory_space<vmem>>, vector<8x392xf32>
    %cst_19 = arith.constant dense<0.000000e+00> : vector<1x392xf32>
    %24 = tpu.matmul %22, %23, %cst_19 {dimension_numbers = #tpu.dot_dimension_numbers<[1], [0], [0], [1], [0, 0, 1, 1], [], []>} : vector<1x8xf32>, vector<8x392xf32>, vector<1x392xf32> -> vector<1x392xf32>
    %25 = vector.broadcast %24 : vector<1x392xf32> to vector<8x392xf32>
    %26 = arith.mulf %12, %25 : vector<8x392xf32>
    %c0_20 = arith.constant 0 : index
    %c0_21 = arith.constant 0 : index
    %27 = vector.load %arg5[%c0_20, %c0_21] : memref<1x392xf32, #tpu.memory_space<vmem>>, vector<1x392xf32>
    %28 = vector.broadcast %27 : vector<1x392xf32> to vector<8x392xf32>
    %29 = arith.mulf %26, %28 : vector<8x392xf32>
    %c0_22 = arith.constant 0 : index
    %c0_23 = arith.constant 0 : index
    %30 = vector.load %arg6[%c0_22, %c0_23] : memref<1x392xf32, #tpu.memory_space<vmem>>, vector<1x392xf32>
    %31 = vector.broadcast %30 : vector<1x392xf32> to vector<8x392xf32>
    %32 = arith.addf %29, %31 : vector<8x392xf32>
    %cst_24 = arith.constant 0.000000e+00 : f32
    %33 = vector.broadcast %cst_24 : f32 to vector<8x392xf32>
    %34 = arith.cmpf oge, %32, %33 : vector<8x392xf32>
    %cst_25 = arith.constant 0.00999999977 : f32
    %35 = vector.broadcast %cst_25 : f32 to vector<8x392xf32>
    %36 = arith.mulf %35, %32 : vector<8x392xf32>
    %37 = arith.select %34, %32, %36 : vector<8x392xi1>, vector<8x392xf32>
    %c0_26 = arith.constant 0 : index
    %c0_27 = arith.constant 0 : index
    %38 = vector.load %arg7[%c0_26, %c0_27] : memref<392x144xf32, #tpu.memory_space<vmem>>, vector<392x144xf32>
    %cst_28 = arith.constant dense<0.000000e+00> : vector<8x144xf32>
    %39 = tpu.matmul %37, %38, %cst_28 {dimension_numbers = #tpu.dot_dimension_numbers<[1], [0], [0], [1], [0, 0, 1, 1], [], []>} : vector<8x392xf32>, vector<392x144xf32>, vector<8x144xf32> -> vector<8x144xf32>
    %cst_29 = arith.constant dense<0.000000e+00> : vector<144xf32>
    %40 = vector.multi_reduction <add>, %39, %cst_29 [0] : vector<8x144xf32> to vector<144xf32>
    %41 = vector.shape_cast %40 : vector<144xf32> to vector<1x144xf32>
    %c0_30 = arith.constant 0 : index
    %c0_31 = arith.constant 0 : index
    %42 = vector.load %arg8[%c0_30, %c0_31] : memref<144x16xf32, #tpu.memory_space<vmem>>, vector<144x16xf32>
    %cst_32 = arith.constant dense<0.000000e+00> : vector<1x16xf32>
    %43 = tpu.matmul %41, %42, %cst_32 {dimension_numbers = #tpu.dot_dimension_numbers<[1], [0], [0], [1], [0, 0, 1, 1], [], []>} : vector<1x144xf32>, vector<144x16xf32>, vector<1x16xf32> -> vector<1x16xf32>
    %cst_33 = arith.constant 0.013888889 : f32
    %44 = vector.broadcast %cst_33 : f32 to vector<1x16xf32>
    %45 = arith.mulf %43, %44 : vector<1x16xf32>
    %c0_34 = arith.constant 0 : index
    %c0_35 = arith.constant 0 : index
    %46 = vector.load %arg9[%c0_34, %c0_35] : memref<16x144xf32, #tpu.memory_space<vmem>>, vector<16x144xf32>
    %cst_36 = arith.constant dense<0.000000e+00> : vector<1x144xf32>
    %47 = tpu.matmul %45, %46, %cst_36 {dimension_numbers = #tpu.dot_dimension_numbers<[1], [0], [0], [1], [0, 0, 1, 1], [], []>} : vector<1x16xf32>, vector<16x144xf32>, vector<1x144xf32> -> vector<1x144xf32>
    %48 = vector.broadcast %47 : vector<1x144xf32> to vector<8x144xf32>
    %49 = arith.subf %39, %48 : vector<8x144xf32>
    %50 = arith.mulf %49, %49 : vector<8x144xf32>
    %cst_37 = arith.constant dense<0.000000e+00> : vector<144xf32>
    %51 = vector.multi_reduction <add>, %50, %cst_37 [0] : vector<8x144xf32> to vector<144xf32>
    %52 = vector.shape_cast %51 : vector<144xf32> to vector<1x144xf32>
    %c0_38 = arith.constant 0 : index
    %c0_39 = arith.constant 0 : index
    %53 = vector.load %arg8[%c0_38, %c0_39] : memref<144x16xf32, #tpu.memory_space<vmem>>, vector<144x16xf32>
    %cst_40 = arith.constant dense<0.000000e+00> : vector<1x16xf32>
    %54 = tpu.matmul %52, %53, %cst_40 {dimension_numbers = #tpu.dot_dimension_numbers<[1], [0], [0], [1], [0, 0, 1, 1], [], []>} : vector<1x144xf32>, vector<144x16xf32>, vector<1x16xf32> -> vector<1x16xf32>
    %cst_41 = arith.constant 0.013888889 : f32
    %55 = vector.broadcast %cst_41 : f32 to vector<1x16xf32>
    %56 = arith.mulf %54, %55 : vector<1x16xf32>
    %cst_42 = arith.constant 9.99999974E-6 : f32
    %57 = vector.broadcast %cst_42 : f32 to vector<1x16xf32>
    %58 = arith.addf %56, %57 : vector<1x16xf32>
    %59 = math.rsqrt %58 : vector<1x16xf32>
    %c0_43 = arith.constant 0 : index
    %c0_44 = arith.constant 0 : index
    %60 = vector.load %arg9[%c0_43, %c0_44] : memref<16x144xf32, #tpu.memory_space<vmem>>, vector<16x144xf32>
    %cst_45 = arith.constant dense<0.000000e+00> : vector<1x144xf32>
    %61 = tpu.matmul %59, %60, %cst_45 {dimension_numbers = #tpu.dot_dimension_numbers<[1], [0], [0], [1], [0, 0, 1, 1], [], []>} : vector<1x16xf32>, vector<16x144xf32>, vector<1x144xf32> -> vector<1x144xf32>
    %62 = vector.broadcast %61 : vector<1x144xf32> to vector<8x144xf32>
    %63 = arith.mulf %49, %62 : vector<8x144xf32>
    %c0_46 = arith.constant 0 : index
    %c0_47 = arith.constant 0 : index
    %64 = vector.load %arg10[%c0_46, %c0_47] : memref<1x144xf32, #tpu.memory_space<vmem>>, vector<1x144xf32>
    %65 = vector.broadcast %64 : vector<1x144xf32> to vector<8x144xf32>
    %66 = arith.mulf %63, %65 : vector<8x144xf32>
    %c0_48 = arith.constant 0 : index
    %c0_49 = arith.constant 0 : index
    %67 = vector.load %arg11[%c0_48, %c0_49] : memref<1x144xf32, #tpu.memory_space<vmem>>, vector<1x144xf32>
    %68 = vector.broadcast %67 : vector<1x144xf32> to vector<8x144xf32>
    %69 = arith.addf %66, %68 : vector<8x144xf32>
    %cst_50 = arith.constant 0.000000e+00 : f32
    %70 = vector.broadcast %cst_50 : f32 to vector<8x144xf32>
    %71 = arith.cmpf oge, %69, %70 : vector<8x144xf32>
    %cst_51 = arith.constant 0.00999999977 : f32
    %72 = vector.broadcast %cst_51 : f32 to vector<8x144xf32>
    %73 = arith.mulf %72, %69 : vector<8x144xf32>
    %74 = arith.select %71, %69, %73 : vector<8x144xi1>, vector<8x144xf32>
    %c0_52 = arith.constant 0 : index
    %c0_53 = arith.constant 0 : index
    %75 = vector.load %arg12[%c0_52, %c0_53] : memref<144x16xf32, #tpu.memory_space<vmem>>, vector<144x16xf32>
    %cst_54 = arith.constant dense<0.000000e+00> : vector<8x16xf32>
    %76 = tpu.matmul %74, %75, %cst_54 {dimension_numbers = #tpu.dot_dimension_numbers<[1], [0], [0], [1], [0, 0, 1, 1], [], []>} : vector<8x144xf32>, vector<144x16xf32>, vector<8x16xf32> -> vector<8x16xf32>
    %cst_55 = arith.constant dense<0.000000e+00> : vector<16xf32>
    %77 = vector.multi_reduction <add>, %76, %cst_55 [0] : vector<8x16xf32> to vector<16xf32>
    %78 = vector.shape_cast %77 : vector<16xf32> to vector<1x16xf32>
    %c0_56 = arith.constant 0 : index
    %c0_57 = arith.constant 0 : index
    %79 = vector.load %arg13[%c0_56, %c0_57] : memref<16x16xf32, #tpu.memory_space<vmem>>, vector<16x16xf32>
    %cst_58 = arith.constant dense<0.000000e+00> : vector<1x16xf32>
    %80 = tpu.matmul %78, %79, %cst_58 {dimension_numbers = #tpu.dot_dimension_numbers<[1], [0], [0], [1], [0, 0, 1, 1], [], []>} : vector<1x16xf32>, vector<16x16xf32>, vector<1x16xf32> -> vector<1x16xf32>
    %cst_59 = arith.constant 1.250000e-01 : f32
    %81 = vector.broadcast %cst_59 : f32 to vector<1x16xf32>
    %82 = arith.mulf %80, %81 : vector<1x16xf32>
    %c0_60 = arith.constant 0 : index
    %c0_61 = arith.constant 0 : index
    %83 = vector.load %arg14[%c0_60, %c0_61] : memref<16x16xf32, #tpu.memory_space<vmem>>, vector<16x16xf32>
    %cst_62 = arith.constant dense<0.000000e+00> : vector<1x16xf32>
    %84 = tpu.matmul %82, %83, %cst_62 {dimension_numbers = #tpu.dot_dimension_numbers<[1], [0], [0], [1], [0, 0, 1, 1], [], []>} : vector<1x16xf32>, vector<16x16xf32>, vector<1x16xf32> -> vector<1x16xf32>
    %85 = vector.broadcast %84 : vector<1x16xf32> to vector<8x16xf32>
    %86 = arith.subf %76, %85 : vector<8x16xf32>
    %87 = arith.mulf %86, %86 : vector<8x16xf32>
    %cst_63 = arith.constant dense<0.000000e+00> : vector<16xf32>
    %88 = vector.multi_reduction <add>, %87, %cst_63 [0] : vector<8x16xf32> to vector<16xf32>
    %89 = vector.shape_cast %88 : vector<16xf32> to vector<1x16xf32>
    %c0_64 = arith.constant 0 : index
    %c0_65 = arith.constant 0 : index
    %90 = vector.load %arg13[%c0_64, %c0_65] : memref<16x16xf32, #tpu.memory_space<vmem>>, vector<16x16xf32>
    %cst_66 = arith.constant dense<0.000000e+00> : vector<1x16xf32>
    %91 = tpu.matmul %89, %90, %cst_66 {dimension_numbers = #tpu.dot_dimension_numbers<[1], [0], [0], [1], [0, 0, 1, 1], [], []>} : vector<1x16xf32>, vector<16x16xf32>, vector<1x16xf32> -> vector<1x16xf32>
    %cst_67 = arith.constant 1.250000e-01 : f32
    %92 = vector.broadcast %cst_67 : f32 to vector<1x16xf32>
    %93 = arith.mulf %91, %92 : vector<1x16xf32>
    %cst_68 = arith.constant 9.99999974E-6 : f32
    %94 = vector.broadcast %cst_68 : f32 to vector<1x16xf32>
    %95 = arith.addf %93, %94 : vector<1x16xf32>
    %96 = math.rsqrt %95 : vector<1x16xf32>
    %c0_69 = arith.constant 0 : index
    %c0_70 = arith.constant 0 : index
    %97 = vector.load %arg14[%c0_69, %c0_70] : memref<16x16xf32, #tpu.memory_space<vmem>>, vector<16x16xf32>
    %cst_71 = arith.constant dense<0.000000e+00> : vector<1x16xf32>
    %98 = tpu.matmul %96, %97, %cst_71 {dimension_numbers = #tpu.dot_dimension_numbers<[1], [0], [0], [1], [0, 0, 1, 1], [], []>} : vector<1x16xf32>, vector<16x16xf32>, vector<1x16xf32> -> vector<1x16xf32>
    %99 = vector.broadcast %98 : vector<1x16xf32> to vector<8x16xf32>
    %100 = arith.mulf %86, %99 : vector<8x16xf32>
    %c0_72 = arith.constant 0 : index
    %c0_73 = arith.constant 0 : index
    %101 = vector.load %arg15[%c0_72, %c0_73] : memref<1x16xf32, #tpu.memory_space<vmem>>, vector<1x16xf32>
    %102 = vector.broadcast %101 : vector<1x16xf32> to vector<8x16xf32>
    %103 = arith.mulf %100, %102 : vector<8x16xf32>
    %c0_74 = arith.constant 0 : index
    %c0_75 = arith.constant 0 : index
    %104 = vector.load %arg16[%c0_74, %c0_75] : memref<1x16xf32, #tpu.memory_space<vmem>>, vector<1x16xf32>
    %105 = vector.broadcast %104 : vector<1x16xf32> to vector<8x16xf32>
    %106 = arith.addf %103, %105 : vector<8x16xf32>
    %cst_76 = arith.constant 0.000000e+00 : f32
    %107 = vector.broadcast %cst_76 : f32 to vector<8x16xf32>
    %108 = arith.cmpf oge, %106, %107 : vector<8x16xf32>
    %cst_77 = arith.constant 0.00999999977 : f32
    %109 = vector.broadcast %cst_77 : f32 to vector<8x16xf32>
    %110 = arith.mulf %109, %106 : vector<8x16xf32>
    %111 = arith.select %108, %106, %110 : vector<8x16xi1>, vector<8x16xf32>
    %c0_78 = arith.constant 0 : index
    %c0_79 = arith.constant 0 : index
    %112 = vector.load %arg1[%c0_78, %c0_79] : memref<8x32xf32, #tpu.memory_space<vmem>>, vector<8x32xf32>
    %c0_80 = arith.constant 0 : index
    %c0_81 = arith.constant 0 : index
    %113 = vector.load %arg17[%c0_80, %c0_81] : memref<32x52xf32, #tpu.memory_space<vmem>>, vector<32x52xf32>
    %cst_82 = arith.constant dense<0.000000e+00> : vector<8x52xf32>
    %114 = tpu.matmul %112, %113, %cst_82 {dimension_numbers = #tpu.dot_dimension_numbers<[1], [0], [0], [1], [0, 0, 1, 1], [], []>} : vector<8x32xf32>, vector<32x52xf32>, vector<8x52xf32> -> vector<8x52xf32>
    %cst_83 = arith.constant dense<0.000000e+00> : vector<52xf32>
    %115 = vector.multi_reduction <add>, %114, %cst_83 [0] : vector<8x52xf32> to vector<52xf32>
    %116 = vector.shape_cast %115 : vector<52xf32> to vector<1x52xf32>
    %c0_84 = arith.constant 0 : index
    %c0_85 = arith.constant 0 : index
    %117 = vector.load %arg18[%c0_84, %c0_85] : memref<52x4xf32, #tpu.memory_space<vmem>>, vector<52x4xf32>
    %cst_86 = arith.constant dense<0.000000e+00> : vector<1x4xf32>
    %118 = tpu.matmul %116, %117, %cst_86 {dimension_numbers = #tpu.dot_dimension_numbers<[1], [0], [0], [1], [0, 0, 1, 1], [], []>} : vector<1x52xf32>, vector<52x4xf32>, vector<1x4xf32> -> vector<1x4xf32>
    %cst_87 = arith.constant 0.00961538497 : f32
    %119 = vector.broadcast %cst_87 : f32 to vector<1x4xf32>
    %120 = arith.mulf %118, %119 : vector<1x4xf32>
    %c0_88 = arith.constant 0 : index
    %c0_89 = arith.constant 0 : index
    %121 = vector.load %arg19[%c0_88, %c0_89] : memref<4x52xf32, #tpu.memory_space<vmem>>, vector<4x52xf32>
    %cst_90 = arith.constant dense<0.000000e+00> : vector<1x52xf32>
    %122 = tpu.matmul %120, %121, %cst_90 {dimension_numbers = #tpu.dot_dimension_numbers<[1], [0], [0], [1], [0, 0, 1, 1], [], []>} : vector<1x4xf32>, vector<4x52xf32>, vector<1x52xf32> -> vector<1x52xf32>
    %123 = vector.broadcast %122 : vector<1x52xf32> to vector<8x52xf32>
    %124 = arith.subf %114, %123 : vector<8x52xf32>
    %125 = arith.mulf %124, %124 : vector<8x52xf32>
    %cst_91 = arith.constant dense<0.000000e+00> : vector<52xf32>
    %126 = vector.multi_reduction <add>, %125, %cst_91 [0] : vector<8x52xf32> to vector<52xf32>
    %127 = vector.shape_cast %126 : vector<52xf32> to vector<1x52xf32>
    %c0_92 = arith.constant 0 : index
    %c0_93 = arith.constant 0 : index
    %128 = vector.load %arg18[%c0_92, %c0_93] : memref<52x4xf32, #tpu.memory_space<vmem>>, vector<52x4xf32>
    %cst_94 = arith.constant dense<0.000000e+00> : vector<1x4xf32>
    %129 = tpu.matmul %127, %128, %cst_94 {dimension_numbers = #tpu.dot_dimension_numbers<[1], [0], [0], [1], [0, 0, 1, 1], [], []>} : vector<1x52xf32>, vector<52x4xf32>, vector<1x4xf32> -> vector<1x4xf32>
    %cst_95 = arith.constant 0.00961538497 : f32
    %130 = vector.broadcast %cst_95 : f32 to vector<1x4xf32>
    %131 = arith.mulf %129, %130 : vector<1x4xf32>
    %cst_96 = arith.constant 9.99999974E-6 : f32
    %132 = vector.broadcast %cst_96 : f32 to vector<1x4xf32>
    %133 = arith.addf %131, %132 : vector<1x4xf32>
    %134 = math.rsqrt %133 : vector<1x4xf32>
    %c0_97 = arith.constant 0 : index
    %c0_98 = arith.constant 0 : index
    %135 = vector.load %arg19[%c0_97, %c0_98] : memref<4x52xf32, #tpu.memory_space<vmem>>, vector<4x52xf32>
    %cst_99 = arith.constant dense<0.000000e+00> : vector<1x52xf32>
    %136 = tpu.matmul %134, %135, %cst_99 {dimension_numbers = #tpu.dot_dimension_numbers<[1], [0], [0], [1], [0, 0, 1, 1], [], []>} : vector<1x4xf32>, vector<4x52xf32>, vector<1x52xf32> -> vector<1x52xf32>
    %137 = vector.broadcast %136 : vector<1x52xf32> to vector<8x52xf32>
    %138 = arith.mulf %124, %137 : vector<8x52xf32>
    %c0_100 = arith.constant 0 : index
    %c0_101 = arith.constant 0 : index
    %139 = vector.load %arg20[%c0_100, %c0_101] : memref<1x52xf32, #tpu.memory_space<vmem>>, vector<1x52xf32>
    %140 = vector.broadcast %139 : vector<1x52xf32> to vector<8x52xf32>
    %141 = arith.mulf %138, %140 : vector<8x52xf32>
    %c0_102 = arith.constant 0 : index
    %c0_103 = arith.constant 0 : index
    %142 = vector.load %arg21[%c0_102, %c0_103] : memref<1x52xf32, #tpu.memory_space<vmem>>, vector<1x52xf32>
    %143 = vector.broadcast %142 : vector<1x52xf32> to vector<8x52xf32>
    %144 = arith.addf %141, %143 : vector<8x52xf32>
    %cst_104 = arith.constant 0.000000e+00 : f32
    %145 = vector.broadcast %cst_104 : f32 to vector<8x52xf32>
    %146 = arith.cmpf oge, %144, %145 : vector<8x52xf32>
    %cst_105 = arith.constant 0.00999999977 : f32
    %147 = vector.broadcast %cst_105 : f32 to vector<8x52xf32>
    %148 = arith.mulf %147, %144 : vector<8x52xf32>
    %149 = arith.select %146, %144, %148 : vector<8x52xi1>, vector<8x52xf32>
    %c0_106 = arith.constant 0 : index
    %c0_107 = arith.constant 0 : index
    %150 = vector.load %arg22[%c0_106, %c0_107] : memref<52x40xf32, #tpu.memory_space<vmem>>, vector<52x40xf32>
    %cst_108 = arith.constant dense<0.000000e+00> : vector<8x40xf32>
    %151 = tpu.matmul %149, %150, %cst_108 {dimension_numbers = #tpu.dot_dimension_numbers<[1], [0], [0], [1], [0, 0, 1, 1], [], []>} : vector<8x52xf32>, vector<52x40xf32>, vector<8x40xf32> -> vector<8x40xf32>
    %cst_109 = arith.constant dense<0.000000e+00> : vector<40xf32>
    %152 = vector.multi_reduction <add>, %151, %cst_109 [0] : vector<8x40xf32> to vector<40xf32>
    %153 = vector.shape_cast %152 : vector<40xf32> to vector<1x40xf32>
    %c0_110 = arith.constant 0 : index
    %c0_111 = arith.constant 0 : index
    %154 = vector.load %arg23[%c0_110, %c0_111] : memref<40x8xf32, #tpu.memory_space<vmem>>, vector<40x8xf32>
    %cst_112 = arith.constant dense<0.000000e+00> : vector<1x8xf32>
    %155 = tpu.matmul %153, %154, %cst_112 {dimension_numbers = #tpu.dot_dimension_numbers<[1], [0], [0], [1], [0, 0, 1, 1], [], []>} : vector<1x40xf32>, vector<40x8xf32>, vector<1x8xf32> -> vector<1x8xf32>
    %cst_113 = arith.constant 2.500000e-02 : f32
    %156 = vector.broadcast %cst_113 : f32 to vector<1x8xf32>
    %157 = arith.mulf %155, %156 : vector<1x8xf32>
    %c0_114 = arith.constant 0 : index
    %c0_115 = arith.constant 0 : index
    %158 = vector.load %arg24[%c0_114, %c0_115] : memref<8x40xf32, #tpu.memory_space<vmem>>, vector<8x40xf32>
    %cst_116 = arith.constant dense<0.000000e+00> : vector<1x40xf32>
    %159 = tpu.matmul %157, %158, %cst_116 {dimension_numbers = #tpu.dot_dimension_numbers<[1], [0], [0], [1], [0, 0, 1, 1], [], []>} : vector<1x8xf32>, vector<8x40xf32>, vector<1x40xf32> -> vector<1x40xf32>
    %160 = vector.broadcast %159 : vector<1x40xf32> to vector<8x40xf32>
    %161 = arith.subf %151, %160 : vector<8x40xf32>
    %162 = arith.mulf %161, %161 : vector<8x40xf32>
    %cst_117 = arith.constant dense<0.000000e+00> : vector<40xf32>
    %163 = vector.multi_reduction <add>, %162, %cst_117 [0] : vector<8x40xf32> to vector<40xf32>
    %164 = vector.shape_cast %163 : vector<40xf32> to vector<1x40xf32>
    %c0_118 = arith.constant 0 : index
    %c0_119 = arith.constant 0 : index
    %165 = vector.load %arg23[%c0_118, %c0_119] : memref<40x8xf32, #tpu.memory_space<vmem>>, vector<40x8xf32>
    %cst_120 = arith.constant dense<0.000000e+00> : vector<1x8xf32>
    %166 = tpu.matmul %164, %165, %cst_120 {dimension_numbers = #tpu.dot_dimension_numbers<[1], [0], [0], [1], [0, 0, 1, 1], [], []>} : vector<1x40xf32>, vector<40x8xf32>, vector<1x8xf32> -> vector<1x8xf32>
    %cst_121 = arith.constant 2.500000e-02 : f32
    %167 = vector.broadcast %cst_121 : f32 to vector<1x8xf32>
    %168 = arith.mulf %166, %167 : vector<1x8xf32>
    %cst_122 = arith.constant 9.99999974E-6 : f32
    %169 = vector.broadcast %cst_122 : f32 to vector<1x8xf32>
    %170 = arith.addf %168, %169 : vector<1x8xf32>
    %171 = math.rsqrt %170 : vector<1x8xf32>
    %c0_123 = arith.constant 0 : index
    %c0_124 = arith.constant 0 : index
    %172 = vector.load %arg24[%c0_123, %c0_124] : memref<8x40xf32, #tpu.memory_space<vmem>>, vector<8x40xf32>
    %cst_125 = arith.constant dense<0.000000e+00> : vector<1x40xf32>
    %173 = tpu.matmul %171, %172, %cst_125 {dimension_numbers = #tpu.dot_dimension_numbers<[1], [0], [0], [1], [0, 0, 1, 1], [], []>} : vector<1x8xf32>, vector<8x40xf32>, vector<1x40xf32> -> vector<1x40xf32>
    %174 = vector.broadcast %173 : vector<1x40xf32> to vector<8x40xf32>
    %175 = arith.mulf %161, %174 : vector<8x40xf32>
    %c0_126 = arith.constant 0 : index
    %c0_127 = arith.constant 0 : index
    %176 = vector.load %arg25[%c0_126, %c0_127] : memref<1x40xf32, #tpu.memory_space<vmem>>, vector<1x40xf32>
    %177 = vector.broadcast %176 : vector<1x40xf32> to vector<8x40xf32>
    %178 = arith.mulf %175, %177 : vector<8x40xf32>
    %c0_128 = arith.constant 0 : index
    %c0_129 = arith.constant 0 : index
    %179 = vector.load %arg26[%c0_128, %c0_129] : memref<1x40xf32, #tpu.memory_space<vmem>>, vector<1x40xf32>
    %180 = vector.broadcast %179 : vector<1x40xf32> to vector<8x40xf32>
    %181 = arith.addf %178, %180 : vector<8x40xf32>
    %cst_130 = arith.constant 0.000000e+00 : f32
    %182 = vector.broadcast %cst_130 : f32 to vector<8x40xf32>
    %183 = arith.cmpf oge, %181, %182 : vector<8x40xf32>
    %cst_131 = arith.constant 0.00999999977 : f32
    %184 = vector.broadcast %cst_131 : f32 to vector<8x40xf32>
    %185 = arith.mulf %184, %181 : vector<8x40xf32>
    %186 = arith.select %183, %181, %185 : vector<8x40xi1>, vector<8x40xf32>
    %c0_132 = arith.constant 0 : index
    %c0_133 = arith.constant 0 : index
    %187 = vector.load %arg27[%c0_132, %c0_133] : memref<40x8xf32, #tpu.memory_space<vmem>>, vector<40x8xf32>
    %cst_134 = arith.constant dense<0.000000e+00> : vector<8x8xf32>
    %188 = tpu.matmul %186, %187, %cst_134 {dimension_numbers = #tpu.dot_dimension_numbers<[1], [0], [0], [1], [0, 0, 1, 1], [], []>} : vector<8x40xf32>, vector<40x8xf32>, vector<8x8xf32> -> vector<8x8xf32>
    %cst_135 = arith.constant dense<0.000000e+00> : vector<8xf32>
    %189 = vector.multi_reduction <add>, %188, %cst_135 [0] : vector<8x8xf32> to vector<8xf32>
    %190 = vector.shape_cast %189 : vector<8xf32> to vector<1x8xf32>
    %c0_136 = arith.constant 0 : index
    %c0_137 = arith.constant 0 : index
    %191 = vector.load %arg28[%c0_136, %c0_137] : memref<8x8xf32, #tpu.memory_space<vmem>>, vector<8x8xf32>
    %cst_138 = arith.constant dense<0.000000e+00> : vector<1x8xf32>
    %192 = tpu.matmul %190, %191, %cst_138 {dimension_numbers = #tpu.dot_dimension_numbers<[1], [0], [0], [1], [0, 0, 1, 1], [], []>} : vector<1x8xf32>, vector<8x8xf32>, vector<1x8xf32> -> vector<1x8xf32>
    %cst_139 = arith.constant 1.250000e-01 : f32
    %193 = vector.broadcast %cst_139 : f32 to vector<1x8xf32>
    %194 = arith.mulf %192, %193 : vector<1x8xf32>
    %c0_140 = arith.constant 0 : index
    %c0_141 = arith.constant 0 : index
    %195 = vector.load %arg29[%c0_140, %c0_141] : memref<8x8xf32, #tpu.memory_space<vmem>>, vector<8x8xf32>
    %cst_142 = arith.constant dense<0.000000e+00> : vector<1x8xf32>
    %196 = tpu.matmul %194, %195, %cst_142 {dimension_numbers = #tpu.dot_dimension_numbers<[1], [0], [0], [1], [0, 0, 1, 1], [], []>} : vector<1x8xf32>, vector<8x8xf32>, vector<1x8xf32> -> vector<1x8xf32>
    %197 = vector.broadcast %196 : vector<1x8xf32> to vector<8x8xf32>
    %198 = arith.subf %188, %197 : vector<8x8xf32>
    %199 = arith.mulf %198, %198 : vector<8x8xf32>
    %cst_143 = arith.constant dense<0.000000e+00> : vector<8xf32>
    %200 = vector.multi_reduction <add>, %199, %cst_143 [0] : vector<8x8xf32> to vector<8xf32>
    %201 = vector.shape_cast %200 : vector<8xf32> to vector<1x8xf32>
    %c0_144 = arith.constant 0 : index
    %c0_145 = arith.constant 0 : index
    %202 = vector.load %arg28[%c0_144, %c0_145] : memref<8x8xf32, #tpu.memory_space<vmem>>, vector<8x8xf32>
    %cst_146 = arith.constant dense<0.000000e+00> : vector<1x8xf32>
    %203 = tpu.matmul %201, %202, %cst_146 {dimension_numbers = #tpu.dot_dimension_numbers<[1], [0], [0], [1], [0, 0, 1, 1], [], []>} : vector<1x8xf32>, vector<8x8xf32>, vector<1x8xf32> -> vector<1x8xf32>
    %cst_147 = arith.constant 1.250000e-01 : f32
    %204 = vector.broadcast %cst_147 : f32 to vector<1x8xf32>
    %205 = arith.mulf %203, %204 : vector<1x8xf32>
    %cst_148 = arith.constant 9.99999974E-6 : f32
    %206 = vector.broadcast %cst_148 : f32 to vector<1x8xf32>
    %207 = arith.addf %205, %206 : vector<1x8xf32>
    %208 = math.rsqrt %207 : vector<1x8xf32>
    %c0_149 = arith.constant 0 : index
    %c0_150 = arith.constant 0 : index
    %209 = vector.load %arg29[%c0_149, %c0_150] : memref<8x8xf32, #tpu.memory_space<vmem>>, vector<8x8xf32>
    %cst_151 = arith.constant dense<0.000000e+00> : vector<1x8xf32>
    %210 = tpu.matmul %208, %209, %cst_151 {dimension_numbers = #tpu.dot_dimension_numbers<[1], [0], [0], [1], [0, 0, 1, 1], [], []>} : vector<1x8xf32>, vector<8x8xf32>, vector<1x8xf32> -> vector<1x8xf32>
    %211 = vector.broadcast %210 : vector<1x8xf32> to vector<8x8xf32>
    %212 = arith.mulf %198, %211 : vector<8x8xf32>
    %c0_152 = arith.constant 0 : index
    %c0_153 = arith.constant 0 : index
    %213 = vector.load %arg30[%c0_152, %c0_153] : memref<1x8xf32, #tpu.memory_space<vmem>>, vector<1x8xf32>
    %214 = vector.broadcast %213 : vector<1x8xf32> to vector<8x8xf32>
    %215 = arith.mulf %212, %214 : vector<8x8xf32>
    %c0_154 = arith.constant 0 : index
    %c0_155 = arith.constant 0 : index
    %216 = vector.load %arg31[%c0_154, %c0_155] : memref<1x8xf32, #tpu.memory_space<vmem>>, vector<1x8xf32>
    %217 = vector.broadcast %216 : vector<1x8xf32> to vector<8x8xf32>
    %218 = arith.addf %215, %217 : vector<8x8xf32>
    %cst_156 = arith.constant 0.000000e+00 : f32
    %219 = vector.broadcast %cst_156 : f32 to vector<8x8xf32>
    %220 = arith.cmpf oge, %218, %219 : vector<8x8xf32>
    %cst_157 = arith.constant 0.00999999977 : f32
    %221 = vector.broadcast %cst_157 : f32 to vector<8x8xf32>
    %222 = arith.mulf %221, %218 : vector<8x8xf32>
    %223 = arith.select %220, %218, %222 : vector<8x8xi1>, vector<8x8xf32>
    %c0_158 = arith.constant 0 : index
    %c0_159 = arith.constant 0 : index
    %224 = vector.load %arg32[%c0_158, %c0_159] : memref<16x256xf32, #tpu.memory_space<vmem>>, vector<16x256xf32>
    %cst_160 = arith.constant dense<0.000000e+00> : vector<8x256xf32>
    %225 = tpu.matmul %111, %224, %cst_160 {dimension_numbers = #tpu.dot_dimension_numbers<[1], [0], [0], [1], [0, 0, 1, 1], [], []>} : vector<8x16xf32>, vector<16x256xf32>, vector<8x256xf32> -> vector<8x256xf32>
    %c0_161 = arith.constant 0 : index
    %c0_162 = arith.constant 0 : index
    %226 = vector.load %arg34[%c0_161, %c0_162] : memref<1x256xf32, #tpu.memory_space<vmem>>, vector<1x256xf32>
    %227 = vector.broadcast %226 : vector<1x256xf32> to vector<8x256xf32>
    %228 = arith.addf %225, %227 : vector<8x256xf32>
    %c0_163 = arith.constant 0 : index
    %c0_164 = arith.constant 0 : index
    %229 = vector.load %arg35[%c0_163, %c0_164] : memref<8x256xf32, #tpu.memory_space<vmem>>, vector<8x256xf32>
    %cst_165 = arith.constant dense<0.000000e+00> : vector<8x256xf32>
    %230 = tpu.matmul %223, %229, %cst_165 {dimension_numbers = #tpu.dot_dimension_numbers<[1], [0], [0], [1], [0, 0, 1, 1], [], []>} : vector<8x8xf32>, vector<8x256xf32>, vector<8x256xf32> -> vector<8x256xf32>
    %c0_166 = arith.constant 0 : index
    %c0_167 = arith.constant 0 : index
    %231 = vector.load %arg37[%c0_166, %c0_167] : memref<1x256xf32, #tpu.memory_space<vmem>>, vector<1x256xf32>
    %232 = vector.broadcast %231 : vector<1x256xf32> to vector<8x256xf32>
    %233 = arith.addf %230, %232 : vector<8x256xf32>
    %cst_168 = arith.constant 0.000000e+00 : f32
    %234 = vector.broadcast %cst_168 : f32 to vector<1x256xf32>
    %cst_169 = arith.constant 0.000000e+00 : f32
    %235 = vector.broadcast %cst_169 : f32 to vector<1x256xf32>
    %236 = vector.extract_strided_slice %228 {offsets = [0, 0], sizes = [1, 256], strides = [1, 1]} : vector<8x256xf32> to vector<1x256xf32>
    %c0_170 = arith.constant 0 : index
    %c0_171 = arith.constant 0 : index
    %237 = vector.load %arg33[%c0_170, %c0_171] : memref<256x256xf32, #tpu.memory_space<vmem>>, vector<256x256xf32>
    %cst_172 = arith.constant dense<0.000000e+00> : vector<1x256xf32>
    %238 = tpu.matmul %234, %237, %cst_172 {dimension_numbers = #tpu.dot_dimension_numbers<[1], [0], [0], [1], [0, 0, 1, 1], [], []>} : vector<1x256xf32>, vector<256x256xf32>, vector<1x256xf32> -> vector<1x256xf32>
    %239 = arith.addf %236, %238 : vector<1x256xf32>
    %240 = math.tanh %239 : vector<1x256xf32>
    %241 = vector.extract_strided_slice %233 {offsets = [0, 0], sizes = [1, 256], strides = [1, 1]} : vector<8x256xf32> to vector<1x256xf32>
    %c0_173 = arith.constant 0 : index
    %c0_174 = arith.constant 0 : index
    %242 = vector.load %arg36[%c0_173, %c0_174] : memref<256x256xf32, #tpu.memory_space<vmem>>, vector<256x256xf32>
    %cst_175 = arith.constant dense<0.000000e+00> : vector<1x256xf32>
    %243 = tpu.matmul %235, %242, %cst_175 {dimension_numbers = #tpu.dot_dimension_numbers<[1], [0], [0], [1], [0, 0, 1, 1], [], []>} : vector<1x256xf32>, vector<256x256xf32>, vector<1x256xf32> -> vector<1x256xf32>
    %244 = arith.addf %241, %243 : vector<1x256xf32>
    %245 = math.tanh %244 : vector<1x256xf32>
    %c0_176 = arith.constant 0 : index
    %c0_177 = arith.constant 0 : index
    %246 = vector.load %arg42[%c0_176, %c0_177] : memref<8x256xf32, #tpu.memory_space<vmem>>, vector<1x256xf32>
    tpu.vector_store %arg42[%c0_176, %c0_177], %240 {strides = array<i32>} : memref<8x256xf32, #tpu.memory_space<vmem>>, vector<1x256xf32>,
    %c0_178 = arith.constant 0 : index
    %c0_179 = arith.constant 0 : index
    %247 = vector.load %arg43[%c0_178, %c0_179] : memref<8x256xf32, #tpu.memory_space<vmem>>, vector<1x256xf32>
    tpu.vector_store %arg43[%c0_178, %c0_179], %245 {strides = array<i32>} : memref<8x256xf32, #tpu.memory_space<vmem>>, vector<1x256xf32>,
    %248 = vector.extract_strided_slice %228 {offsets = [1, 0], sizes = [1, 256], strides = [1, 1]} : vector<8x256xf32> to vector<1x256xf32>
    %c0_180 = arith.constant 0 : index
    %c0_181 = arith.constant 0 : index
    %249 = vector.load %arg33[%c0_180, %c0_181] : memref<256x256xf32, #tpu.memory_space<vmem>>, vector<256x256xf32>
    %cst_182 = arith.constant dense<0.000000e+00> : vector<1x256xf32>
    %250 = tpu.matmul %240, %249, %cst_182 {dimension_numbers = #tpu.dot_dimension_numbers<[1], [0], [0], [1], [0, 0, 1, 1], [], []>} : vector<1x256xf32>, vector<256x256xf32>, vector<1x256xf32> -> vector<1x256xf32>
    %251 = arith.addf %248, %250 : vector<1x256xf32>
    %252 = math.tanh %251 : vector<1x256xf32>
    %253 = vector.extract_strided_slice %233 {offsets = [1, 0], sizes = [1, 256], strides = [1, 1]} : vector<8x256xf32> to vector<1x256xf32>
    %c0_183 = arith.constant 0 : index
    %c0_184 = arith.constant 0 : index
    %254 = vector.load %arg36[%c0_183, %c0_184] : memref<256x256xf32, #tpu.memory_space<vmem>>, vector<256x256xf32>
    %cst_185 = arith.constant dense<0.000000e+00> : vector<1x256xf32>
    %255 = tpu.matmul %245, %254, %cst_185 {dimension_numbers = #tpu.dot_dimension_numbers<[1], [0], [0], [1], [0, 0, 1, 1], [], []>} : vector<1x256xf32>, vector<256x256xf32>, vector<1x256xf32> -> vector<1x256xf32>
    %256 = arith.addf %253, %255 : vector<1x256xf32>
    %257 = math.tanh %256 : vector<1x256xf32>
    %c1 = arith.constant 1 : index
    %c0_186 = arith.constant 0 : index
    %258 = vector.load %arg42[%c1, %c0_186] : memref<8x256xf32, #tpu.memory_space<vmem>>, vector<1x256xf32>
    tpu.vector_store %arg42[%c1, %c0_186], %252 {strides = array<i32>} : memref<8x256xf32, #tpu.memory_space<vmem>>, vector<1x256xf32>,
    %c1_187 = arith.constant 1 : index
    %c0_188 = arith.constant 0 : index
    %259 = vector.load %arg43[%c1_187, %c0_188] : memref<8x256xf32, #tpu.memory_space<vmem>>, vector<1x256xf32>
    tpu.vector_store %arg43[%c1_187, %c0_188], %257 {strides = array<i32>} : memref<8x256xf32, #tpu.memory_space<vmem>>, vector<1x256xf32>,
    %260 = vector.extract_strided_slice %228 {offsets = [2, 0], sizes = [1, 256], strides = [1, 1]} : vector<8x256xf32> to vector<1x256xf32>
    %c0_189 = arith.constant 0 : index
    %c0_190 = arith.constant 0 : index
    %261 = vector.load %arg33[%c0_189, %c0_190] : memref<256x256xf32, #tpu.memory_space<vmem>>, vector<256x256xf32>
    %cst_191 = arith.constant dense<0.000000e+00> : vector<1x256xf32>
    %262 = tpu.matmul %252, %261, %cst_191 {dimension_numbers = #tpu.dot_dimension_numbers<[1], [0], [0], [1], [0, 0, 1, 1], [], []>} : vector<1x256xf32>, vector<256x256xf32>, vector<1x256xf32> -> vector<1x256xf32>
    %263 = arith.addf %260, %262 : vector<1x256xf32>
    %264 = math.tanh %263 : vector<1x256xf32>
    %265 = vector.extract_strided_slice %233 {offsets = [2, 0], sizes = [1, 256], strides = [1, 1]} : vector<8x256xf32> to vector<1x256xf32>
    %c0_192 = arith.constant 0 : index
    %c0_193 = arith.constant 0 : index
    %266 = vector.load %arg36[%c0_192, %c0_193] : memref<256x256xf32, #tpu.memory_space<vmem>>, vector<256x256xf32>
    %cst_194 = arith.constant dense<0.000000e+00> : vector<1x256xf32>
    %267 = tpu.matmul %257, %266, %cst_194 {dimension_numbers = #tpu.dot_dimension_numbers<[1], [0], [0], [1], [0, 0, 1, 1], [], []>} : vector<1x256xf32>, vector<256x256xf32>, vector<1x256xf32> -> vector<1x256xf32>
    %268 = arith.addf %265, %267 : vector<1x256xf32>
    %269 = math.tanh %268 : vector<1x256xf32>
    %c2 = arith.constant 2 : index
    %c0_195 = arith.constant 0 : index
    %270 = vector.load %arg42[%c2, %c0_195] : memref<8x256xf32, #tpu.memory_space<vmem>>, vector<1x256xf32>
    tpu.vector_store %arg42[%c2, %c0_195], %264 {strides = array<i32>} : memref<8x256xf32, #tpu.memory_space<vmem>>, vector<1x256xf32>,
    %c2_196 = arith.constant 2 : index
    %c0_197 = arith.constant 0 : index
    %271 = vector.load %arg43[%c2_196, %c0_197] : memref<8x256xf32, #tpu.memory_space<vmem>>, vector<1x256xf32>
    tpu.vector_store %arg43[%c2_196, %c0_197], %269 {strides = array<i32>} : memref<8x256xf32, #tpu.memory_space<vmem>>, vector<1x256xf32>,
    %272 = vector.extract_strided_slice %228 {offsets = [3, 0], sizes = [1, 256], strides = [1, 1]} : vector<8x256xf32> to vector<1x256xf32>
    %c0_198 = arith.constant 0 : index
    %c0_199 = arith.constant 0 : index
    %273 = vector.load %arg33[%c0_198, %c0_199] : memref<256x256xf32, #tpu.memory_space<vmem>>, vector<256x256xf32>
    %cst_200 = arith.constant dense<0.000000e+00> : vector<1x256xf32>
    %274 = tpu.matmul %264, %273, %cst_200 {dimension_numbers = #tpu.dot_dimension_numbers<[1], [0], [0], [1], [0, 0, 1, 1], [], []>} : vector<1x256xf32>, vector<256x256xf32>, vector<1x256xf32> -> vector<1x256xf32>
    %275 = arith.addf %272, %274 : vector<1x256xf32>
    %276 = math.tanh %275 : vector<1x256xf32>
    %277 = vector.extract_strided_slice %233 {offsets = [3, 0], sizes = [1, 256], strides = [1, 1]} : vector<8x256xf32> to vector<1x256xf32>
    %c0_201 = arith.constant 0 : index
    %c0_202 = arith.constant 0 : index
    %278 = vector.load %arg36[%c0_201, %c0_202] : memref<256x256xf32, #tpu.memory_space<vmem>>, vector<256x256xf32>
    %cst_203 = arith.constant dense<0.000000e+00> : vector<1x256xf32>
    %279 = tpu.matmul %269, %278, %cst_203 {dimension_numbers = #tpu.dot_dimension_numbers<[1], [0], [0], [1], [0, 0, 1, 1], [], []>} : vector<1x256xf32>, vector<256x256xf32>, vector<1x256xf32> -> vector<1x256xf32>
    %280 = arith.addf %277, %279 : vector<1x256xf32>
    %281 = math.tanh %280 : vector<1x256xf32>
    %c3 = arith.constant 3 : index
    %c0_204 = arith.constant 0 : index
    %282 = vector.load %arg42[%c3, %c0_204] : memref<8x256xf32, #tpu.memory_space<vmem>>, vector<1x256xf32>
    tpu.vector_store %arg42[%c3, %c0_204], %276 {strides = array<i32>} : memref<8x256xf32, #tpu.memory_space<vmem>>, vector<1x256xf32>,
    %c3_205 = arith.constant 3 : index
    %c0_206 = arith.constant 0 : index
    %283 = vector.load %arg43[%c3_205, %c0_206] : memref<8x256xf32, #tpu.memory_space<vmem>>, vector<1x256xf32>
    tpu.vector_store %arg43[%c3_205, %c0_206], %281 {strides = array<i32>} : memref<8x256xf32, #tpu.memory_space<vmem>>, vector<1x256xf32>,
    %284 = vector.extract_strided_slice %228 {offsets = [4, 0], sizes = [1, 256], strides = [1, 1]} : vector<8x256xf32> to vector<1x256xf32>
    %c0_207 = arith.constant 0 : index
    %c0_208 = arith.constant 0 : index
    %285 = vector.load %arg33[%c0_207, %c0_208] : memref<256x256xf32, #tpu.memory_space<vmem>>, vector<256x256xf32>
    %cst_209 = arith.constant dense<0.000000e+00> : vector<1x256xf32>
    %286 = tpu.matmul %276, %285, %cst_209 {dimension_numbers = #tpu.dot_dimension_numbers<[1], [0], [0], [1], [0, 0, 1, 1], [], []>} : vector<1x256xf32>, vector<256x256xf32>, vector<1x256xf32> -> vector<1x256xf32>
    %287 = arith.addf %284, %286 : vector<1x256xf32>
    %288 = math.tanh %287 : vector<1x256xf32>
    %289 = vector.extract_strided_slice %233 {offsets = [4, 0], sizes = [1, 256], strides = [1, 1]} : vector<8x256xf32> to vector<1x256xf32>
    %c0_210 = arith.constant 0 : index
    %c0_211 = arith.constant 0 : index
    %290 = vector.load %arg36[%c0_210, %c0_211] : memref<256x256xf32, #tpu.memory_space<vmem>>, vector<256x256xf32>
    %cst_212 = arith.constant dense<0.000000e+00> : vector<1x256xf32>
    %291 = tpu.matmul %281, %290, %cst_212 {dimension_numbers = #tpu.dot_dimension_numbers<[1], [0], [0], [1], [0, 0, 1, 1], [], []>} : vector<1x256xf32>, vector<256x256xf32>, vector<1x256xf32> -> vector<1x256xf32>
    %292 = arith.addf %289, %291 : vector<1x256xf32>
    %293 = math.tanh %292 : vector<1x256xf32>
    %c4 = arith.constant 4 : index
    %c0_213 = arith.constant 0 : index
    %294 = vector.load %arg42[%c4, %c0_213] : memref<8x256xf32, #tpu.memory_space<vmem>>, vector<1x256xf32>
    tpu.vector_store %arg42[%c4, %c0_213], %288 {strides = array<i32>} : memref<8x256xf32, #tpu.memory_space<vmem>>, vector<1x256xf32>,
    %c4_214 = arith.constant 4 : index
    %c0_215 = arith.constant 0 : index
    %295 = vector.load %arg43[%c4_214, %c0_215] : memref<8x256xf32, #tpu.memory_space<vmem>>, vector<1x256xf32>
    tpu.vector_store %arg43[%c4_214, %c0_215], %293 {strides = array<i32>} : memref<8x256xf32, #tpu.memory_space<vmem>>, vector<1x256xf32>,
    %296 = vector.extract_strided_slice %228 {offsets = [5, 0], sizes = [1, 256], strides = [1, 1]} : vector<8x256xf32> to vector<1x256xf32>
    %c0_216 = arith.constant 0 : index
    %c0_217 = arith.constant 0 : index
    %297 = vector.load %arg33[%c0_216, %c0_217] : memref<256x256xf32, #tpu.memory_space<vmem>>, vector<256x256xf32>
    %cst_218 = arith.constant dense<0.000000e+00> : vector<1x256xf32>
    %298 = tpu.matmul %288, %297, %cst_218 {dimension_numbers = #tpu.dot_dimension_numbers<[1], [0], [0], [1], [0, 0, 1, 1], [], []>} : vector<1x256xf32>, vector<256x256xf32>, vector<1x256xf32> -> vector<1x256xf32>
    %299 = arith.addf %296, %298 : vector<1x256xf32>
    %300 = math.tanh %299 : vector<1x256xf32>
    %301 = vector.extract_strided_slice %233 {offsets = [5, 0], sizes = [1, 256], strides = [1, 1]} : vector<8x256xf32> to vector<1x256xf32>
    %c0_219 = arith.constant 0 : index
    %c0_220 = arith.constant 0 : index
    %302 = vector.load %arg36[%c0_219, %c0_220] : memref<256x256xf32, #tpu.memory_space<vmem>>, vector<256x256xf32>
    %cst_221 = arith.constant dense<0.000000e+00> : vector<1x256xf32>
    %303 = tpu.matmul %293, %302, %cst_221 {dimension_numbers = #tpu.dot_dimension_numbers<[1], [0], [0], [1], [0, 0, 1, 1], [], []>} : vector<1x256xf32>, vector<256x256xf32>, vector<1x256xf32> -> vector<1x256xf32>
    %304 = arith.addf %301, %303 : vector<1x256xf32>
    %305 = math.tanh %304 : vector<1x256xf32>
    %c5 = arith.constant 5 : index
    %c0_222 = arith.constant 0 : index
    %306 = vector.load %arg42[%c5, %c0_222] : memref<8x256xf32, #tpu.memory_space<vmem>>, vector<1x256xf32>
    tpu.vector_store %arg42[%c5, %c0_222], %300 {strides = array<i32>} : memref<8x256xf32, #tpu.memory_space<vmem>>, vector<1x256xf32>,
    %c5_223 = arith.constant 5 : index
    %c0_224 = arith.constant 0 : index
    %307 = vector.load %arg43[%c5_223, %c0_224] : memref<8x256xf32, #tpu.memory_space<vmem>>, vector<1x256xf32>
    tpu.vector_store %arg43[%c5_223, %c0_224], %305 {strides = array<i32>} : memref<8x256xf32, #tpu.memory_space<vmem>>, vector<1x256xf32>,
    %308 = vector.extract_strided_slice %228 {offsets = [6, 0], sizes = [1, 256], strides = [1, 1]} : vector<8x256xf32> to vector<1x256xf32>
    %c0_225 = arith.constant 0 : index
    %c0_226 = arith.constant 0 : index
    %309 = vector.load %arg33[%c0_225, %c0_226] : memref<256x256xf32, #tpu.memory_space<vmem>>, vector<256x256xf32>
    %cst_227 = arith.constant dense<0.000000e+00> : vector<1x256xf32>
    %310 = tpu.matmul %300, %309, %cst_227 {dimension_numbers = #tpu.dot_dimension_numbers<[1], [0], [0], [1], [0, 0, 1, 1], [], []>} : vector<1x256xf32>, vector<256x256xf32>, vector<1x256xf32> -> vector<1x256xf32>
    %311 = arith.addf %308, %310 : vector<1x256xf32>
    %312 = math.tanh %311 : vector<1x256xf32>
    %313 = vector.extract_strided_slice %233 {offsets = [6, 0], sizes = [1, 256], strides = [1, 1]} : vector<8x256xf32> to vector<1x256xf32>
    %c0_228 = arith.constant 0 : index
    %c0_229 = arith.constant 0 : index
    %314 = vector.load %arg36[%c0_228, %c0_229] : memref<256x256xf32, #tpu.memory_space<vmem>>, vector<256x256xf32>
    %cst_230 = arith.constant dense<0.000000e+00> : vector<1x256xf32>
    %315 = tpu.matmul %305, %314, %cst_230 {dimension_numbers = #tpu.dot_dimension_numbers<[1], [0], [0], [1], [0, 0, 1, 1], [], []>} : vector<1x256xf32>, vector<256x256xf32>, vector<1x256xf32> -> vector<1x256xf32>
    %316 = arith.addf %313, %315 : vector<1x256xf32>
    %317 = math.tanh %316 : vector<1x256xf32>
    %c6 = arith.constant 6 : index
    %c0_231 = arith.constant 0 : index
    %318 = vector.load %arg42[%c6, %c0_231] : memref<8x256xf32, #tpu.memory_space<vmem>>, vector<1x256xf32>
    tpu.vector_store %arg42[%c6, %c0_231], %312 {strides = array<i32>} : memref<8x256xf32, #tpu.memory_space<vmem>>, vector<1x256xf32>,
    %c6_232 = arith.constant 6 : index
    %c0_233 = arith.constant 0 : index
    %319 = vector.load %arg43[%c6_232, %c0_233] : memref<8x256xf32, #tpu.memory_space<vmem>>, vector<1x256xf32>
    tpu.vector_store %arg43[%c6_232, %c0_233], %317 {strides = array<i32>} : memref<8x256xf32, #tpu.memory_space<vmem>>, vector<1x256xf32>,
    %320 = vector.extract_strided_slice %228 {offsets = [7, 0], sizes = [1, 256], strides = [1, 1]} : vector<8x256xf32> to vector<1x256xf32>
    %c0_234 = arith.constant 0 : index
    %c0_235 = arith.constant 0 : index
    %321 = vector.load %arg33[%c0_234, %c0_235] : memref<256x256xf32, #tpu.memory_space<vmem>>, vector<256x256xf32>
    %cst_236 = arith.constant dense<0.000000e+00> : vector<1x256xf32>
    %322 = tpu.matmul %312, %321, %cst_236 {dimension_numbers = #tpu.dot_dimension_numbers<[1], [0], [0], [1], [0, 0, 1, 1], [], []>} : vector<1x256xf32>, vector<256x256xf32>, vector<1x256xf32> -> vector<1x256xf32>
    %323 = arith.addf %320, %322 : vector<1x256xf32>
    %324 = math.tanh %323 : vector<1x256xf32>
    %325 = vector.extract_strided_slice %233 {offsets = [7, 0], sizes = [1, 256], strides = [1, 1]} : vector<8x256xf32> to vector<1x256xf32>
    %c0_237 = arith.constant 0 : index
    %c0_238 = arith.constant 0 : index
    %326 = vector.load %arg36[%c0_237, %c0_238] : memref<256x256xf32, #tpu.memory_space<vmem>>, vector<256x256xf32>
    %cst_239 = arith.constant dense<0.000000e+00> : vector<1x256xf32>
    %327 = tpu.matmul %317, %326, %cst_239 {dimension_numbers = #tpu.dot_dimension_numbers<[1], [0], [0], [1], [0, 0, 1, 1], [], []>} : vector<1x256xf32>, vector<256x256xf32>, vector<1x256xf32> -> vector<1x256xf32>
    %328 = arith.addf %325, %327 : vector<1x256xf32>
    %329 = math.tanh %328 : vector<1x256xf32>
    %c7 = arith.constant 7 : index
    %c0_240 = arith.constant 0 : index
    %330 = vector.load %arg42[%c7, %c0_240] : memref<8x256xf32, #tpu.memory_space<vmem>>, vector<1x256xf32>
    tpu.vector_store %arg42[%c7, %c0_240], %324 {strides = array<i32>} : memref<8x256xf32, #tpu.memory_space<vmem>>, vector<1x256xf32>,
    %c7_241 = arith.constant 7 : index
    %c0_242 = arith.constant 0 : index
    %331 = vector.load %arg43[%c7_241, %c0_242] : memref<8x256xf32, #tpu.memory_space<vmem>>, vector<1x256xf32>
    tpu.vector_store %arg43[%c7_241, %c0_242], %329 {strides = array<i32>} : memref<8x256xf32, #tpu.memory_space<vmem>>, vector<1x256xf32>,
    %c0_243 = arith.constant 0 : index
    %c0_244 = arith.constant 0 : index
    %332 = vector.load %arg42[%c0_243, %c0_244] : memref<8x256xf32, #tpu.memory_space<vmem>>, vector<8x256xf32>
    %c0_245 = arith.constant 0 : index
    %c0_246 = arith.constant 0 : index
    %333 = vector.load %arg38[%c0_245, %c0_246] : memref<256x1xf32, #tpu.memory_space<vmem>>, vector<256x1xf32>
    %cst_247 = arith.constant dense<0.000000e+00> : vector<8x1xf32>
    %334 = tpu.matmul %332, %333, %cst_247 {dimension_numbers = #tpu.dot_dimension_numbers<[1], [0], [0], [1], [0, 0, 1, 1], [], []>} : vector<8x256xf32>, vector<256x1xf32>, vector<8x1xf32> -> vector<8x1xf32>
    %c0_248 = arith.constant 0 : index
    %c0_249 = arith.constant 0 : index
    %335 = vector.load %arg43[%c0_248, %c0_249] : memref<8x256xf32, #tpu.memory_space<vmem>>, vector<8x256xf32>
    %c0_250 = arith.constant 0 : index
    %c0_251 = arith.constant 0 : index
    %336 = vector.load %arg39[%c0_250, %c0_251] : memref<256x1xf32, #tpu.memory_space<vmem>>, vector<256x1xf32>
    %cst_252 = arith.constant dense<0.000000e+00> : vector<8x1xf32>
    %337 = tpu.matmul %335, %336, %cst_252 {dimension_numbers = #tpu.dot_dimension_numbers<[1], [0], [0], [1], [0, 0, 1, 1], [], []>} : vector<8x256xf32>, vector<256x1xf32>, vector<8x1xf32> -> vector<8x1xf32>
    %338 = arith.addf %334, %337 : vector<8x1xf32>
    %c0_253 = arith.constant 0 : index
    %c0_254 = arith.constant 0 : index
    %339 = vector.load %arg40[%c0_253, %c0_254] : memref<1x1xf32, #tpu.memory_space<vmem>>, vector<1x1xf32>
    %340 = vector.broadcast %339 : vector<1x1xf32> to vector<8x1xf32>
    %341 = arith.addf %338, %340 : vector<8x1xf32>
    %cst_255 = arith.constant 0.000000e+00 : f32
    %342 = vector.broadcast %cst_255 : f32 to vector<8x1xf32>
    %343 = arith.subf %342, %341 : vector<8x1xf32>
    %344 = math.exp %343 : vector<8x1xf32>
    %cst_256 = arith.constant 1.000000e+00 : f32
    %345 = vector.broadcast %cst_256 : f32 to vector<8x1xf32>
    %346 = arith.addf %345, %344 : vector<8x1xf32>
    %cst_257 = arith.constant 1.000000e+00 : f32
    %347 = vector.broadcast %cst_257 : f32 to vector<8x1xf32>
    %348 = arith.divf %347, %346 : vector<8x1xf32>
    %c0_258 = arith.constant 0 : index
    %c0_259 = arith.constant 0 : index
    %349 = vector.load %arg41[%c0_258, %c0_259] : memref<8x1xf32, #tpu.memory_space<vmem>>, vector<8x1xf32>
    tpu.vector_store %arg41[%c0_258, %c0_259], %348 {strides = array<i32>} : memref<8x1xf32, #tpu.memory_space<vmem>>, vector<8x1xf32>,
    return
  }
}

</mosaic_0001>

<bundles_post_ra>
// kernel: video_discriminator_forward.1
= control target key start
LH: loop header
LB: loop body
LE: loop exit
PB: predicated region body
PF: predicated region fallthrough
CT: control target
= control target key end

     0   :  { %s8139_s3 = smov 2   ;;  %s8140_s10 = smov 3   ;;  %vm1278_vm0 = vcmask 64512   ;;  %vm2301_vm5 = vcmask 130048   ;;  %vm8152_vm8 = vmmov 0   ;;  %vm3138_vm9 = vcmask 261120   ;;  %s12219_s0 = inlined_call_operand.smem [shape: u32[42], index: -1, kind: input, shape index: {}] }
   0x1   :  { %s8191_s6 = sld [smem:[%s12219_s0 + %s8139_s3]]   ;;  %s8142_s14 = smov 4   ;;  %vm3212_vm10 = vcmask 424960   ;;  %vm3230_vm11 = vcmask 1043456   ;;  %vm3306_vm12 = vcmask 31744   ;;  %vm3652_vm14 = vcmask 326656  }
   0x2   :  { %s8308_s9 = sld [smem:[%s12219_s0]]   ;;  %s8143_s18 = smov 7  }
   0x3   :  { %s8715_s13 = sld [smem:[%s12219_s0 + %s8140_s10]]   ;;  %s8144_s22 = smov 5  }
   0x4   :  { %s7538_s17 = sld [smem:[%s12219_s0 + %s8142_s14]]   ;;  %s8145_s26 = smov 6  }
   0x5   :  { %s9085_s21 = sld [smem:[%s12219_s0 + %s8143_s18]]   ;;  %s8146_s30 = smov 8  }
   0x6   :  { %s7539_s25 = sld [smem:[%s12219_s0 + %s8144_s22]]   ;;  %s8147_s4 = smov 9  }
   0x7   :  { %v241_v0 = vld [vmem:[%s8191_s6 + $0x1e8] sm:$0xff]  ;;  %v240_v2 = vld [vmem:[%s8191_s6 + $0x1e0] sm:$0xff]  ;;  %s7540_s29 = sld [smem:[%s12219_s0 + %s8145_s26]]   ;;  %s8148_s8 = smov 12  }
   0x8   :  { %v369_v1 = vld [vmem:[%s8191_s6 + $0x5e8] sm:$0xff]  ;;  %692 = vmatprep.subr.mxu0 %v241_v0  ;;  %v368_v3 = vld [vmem:[%s8191_s6 + $0x5e0] sm:$0xff]  ;;  %s9216_s3 = sld [smem:[%s12219_s0 + %s8146_s30]]   ;;  %s8149_s12 = smov 10  }
   0x9   :  { %763 = vmatprep.subr.mxu1 %v369_v1  ;;  %v237_v4 = vld [vmem:[%s8191_s6 + $0x1c8] sm:$0xff]  ;;  %693 = vmatpush1.msra.mxu0 %v240_v2  ;;  %v236_v6 = vld [vmem:[%s8191_s6 + $0x1c0] sm:$0xff]  ;;  %s9312_s7 = sld [smem:[%s12219_s0 + %s8147_s4]]   ;;  %s8150_s16 = smov 11  }
   0xa   :  { %v365_v5 = vld [vmem:[%s8191_s6 + $0x5c8] sm:$0xff]  ;;  %764 = vmatpush1.msra.mxu1 %v368_v3  ;;  %v364_v7 = vld [vmem:[%s8191_s6 + $0x5c0] sm:$0xff]  ;;  %694 = vmatprep.subr.mxu0 %v237_v4  ;;  %s9384_s11 = sld [smem:[%s12219_s0 + %s8148_s8]]   ;;  %s8151_s20 = smov 13  }
   0xb   :  { %v233_v8 = vld [vmem:[%s8191_s6 + $0x1a8] sm:$0xff]  ;;  %765 = vmatprep.subr.mxu1 %v365_v5  ;;  %v232_v10 = vld [vmem:[%s8191_s6 + $0x1a0] sm:$0xff]  ;;  %695 = vmatpush1.msra.mxu0 %v236_v6  ;;  %s7544_s15 = sld [smem:[%s12219_s0 + %s8149_s12]]   ;;  %s8153_s24 = smov 14  }
   0xc   :  { %v361_v9 = vld [vmem:[%s8191_s6 + $0x5a8] sm:$0xff]  ;;  %v360_v11 = vld [vmem:[%s8191_s6 + $0x5a0] sm:$0xff]  ;;  %766 = vmatpush1.msra.mxu1 %v364_v7  ;;  %696 = vmatprep.subr.mxu0 %v233_v8  ;;  %s7545_s19 = sld [smem:[%s12219_s0 + %s8150_s16]]   ;;  %s8154_s28 = smov 17  }
   0xd   :  { %v229_v12 = vld [vmem:[%s8191_s6 + $0x188] sm:$0xff]  ;;  %767 = vmatprep.subr.mxu1 %v361_v9  ;;  %v228_v14 = vld [vmem:[%s8191_s6 + $0x180] sm:$0xff]  ;;  %697 = vmatpush1.msra.mxu0 %v232_v10  ;;  %s7547_s23 = sld [smem:[%s12219_s0 + %s8151_s20]]   ;;  %s8155_s2 = smov 1  }
   0xe   :  { %v357_v13 = vld [vmem:[%s8191_s6 + $0x588] sm:$0xff]  ;;  %v356_v15 = vld [vmem:[%s8191_s6 + $0x580] sm:$0xff]  ;;  %768 = vmatpush1.msra.mxu1 %v360_v11  ;;  %698 = vmatprep.subr.mxu0 %v229_v12  ;;  %s7548_s27 = sld [smem:[%s12219_s0 + %s8153_s24]]   ;;  %s8157_s10 = smov 19  }
   0xf   :  { %v225_v16 = vld [vmem:[%s8191_s6 + $0x168] sm:$0xff]  ;;  %769 = vmatprep.subr.mxu1 %v357_v13  ;;  %v224_v18 = vld [vmem:[%s8191_s6 + $0x160] sm:$0xff]  ;;  %699 = vmatpush1.msra.mxu0 %v228_v14  ;;  %s7551_s1 = sld [smem:[%s12219_s0 + %s8154_s28]]   ;;  %s8158_s14 = smov 22  }
  0x10   :  { %v353_v17 = vld [vmem:[%s8191_s6 + $0x568] sm:$0xff]  ;;  %v352_v19 = vld [vmem:[%s8191_s6 + $0x560] sm:$0xff]  ;;  %770 = vmatpush1.msra.mxu1 %v356_v15  ;;  %700 = vmatprep.subr.mxu0 %v225_v16  ;;  %s7535_s5 = sld [smem:[%s12219_s0 + %s8155_s2]]   ;;  %s8159_s18 = smov 20  }
  0x11   :  { %v221_v20 = vld [vmem:[%s8191_s6 + $0x148] sm:$0xff]  ;;  %771 = vmatprep.subr.mxu1 %v353_v17  ;;  %v220_v22 = vld [vmem:[%s8191_s6 + $0x140] sm:$0xff]  ;;  %701 = vmatpush1.msra.mxu0 %v224_v18  ;;  %s8160_s22 = smov 21   ;;  %s8161_s26 = smov 23  }
  0x12   :  { %v349_v21 = vld [vmem:[%s8191_s6 + $0x548] sm:$0xff]  ;;  %v348_v23 = vld [vmem:[%s8191_s6 + $0x540] sm:$0xff]  ;;  %772 = vmatpush1.msra.mxu1 %v352_v19  ;;  %702 = vmatprep.subr.mxu0 %v221_v20  ;;  %s8162_s30 = smov 24   ;;  %s8163_s4 = smov 27  }
  0x13   :  { %v217_v24 = vld [vmem:[%s8191_s6 + $0x128] sm:$0xff]  ;;  %773 = vmatprep.subr.mxu1 %v349_v21  ;;  %v216_v26 = vld [vmem:[%s8191_s6 + $0x120] sm:$0xff]  ;;  %703 = vmatpush1.msra.mxu0 %v220_v22  ;;  %s8164_s8 = smov 25   ;;  %s8165_s12 = smov 26  }
  0x14   :  { %v345_v25 = vld [vmem:[%s8191_s6 + $0x528] sm:$0xff]  ;;  %v344_v27 = vld [vmem:[%s8191_s6 + $0x520] sm:$0xff]  ;;  %774 = vmatpush1.msra.mxu1 %v348_v23  ;;  %704 = vmatprep.subr.mxu0 %v217_v24  ;;  %s8166_s16 = smov 28   ;;  %s8167_s20 = smov 29  }
  0x15   :  { %v213_v28 = vld [vmem:[%s8191_s6 + $0x108] sm:$0xff]  ;;  %775 = vmatprep.subr.mxu1 %v345_v25  ;;  %v212_v30 = vld [vmem:[%s8191_s6 + $0x100] sm:$0xff]  ;;  %705 = vmatpush1.msra.mxu0 %v216_v26  ;;  %s8168_s24 = smov 32   ;;  %s8169_s28 = smov 15  }
  0x16   :  { %v341_v29 = vld [vmem:[%s8191_s6 + $0x508] sm:$0xff]  ;;  %v340_v31 = vld [vmem:[%s8191_s6 + $0x500] sm:$0xff]  ;;  %776 = vmatpush1.msra.mxu1 %v344_v27  ;;  %706 = vmatprep.subr.mxu0 %v213_v28  ;;  %s8170_s2 = smov 16  }
  0x17   :  { %v209_v32 = vld [vmem:[%s8191_s6 + $0xe8] sm:$0xff]  ;;  %777 = vmatprep.subr.mxu1 %v341_v29  ;;  %v208_v34 = vld [vmem:[%s8191_s6 + $0xe0] sm:$0xff]  ;;  %707 = vmatpush1.msra.mxu0 %v212_v30 }
  0x18   :  { %v337_v33 = vld [vmem:[%s8191_s6 + $0x4e8] sm:$0xff]  ;;  %v336_v35 = vld [vmem:[%s8191_s6 + $0x4e0] sm:$0xff]  ;;  %778 = vmatpush1.msra.mxu1 %v340_v31  ;;  %708 = vmatprep.subr.mxu0 %v209_v32 }
  0x19   :  { %v205_v36 = vld [vmem:[%s8191_s6 + $0xc8] sm:$0xff]  ;;  %779 = vmatprep.subr.mxu1 %v337_v33  ;;  %v204_v38 = vld [vmem:[%s8191_s6 + $0xc0] sm:$0xff]  ;;  %709 = vmatpush1.msra.mxu0 %v208_v34 }
  0x1a   :  { %v333_v37 = vld [vmem:[%s8191_s6 + $0x4c8] sm:$0xff]  ;;  %v332_v39 = vld [vmem:[%s8191_s6 + $0x4c0] sm:$0xff]  ;;  %780 = vmatpush1.msra.mxu1 %v336_v35  ;;  %710 = vmatprep.subr.mxu0 %v205_v36 }
  0x1b   :  { %v201_v40 = vld [vmem:[%s8191_s6 + $0xa8] sm:$0xff]  ;;  %781 = vmatprep.subr.mxu1 %v333_v37  ;;  %v200_v42 = vld [vmem:[%s8191_s6 + $0xa0] sm:$0xff]  ;;  %711 = vmatpush1.msra.mxu0 %v204_v38 }
  0x1c   :  { %v329_v41 = vld [vmem:[%s8191_s6 + $0x4a8] sm:$0xff]  ;;  %v328_v43 = vld [vmem:[%s8191_s6 + $0x4a0] sm:$0xff]  ;;  %782 = vmatpush1.msra.mxu1 %v332_v39  ;;  %712 = vmatprep.subr.mxu0 %v201_v40 }
  0x1d   :  { %v197_v44 = vld [vmem:[%s8191_s6 + $0x88] sm:$0xff]  ;;  %783 = vmatprep.subr.mxu1 %v329_v41  ;;  %v196_v46 = vld [vmem:[%s8191_s6 + $0x80] sm:$0xff]  ;;  %713 = vmatpush1.msra.mxu0 %v200_v42 }
  0x1e   :  { %v325_v45 = vld [vmem:[%s8191_s6 + $0x488] sm:$0xff]  ;;  %v324_v47 = vld [vmem:[%s8191_s6 + $0x480] sm:$0xff]  ;;  %784 = vmatpush1.msra.mxu1 %v328_v43  ;;  %714 = vmatprep.subr.mxu0 %v197_v44 }
  0x1f   :  { %v193_v48 = vld [vmem:[%s8191_s6 + $0x68] sm:$0xff]  ;;  %785 = vmatprep.subr.mxu1 %v325_v45  ;;  %v192_v50 = vld [vmem:[%s8191_s6 + $0x60] sm:$0xff]  ;;  %715 = vmatpush1.msra.mxu0 %v196_v46 }
  0x20   :  { %v321_v49 = vld [vmem:[%s8191_s6 + $0x468] sm:$0xff]  ;;  %v320_v51 = vld [vmem:[%s8191_s6 + $0x460] sm:$0xff]  ;;  %786 = vmatpush1.msra.mxu1 %v324_v47  ;;  %716 = vmatprep.subr.mxu0 %v193_v48 }
  0x21   :  { %v189_v52 = vld [vmem:[%s8191_s6 + $0x48] sm:$0xff]  ;;  %787 = vmatprep.subr.mxu1 %v321_v49  ;;  %v188_v54 = vld [vmem:[%s8191_s6 + $0x40] sm:$0xff]  ;;  %717 = vmatpush1.msra.mxu0 %v192_v50 }
  0x22   :  { %v317_v53 = vld [vmem:[%s8191_s6 + $0x448] sm:$0xff]  ;;  %v316_v55 = vld [vmem:[%s8191_s6 + $0x440] sm:$0xff]  ;;  %788 = vmatpush1.msra.mxu1 %v320_v51  ;;  %718 = vmatprep.subr.mxu0 %v189_v52 }
  0x23   :  { %v185_v56 = vld [vmem:[%s8191_s6 + $0x28] sm:$0xff]  ;;  %789 = vmatprep.subr.mxu1 %v317_v53  ;;  %v184_v58 = vld [vmem:[%s8191_s6 + $0x20] sm:$0xff]  ;;  %719 = vmatpush1.msra.mxu0 %v188_v54 }
  0x24   :  { %v313_v57 = vld [vmem:[%s8191_s6 + $0x428] sm:$0xff]  ;;  %v312_v59 = vld [vmem:[%s8191_s6 + $0x420] sm:$0xff]  ;;  %790 = vmatpush1.msra.mxu1 %v316_v55  ;;  %720 = vmatprep.subr.mxu0 %v185_v56 }
  0x25   :  { %v181_v60 = vld [vmem:[%s8191_s6 + $0x8] sm:$0xff]  ;;  %791 = vmatprep.subr.mxu1 %v313_v57  ;;  %v180_v62 = vld [vmem:[%s8191_s6] sm:$0xff]  ;;  %721 = vmatpush1.msra.mxu0 %v184_v58 }
  0x26   :  { %v309_v61 = vld [vmem:[%s8191_s6 + $0x408] sm:$0xff]  ;;  %v308_v63 = vld [vmem:[%s8191_s6 + $0x400] sm:$0xff]  ;;  %792 = vmatpush1.msra.mxu1 %v312_v59  ;;  %722 = vmatprep.subr.mxu0 %v181_v60 }
  0x27   :  { %v305_v0 = vld [vmem:[%s8191_s6 + $0x3e8] sm:$0xff]  ;;  %793 = vmatprep.subr.mxu1 %v309_v61  ;;  %v304_v2 = vld [vmem:[%s8191_s6 + $0x3e0] sm:$0xff]  ;;  %723 = vmatpush1.msra.mxu0 %v180_v62 }
  0x28   :  { %v433_v1 = vld [vmem:[%s8191_s6 + $0x7e8] sm:$0xff]  ;;  %v432_v3 = vld [vmem:[%s8191_s6 + $0x7e0] sm:$0xff]  ;;  %794 = vmatpush1.msra.mxu1 %v308_v63  ;;  %724 = vmatprep.subr.mxu0 %v305_v0 }
  0x29   :  { %v301_v4 = vld [vmem:[%s8191_s6 + $0x3c8] sm:$0xff]  ;;  %795 = vmatprep.subr.mxu1 %v433_v1  ;;  %v300_v6 = vld [vmem:[%s8191_s6 + $0x3c0] sm:$0xff]  ;;  %725 = vmatpush2.msra.mxu0 %v304_v2  ;;  %v175_v1 = vld [vmem:[%s8308_s9 + $0x18] sm:$0xff] }
  0x2a   :  { %v429_v5 = vld [vmem:[%s8191_s6 + $0x7c8] sm:$0xff]  ;;  %v428_v7 = vld [vmem:[%s8191_s6 + $0x7c0] sm:$0xff]  ;;  %796 = vmatpush2.msra.mxu1 %v432_v3  ;;  %726 = vmatprep.subr.mxu0 %v301_v4  ;;  %v174_v3 = vld [vmem:[%s8308_s9 + $0x10] sm:$0xff] }
  0x2b   :  { %v297_v8 = vld [vmem:[%s8191_s6 + $0x3a8] sm:$0xff]  ;;  %797 = vmatprep.subr.mxu1 %v429_v5  ;;  %v296_v10 = vld [vmem:[%s8191_s6 + $0x3a0] sm:$0xff]  ;;  %727 = vmatpush2.msra.mxu0 %v300_v6 }
  0x2c   :  { %v425_v9 = vld [vmem:[%s8191_s6 + $0x7a8] sm:$0xff]  ;;  %v424_v11 = vld [vmem:[%s8191_s6 + $0x7a0] sm:$0xff]  ;;  %798 = vmatpush2.msra.mxu1 %v428_v7  ;;  %728 = vmatprep.subr.mxu0 %v297_v8 }
  0x2d   :  { %v293_v12 = vld [vmem:[%s8191_s6 + $0x388] sm:$0xff]  ;;  %799 = vmatprep.subr.mxu1 %v425_v9  ;;  %v292_v14 = vld [vmem:[%s8191_s6 + $0x380] sm:$0xff]  ;;  %729 = vmatpush2.msra.mxu0 %v296_v10 }
  0x2e   :  { %v421_v13 = vld [vmem:[%s8191_s6 + $0x788] sm:$0xff]  ;;  %v420_v15 = vld [vmem:[%s8191_s6 + $0x780] sm:$0xff]  ;;  %800 = vmatpush2.msra.mxu1 %v424_v11  ;;  %730 = vmatprep.subr.mxu0 %v293_v12 }
  0x2f   :  { %v289_v16 = vld [vmem:[%s8191_s6 + $0x368] sm:$0xff]  ;;  %801 = vmatprep.subr.mxu1 %v421_v13  ;;  %v288_v18 = vld [vmem:[%s8191_s6 + $0x360] sm:$0xff]  ;;  %731 = vmatpush2.msra.mxu0 %v292_v14 }
  0x30   :  { %v417_v17 = vld [vmem:[%s8191_s6 + $0x768] sm:$0xff]  ;;  %v416_v19 = vld [vmem:[%s8191_s6 + $0x760] sm:$0xff]  ;;  %802 = vmatpush2.msra.mxu1 %v420_v15  ;;  %732 = vmatprep.subr.mxu0 %v289_v16 }
  0x31   :  { %v285_v20 = vld [vmem:[%s8191_s6 + $0x348] sm:$0xff]  ;;  %803 = vmatprep.subr.mxu1 %v417_v17  ;;  %v284_v22 = vld [vmem:[%s8191_s6 + $0x340] sm:$0xff]  ;;  %733 = vmatpush2.msra.mxu0 %v288_v18 }
  0x32   :  { %v413_v21 = vld [vmem:[%s8191_s6 + $0x748] sm:$0xff]  ;;  %v412_v23 = vld [vmem:[%s8191_s6 + $0x740] sm:$0xff]  ;;  %804 = vmatpush2.msra.mxu1 %v416_v19  ;;  %734 = vmatprep.subr.mxu0 %v285_v20 }
  0x33   :  { %v281_v24 = vld [vmem:[%s8191_s6 + $0x328] sm:$0xff]  ;;  %805 = vmatprep.subr.mxu1 %v413_v21  ;;  %v280_v26 = vld [vmem:[%s8191_s6 + $0x320] sm:$0xff]  ;;  %735 = vmatpush2.msra.mxu0 %v284_v22 }
  0x34   :  { %v409_v25 = vld [vmem:[%s8191_s6 + $0x728] sm:$0xff]  ;;  %v408_v27 = vld [vmem:[%s8191_s6 + $0x720] sm:$0xff]  ;;  %806 = vmatpush2.msra.mxu1 %v412_v23  ;;  %736 = vmatprep.subr.mxu0 %v281_v24 }
  0x35   :  { %v277_v28 = vld [vmem:[%s8191_s6 + $0x308] sm:$0xff]  ;;  %807 = vmatprep.subr.mxu1 %v409_v25  ;;  %v276_v30 = vld [vmem:[%s8191_s6 + $0x300] sm:$0xff]  ;;  %737 = vmatpush2.msra.mxu0 %v280_v26 }
  0x36   :  { %v405_v29 = vld [vmem:[%s8191_s6 + $0x708] sm:$0xff]  ;;  %v404_v31 = vld [vmem:[%s8191_s6 + $0x700] sm:$0xff]  ;;  %808 = vmatpush2.msra.mxu1 %v408_v27  ;;  %738 = vmatprep.subr.mxu0 %v277_v28 }
  0x37   :  { %v273_v32 = vld [vmem:[%s8191_s6 + $0x2e8] sm:$0xff]  ;;  %809 = vmatprep.subr.mxu1 %v405_v29  ;;  %v272_v34 = vld [vmem:[%s8191_s6 + $0x2e0] sm:$0xff]  ;;  %739 = vmatpush2.msra.mxu0 %v276_v30 }
  0x38   :  { %v401_v33 = vld [vmem:[%s8191_s6 + $0x6e8] sm:$0xff]  ;;  %v400_v35 = vld [vmem:[%s8191_s6 + $0x6e0] sm:$0xff]  ;;  %810 = vmatpush2.msra.mxu1 %v404_v31  ;;  %740 = vmatprep.subr.mxu0 %v273_v32 }
  0x39   :  { %v269_v36 = vld [vmem:[%s8191_s6 + $0x2c8] sm:$0xff]  ;;  %811 = vmatprep.subr.mxu1 %v401_v33  ;;  %v268_v38 = vld [vmem:[%s8191_s6 + $0x2c0] sm:$0xff]  ;;  %741 = vmatpush2.msra.mxu0 %v272_v34 }
  0x3a   :  { %v397_v37 = vld [vmem:[%s8191_s6 + $0x6c8] sm:$0xff]  ;;  %v396_v39 = vld [vmem:[%s8191_s6 + $0x6c0] sm:$0xff]  ;;  %812 = vmatpush2.msra.mxu1 %v400_v35  ;;  %742 = vmatprep.subr.mxu0 %v269_v36 }
  0x3b   :  { %v265_v40 = vld [vmem:[%s8191_s6 + $0x2a8] sm:$0xff]  ;;  %813 = vmatprep.subr.mxu1 %v397_v37  ;;  %v264_v42 = vld [vmem:[%s8191_s6 + $0x2a0] sm:$0xff]  ;;  %743 = vmatpush2.msra.mxu0 %v268_v38 }
  0x3c   :  { %v393_v41 = vld [vmem:[%s8191_s6 + $0x6a8] sm:$0xff]  ;;  %v392_v43 = vld [vmem:[%s8191_s6 + $0x6a0] sm:$0xff]  ;;  %814 = vmatpush2.msra.mxu1 %v396_v39  ;;  %744 = vmatprep.subr.mxu0 %v265_v40 }
  0x3d   :  { %v261_v44 = vld [vmem:[%s8191_s6 + $0x288] sm:$0xff]  ;;  %815 = vmatprep.subr.mxu1 %v393_v41  ;;  %v260_v46 = vld [vmem:[%s8191_s6 + $0x280] sm:$0xff]  ;;  %745 = vmatpush2.msra.mxu0 %v264_v42 }
  0x3e   :  { %v389_v45 = vld [vmem:[%s8191_s6 + $0x688] sm:$0xff]  ;;  %v388_v47 = vld [vmem:[%s8191_s6 + $0x680] sm:$0xff]  ;;  %816 = vmatpush2.msra.mxu1 %v392_v43  ;;  %746 = vmatprep.subr.mxu0 %v261_v44 }
  0x3f   :  { %v257_v48 = vld [vmem:[%s8191_s6 + $0x268] sm:$0xff]  ;;  %817 = vmatprep.subr.mxu1 %v389_v45  ;;  %v256_v50 = vld [vmem:[%s8191_s6 + $0x260] sm:$0xff]  ;;  %747 = vmatpush2.msra.mxu0 %v260_v46 }
  0x40   :  { %v385_v49 = vld [vmem:[%s8191_s6 + $0x668] sm:$0xff]  ;;  %v384_v51 = vld [vmem:[%s8191_s6 + $0x660] sm:$0xff]  ;;  %818 = vmatpush2.msra.mxu1 %v388_v47  ;;  %748 = vmatprep.subr.mxu0 %v257_v48 }
  0x41   :  { %v253_v52 = vld [vmem:[%s8191_s6 + $0x248] sm:$0xff]  ;;  %819 = vmatprep.subr.mxu1 %v385_v49  ;;  %v252_v54 = vld [vmem:[%s8191_s6 + $0x240] sm:$0xff]  ;;  %749 = vmatpush2.msra.mxu0 %v256_v50 }
  0x42   :  { %v381_v53 = vld [vmem:[%s8191_s6 + $0x648] sm:$0xff]  ;;  %v380_v55 = vld [vmem:[%s8191_s6 + $0x640] sm:$0xff]  ;;  %820 = vmatpush2.msra.mxu1 %v384_v51  ;;  %750 = vmatprep.subr.mxu0 %v253_v52 }
  0x43   :  { %v249_v56 = vld [vmem:[%s8191_s6 + $0x228] sm:$0xff]  ;;  %821 = vmatprep.subr.mxu1 %v381_v53  ;;  %v248_v58 = vld [vmem:[%s8191_s6 + $0x220] sm:$0xff]  ;;  %751 = vmatpush2.msra.mxu0 %v252_v54 }
  0x44   :  { %v377_v57 = vld [vmem:[%s8191_s6 + $0x628] sm:$0xff]  ;;  %v376_v59 = vld [vmem:[%s8191_s6 + $0x620] sm:$0xff]  ;;  %822 = vmatpush2.msra.mxu1 %v380_v55  ;;  %752 = vmatprep.subr.mxu0 %v249_v56 }
  0x45   :  { %v245_v60 = vld [vmem:[%s8191_s6 + $0x208] sm:$0xff]  ;;  %823 = vmatprep.subr.mxu1 %v377_v57  ;;  %v244_v62 = vld [vmem:[%s8191_s6 + $0x200] sm:$0xff]  ;;  %753 = vmatpush2.msra.mxu0 %v248_v58 }
  0x46   :  { %v373_v61 = vld [vmem:[%s8191_s6 + $0x608] sm:$0xff]  ;;  %824 = vmatpush2.msra.mxu1 %v376_v59  ;;  %v372_v0 = vld [vmem:[%s8191_s6 + $0x600] sm:$0xff]  ;;  %754 = vmatprep.subr.mxu0 %v245_v60 }
  0x47   :  { %v173_v63 = vld [vmem:[%s8308_s9 + $0x8] sm:$0xff]  ;;  %825 = vmatprep.subr.mxu1 %v373_v61  ;;  %v172_v2 = vld [vmem:[%s8308_s9] sm:$0xff]  ;;  %755 = vmatpush2.msra.mxu0 %v244_v62 }
  0x48   :  { %756 = vmatprep.mubr.f32.mxu0 %v173_v63  ;;  %v497_v4 = vld [vmem:[%s8191_s6 + $0x9e8] sm:$0xff]  ;;  %826 = vmatpush2.msra.mxu1 %v372_v0  ;;  %v496_v6 = vld [vmem:[%s8191_s6 + $0x9e0] sm:$0xff] }
  0x49   :  { %v625_v5 = vld [vmem:[%s8191_s6 + $0xde8] sm:$0xff]  ;;  %827 = vmatprep.mubr.f32.mxu1 %v175_v1  ;;  %v624_v7 = vld [vmem:[%s8191_s6 + $0xde0] sm:$0xff]  ;;  %757 = vmatmul.mubr.f32.vlgmr.msra.gmra.mxu0 %v172_v2 }
  0x4a   :  { %828 = vmatmul.mubr.f32.vlgmr.msra.gmra.mxu1 %v174_v3  ;;  %v493_v8 = vld [vmem:[%s8191_s6 + $0x9c8] sm:$0xff]  ;;  %834 = vmatprep.subr.mxu0 %v497_v4  ;;  %v492_v10 = vld [vmem:[%s8191_s6 + $0x9c0] sm:$0xff] }
  0x4b   :  { %v621_v9 = vld [vmem:[%s8191_s6 + $0xdc8] sm:$0xff]  ;;  %905 = vmatprep.subr.mxu1 %v625_v5  ;;  %v620_v11 = vld [vmem:[%s8191_s6 + $0xdc0] sm:$0xff]  ;;  %835 = vmatpush1.msra.mxu0 %v496_v6 }
  0x4c   :  { %906 = vmatpush1.msra.mxu1 %v624_v7  ;;  %v489_v12 = vld [vmem:[%s8191_s6 + $0x9a8] sm:$0xff]  ;;  %836 = vmatprep.subr.mxu0 %v493_v8  ;;  %v488_v14 = vld [vmem:[%s8191_s6 + $0x9a0] sm:$0xff] }
  0x4d   :  { %v617_v13 = vld [vmem:[%s8191_s6 + $0xda8] sm:$0xff]  ;;  %907 = vmatprep.subr.mxu1 %v621_v9  ;;  %v616_v15 = vld [vmem:[%s8191_s6 + $0xda0] sm:$0xff]  ;;  %837 = vmatpush1.msra.mxu0 %v492_v10 }
  0x4e   :  { %908 = vmatpush1.msra.mxu1 %v620_v11  ;;  %v485_v16 = vld [vmem:[%s8191_s6 + $0x988] sm:$0xff]  ;;  %838 = vmatprep.subr.mxu0 %v489_v12  ;;  %v484_v18 = vld [vmem:[%s8191_s6 + $0x980] sm:$0xff] }
  0x4f   :  { %v613_v17 = vld [vmem:[%s8191_s6 + $0xd88] sm:$0xff]  ;;  %909 = vmatprep.subr.mxu1 %v617_v13  ;;  %v612_v19 = vld [vmem:[%s8191_s6 + $0xd80] sm:$0xff]  ;;  %839 = vmatpush1.msra.mxu0 %v488_v14 }
  0x50   :  { %910 = vmatpush1.msra.mxu1 %v616_v15  ;;  %v481_v20 = vld [vmem:[%s8191_s6 + $0x968] sm:$0xff]  ;;  %840 = vmatprep.subr.mxu0 %v485_v16  ;;  %v480_v22 = vld [vmem:[%s8191_s6 + $0x960] sm:$0xff] }
  0x51   :  { %v609_v21 = vld [vmem:[%s8191_s6 + $0xd68] sm:$0xff]  ;;  %911 = vmatprep.subr.mxu1 %v613_v17  ;;  %v608_v23 = vld [vmem:[%s8191_s6 + $0xd60] sm:$0xff]  ;;  %841 = vmatpush1.msra.mxu0 %v484_v18 }
  0x52   :  { %912 = vmatpush1.msra.mxu1 %v612_v19  ;;  %v477_v24 = vld [vmem:[%s8191_s6 + $0x948] sm:$0xff]  ;;  %842 = vmatprep.subr.mxu0 %v481_v20  ;;  %v476_v26 = vld [vmem:[%s8191_s6 + $0x940] sm:$0xff] }
  0x53   :  { %v605_v25 = vld [vmem:[%s8191_s6 + $0xd48] sm:$0xff]  ;;  %913 = vmatprep.subr.mxu1 %v609_v21  ;;  %v604_v27 = vld [vmem:[%s8191_s6 + $0xd40] sm:$0xff]  ;;  %843 = vmatpush1.msra.mxu0 %v480_v22 }
  0x54   :  { %914 = vmatpush1.msra.mxu1 %v608_v23  ;;  %v473_v28 = vld [vmem:[%s8191_s6 + $0x928] sm:$0xff]  ;;  %844 = vmatprep.subr.mxu0 %v477_v24  ;;  %v472_v30 = vld [vmem:[%s8191_s6 + $0x920] sm:$0xff] }
  0x55   :  { %v601_v29 = vld [vmem:[%s8191_s6 + $0xd28] sm:$0xff]  ;;  %915 = vmatprep.subr.mxu1 %v605_v25  ;;  %v600_v31 = vld [vmem:[%s8191_s6 + $0xd20] sm:$0xff]  ;;  %845 = vmatpush1.msra.mxu0 %v476_v26 }
  0x56   :  { %916 = vmatpush1.msra.mxu1 %v604_v27  ;;  %v469_v32 = vld [vmem:[%s8191_s6 + $0x908] sm:$0xff]  ;;  %846 = vmatprep.subr.mxu0 %v473_v28  ;;  %v468_v34 = vld [vmem:[%s8191_s6 + $0x900] sm:$0xff] }
  0x57   :  { %v597_v33 = vld [vmem:[%s8191_s6 + $0xd08] sm:$0xff]  ;;  %917 = vmatprep.subr.mxu1 %v601_v29  ;;  %v596_v35 = vld [vmem:[%s8191_s6 + $0xd00] sm:$0xff]  ;;  %847 = vmatpush1.msra.mxu0 %v472_v30 }
  0x58   :  { %918 = vmatpush1.msra.mxu1 %v600_v31  ;;  %v465_v36 = vld [vmem:[%s8191_s6 + $0x8e8] sm:$0xff]  ;;  %848 = vmatprep.subr.mxu0 %v469_v32  ;;  %v464_v38 = vld [vmem:[%s8191_s6 + $0x8e0] sm:$0xff] }
  0x59   :  { %v593_v37 = vld [vmem:[%s8191_s6 + $0xce8] sm:$0xff]  ;;  %919 = vmatprep.subr.mxu1 %v597_v33  ;;  %v592_v39 = vld [vmem:[%s8191_s6 + $0xce0] sm:$0xff]  ;;  %849 = vmatpush1.msra.mxu0 %v468_v34 }
  0x5a   :  { %920 = vmatpush1.msra.mxu1 %v596_v35  ;;  %v461_v40 = vld [vmem:[%s8191_s6 + $0x8c8] sm:$0xff]  ;;  %850 = vmatprep.subr.mxu0 %v465_v36  ;;  %v460_v42 = vld [vmem:[%s8191_s6 + $0x8c0] sm:$0xff] }
  0x5b   :  { %v589_v41 = vld [vmem:[%s8191_s6 + $0xcc8] sm:$0xff]  ;;  %921 = vmatprep.subr.mxu1 %v593_v37  ;;  %v588_v43 = vld [vmem:[%s8191_s6 + $0xcc0] sm:$0xff]  ;;  %851 = vmatpush1.msra.mxu0 %v464_v38 }
  0x5c   :  { %922 = vmatpush1.msra.mxu1 %v592_v39  ;;  %v457_v44 = vld [vmem:[%s8191_s6 + $0x8a8] sm:$0xff]  ;;  %852 = vmatprep.subr.mxu0 %v461_v40  ;;  %v456_v46 = vld [vmem:[%s8191_s6 + $0x8a0] sm:$0xff] }
  0x5d   :  { %v585_v45 = vld [vmem:[%s8191_s6 + $0xca8] sm:$0xff]  ;;  %923 = vmatprep.subr.mxu1 %v589_v41  ;;  %v584_v47 = vld [vmem:[%s8191_s6 + $0xca0] sm:$0xff]  ;;  %853 = vmatpush1.msra.mxu0 %v460_v42 }
  0x5e   :  { %924 = vmatpush1.msra.mxu1 %v588_v43  ;;  %v453_v48 = vld [vmem:[%s8191_s6 + $0x888] sm:$0xff]  ;;  %854 = vmatprep.subr.mxu0 %v457_v44  ;;  %v452_v50 = vld [vmem:[%s8191_s6 + $0x880] sm:$0xff] }
  0x5f   :  { %v581_v49 = vld [vmem:[%s8191_s6 + $0xc88] sm:$0xff]  ;;  %925 = vmatprep.subr.mxu1 %v585_v45  ;;  %v580_v51 = vld [vmem:[%s8191_s6 + $0xc80] sm:$0xff]  ;;  %855 = vmatpush1.msra.mxu0 %v456_v46 }
  0x60   :  { %926 = vmatpush1.msra.mxu1 %v584_v47  ;;  %v449_v52 = vld [vmem:[%s8191_s6 + $0x868] sm:$0xff]  ;;  %856 = vmatprep.subr.mxu0 %v453_v48  ;;  %v448_v54 = vld [vmem:[%s8191_s6 + $0x860] sm:$0xff] }
  0x61   :  { %v577_v53 = vld [vmem:[%s8191_s6 + $0xc68] sm:$0xff]  ;;  %927 = vmatprep.subr.mxu1 %v581_v49  ;;  %v576_v55 = vld [vmem:[%s8191_s6 + $0xc60] sm:$0xff]  ;;  %857 = vmatpush1.msra.mxu0 %v452_v50 }
  0x62   :  { %928 = vmatpush1.msra.mxu1 %v580_v51  ;;  %v445_v56 = vld [vmem:[%s8191_s6 + $0x848] sm:$0xff]  ;;  %858 = vmatprep.subr.mxu0 %v449_v52  ;;  %v444_v58 = vld [vmem:[%s8191_s6 + $0x840] sm:$0xff] }
  0x63   :  { %v573_v57 = vld [vmem:[%s8191_s6 + $0xc48] sm:$0xff]  ;;  %929 = vmatprep.subr.mxu1 %v577_v53  ;;  %v572_v59 = vld [vmem:[%s8191_s6 + $0xc40] sm:$0xff]  ;;  %859 = vmatpush1.msra.mxu0 %v448_v54 }
  0x64   :  { %930 = vmatpush1.msra.mxu1 %v576_v55  ;;  %v441_v60 = vld [vmem:[%s8191_s6 + $0x828] sm:$0xff]  ;;  %860 = vmatprep.subr.mxu0 %v445_v56  ;;  %v440_v62 = vld [vmem:[%s8191_s6 + $0x820] sm:$0xff] }
  0x65   :  { %v569_v61 = vld [vmem:[%s8191_s6 + $0xc28] sm:$0xff]  ;;  %931 = vmatprep.subr.mxu1 %v573_v57  ;;  %v568_v63 = vld [vmem:[%s8191_s6 + $0xc20] sm:$0xff]  ;;  %861 = vmatpush1.msra.mxu0 %v444_v58 }
  0x66   :  { %932 = vmatpush1.msra.mxu1 %v572_v59  ;;  %v437_v0 = vld [vmem:[%s8191_s6 + $0x808] sm:$0xff]  ;;  %862 = vmatprep.subr.mxu0 %v441_v60  ;;  %v436_v2 = vld [vmem:[%s8191_s6 + $0x800] sm:$0xff] }
  0x67   :  { %v565_v1 = vld [vmem:[%s8191_s6 + $0xc08] sm:$0xff]  ;;  %933 = vmatprep.subr.mxu1 %v569_v61  ;;  %v564_v3 = vld [vmem:[%s8191_s6 + $0xc00] sm:$0xff]  ;;  %863 = vmatpush1.msra.mxu0 %v440_v62 }
  0x68   :  { %934 = vmatpush1.msra.mxu1 %v568_v63  ;;  %v561_v4 = vld [vmem:[%s8191_s6 + $0xbe8] sm:$0xff]  ;;  %864 = vmatprep.subr.mxu0 %v437_v0  ;;  %v560_v6 = vld [vmem:[%s8191_s6 + $0xbe0] sm:$0xff] }
  0x69   :  { %v689_v5 = vld [vmem:[%s8191_s6 + $0xfe8] sm:$0xff]  ;;  %935 = vmatprep.subr.mxu1 %v565_v1  ;;  %v688_v7 = vld [vmem:[%s8191_s6 + $0xfe0] sm:$0xff]  ;;  %865 = vmatpush1.msra.mxu0 %v436_v2 }
  0x6a   :  { %936 = vmatpush1.msra.mxu1 %v564_v3  ;;  %v557_v8 = vld [vmem:[%s8191_s6 + $0xbc8] sm:$0xff]  ;;  %866 = vmatprep.subr.mxu0 %v561_v4  ;;  %v556_v10 = vld [vmem:[%s8191_s6 + $0xbc0] sm:$0xff] }
  0x6b   :  { %v685_v9 = vld [vmem:[%s8191_s6 + $0xfc8] sm:$0xff]  ;;  %937 = vmatprep.subr.mxu1 %v689_v5  ;;  %v684_v11 = vld [vmem:[%s8191_s6 + $0xfc0] sm:$0xff]  ;;  %867 = vmatpush2.msra.mxu0 %v560_v6  ;;  %v179_v6 = vld [vmem:[%s8308_s9 + $0x38] sm:$0xff] }
  0x6c   :  { %938 = vmatpush2.msra.mxu1 %v688_v7  ;;  %v553_v12 = vld [vmem:[%s8191_s6 + $0xba8] sm:$0xff]  ;;  %868 = vmatprep.subr.mxu0 %v557_v8  ;;  %v552_v14 = vld [vmem:[%s8191_s6 + $0xba0] sm:$0xff]  ;;  %v243_v7 = vld [vmem:[%s8191_s6 + $0x1f8] sm:$0xff] }
  0x6d   :  { %v681_v13 = vld [vmem:[%s8191_s6 + $0xfa8] sm:$0xff]  ;;  %939 = vmatprep.subr.mxu1 %v685_v9  ;;  %v680_v15 = vld [vmem:[%s8191_s6 + $0xfa0] sm:$0xff]  ;;  %869 = vmatpush2.msra.mxu0 %v556_v10  ;;  %v371_v8 = vld [vmem:[%s8191_s6 + $0x5f8] sm:$0xff] }
  0x6e   :  { %940 = vmatpush2.msra.mxu1 %v684_v11  ;;  %v549_v16 = vld [vmem:[%s8191_s6 + $0xb88] sm:$0xff]  ;;  %870 = vmatprep.subr.mxu0 %v553_v12  ;;  %v548_v18 = vld [vmem:[%s8191_s6 + $0xb80] sm:$0xff]  ;;  %v178_v9 = vld [vmem:[%s8308_s9 + $0x30] sm:$0xff] }
  0x6f   :  { %v677_v17 = vld [vmem:[%s8191_s6 + $0xf88] sm:$0xff]  ;;  %941 = vmatprep.subr.mxu1 %v681_v13  ;;  %v676_v19 = vld [vmem:[%s8191_s6 + $0xf80] sm:$0xff]  ;;  %871 = vmatpush2.msra.mxu0 %v552_v14  ;;  %v242_v10 = vld [vmem:[%s8191_s6 + $0x1f0] sm:$0xff] }
  0x70   :  { %942 = vmatpush2.msra.mxu1 %v680_v15  ;;  %v545_v20 = vld [vmem:[%s8191_s6 + $0xb68] sm:$0xff]  ;;  %872 = vmatprep.subr.mxu0 %v549_v16  ;;  %v544_v22 = vld [vmem:[%s8191_s6 + $0xb60] sm:$0xff]  ;;  %v370_v11 = vld [vmem:[%s8191_s6 + $0x5f0] sm:$0xff] }
  0x71   :  { %v673_v21 = vld [vmem:[%s8191_s6 + $0xf68] sm:$0xff]  ;;  %943 = vmatprep.subr.mxu1 %v677_v17  ;;  %v672_v23 = vld [vmem:[%s8191_s6 + $0xf60] sm:$0xff]  ;;  %873 = vmatpush2.msra.mxu0 %v548_v18  ;;  %v239_v12 = vld [vmem:[%s8191_s6 + $0x1d8] sm:$0xff] }
  0x72   :  { %944 = vmatpush2.msra.mxu1 %v676_v19  ;;  %v541_v24 = vld [vmem:[%s8191_s6 + $0xb48] sm:$0xff]  ;;  %874 = vmatprep.subr.mxu0 %v545_v20  ;;  %v540_v26 = vld [vmem:[%s8191_s6 + $0xb40] sm:$0xff]  ;;  %v367_v13 = vld [vmem:[%s8191_s6 + $0x5d8] sm:$0xff] }
  0x73   :  { %v669_v25 = vld [vmem:[%s8191_s6 + $0xf48] sm:$0xff]  ;;  %945 = vmatprep.subr.mxu1 %v673_v21  ;;  %v668_v27 = vld [vmem:[%s8191_s6 + $0xf40] sm:$0xff]  ;;  %875 = vmatpush2.msra.mxu0 %v544_v22  ;;  %v238_v14 = vld [vmem:[%s8191_s6 + $0x1d0] sm:$0xff] }
  0x74   :  { %946 = vmatpush2.msra.mxu1 %v672_v23  ;;  %v537_v28 = vld [vmem:[%s8191_s6 + $0xb28] sm:$0xff]  ;;  %876 = vmatprep.subr.mxu0 %v541_v24  ;;  %v536_v30 = vld [vmem:[%s8191_s6 + $0xb20] sm:$0xff]  ;;  %v366_v15 = vld [vmem:[%s8191_s6 + $0x5d0] sm:$0xff] }
  0x75   :  { %v665_v29 = vld [vmem:[%s8191_s6 + $0xf28] sm:$0xff]  ;;  %947 = vmatprep.subr.mxu1 %v669_v25  ;;  %v664_v31 = vld [vmem:[%s8191_s6 + $0xf20] sm:$0xff]  ;;  %877 = vmatpush2.msra.mxu0 %v540_v26  ;;  %v235_v16 = vld [vmem:[%s8191_s6 + $0x1b8] sm:$0xff] }
  0x76   :  { %948 = vmatpush2.msra.mxu1 %v668_v27  ;;  %v533_v32 = vld [vmem:[%s8191_s6 + $0xb08] sm:$0xff]  ;;  %878 = vmatprep.subr.mxu0 %v537_v28  ;;  %v532_v34 = vld [vmem:[%s8191_s6 + $0xb00] sm:$0xff]  ;;  %v363_v17 = vld [vmem:[%s8191_s6 + $0x5b8] sm:$0xff] }
  0x77   :  { %v661_v33 = vld [vmem:[%s8191_s6 + $0xf08] sm:$0xff]  ;;  %949 = vmatprep.subr.mxu1 %v665_v29  ;;  %v660_v35 = vld [vmem:[%s8191_s6 + $0xf00] sm:$0xff]  ;;  %879 = vmatpush2.msra.mxu0 %v536_v30  ;;  %v234_v18 = vld [vmem:[%s8191_s6 + $0x1b0] sm:$0xff] }
  0x78   :  { %950 = vmatpush2.msra.mxu1 %v664_v31  ;;  %v529_v36 = vld [vmem:[%s8191_s6 + $0xae8] sm:$0xff]  ;;  %880 = vmatprep.subr.mxu0 %v533_v32  ;;  %v528_v38 = vld [vmem:[%s8191_s6 + $0xae0] sm:$0xff]  ;;  %v362_v19 = vld [vmem:[%s8191_s6 + $0x5b0] sm:$0xff] }
  0x79   :  { %v657_v37 = vld [vmem:[%s8191_s6 + $0xee8] sm:$0xff]  ;;  %951 = vmatprep.subr.mxu1 %v661_v33  ;;  %v656_v39 = vld [vmem:[%s8191_s6 + $0xee0] sm:$0xff]  ;;  %881 = vmatpush2.msra.mxu0 %v532_v34  ;;  %v231_v20 = vld [vmem:[%s8191_s6 + $0x198] sm:$0xff] }
  0x7a   :  { %952 = vmatpush2.msra.mxu1 %v660_v35  ;;  %v525_v40 = vld [vmem:[%s8191_s6 + $0xac8] sm:$0xff]  ;;  %882 = vmatprep.subr.mxu0 %v529_v36  ;;  %v524_v42 = vld [vmem:[%s8191_s6 + $0xac0] sm:$0xff]  ;;  %v359_v21 = vld [vmem:[%s8191_s6 + $0x598] sm:$0xff] }
  0x7b   :  { %v653_v41 = vld [vmem:[%s8191_s6 + $0xec8] sm:$0xff]  ;;  %953 = vmatprep.subr.mxu1 %v657_v37  ;;  %v652_v43 = vld [vmem:[%s8191_s6 + $0xec0] sm:$0xff]  ;;  %883 = vmatpush2.msra.mxu0 %v528_v38  ;;  %v230_v22 = vld [vmem:[%s8191_s6 + $0x190] sm:$0xff] }
  0x7c   :  { %954 = vmatpush2.msra.mxu1 %v656_v39  ;;  %v521_v44 = vld [vmem:[%s8191_s6 + $0xaa8] sm:$0xff]  ;;  %884 = vmatprep.subr.mxu0 %v525_v40  ;;  %v520_v46 = vld [vmem:[%s8191_s6 + $0xaa0] sm:$0xff]  ;;  %v358_v23 = vld [vmem:[%s8191_s6 + $0x590] sm:$0xff] }
  0x7d   :  { %v649_v45 = vld [vmem:[%s8191_s6 + $0xea8] sm:$0xff]  ;;  %955 = vmatprep.subr.mxu1 %v653_v41  ;;  %v648_v47 = vld [vmem:[%s8191_s6 + $0xea0] sm:$0xff]  ;;  %885 = vmatpush2.msra.mxu0 %v524_v42  ;;  %v227_v24 = vld [vmem:[%s8191_s6 + $0x178] sm:$0xff] }
  0x7e   :  { %956 = vmatpush2.msra.mxu1 %v652_v43  ;;  %v517_v48 = vld [vmem:[%s8191_s6 + $0xa88] sm:$0xff]  ;;  %886 = vmatprep.subr.mxu0 %v521_v44  ;;  %v516_v50 = vld [vmem:[%s8191_s6 + $0xa80] sm:$0xff]  ;;  %v355_v25 = vld [vmem:[%s8191_s6 + $0x578] sm:$0xff] }
  0x7f   :  { %v645_v49 = vld [vmem:[%s8191_s6 + $0xe88] sm:$0xff]  ;;  %957 = vmatprep.subr.mxu1 %v649_v45  ;;  %v644_v51 = vld [vmem:[%s8191_s6 + $0xe80] sm:$0xff]  ;;  %887 = vmatpush2.msra.mxu0 %v520_v46  ;;  %v226_v26 = vld [vmem:[%s8191_s6 + $0x170] sm:$0xff] }
  0x80   :  { %958 = vmatpush2.msra.mxu1 %v648_v47  ;;  %v513_v52 = vld [vmem:[%s8191_s6 + $0xa68] sm:$0xff]  ;;  %888 = vmatprep.subr.mxu0 %v517_v48  ;;  %v512_v54 = vld [vmem:[%s8191_s6 + $0xa60] sm:$0xff]  ;;  %v354_v27 = vld [vmem:[%s8191_s6 + $0x570] sm:$0xff] }
  0x81   :  { %v641_v53 = vld [vmem:[%s8191_s6 + $0xe68] sm:$0xff]  ;;  %959 = vmatprep.subr.mxu1 %v645_v49  ;;  %v640_v55 = vld [vmem:[%s8191_s6 + $0xe60] sm:$0xff]  ;;  %889 = vmatpush2.msra.mxu0 %v516_v50  ;;  %v223_v28 = vld [vmem:[%s8191_s6 + $0x158] sm:$0xff] }
  0x82   :  { %960 = vmatpush2.msra.mxu1 %v644_v51  ;;  %v509_v56 = vld [vmem:[%s8191_s6 + $0xa48] sm:$0xff]  ;;  %890 = vmatprep.subr.mxu0 %v513_v52  ;;  %v508_v58 = vld [vmem:[%s8191_s6 + $0xa40] sm:$0xff]  ;;  %v351_v29 = vld [vmem:[%s8191_s6 + $0x558] sm:$0xff] }
  0x83   :  { %v637_v57 = vld [vmem:[%s8191_s6 + $0xe48] sm:$0xff]  ;;  %961 = vmatprep.subr.mxu1 %v641_v53  ;;  %v636_v59 = vld [vmem:[%s8191_s6 + $0xe40] sm:$0xff]  ;;  %891 = vmatpush2.msra.mxu0 %v512_v54  ;;  %v222_v30 = vld [vmem:[%s8191_s6 + $0x150] sm:$0xff] }
  0x84   :  { %962 = vmatpush2.msra.mxu1 %v640_v55  ;;  %v505_v60 = vld [vmem:[%s8191_s6 + $0xa28] sm:$0xff]  ;;  %892 = vmatprep.subr.mxu0 %v509_v56  ;;  %v504_v62 = vld [vmem:[%s8191_s6 + $0xa20] sm:$0xff]  ;;  %v350_v31 = vld [vmem:[%s8191_s6 + $0x550] sm:$0xff] }
  0x85   :  { %v633_v61 = vld [vmem:[%s8191_s6 + $0xe28] sm:$0xff]  ;;  %963 = vmatprep.subr.mxu1 %v637_v57  ;;  %v632_v63 = vld [vmem:[%s8191_s6 + $0xe20] sm:$0xff]  ;;  %893 = vmatpush2.msra.mxu0 %v508_v58  ;;  %v219_v32 = vld [vmem:[%s8191_s6 + $0x138] sm:$0xff] }
  0x86   :  { %964 = vmatpush2.msra.mxu1 %v636_v59  ;;  %v501_v0 = vld [vmem:[%s8191_s6 + $0xa08] sm:$0xff]  ;;  %894 = vmatprep.subr.mxu0 %v505_v60  ;;  %v500_v2 = vld [vmem:[%s8191_s6 + $0xa00] sm:$0xff]  ;;  %v347_v33 = vld [vmem:[%s8191_s6 + $0x538] sm:$0xff] }
  0x87   :  { %v629_v1 = vld [vmem:[%s8191_s6 + $0xe08] sm:$0xff]  ;;  %965 = vmatprep.subr.mxu1 %v633_v61  ;;  %895 = vmatpush2.msra.mxu0 %v504_v62  ;;  %v628_v4 = vld [vmem:[%s8191_s6 + $0xe00] sm:$0xff]  ;;  %v218_v34 = vld [vmem:[%s8191_s6 + $0x130] sm:$0xff] }
  0x88   :  { %v177_v3 = vld [vmem:[%s8308_s9 + $0x28] sm:$0xff]  ;;  %966 = vmatpush2.msra.mxu1 %v632_v63  ;;  %v176_v5 = vld [vmem:[%s8308_s9 + $0x20] sm:$0xff]  ;;  %896 = vmatprep.subr.mxu0 %v501_v0  ;;  %v346_v35 = vld [vmem:[%s8191_s6 + $0x530] sm:$0xff] }
  0x89   :  { %967 = vmatprep.subr.mxu1 %v629_v1  ;;  %897 = vmatpush2.msra.mxu0 %v500_v2  ;;  %v215_v36 = vld [vmem:[%s8191_s6 + $0x118] sm:$0xff]  ;;  %v214_v38 = vld [vmem:[%s8191_s6 + $0x110] sm:$0xff] }
  0x8a   :  { %898 = vmatprep.mubr.f32.mxu0 %v177_v3  ;;  %968 = vmatpush2.msra.mxu1 %v628_v4  ;;  %v343_v37 = vld [vmem:[%s8191_s6 + $0x518] sm:$0xff]  ;;  %v342_v39 = vld [vmem:[%s8191_s6 + $0x510] sm:$0xff] }
  0x8b   :  { %899 = vmatmul.mubr.f32.vlgmr.msra.gmra.mxu0 %v176_v5  ;;  %969 = vmatprep.mubr.f32.mxu1 %v179_v6  ;;  %v211_v40 = vld [vmem:[%s8191_s6 + $0xf8] sm:$0xff]  ;;  %v210_v42 = vld [vmem:[%s8191_s6 + $0xf0] sm:$0xff] }
  0x8c   :  { %976 = vmatprep.subr.mxu0 %v243_v7  ;;  %1047 = vmatprep.subr.mxu1 %v371_v8  ;;  %v339_v41 = vld [vmem:[%s8191_s6 + $0x4f8] sm:$0xff]  ;;  %v338_v43 = vld [vmem:[%s8191_s6 + $0x4f0] sm:$0xff] }
  0x8d   :  { %970 = vmatmul.mubr.f32.vlgmr.msra.gmra.mxu1 %v178_v9  ;;  %977 = vmatpush1.msra.mxu0 %v242_v10  ;;  %v207_v44 = vld [vmem:[%s8191_s6 + $0xd8] sm:$0xff]  ;;  %v206_v46 = vld [vmem:[%s8191_s6 + $0xd0] sm:$0xff] }
  0x8e   :  { %1048 = vmatpush1.msra.mxu1 %v370_v11  ;;  %978 = vmatprep.subr.mxu0 %v239_v12  ;;  %v335_v45 = vld [vmem:[%s8191_s6 + $0x4d8] sm:$0xff]  ;;  %v334_v47 = vld [vmem:[%s8191_s6 + $0x4d0] sm:$0xff] }
  0x8f   :  { %1049 = vmatprep.subr.mxu1 %v367_v13  ;;  %979 = vmatpush1.msra.mxu0 %v238_v14  ;;  %v203_v48 = vld [vmem:[%s8191_s6 + $0xb8] sm:$0xff]  ;;  %v202_v50 = vld [vmem:[%s8191_s6 + $0xb0] sm:$0xff] }
  0x90   :  { %1050 = vmatpush1.msra.mxu1 %v366_v15  ;;  %980 = vmatprep.subr.mxu0 %v235_v16  ;;  %v331_v49 = vld [vmem:[%s8191_s6 + $0x4b8] sm:$0xff]  ;;  %v330_v51 = vld [vmem:[%s8191_s6 + $0x4b0] sm:$0xff] }
  0x91   :  { %1051 = vmatprep.subr.mxu1 %v363_v17  ;;  %981 = vmatpush1.msra.mxu0 %v234_v18  ;;  %v199_v52 = vld [vmem:[%s8191_s6 + $0x98] sm:$0xff]  ;;  %v198_v54 = vld [vmem:[%s8191_s6 + $0x90] sm:$0xff] }
  0x92   :  { %1052 = vmatpush1.msra.mxu1 %v362_v19  ;;  %982 = vmatprep.subr.mxu0 %v231_v20  ;;  %v327_v53 = vld [vmem:[%s8191_s6 + $0x498] sm:$0xff]  ;;  %v326_v55 = vld [vmem:[%s8191_s6 + $0x490] sm:$0xff] }
  0x93   :  { %1053 = vmatprep.subr.mxu1 %v359_v21  ;;  %983 = vmatpush1.msra.mxu0 %v230_v22  ;;  %v195_v56 = vld [vmem:[%s8191_s6 + $0x78] sm:$0xff]  ;;  %v194_v58 = vld [vmem:[%s8191_s6 + $0x70] sm:$0xff] }
  0x94   :  { %1054 = vmatpush1.msra.mxu1 %v358_v23  ;;  %984 = vmatprep.subr.mxu0 %v227_v24  ;;  %v323_v57 = vld [vmem:[%s8191_s6 + $0x478] sm:$0xff]  ;;  %v322_v59 = vld [vmem:[%s8191_s6 + $0x470] sm:$0xff] }
  0x95   :  { %1055 = vmatprep.subr.mxu1 %v355_v25  ;;  %985 = vmatpush1.msra.mxu0 %v226_v26  ;;  %v191_v60 = vld [vmem:[%s8191_s6 + $0x58] sm:$0xff]  ;;  %v190_v62 = vld [vmem:[%s8191_s6 + $0x50] sm:$0xff] }
  0x96   :  { %1056 = vmatpush1.msra.mxu1 %v354_v27  ;;  %986 = vmatprep.subr.mxu0 %v223_v28  ;;  %v319_v61 = vld [vmem:[%s8191_s6 + $0x458] sm:$0xff]  ;;  %v318_v63 = vld [vmem:[%s8191_s6 + $0x450] sm:$0xff] }
  0x97   :  { %1057 = vmatprep.subr.mxu1 %v351_v29  ;;  %987 = vmatpush1.msra.mxu0 %v222_v30  ;;  %v187_v0 = vld [vmem:[%s8191_s6 + $0x38] sm:$0xff]  ;;  %v186_v2 = vld [vmem:[%s8191_s6 + $0x30] sm:$0xff] }
  0x98   :  { %1058 = vmatpush1.msra.mxu1 %v350_v31  ;;  %988 = vmatprep.subr.mxu0 %v219_v32  ;;  %v315_v1 = vld [vmem:[%s8191_s6 + $0x438] sm:$0xff]  ;;  %v314_v3 = vld [vmem:[%s8191_s6 + $0x430] sm:$0xff] }
  0x99   :  { %1059 = vmatprep.subr.mxu1 %v347_v33  ;;  %989 = vmatpush1.msra.mxu0 %v218_v34  ;;  %v183_v4 = vld [vmem:[%s8191_s6 + $0x18] sm:$0xff]  ;;  %v182_v6 = vld [vmem:[%s8191_s6 + $0x10] sm:$0xff] }
  0x9a   :  { %1060 = vmatpush1.msra.mxu1 %v346_v35  ;;  %990 = vmatprep.subr.mxu0 %v215_v36  ;;  %v311_v5 = vld [vmem:[%s8191_s6 + $0x418] sm:$0xff]  ;;  %v310_v7 = vld [vmem:[%s8191_s6 + $0x410] sm:$0xff] }
  0x9b   :  { %1061 = vmatprep.subr.mxu1 %v343_v37  ;;  %991 = vmatpush1.msra.mxu0 %v214_v38  ;;  %v307_v8 = vld [vmem:[%s8191_s6 + $0x3f8] sm:$0xff]  ;;  %v306_v10 = vld [vmem:[%s8191_s6 + $0x3f0] sm:$0xff] }
  0x9c   :  { %1062 = vmatpush1.msra.mxu1 %v342_v39  ;;  %992 = vmatprep.subr.mxu0 %v211_v40  ;;  %v435_v9 = vld [vmem:[%s8191_s6 + $0x7f8] sm:$0xff]  ;;  %v434_v11 = vld [vmem:[%s8191_s6 + $0x7f0] sm:$0xff] }
  0x9d   :  { %1063 = vmatprep.subr.mxu1 %v339_v41  ;;  %993 = vmatpush1.msra.mxu0 %v210_v42  ;;  %v303_v12 = vld [vmem:[%s8191_s6 + $0x3d8] sm:$0xff]  ;;  %v302_v14 = vld [vmem:[%s8191_s6 + $0x3d0] sm:$0xff] }
  0x9e   :  { %1064 = vmatpush1.msra.mxu1 %v338_v43  ;;  %994 = vmatprep.subr.mxu0 %v207_v44  ;;  %v431_v13 = vld [vmem:[%s8191_s6 + $0x7d8] sm:$0xff]  ;;  %v430_v15 = vld [vmem:[%s8191_s6 + $0x7d0] sm:$0xff] }
  0x9f   :  { %1065 = vmatprep.subr.mxu1 %v335_v45  ;;  %995 = vmatpush1.msra.mxu0 %v206_v46  ;;  %v299_v16 = vld [vmem:[%s8191_s6 + $0x3b8] sm:$0xff]  ;;  %v298_v18 = vld [vmem:[%s8191_s6 + $0x3b0] sm:$0xff] }
  0xa0   :  { %1066 = vmatpush1.msra.mxu1 %v334_v47  ;;  %996 = vmatprep.subr.mxu0 %v203_v48  ;;  %v427_v17 = vld [vmem:[%s8191_s6 + $0x7b8] sm:$0xff]  ;;  %v426_v19 = vld [vmem:[%s8191_s6 + $0x7b0] sm:$0xff] }
  0xa1   :  { %1067 = vmatprep.subr.mxu1 %v331_v49  ;;  %997 = vmatpush1.msra.mxu0 %v202_v50  ;;  %v295_v20 = vld [vmem:[%s8191_s6 + $0x398] sm:$0xff]  ;;  %v294_v22 = vld [vmem:[%s8191_s6 + $0x390] sm:$0xff] }
  0xa2   :  { %1068 = vmatpush1.msra.mxu1 %v330_v51  ;;  %998 = vmatprep.subr.mxu0 %v199_v52  ;;  %v423_v21 = vld [vmem:[%s8191_s6 + $0x798] sm:$0xff]  ;;  %v422_v23 = vld [vmem:[%s8191_s6 + $0x790] sm:$0xff] }
  0xa3   :  { %1069 = vmatprep.subr.mxu1 %v327_v53  ;;  %999 = vmatpush1.msra.mxu0 %v198_v54  ;;  %v291_v24 = vld [vmem:[%s8191_s6 + $0x378] sm:$0xff]  ;;  %v290_v26 = vld [vmem:[%s8191_s6 + $0x370] sm:$0xff] }
  0xa4   :  { %1070 = vmatpush1.msra.mxu1 %v326_v55  ;;  %1000 = vmatprep.subr.mxu0 %v195_v56  ;;  %v419_v25 = vld [vmem:[%s8191_s6 + $0x778] sm:$0xff]  ;;  %v418_v27 = vld [vmem:[%s8191_s6 + $0x770] sm:$0xff] }
  0xa5   :  { %1071 = vmatprep.subr.mxu1 %v323_v57  ;;  %1001 = vmatpush1.msra.mxu0 %v194_v58  ;;  %v287_v28 = vld [vmem:[%s8191_s6 + $0x358] sm:$0xff]  ;;  %v286_v30 = vld [vmem:[%s8191_s6 + $0x350] sm:$0xff] }
  0xa6   :  { %1072 = vmatpush1.msra.mxu1 %v322_v59  ;;  %1002 = vmatprep.subr.mxu0 %v191_v60  ;;  %v415_v29 = vld [vmem:[%s8191_s6 + $0x758] sm:$0xff]  ;;  %v414_v31 = vld [vmem:[%s8191_s6 + $0x750] sm:$0xff] }
  0xa7   :  { %1073 = vmatprep.subr.mxu1 %v319_v61  ;;  %1003 = vmatpush1.msra.mxu0 %v190_v62  ;;  %v283_v32 = vld [vmem:[%s8191_s6 + $0x338] sm:$0xff]  ;;  %v282_v34 = vld [vmem:[%s8191_s6 + $0x330] sm:$0xff] }
  0xa8   :  { %1074 = vmatpush1.msra.mxu1 %v318_v63  ;;  %1004 = vmatprep.subr.mxu0 %v187_v0  ;;  %v411_v33 = vld [vmem:[%s8191_s6 + $0x738] sm:$0xff]  ;;  %v410_v35 = vld [vmem:[%s8191_s6 + $0x730] sm:$0xff] }
  0xa9   :  { %1075 = vmatprep.subr.mxu1 %v315_v1  ;;  %1005 = vmatpush1.msra.mxu0 %v186_v2  ;;  %v279_v36 = vld [vmem:[%s8191_s6 + $0x318] sm:$0xff]  ;;  %v278_v38 = vld [vmem:[%s8191_s6 + $0x310] sm:$0xff] }
  0xaa   :  { %1076 = vmatpush1.msra.mxu1 %v314_v3  ;;  %1006 = vmatprep.subr.mxu0 %v183_v4  ;;  %v407_v37 = vld [vmem:[%s8191_s6 + $0x718] sm:$0xff]  ;;  %v406_v39 = vld [vmem:[%s8191_s6 + $0x710] sm:$0xff] }
  0xab   :  { %1077 = vmatprep.subr.mxu1 %v311_v5  ;;  %1007 = vmatpush1.msra.mxu0 %v182_v6  ;;  %v275_v40 = vld [vmem:[%s8191_s6 + $0x2f8] sm:$0xff]  ;;  %v274_v42 = vld [vmem:[%s8191_s6 + $0x2f0] sm:$0xff] }
  0xac   :  { %1078 = vmatpush1.msra.mxu1 %v310_v7  ;;  %1008 = vmatprep.subr.mxu0 %v307_v8  ;;  %v403_v41 = vld [vmem:[%s8191_s6 + $0x6f8] sm:$0xff]  ;;  %v402_v43 = vld [vmem:[%s8191_s6 + $0x6f0] sm:$0xff]  ;;  %v8131_v8 = vld [vmem:[%s8308_s9 + $0x8] sm:$0xff] }
  0xad   :  { %1079 = vmatprep.subr.mxu1 %v435_v9  ;;  %1009 = vmatpush2.msra.mxu0 %v306_v10  ;;  %v271_v44 = vld [vmem:[%s8191_s6 + $0x2d8] sm:$0xff]  ;;  %v270_v46 = vld [vmem:[%s8191_s6 + $0x2d0] sm:$0xff] }
  0xae   :  { %1080 = vmatpush2.msra.mxu1 %v434_v11  ;;  %1010 = vmatprep.subr.mxu0 %v303_v12  ;;  %v399_v45 = vld [vmem:[%s8191_s6 + $0x6d8] sm:$0xff]  ;;  %v398_v47 = vld [vmem:[%s8191_s6 + $0x6d0] sm:$0xff] }
  0xaf   :  { %1081 = vmatprep.subr.mxu1 %v431_v13  ;;  %1011 = vmatpush2.msra.mxu0 %v302_v14  ;;  %v267_v48 = vld [vmem:[%s8191_s6 + $0x2b8] sm:$0xff]  ;;  %v266_v50 = vld [vmem:[%s8191_s6 + $0x2b0] sm:$0xff]  ;;  %v8133_v14 = vld [vmem:[%s8308_s9] sm:$0xff] }
  0xb0   :  { %1082 = vmatpush2.msra.mxu1 %v430_v15  ;;  %1012 = vmatprep.subr.mxu0 %v299_v16  ;;  %v395_v49 = vld [vmem:[%s8191_s6 + $0x6b8] sm:$0xff]  ;;  %v394_v51 = vld [vmem:[%s8191_s6 + $0x6b0] sm:$0xff] }
  0xb1   :  { %1083 = vmatprep.subr.mxu1 %v427_v17  ;;  %1013 = vmatpush2.msra.mxu0 %v298_v18  ;;  %v263_v52 = vld [vmem:[%s8191_s6 + $0x298] sm:$0xff]  ;;  %v262_v54 = vld [vmem:[%s8191_s6 + $0x290] sm:$0xff] }
  0xb2   :  { %1084 = vmatpush2.msra.mxu1 %v426_v19  ;;  %1014 = vmatprep.subr.mxu0 %v295_v20  ;;  %v391_v53 = vld [vmem:[%s8191_s6 + $0x698] sm:$0xff]  ;;  %v390_v55 = vld [vmem:[%s8191_s6 + $0x690] sm:$0xff] }
  0xb3   :  { %1085 = vmatprep.subr.mxu1 %v423_v21  ;;  %1015 = vmatpush2.msra.mxu0 %v294_v22  ;;  %v259_v56 = vld [vmem:[%s8191_s6 + $0x278] sm:$0xff]  ;;  %v258_v58 = vld [vmem:[%s8191_s6 + $0x270] sm:$0xff] }
  0xb4   :  { %1086 = vmatpush2.msra.mxu1 %v422_v23  ;;  %1016 = vmatprep.subr.mxu0 %v291_v24  ;;  %v387_v57 = vld [vmem:[%s8191_s6 + $0x678] sm:$0xff]  ;;  %v386_v59 = vld [vmem:[%s8191_s6 + $0x670] sm:$0xff] }
  0xb5   :  { %1087 = vmatprep.subr.mxu1 %v419_v25  ;;  %1017 = vmatpush2.msra.mxu0 %v290_v26  ;;  %v255_v60 = vld [vmem:[%s8191_s6 + $0x258] sm:$0xff]  ;;  %v254_v62 = vld [vmem:[%s8191_s6 + $0x250] sm:$0xff] }
  0xb6   :  { %1088 = vmatpush2.msra.mxu1 %v418_v27  ;;  %1018 = vmatprep.subr.mxu0 %v287_v28  ;;  %v383_v61 = vld [vmem:[%s8191_s6 + $0x658] sm:$0xff]  ;;  %v382_v63 = vld [vmem:[%s8191_s6 + $0x650] sm:$0xff] }
  0xb7   :  { %1089 = vmatprep.subr.mxu1 %v415_v29  ;;  %1019 = vmatpush2.msra.mxu0 %v286_v30  ;;  %v251_v0 = vld [vmem:[%s8191_s6 + $0x238] sm:$0xff]  ;;  %v250_v2 = vld [vmem:[%s8191_s6 + $0x230] sm:$0xff] }
  0xb8   :  { %1090 = vmatpush2.msra.mxu1 %v414_v31  ;;  %1020 = vmatprep.subr.mxu0 %v283_v32  ;;  %v379_v1 = vld [vmem:[%s8191_s6 + $0x638] sm:$0xff]  ;;  %v378_v3 = vld [vmem:[%s8191_s6 + $0x630] sm:$0xff] }
  0xb9   :  { %1091 = vmatprep.subr.mxu1 %v411_v33  ;;  %1021 = vmatpush2.msra.mxu0 %v282_v34  ;;  %v247_v4 = vld [vmem:[%s8191_s6 + $0x218] sm:$0xff]  ;;  %v246_v6 = vld [vmem:[%s8191_s6 + $0x210] sm:$0xff] }
  0xba   :  { %1092 = vmatpush2.msra.mxu1 %v410_v35  ;;  %1022 = vmatprep.subr.mxu0 %v279_v36  ;;  %v375_v5 = vld [vmem:[%s8191_s6 + $0x618] sm:$0xff]  ;;  %v374_v7 = vld [vmem:[%s8191_s6 + $0x610] sm:$0xff] }
  0xbb   :  { %1093 = vmatprep.subr.mxu1 %v407_v37  ;;  %1023 = vmatpush2.msra.mxu0 %v278_v38  ;;  %v499_v9 = vld [vmem:[%s8191_s6 + $0x9f8] sm:$0xff]  ;;  %v498_v12 = vld [vmem:[%s8191_s6 + $0x9f0] sm:$0xff] }
  0xbc   :  { %1094 = vmatpush2.msra.mxu1 %v406_v39  ;;  %1024 = vmatprep.subr.mxu0 %v275_v40  ;;  %v627_v10 = vld [vmem:[%s8191_s6 + $0xdf8] sm:$0xff]  ;;  %v626_v13 = vld [vmem:[%s8191_s6 + $0xdf0] sm:$0xff] }
  0xbd   :  { %1095 = vmatprep.subr.mxu1 %v403_v41  ;;  %1025 = vmatpush2.msra.mxu0 %v274_v42  ;;  %v8132_v11 = vld [vmem:[%s8308_s9 + $0x18] sm:$0xff]  ;;  %v8134_v15 = vld [vmem:[%s8308_s9 + $0x10] sm:$0xff] }
  0xbe   :  { %1096 = vmatpush2.msra.mxu1 %v402_v43  ;;  %1026 = vmatprep.subr.mxu0 %v271_v44  ;;  %v495_v16 = vld [vmem:[%s8191_s6 + $0x9d8] sm:$0xff]  ;;  %v494_v18 = vld [vmem:[%s8191_s6 + $0x9d0] sm:$0xff] }
  0xbf   :  { %1097 = vmatprep.subr.mxu1 %v399_v45  ;;  %1027 = vmatpush2.msra.mxu0 %v270_v46  ;;  %v623_v17 = vld [vmem:[%s8191_s6 + $0xdd8] sm:$0xff]  ;;  %v622_v19 = vld [vmem:[%s8191_s6 + $0xdd0] sm:$0xff] }
  0xc0   :  { %1098 = vmatpush2.msra.mxu1 %v398_v47  ;;  %1028 = vmatprep.subr.mxu0 %v267_v48  ;;  %v491_v20 = vld [vmem:[%s8191_s6 + $0x9b8] sm:$0xff]  ;;  %v490_v22 = vld [vmem:[%s8191_s6 + $0x9b0] sm:$0xff] }
  0xc1   :  { %1099 = vmatprep.subr.mxu1 %v395_v49  ;;  %1029 = vmatpush2.msra.mxu0 %v266_v50  ;;  %v619_v21 = vld [vmem:[%s8191_s6 + $0xdb8] sm:$0xff]  ;;  %v618_v23 = vld [vmem:[%s8191_s6 + $0xdb0] sm:$0xff] }
  0xc2   :  { %1100 = vmatpush2.msra.mxu1 %v394_v51  ;;  %1030 = vmatprep.subr.mxu0 %v263_v52  ;;  %v487_v24 = vld [vmem:[%s8191_s6 + $0x998] sm:$0xff]  ;;  %v486_v26 = vld [vmem:[%s8191_s6 + $0x990] sm:$0xff] }
  0xc3   :  { %1101 = vmatprep.subr.mxu1 %v391_v53  ;;  %1031 = vmatpush2.msra.mxu0 %v262_v54  ;;  %v615_v25 = vld [vmem:[%s8191_s6 + $0xd98] sm:$0xff]  ;;  %v614_v27 = vld [vmem:[%s8191_s6 + $0xd90] sm:$0xff] }
  0xc4   :  { %1102 = vmatpush2.msra.mxu1 %v390_v55  ;;  %1032 = vmatprep.subr.mxu0 %v259_v56  ;;  %v483_v28 = vld [vmem:[%s8191_s6 + $0x978] sm:$0xff]  ;;  %v482_v30 = vld [vmem:[%s8191_s6 + $0x970] sm:$0xff] }
  0xc5   :  { %1103 = vmatprep.subr.mxu1 %v387_v57  ;;  %1033 = vmatpush2.msra.mxu0 %v258_v58  ;;  %v611_v29 = vld [vmem:[%s8191_s6 + $0xd78] sm:$0xff]  ;;  %v610_v31 = vld [vmem:[%s8191_s6 + $0xd70] sm:$0xff] }
  0xc6   :  { %1104 = vmatpush2.msra.mxu1 %v386_v59  ;;  %1034 = vmatprep.subr.mxu0 %v255_v60  ;;  %v479_v32 = vld [vmem:[%s8191_s6 + $0x958] sm:$0xff]  ;;  %v478_v34 = vld [vmem:[%s8191_s6 + $0x950] sm:$0xff] }
  0xc7   :  { %1105 = vmatprep.subr.mxu1 %v383_v61  ;;  %1035 = vmatpush2.msra.mxu0 %v254_v62  ;;  %v607_v33 = vld [vmem:[%s8191_s6 + $0xd58] sm:$0xff]  ;;  %v606_v35 = vld [vmem:[%s8191_s6 + $0xd50] sm:$0xff] }
  0xc8   :  { %1106 = vmatpush2.msra.mxu1 %v382_v63  ;;  %1036 = vmatprep.subr.mxu0 %v251_v0  ;;  %v475_v36 = vld [vmem:[%s8191_s6 + $0x938] sm:$0xff]  ;;  %v474_v38 = vld [vmem:[%s8191_s6 + $0x930] sm:$0xff] }
  0xc9   :  { %1107 = vmatprep.subr.mxu1 %v379_v1  ;;  %1037 = vmatpush2.msra.mxu0 %v250_v2  ;;  %v603_v37 = vld [vmem:[%s8191_s6 + $0xd38] sm:$0xff]  ;;  %v602_v39 = vld [vmem:[%s8191_s6 + $0xd30] sm:$0xff] }
  0xca   :  { %1108 = vmatpush2.msra.mxu1 %v378_v3  ;;  %1038 = vmatprep.subr.mxu0 %v247_v4  ;;  %v471_v40 = vld [vmem:[%s8191_s6 + $0x918] sm:$0xff]  ;;  %v470_v42 = vld [vmem:[%s8191_s6 + $0x910] sm:$0xff] }
  0xcb   :  { %1109 = vmatprep.subr.mxu1 %v375_v5  ;;  %1039 = vmatpush2.msra.mxu0 %v246_v6  ;;  %v599_v41 = vld [vmem:[%s8191_s6 + $0xd18] sm:$0xff]  ;;  %v598_v43 = vld [vmem:[%s8191_s6 + $0xd10] sm:$0xff] }
  0xcc   :  { %1040 = vmatprep.mubr.f32.mxu0 %v8131_v8  ;;  %1110 = vmatpush2.msra.mxu1 %v374_v7  ;;  %v467_v44 = vld [vmem:[%s8191_s6 + $0x8f8] sm:$0xff]  ;;  %v466_v46 = vld [vmem:[%s8191_s6 + $0x8f0] sm:$0xff] }
  0xcd   :  { %1111 = vmatprep.mubr.f32.mxu1 %v8132_v11  ;;  %1041 = vmatmul.mubr.f32.vlgmr.msra.gmra.mxu0 %v8133_v14  ;;  %v595_v45 = vld [vmem:[%s8191_s6 + $0xcf8] sm:$0xff]  ;;  %v594_v47 = vld [vmem:[%s8191_s6 + $0xcf0] sm:$0xff] }
  0xce   :  { %1112 = vmatmul.mubr.f32.vlgmr.msra.gmra.mxu1 %v8134_v15  ;;  %1118 = vmatprep.subr.mxu0 %v499_v9  ;;  %v463_v48 = vld [vmem:[%s8191_s6 + $0x8d8] sm:$0xff]  ;;  %v462_v50 = vld [vmem:[%s8191_s6 + $0x8d0] sm:$0xff] }
  0xcf   :  { %1189 = vmatprep.subr.mxu1 %v627_v10  ;;  %1119 = vmatpush1.msra.mxu0 %v498_v12  ;;  %v591_v49 = vld [vmem:[%s8191_s6 + $0xcd8] sm:$0xff]  ;;  %v590_v51 = vld [vmem:[%s8191_s6 + $0xcd0] sm:$0xff] }
  0xd0   :  { %1190 = vmatpush1.msra.mxu1 %v626_v13  ;;  %1120 = vmatprep.subr.mxu0 %v495_v16  ;;  %v459_v52 = vld [vmem:[%s8191_s6 + $0x8b8] sm:$0xff]  ;;  %v458_v54 = vld [vmem:[%s8191_s6 + $0x8b0] sm:$0xff] }
  0xd1   :  { %1191 = vmatprep.subr.mxu1 %v623_v17  ;;  %1121 = vmatpush1.msra.mxu0 %v494_v18  ;;  %v587_v53 = vld [vmem:[%s8191_s6 + $0xcb8] sm:$0xff]  ;;  %v586_v55 = vld [vmem:[%s8191_s6 + $0xcb0] sm:$0xff] }
  0xd2   :  { %1192 = vmatpush1.msra.mxu1 %v622_v19  ;;  %1122 = vmatprep.subr.mxu0 %v491_v20  ;;  %v455_v56 = vld [vmem:[%s8191_s6 + $0x898] sm:$0xff]  ;;  %v454_v58 = vld [vmem:[%s8191_s6 + $0x890] sm:$0xff] }
  0xd3   :  { %1193 = vmatprep.subr.mxu1 %v619_v21  ;;  %1123 = vmatpush1.msra.mxu0 %v490_v22  ;;  %v583_v57 = vld [vmem:[%s8191_s6 + $0xc98] sm:$0xff]  ;;  %v582_v59 = vld [vmem:[%s8191_s6 + $0xc90] sm:$0xff] }
  0xd4   :  { %1194 = vmatpush1.msra.mxu1 %v618_v23  ;;  %1124 = vmatprep.subr.mxu0 %v487_v24  ;;  %v451_v60 = vld [vmem:[%s8191_s6 + $0x878] sm:$0xff]  ;;  %v450_v62 = vld [vmem:[%s8191_s6 + $0x870] sm:$0xff] }
  0xd5   :  { %1195 = vmatprep.subr.mxu1 %v615_v25  ;;  %1125 = vmatpush1.msra.mxu0 %v486_v26  ;;  %v579_v61 = vld [vmem:[%s8191_s6 + $0xc78] sm:$0xff]  ;;  %v578_v63 = vld [vmem:[%s8191_s6 + $0xc70] sm:$0xff] }
  0xd6   :  { %1196 = vmatpush1.msra.mxu1 %v614_v27  ;;  %1126 = vmatprep.subr.mxu0 %v483_v28  ;;  %v447_v0 = vld [vmem:[%s8191_s6 + $0x858] sm:$0xff]  ;;  %v446_v2 = vld [vmem:[%s8191_s6 + $0x850] sm:$0xff] }
  0xd7   :  { %1197 = vmatprep.subr.mxu1 %v611_v29  ;;  %1127 = vmatpush1.msra.mxu0 %v482_v30  ;;  %v575_v1 = vld [vmem:[%s8191_s6 + $0xc58] sm:$0xff]  ;;  %v574_v3 = vld [vmem:[%s8191_s6 + $0xc50] sm:$0xff] }
  0xd8   :  { %1198 = vmatpush1.msra.mxu1 %v610_v31  ;;  %1128 = vmatprep.subr.mxu0 %v479_v32  ;;  %v443_v4 = vld [vmem:[%s8191_s6 + $0x838] sm:$0xff]  ;;  %v442_v6 = vld [vmem:[%s8191_s6 + $0x830] sm:$0xff] }
  0xd9   :  { %1199 = vmatprep.subr.mxu1 %v607_v33  ;;  %1129 = vmatpush1.msra.mxu0 %v478_v34  ;;  %v571_v5 = vld [vmem:[%s8191_s6 + $0xc38] sm:$0xff]  ;;  %v570_v7 = vld [vmem:[%s8191_s6 + $0xc30] sm:$0xff] }
  0xda   :  { %1200 = vmatpush1.msra.mxu1 %v606_v35  ;;  %1130 = vmatprep.subr.mxu0 %v475_v36  ;;  %v439_v8 = vld [vmem:[%s8191_s6 + $0x818] sm:$0xff]  ;;  %v438_v10 = vld [vmem:[%s8191_s6 + $0x810] sm:$0xff] }
  0xdb   :  { %1201 = vmatprep.subr.mxu1 %v603_v37  ;;  %1131 = vmatpush1.msra.mxu0 %v474_v38  ;;  %v567_v9 = vld [vmem:[%s8191_s6 + $0xc18] sm:$0xff]  ;;  %v566_v11 = vld [vmem:[%s8191_s6 + $0xc10] sm:$0xff] }
  0xdc   :  { %1202 = vmatpush1.msra.mxu1 %v602_v39  ;;  %1132 = vmatprep.subr.mxu0 %v471_v40  ;;  %v563_v12 = vld [vmem:[%s8191_s6 + $0xbf8] sm:$0xff]  ;;  %v562_v14 = vld [vmem:[%s8191_s6 + $0xbf0] sm:$0xff] }
  0xdd   :  { %1203 = vmatprep.subr.mxu1 %v599_v41  ;;  %1133 = vmatpush1.msra.mxu0 %v470_v42  ;;  %v691_v13 = vld [vmem:[%s8191_s6 + $0xff8] sm:$0xff]  ;;  %v690_v15 = vld [vmem:[%s8191_s6 + $0xff0] sm:$0xff] }
  0xde   :  { %1204 = vmatpush1.msra.mxu1 %v598_v43  ;;  %1134 = vmatprep.subr.mxu0 %v467_v44  ;;  %v559_v16 = vld [vmem:[%s8191_s6 + $0xbd8] sm:$0xff]  ;;  %v558_v18 = vld [vmem:[%s8191_s6 + $0xbd0] sm:$0xff] }
  0xdf   :  { %1205 = vmatprep.subr.mxu1 %v595_v45  ;;  %1135 = vmatpush1.msra.mxu0 %v466_v46  ;;  %v687_v17 = vld [vmem:[%s8191_s6 + $0xfd8] sm:$0xff]  ;;  %v686_v19 = vld [vmem:[%s8191_s6 + $0xfd0] sm:$0xff] }
  0xe0   :  { %1206 = vmatpush1.msra.mxu1 %v594_v47  ;;  %1136 = vmatprep.subr.mxu0 %v463_v48  ;;  %v555_v20 = vld [vmem:[%s8191_s6 + $0xbb8] sm:$0xff]  ;;  %v554_v22 = vld [vmem:[%s8191_s6 + $0xbb0] sm:$0xff] }
  0xe1   :  { %1207 = vmatprep.subr.mxu1 %v591_v49  ;;  %1137 = vmatpush1.msra.mxu0 %v462_v50  ;;  %v683_v21 = vld [vmem:[%s8191_s6 + $0xfb8] sm:$0xff]  ;;  %v682_v23 = vld [vmem:[%s8191_s6 + $0xfb0] sm:$0xff] }
  0xe2   :  { %1208 = vmatpush1.msra.mxu1 %v590_v51  ;;  %1138 = vmatprep.subr.mxu0 %v459_v52  ;;  %v551_v24 = vld [vmem:[%s8191_s6 + $0xb98] sm:$0xff]  ;;  %v550_v26 = vld [vmem:[%s8191_s6 + $0xb90] sm:$0xff] }
  0xe3   :  { %1209 = vmatprep.subr.mxu1 %v587_v53  ;;  %1139 = vmatpush1.msra.mxu0 %v458_v54  ;;  %v679_v25 = vld [vmem:[%s8191_s6 + $0xf98] sm:$0xff]  ;;  %v678_v27 = vld [vmem:[%s8191_s6 + $0xf90] sm:$0xff] }
  0xe4   :  { %1210 = vmatpush1.msra.mxu1 %v586_v55  ;;  %1140 = vmatprep.subr.mxu0 %v455_v56  ;;  %v547_v28 = vld [vmem:[%s8191_s6 + $0xb78] sm:$0xff]  ;;  %v546_v30 = vld [vmem:[%s8191_s6 + $0xb70] sm:$0xff] }
  0xe5   :  { %1211 = vmatprep.subr.mxu1 %v583_v57  ;;  %1141 = vmatpush1.msra.mxu0 %v454_v58  ;;  %v675_v29 = vld [vmem:[%s8191_s6 + $0xf78] sm:$0xff]  ;;  %v674_v31 = vld [vmem:[%s8191_s6 + $0xf70] sm:$0xff] }
  0xe6   :  { %1212 = vmatpush1.msra.mxu1 %v582_v59  ;;  %1142 = vmatprep.subr.mxu0 %v451_v60  ;;  %v543_v32 = vld [vmem:[%s8191_s6 + $0xb58] sm:$0xff]  ;;  %v542_v34 = vld [vmem:[%s8191_s6 + $0xb50] sm:$0xff] }
  0xe7   :  { %1213 = vmatprep.subr.mxu1 %v579_v61  ;;  %1143 = vmatpush1.msra.mxu0 %v450_v62  ;;  %v671_v33 = vld [vmem:[%s8191_s6 + $0xf58] sm:$0xff]  ;;  %v670_v35 = vld [vmem:[%s8191_s6 + $0xf50] sm:$0xff] }
  0xe8   :  { %1214 = vmatpush1.msra.mxu1 %v578_v63  ;;  %1144 = vmatprep.subr.mxu0 %v447_v0  ;;  %v539_v36 = vld [vmem:[%s8191_s6 + $0xb38] sm:$0xff]  ;;  %v538_v38 = vld [vmem:[%s8191_s6 + $0xb30] sm:$0xff] }
  0xe9   :  { %1215 = vmatprep.subr.mxu1 %v575_v1  ;;  %1145 = vmatpush1.msra.mxu0 %v446_v2  ;;  %v667_v37 = vld [vmem:[%s8191_s6 + $0xf38] sm:$0xff]  ;;  %v666_v39 = vld [vmem:[%s8191_s6 + $0xf30] sm:$0xff] }
  0xea   :  { %1216 = vmatpush1.msra.mxu1 %v574_v3  ;;  %1146 = vmatprep.subr.mxu0 %v443_v4  ;;  %v535_v40 = vld [vmem:[%s8191_s6 + $0xb18] sm:$0xff]  ;;  %v534_v42 = vld [vmem:[%s8191_s6 + $0xb10] sm:$0xff] }
  0xeb   :  { %1217 = vmatprep.subr.mxu1 %v571_v5  ;;  %1147 = vmatpush1.msra.mxu0 %v442_v6  ;;  %v663_v41 = vld [vmem:[%s8191_s6 + $0xf18] sm:$0xff]  ;;  %v662_v43 = vld [vmem:[%s8191_s6 + $0xf10] sm:$0xff] }
  0xec   :  { %1218 = vmatpush1.msra.mxu1 %v570_v7  ;;  %1148 = vmatprep.subr.mxu0 %v439_v8  ;;  %v531_v44 = vld [vmem:[%s8191_s6 + $0xaf8] sm:$0xff]  ;;  %v530_v46 = vld [vmem:[%s8191_s6 + $0xaf0] sm:$0xff] }
  0xed   :  { %1219 = vmatprep.subr.mxu1 %v567_v9  ;;  %1149 = vmatpush1.msra.mxu0 %v438_v10  ;;  %v659_v45 = vld [vmem:[%s8191_s6 + $0xef8] sm:$0xff]  ;;  %v658_v47 = vld [vmem:[%s8191_s6 + $0xef0] sm:$0xff] }
  0xee   :  { %1220 = vmatpush1.msra.mxu1 %v566_v11  ;;  %1150 = vmatprep.subr.mxu0 %v563_v12  ;;  %v527_v48 = vld [vmem:[%s8191_s6 + $0xad8] sm:$0xff]  ;;  %v526_v50 = vld [vmem:[%s8191_s6 + $0xad0] sm:$0xff]  ;;  %v8135_v12 = vld [vmem:[%s8308_s9 + $0x28] sm:$0xff] }
  0xef   :  { %1221 = vmatprep.subr.mxu1 %v691_v13  ;;  %1151 = vmatpush2.msra.mxu0 %v562_v14  ;;  %v655_v49 = vld [vmem:[%s8191_s6 + $0xed8] sm:$0xff]  ;;  %v654_v51 = vld [vmem:[%s8191_s6 + $0xed0] sm:$0xff] }
  0xf0   :  { %1222 = vmatpush2.msra.mxu1 %v690_v15  ;;  %1152 = vmatprep.subr.mxu0 %v559_v16  ;;  %v523_v52 = vld [vmem:[%s8191_s6 + $0xab8] sm:$0xff]  ;;  %v522_v54 = vld [vmem:[%s8191_s6 + $0xab0] sm:$0xff]  ;;  %v8137_v16 = vld [vmem:[%s8308_s9 + $0x20] sm:$0xff] }
  0xf1   :  { %1223 = vmatprep.subr.mxu1 %v687_v17  ;;  %1153 = vmatpush2.msra.mxu0 %v558_v18  ;;  %v651_v53 = vld [vmem:[%s8191_s6 + $0xeb8] sm:$0xff]  ;;  %v650_v55 = vld [vmem:[%s8191_s6 + $0xeb0] sm:$0xff] }
  0xf2   :  { %1224 = vmatpush2.msra.mxu1 %v686_v19  ;;  %1154 = vmatprep.subr.mxu0 %v555_v20  ;;  %v519_v56 = vld [vmem:[%s8191_s6 + $0xa98] sm:$0xff]  ;;  %v518_v58 = vld [vmem:[%s8191_s6 + $0xa90] sm:$0xff] }
  0xf3   :  { %1225 = vmatprep.subr.mxu1 %v683_v21  ;;  %1155 = vmatpush2.msra.mxu0 %v554_v22  ;;  %v647_v57 = vld [vmem:[%s8191_s6 + $0xe98] sm:$0xff]  ;;  %v646_v59 = vld [vmem:[%s8191_s6 + $0xe90] sm:$0xff]  ;;  %v8749_v21 = vld [vmem:[%s8715_s13 + $0xe8] sm:$0xff]  ;;  %v12222_v22 = vmov 0.0  }
  0xf4   :  { %1226 = vmatpush2.msra.mxu1 %v682_v23  ;;  %1156 = vmatprep.subr.mxu0 %v551_v24  ;;  %v515_v60 = vld [vmem:[%s8191_s6 + $0xa78] sm:$0xff]  ;;  %v514_v62 = vld [vmem:[%s8191_s6 + $0xa70] sm:$0xff]  ;;  %v8757_v24 = vld [vmem:[%s8715_s13 + $0x68] sm:$0xff] }
  0xf5   :  { %1227 = vmatprep.subr.mxu1 %v679_v25  ;;  %1157 = vmatpush2.msra.mxu0 %v550_v26  ;;  %v643_v61 = vld [vmem:[%s8191_s6 + $0xe78] sm:$0xff]  ;;  %v642_v63 = vld [vmem:[%s8191_s6 + $0xe70] sm:$0xff]  ;;  %v8762_v25 = vld [vmem:[%s8715_s13 + $0xe0] sm:$0xff] }
  0xf6   :  { %1228 = vmatpush2.msra.mxu1 %v678_v27  ;;  %1158 = vmatprep.subr.mxu0 %v547_v28  ;;  %v511_v0 = vld [vmem:[%s8191_s6 + $0xa58] sm:$0xff]  ;;  %v510_v2 = vld [vmem:[%s8191_s6 + $0xa50] sm:$0xff]  ;;  %v8766_v26 = vld [vmem:[%s8715_s13 + $0x168] sm:$0xff] }
  0xf7   :  { %1229 = vmatprep.subr.mxu1 %v675_v29  ;;  %1159 = vmatpush2.msra.mxu0 %v546_v30  ;;  %v639_v1 = vld [vmem:[%s8191_s6 + $0xe58] sm:$0xff]  ;;  %v638_v3 = vld [vmem:[%s8191_s6 + $0xe50] sm:$0xff]  ;;  %v8770_v27 = vld [vmem:[%s8715_s13 + $0x60] sm:$0xff] }
  0xf8   :  { %1230 = vmatpush2.msra.mxu1 %v674_v31  ;;  %1160 = vmatprep.subr.mxu0 %v543_v32  ;;  %v507_v4 = vld [vmem:[%s8191_s6 + $0xa38] sm:$0xff]  ;;  %v506_v6 = vld [vmem:[%s8191_s6 + $0xa30] sm:$0xff]  ;;  %v8779_v29 = vld [vmem:[%s8715_s13 + $0x160] sm:$0xff] }
  0xf9   :  { %1231 = vmatprep.subr.mxu1 %v671_v33  ;;  %1161 = vmatpush2.msra.mxu0 %v542_v34  ;;  %v635_v5 = vld [vmem:[%s8191_s6 + $0xe38] sm:$0xff]  ;;  %v634_v7 = vld [vmem:[%s8191_s6 + $0xe30] sm:$0xff]  ;;  %v8801_v34 = vld [vmem:[%s8715_s13 + $0xc8] sm:$0xff] }
  0xfa   :  { %1232 = vmatpush2.msra.mxu1 %v670_v35  ;;  %1162 = vmatprep.subr.mxu0 %v539_v36  ;;  %v503_v8 = vld [vmem:[%s8191_s6 + $0xa18] sm:$0xff]  ;;  %v502_v10 = vld [vmem:[%s8191_s6 + $0xa10] sm:$0xff]  ;;  %v8809_v36 = vld [vmem:[%s8715_s13 + $0x48] sm:$0xff] }
  0xfb   :  { %1233 = vmatprep.subr.mxu1 %v667_v37  ;;  %1163 = vmatpush2.msra.mxu0 %v538_v38  ;;  %v631_v9 = vld [vmem:[%s8191_s6 + $0xe18] sm:$0xff]  ;;  %v630_v11 = vld [vmem:[%s8191_s6 + $0xe10] sm:$0xff]  ;;  %v8814_v37 = vld [vmem:[%s8715_s13 + $0xc0] sm:$0xff]  ;;  %s8156_s6 = smov 18  }
  0xfc   :  { %1234 = vmatpush2.msra.mxu1 %v666_v39  ;;  %1164 = vmatprep.subr.mxu0 %v535_v40  ;;  %v8729_v13 = vld [vmem:[%s8715_s13 + $0xf8] sm:$0xff]  ;;  %v8138_v17 = vld [vmem:[%s8308_s9 + $0x30] sm:$0xff]  ;;  %v8819_v38 = vld [vmem:[%s8715_s13 + $0x40] sm:$0xff] }
  0xfd   :  { %1235 = vmatprep.subr.mxu1 %v663_v41  ;;  %1165 = vmatpush2.msra.mxu0 %v534_v42  ;;  %v8136_v14 = vld [vmem:[%s8308_s9 + $0x38] sm:$0xff]  ;;  %v8738_v18 = vld [vmem:[%s8715_s13 + $0xf0] sm:$0xff]  ;;  %s7552_s9 = sld [smem:[%s12219_s0 + %s8156_s6]]   ;;  %s8171_s6 = smov 33  }
  0xfe   :  { %1236 = vmatpush2.msra.mxu1 %v662_v43  ;;  %1166 = vmatprep.subr.mxu0 %v531_v44  ;;  %v8733_v15 = vld [vmem:[%s8715_s13 + $0x78] sm:$0xff]  ;;  %v8742_v19 = vld [vmem:[%s8715_s13 + $0x70] sm:$0xff]  ;;  %v8841_v43 = vld [vmem:[%s8715_s13 + $0xa8] sm:$0xff] }
  0xff   :  { %1237 = vmatprep.subr.mxu1 %v659_v45  ;;  %1167 = vmatpush2.msra.mxu0 %v530_v46  ;;  %v8745_v20 = vld [vmem:[%s8715_s13 + $0x178] sm:$0xff]  ;;  %v8753_v23 = vld [vmem:[%s8715_s13 + $0x170] sm:$0xff]  ;;  %v8845_v44 = vld [vmem:[%s8715_s13 + $0x28] sm:$0xff] }
 0x100   :  { %1238 = vmatpush2.msra.mxu1 %v658_v47  ;;  %1168 = vmatprep.subr.mxu0 %v527_v48  ;;  %v8775_v28 = vld [vmem:[%s8715_s13 + $0xd8] sm:$0xff]  ;;  %v8788_v31 = vld [vmem:[%s8715_s13 + $0xd0] sm:$0xff]  ;;  %v8849_v45 = vld [vmem:[%s8715_s13 + $0xa0] sm:$0xff] }
 0x101   :  { %1239 = vmatprep.subr.mxu1 %v655_v49  ;;  %1169 = vmatpush2.msra.mxu0 %v526_v50  ;;  %v8783_v30 = vld [vmem:[%s8715_s13 + $0x58] sm:$0xff]  ;;  %v8796_v33 = vld [vmem:[%s8715_s13 + $0x50] sm:$0xff]  ;;  %v8853_v46 = vld [vmem:[%s8715_s13 + $0x20] sm:$0xff] }
 0x102   :  { %1240 = vmatpush2.msra.mxu1 %v654_v51  ;;  %1170 = vmatprep.subr.mxu0 %v523_v52  ;;  %v8792_v32 = vld [vmem:[%s8715_s13 + $0x158] sm:$0xff]  ;;  %v8805_v35 = vld [vmem:[%s8715_s13 + $0x150] sm:$0xff]  ;;  %v8873_v51 = vld [vmem:[%s8715_s13 + $0x88] sm:$0xff] }
 0x103   :  { %1241 = vmatprep.subr.mxu1 %v651_v53  ;;  %1171 = vmatpush2.msra.mxu0 %v522_v54  ;;  %v8824_v39 = vld [vmem:[%s8715_s13 + $0xb8] sm:$0xff]  ;;  %v8833_v41 = vld [vmem:[%s8715_s13 + $0xb0] sm:$0xff]  ;;  %v8877_v52 = vld [vmem:[%s8715_s13 + $0x8] sm:$0xff] }
 0x104   :  { %1242 = vmatpush2.msra.mxu1 %v650_v55  ;;  %1172 = vmatprep.subr.mxu0 %v519_v56  ;;  %v8829_v40 = vld [vmem:[%s8715_s13 + $0x38] sm:$0xff]  ;;  %v8837_v42 = vld [vmem:[%s8715_s13 + $0x30] sm:$0xff]  ;;  %v8881_v53 = vld [vmem:[%s8715_s13 + $0x80] sm:$0xff] }
 0x105   :  { %1243 = vmatprep.subr.mxu1 %v647_v57  ;;  %1173 = vmatpush2.msra.mxu0 %v518_v58  ;;  %v8857_v47 = vld [vmem:[%s8715_s13 + $0x98] sm:$0xff]  ;;  %v8865_v49 = vld [vmem:[%s8715_s13 + $0x90] sm:$0xff]  ;;  %v8885_v54 = vld [vmem:[%s8715_s13] sm:$0xff] }
 0x106   :  { %1244 = vmatpush2.msra.mxu1 %v646_v59  ;;  %1174 = vmatprep.subr.mxu0 %v515_v60  ;;  %v8861_v48 = vld [vmem:[%s8715_s13 + $0x18] sm:$0xff]  ;;  %v8869_v50 = vld [vmem:[%s8715_s13 + $0x10] sm:$0xff]  ;;  %12364 = vst [vmem:[#allocation5_spill] sm:$0xff] %v8885_v54 }
 0x107   :  { %1245 = vmatprep.subr.mxu1 %v643_v61  ;;  %1175 = vmatpush2.msra.mxu0 %v514_v62 }
 0x108   :  { %1246 = vmatpush2.msra.mxu1 %v642_v63  ;;  %1176 = vmatprep.subr.mxu0 %v511_v0 }
 0x109   :  { %1247 = vmatprep.subr.mxu1 %v639_v1  ;;  %1177 = vmatpush2.msra.mxu0 %v510_v2  ;;  %v758_v55 = vpop.f32.mrf.mxu0 }
 0x10a   :  { %1248 = vmatpush2.msra.mxu1 %v638_v3  ;;  %1178 = vmatprep.subr.mxu0 %v507_v4  ;;  %v829_v56 = vpop.f32.mrf.mxu1  ;;  %v8893_v4 = vld [vmem:[%s8715_s13 + $0x148] sm:$0xff] }
 0x10b   :  { %1249 = vmatprep.subr.mxu1 %v635_v5  ;;  %1179 = vmatpush2.msra.mxu0 %v506_v6  ;;  %v760_v57 = vpop.f32.mrf.mxu0  ;;  %v830_v59 = vadd.f32 %v829_v56, %v758_v55  ;;  %v8919_v55 = vld [vmem:[%s8715_s13 + $0x128] sm:$0xff] }
 0x10c   :  { %1250 = vmatpush2.msra.mxu1 %v634_v7  ;;  %1180 = vmatprep.subr.mxu0 %v503_v8  ;;  %v831_v58 = vpop.f32.mrf.mxu1  ;;  %v8901_v7 = vld [vmem:[%s8715_s13 + $0x140] sm:$0xff] }
 0x10d   :  { %1251 = vmatprep.subr.mxu1 %v631_v9  ;;  %1181 = vmatpush2.msra.mxu0 %v502_v10  ;;  %v832_v61 = vadd.f32 %v831_v58, %v760_v57  ;;  %v8908_v10 = vld [vmem:[%s8715_s13 + $0x138] sm:$0xff]  ;;  %v8924_v58 = vld [vmem:[%s8715_s13 + $0x120] sm:$0xff] }
 0x10e   :  { %1182 = vmatprep.mubr.f32.mxu0 %v8135_v12  ;;  %1252 = vmatpush2.msra.mxu1 %v630_v11 }
 0x10f   :  { %1253 = vmatprep.mubr.f32.mxu1 %v8136_v14  ;;  %1183 = vmatmul.mubr.f32.vlgmr.msra.gmra.mxu0 %v8137_v16  ;;  %v8914_v14 = vld [vmem:[%s8715_s13 + $0x130] sm:$0xff] }
 0x110   :  { %1254 = vmatmul.mubr.f32.vlgmr.msra.gmra.mxu1 %v8138_v17  ;;  %7623 = vmatprep.subr.mxu0 %v8729_v13 }
 0x111   :  { %7624 = vmatpush3.msra.mxu0 %v8733_v15  ;;  %1408 = vmatprep.subr.mxu1 %v12222_v22 }
 0x112   :  { %7625 = vmatprep.subr.mxu0 %v8738_v18  ;;  %1409 = vmatpush1.msra.mxu1 %v8745_v20 }
 0x113   :  { %7626 = vmatpush3.msra.mxu0 %v8742_v19  ;;  %1410 = vmatprep.subr.mxu1 %v12222_v22 }
 0x114   :  { %7627 = vmatprep.subr.mxu0 %v8749_v21  ;;  %1411 = vmatpush1.msra.mxu1 %v8753_v23 }
 0x115   :  { %7628 = vmatpush3.msra.mxu0 %v8757_v24  ;;  %1412 = vmatprep.subr.mxu1 %v12222_v22 }
 0x116   :  { %7629 = vmatprep.subr.mxu0 %v8762_v25  ;;  %1413 = vmatpush1.msra.mxu1 %v8766_v26 }
 0x117   :  { %7630 = vmatpush3.msra.mxu0 %v8770_v27  ;;  %1414 = vmatprep.subr.mxu1 %v12222_v22 }
 0x118   :  { %7631 = vmatprep.subr.mxu0 %v8775_v28  ;;  %1415 = vmatpush1.msra.mxu1 %v8779_v29 }
 0x119   :  { %7632 = vmatpush3.msra.mxu0 %v8783_v30  ;;  %1416 = vmatprep.subr.mxu1 %v12222_v22 }
 0x11a   :  { %7633 = vmatprep.subr.mxu0 %v8788_v31  ;;  %1417 = vmatpush1.msra.mxu1 %v8792_v32 }
 0x11b   :  { %7634 = vmatpush3.msra.mxu0 %v8796_v33  ;;  %1418 = vmatprep.subr.mxu1 %v12222_v22 }
 0x11c   :  { %7635 = vmatprep.subr.mxu0 %v8801_v34  ;;  %1419 = vmatpush1.msra.mxu1 %v8805_v35 }
 0x11d   :  { %7636 = vmatpush3.msra.mxu0 %v8809_v36  ;;  %1420 = vmatprep.subr.mxu1 %v12222_v22 }
 0x11e   :  { %7637 = vmatprep.subr.mxu0 %v8814_v37  ;;  %1421 = vmatpush1.msra.mxu1 %v8893_v4 }
 0x11f   :  { %7638 = vmatpush3.msra.mxu0 %v8819_v38  ;;  %1422 = vmatprep.subr.mxu1 %v12222_v22 }
 0x120   :  { %7639 = vmatprep.subr.mxu0 %v8824_v39  ;;  %1423 = vmatpush1.msra.mxu1 %v8901_v7 }
 0x121   :  { %7640 = vmatpush3.msra.mxu0 %v8829_v40  ;;  %1424 = vmatprep.subr.mxu1 %v12222_v22 }
 0x122   :  { %7641 = vmatprep.subr.mxu0 %v8833_v41  ;;  %1425 = vmatpush1.msra.mxu1 %v8908_v10 }
 0x123   :  { %7642 = vmatpush3.msra.mxu0 %v8837_v42  ;;  %1426 = vmatprep.subr.mxu1 %v12222_v22 }
 0x124   :  { %7643 = vmatprep.subr.mxu0 %v8841_v43  ;;  %1427 = vmatpush1.msra.mxu1 %v8914_v14 }
 0x125   :  { %7644 = vmatpush3.msra.mxu0 %v8845_v44  ;;  %1428 = vmatprep.subr.mxu1 %v12222_v22 }
 0x126   :  { %7645 = vmatprep.subr.mxu0 %v8849_v45  ;;  %1429 = vmatpush1.msra.mxu1 %v8919_v55 }
 0x127   :  { %7646 = vmatpush3.msra.mxu0 %v8853_v46  ;;  %1430 = vmatprep.subr.mxu1 %v12222_v22 }
 0x128   :  { %7647 = vmatprep.subr.mxu0 %v8857_v47  ;;  %1431 = vmatpush1.msra.mxu1 %v8924_v58 }
 0x129   :  { %7648 = vmatpush3.msra.mxu0 %v8861_v48  ;;  %1432 = vmatprep.subr.mxu1 %v12222_v22 }
 0x12a   :  { %7649 = vmatprep.subr.mxu0 %v8865_v49 }
 0x12b   :  { %7650 = vmatpush3.msra.mxu0 %v8869_v50 }
 0x12c   :  { %7651 = vmatprep.subr.mxu0 %v8873_v51 }
 0x12d   :  { %7652 = vmatpush3.msra.mxu0 %v8877_v52 }
 0x12e   :  { %7653 = vmatprep.subr.mxu0 %v8881_v53 }
 0x12f   :  { %7654 = vmatpush3.msra.mxu0 %v8885_v54 }
 0x14b   :  { %v900_v60 = vpop.f32.mrf.mxu0 }
 0x14c   :  { %v901_v62 = vadd.f32 %v900_v60, %v830_v59  ;;  %v8929_v60 = vld [vmem:[%s8715_s13 + $0x118] sm:$0xff] }
 0x14d   :  { %v971_v63 = vpop.f32.mrf.mxu1  ;;  %v902_v0 = vpop.f32.mrf.mxu0  ;;  %1433 = vmatpush1.msra.mxu1 %v8929_v60 }
 0x14e   :  { %v8890_v1 = vadd.f32 %v971_v63, %v901_v62  ;;  %v903_v2 = vadd.f32 %v902_v0, %v832_v61  ;;  %1434 = vmatprep.subr.mxu1 %v12222_v22  ;;  %v8934_v63 = vld [vmem:[%s8715_s13 + $0x110] sm:$0xff]  ;;  %v8939_v0 = vld [vmem:[%s8715_s13 + $0x108] sm:$0xff] }
 0x14f   :  { %v973_v3 = vpop.f32.mrf.mxu1  ;;  %1435 = vmatpush1.msra.mxu1 %v8934_v63 }
 0x150   :  { %12365 = vst [vmem:[#allocation6_spill] sm:$0xff] %v8890_v1  ;;  %v1260_v5 = vrot.slane %v8890_v1, 4  ;;  %v8896_v6 = vadd.f32 %v973_v3, %v903_v2  ;;  %1436 = vmatprep.subr.mxu1 %v12222_v22  ;;  %v8943_v2 = vld [vmem:[%s8715_s13 + $0x100] sm:$0xff] }
 0x151   :  { %1437 = vmatpush1.msra.mxu1 %v8939_v0  ;;  %12367 = vst [vmem:[#allocation8_spill] sm:$0xff] %v8943_v2  ;;  %v8948_v3 = vld [vmem:[%s8715_s13 + $0x180] sm:$0xff]  ;;  %s7553_s13 = sld [smem:[%s12219_s0 + %s8157_s10]]   ;;  %s8172_s10 = smov 34  }
 0x152   :  { %12366 = vst [vmem:[#allocation7_spill] sm:$0xff] %v8896_v6  ;;  %v1261_v8 = vadd.f32 %v1260_v5, %v8890_v1  ;;  %v1266_v9 = vrot.slane %v8896_v6, 4  ;;  %1438 = vmatprep.subr.mxu1 %v12222_v22  ;;  %12368 = vst [vmem:[#allocation9_spill] sm:$0xff] %v8948_v3 }
 0x153   :  { %1439 = vmatpush1.msra.mxu1 %v8943_v2 }
 0x154   :  { %v1262_v11 = vrot.slane %v1261_v8, 2  ;;  %v1267_v12 = vadd.f32 %v1266_v9, %v8896_v6  ;;  %1470 = vmatprep.subr.mxu1 %v12222_v22 }
 0x155   :  { %1471 = vmatpush2.msra.mxu1 %v8948_v3 }
 0x156   :  { %v1263_v16 = vadd.f32 %v1262_v11, %v1261_v8  ;;  %v1268_v17 = vrot.slane %v1267_v12, 2 }
 0x158   :  { %v1269_v56 = vadd.f32 %v1268_v17, %v1267_v12  ;;  %v1264_v57 = vrot.slane %v1263_v16, 1 }
 0x15a   :  { %v1270_v59 = vrot.slane %v1269_v56, 1  ;;  %v1265_v62 = vadd.f32 %v1264_v57, %v1263_v16 }
 0x15c   :  { %v1271_v61 = vadd.f32 %v1270_v59, %v1269_v56 }
 0x15e   :  { %1402 = vmatprep.mubr.f32.mxu0 %v1271_v61 }
 0x15f   :  { %1403 = vmatmul.mubr.f32.vlgmr.msra.gmra.mxu0 %v1265_v62 }
 0x160   :  { %1550 = vmatprep.mubr.f32.mxu0 %v12222_v22 }
 0x18d   :  { %v1042_v5 = vpop.f32.mrf.mxu0 }
 0x18e   :  { %v1113_v8 = vpop.f32.mrf.mxu1 }
 0x18f   :  { %v1044_v9 = vpop.f32.mrf.mxu0  ;;  %v1114_v12 = vadd.f32 %v1113_v8, %v1042_v5 }
 0x190   :  { %v1115_v11 = vpop.f32.mrf.mxu1 }
 0x191   :  { %v1116_v56 = vadd.f32 %v1115_v11, %v1044_v9 }
 0x1cf   :  { %v1184_v16 = vpop.f32.mrf.mxu0 }
 0x1d0   :  { %v1255_v17 = vpop.f32.mrf.mxu1  ;;  %v1185_v57 = vadd.f32 %v1184_v16, %v1114_v12 }
 0x1d1   :  { %v1186_v59 = vpop.f32.mrf.mxu0 }
 0x1d2   :  { %v8953_v61 = vadd.f32 %v1255_v17, %v1185_v57  ;;  %v1187_v62 = vadd.f32 %v1186_v59, %v1116_v56  ;;  %v1257_v6 = vpop.f32.mrf.mxu1 }
 0x1d4   :  { %v1272_v1 = vrot.slane %v8953_v61, 4  ;;  %v8956_v22 = vadd.f32 %v1257_v6, %v1187_v62  ;;  %v12369_v6 = vmov 0.0  }
 0x1d6   :  { %v1273_v3 = vadd.f32 %v1272_v1, %v8953_v61  ;;  %v1279_v54 = vsel %vm1278_vm0, %v8956_v22, 0.0  ;;  %v8966_v1 = vld [vmem:[%s7538_s17 + $0x8] sm:$0xff] }
 0x1d7   :  { %v1280_v5 = vrot.slane %v1279_v54, 4  ;;  %1516 = vmatprep.subr.mxu0 %v8966_v1 }
 0x1d8   :  { %v1274_v8 = vrot.slane %v1273_v3, 2 }
 0x1d9   :  { %v1281_v2 = vadd.f32 %v1280_v5, %v1279_v54  ;;  %v8968_v54 = vld [vmem:[%s7538_s17 + $0x18] sm:$0xff] }
 0x1da   :  { %v1275_v9 = vadd.f32 %v1274_v8, %v1273_v3  ;;  %1587 = vmatprep.subr.mxu1 %v8968_v54  ;;  %v8974_v3 = vld [vmem:[%s7538_s17 + $0x10] sm:$0xff] }
 0x1db   :  { %v1282_v11 = vrot.slane %v1281_v2, 2 }
 0x1dc   :  { %v1276_v16 = vrot.slane %v1275_v9, 1 }
 0x1dd   :  { %v1283_v12 = vadd.f32 %v1282_v11, %v1281_v2  ;;  %v8971_v2 = vld [vmem:[%s7538_s17] sm:$0xff]  ;;  %s7556_s17 = sld [smem:[%s12219_s0 + %s8158_s14]]   ;;  %s8174_s14 = smov 35  }
 0x1de   :  { %v1277_v57 = vadd.f32 %v1276_v16, %v1275_v9  ;;  %1517 = vmatpush1.msra.mxu0 %v8971_v2 }
 0x1df   :  { %v1284_v17 = vrot.slane %v1283_v12, 1  ;;  %7658 = vmatprep.subr.mxu0 %v8729_v13  ;;  %v12370_v13 = vld [vmem:[#allocation8_spill] sm:$0xff] }
 0x1e1   :  { %v1285_v56 = vadd.f32 %v1284_v17, %v1283_v12  ;;  %v2083_v17 = vld [vmem:[%s9085_s21 + $0xf8] sm:$0xff] }
 0x1e3   :  { %7576 = vmatprep.mubr.msk.f32.mxu1 %vm1278_vm0, %v1285_v56  ;;  %v2082_v56 = vld [vmem:[%s9085_s21 + $0xf0] sm:$0xff] }
 0x1e4   :  { %1473 = vmatmul.mubr.f32.vlgmr.msra.gmra.mxu1 %v1277_v57  ;;  %v2081_v57 = vld [vmem:[%s9085_s21 + $0xe8] sm:$0xff] }
 0x1e5   :  { %1621 = vmatprep.mubr.f32.mxu1 %v12369_v6  ;;  %1588 = vmatpush1.msra.mxu1 %v8974_v3 }
 0x1e6   :  { %1750 = vmatprep.subr.mxu1 %v12369_v6 }
 0x21f   :  { %v7655_v59 = vpop.f32.mrf.mxu0 }
 0x221   :  { %v7656_v62 = vpop.f32.mrf.mxu0 }
 0x222   :  { %v7657_v5 = vadd.f32 %v7656_v62, %v7655_v59  ;;  %v2077_v59 = vld [vmem:[%s9085_s21 + $0xc8] sm:$0xff]  ;;  %v2076_v62 = vld [vmem:[%s9085_s21 + $0xc0] sm:$0xff] }
 0x2a4   :  { %v1474_v8 = vpop.f32.mrf.mxu1 }
 0x2a5   :  { %v1475_v9 = vadd.f32 %v7657_v5, %v1474_v8  ;;  %v2075_v5 = vld [vmem:[%s9085_s21 + $0xb8] sm:$0xff]  ;;  %v2074_v8 = vld [vmem:[%s9085_s21 + $0xb0] sm:$0xff] }
 0x2a6   :  { %v1476_v11 = vpop.f32.mrf.mxu1 }
 0x2a7   :  { %v1478_v12 = vmul.f32 0.0025510204, %v1475_v9  ;;  %v2073_v9 = vld [vmem:[%s9085_s21 + $0xa8] sm:$0xff]  ;;  %v2072_v11 = vld [vmem:[%s9085_s21 + $0xa0] sm:$0xff] }
 0x2a9   :  { %7577 = vmatmul.mubr.msk.f32.vlgmr.msra.gmra.mxu0 %vm1278_vm0, %v1478_v12  ;;  %7578 = vmatmul.mubr.msk.f32.vlgmr.msra.gmra.mxu1 %vm1278_vm0, %v1478_v12  ;;  %v2071_v12 = vld [vmem:[%s9085_s21 + $0x98] sm:$0xff] }
 0x2aa   :  { %1751 = vmatpush1.msra.mxu1 %v8745_v20  ;;  %7659 = vmatpush3.msra.mxu0 %v8733_v15  ;;  %v12371_v15 = vld [vmem:[#allocation5_spill] sm:$0xff] }
 0x2ab   :  { %1752 = vmatprep.subr.mxu1 %v12369_v6  ;;  %7660 = vmatprep.subr.mxu0 %v8738_v18  ;;  %v12372_v18 = vld [vmem:[#allocation9_spill] sm:$0xff] }
 0x2ac   :  { %1753 = vmatpush1.msra.mxu1 %v8753_v23  ;;  %7661 = vmatpush3.msra.mxu0 %v8742_v19  ;;  %v12227_v19 = vlaneseq }
 0x2ad   :  { %1754 = vmatprep.subr.mxu1 %v12369_v6  ;;  %7662 = vmatprep.subr.mxu0 %v8749_v21 }
 0x2ae   :  { %1755 = vmatpush1.msra.mxu1 %v8766_v26  ;;  %7663 = vmatpush3.msra.mxu0 %v8757_v24  ;;  %v9048_v20 = vshrl.u32 %v12227_v19, 7 }
 0x2af   :  { %1756 = vmatprep.subr.mxu1 %v12369_v6  ;;  %7664 = vmatprep.subr.mxu0 %v8762_v25 }
 0x2b0   :  { %1757 = vmatpush1.msra.mxu1 %v8779_v29  ;;  %7665 = vmatpush3.msra.mxu0 %v8770_v27  ;;  %12373 = vst [vmem:[#allocation8_spill] sm:$0xff] %v9048_v20  ;;  %v9051_v21 = vsub.s32 0, %v9048_v20  ;;  %v12375_v29 = vld [vmem:[#allocation6_spill] sm:$0xff] }
 0x2b1   :  { %1758 = vmatprep.subr.mxu1 %v12369_v6  ;;  %7666 = vmatprep.subr.mxu0 %v8775_v28 }
 0x2b2   :  { %1759 = vmatpush1.msra.mxu1 %v8792_v32  ;;  %7667 = vmatpush3.msra.mxu0 %v8783_v30  ;;  %12374 = vst [vmem:[#allocation5_spill] sm:$0xff] %v9051_v21 }
 0x2b3   :  { %1760 = vmatprep.subr.mxu1 %v12369_v6  ;;  %7668 = vmatprep.subr.mxu0 %v8788_v31 }
 0x2b4   :  { %1761 = vmatpush1.msra.mxu1 %v8805_v35  ;;  %7669 = vmatpush3.msra.mxu0 %v8796_v33 }
 0x2b5   :  { %1762 = vmatprep.subr.mxu1 %v12369_v6  ;;  %7670 = vmatprep.subr.mxu0 %v8801_v34 }
 0x2b6   :  { %1763 = vmatpush1.msra.mxu1 %v8893_v4  ;;  %7671 = vmatpush3.msra.mxu0 %v8809_v36  ;;  %v12376_v36 = vld [vmem:[#allocation7_spill] sm:$0xff] }
 0x2b7   :  { %1764 = vmatprep.subr.mxu1 %v12369_v6  ;;  %7672 = vmatprep.subr.mxu0 %v8814_v37 }
 0x2b8   :  { %1765 = vmatpush1.msra.mxu1 %v8901_v7  ;;  %7673 = vmatpush3.msra.mxu0 %v8819_v38 }
 0x2b9   :  { %1766 = vmatprep.subr.mxu1 %v12369_v6  ;;  %7674 = vmatprep.subr.mxu0 %v8824_v39 }
 0x2ba   :  { %1767 = vmatpush1.msra.mxu1 %v8908_v10  ;;  %7675 = vmatpush3.msra.mxu0 %v8829_v40 }
 0x2bb   :  { %1768 = vmatprep.subr.mxu1 %v12369_v6  ;;  %7676 = vmatprep.subr.mxu0 %v8833_v41 }
 0x2bc   :  { %1769 = vmatpush1.msra.mxu1 %v8914_v14  ;;  %7677 = vmatpush3.msra.mxu0 %v8837_v42 }
 0x2bd   :  { %1770 = vmatprep.subr.mxu1 %v12369_v6  ;;  %7678 = vmatprep.subr.mxu0 %v8841_v43 }
 0x2be   :  { %1771 = vmatpush1.msra.mxu1 %v8919_v55  ;;  %7679 = vmatpush3.msra.mxu0 %v8845_v44 }
 0x2bf   :  { %1772 = vmatprep.subr.mxu1 %v12369_v6  ;;  %7680 = vmatprep.subr.mxu0 %v8849_v45 }
 0x2c0   :  { %1773 = vmatpush1.msra.mxu1 %v8924_v58  ;;  %7681 = vmatpush3.msra.mxu0 %v8853_v46 }
 0x2c1   :  { %1774 = vmatprep.subr.mxu1 %v12369_v6  ;;  %7682 = vmatprep.subr.mxu0 %v8857_v47 }
 0x2c2   :  { %1775 = vmatpush1.msra.mxu1 %v8929_v60  ;;  %7683 = vmatpush3.msra.mxu0 %v8861_v48 }
 0x2c3   :  { %1776 = vmatprep.subr.mxu1 %v12369_v6  ;;  %7684 = vmatprep.subr.mxu0 %v8865_v49 }
 0x2c4   :  { %1777 = vmatpush1.msra.mxu1 %v8934_v63  ;;  %7685 = vmatpush3.msra.mxu0 %v8869_v50 }
 0x2c5   :  { %1778 = vmatprep.subr.mxu1 %v12369_v6  ;;  %7686 = vmatprep.subr.mxu0 %v8873_v51 }
 0x2c6   :  { %1779 = vmatpush1.msra.mxu1 %v8939_v0  ;;  %7687 = vmatpush3.msra.mxu0 %v8877_v52 }
 0x2c7   :  { %1780 = vmatprep.subr.mxu1 %v12369_v6  ;;  %7688 = vmatprep.subr.mxu0 %v8881_v53 }
 0x2c8   :  { %1781 = vmatpush1.msra.mxu1 %v12370_v13  ;;  %7689 = vmatpush3.msra.mxu0 %v12371_v15  ;;  %v2070_v13 = vld [vmem:[%s9085_s21 + $0x90] sm:$0xff]  ;;  %v2069_v15 = vld [vmem:[%s9085_s21 + $0x88] sm:$0xff] }
 0x2c9   :  { %1812 = vmatprep.subr.mxu1 %v12369_v6  ;;  %1856 = vmatprep.subr.mxu0 %v8966_v1  ;;  %v2080_v1 = vld [vmem:[%s9085_s21 + $0xe0] sm:$0xff] }
 0x2ca   :  { %1813 = vmatpush2.msra.mxu1 %v12372_v18  ;;  %v2068_v18 = vld [vmem:[%s9085_s21 + $0x80] sm:$0xff] }
 0x2cb   :  { %2153 = vmatprep.subr.mxu1 %v2083_v17 }
 0x369   :  { %v1552_v23 = vpop.f32.mrf.mxu0  ;;  %v1623_v24 = vpop.f32.mrf.mxu1 }
 0x36a   :  { %v1631_v25 = vrot.slane %v1552_v23, %v9051_v21  ;;  %v1639_v26 = vrot.slane %v1623_v24, %v9051_v21  ;;  %v2067_v23 = vld [vmem:[%s9085_s21 + $0x78] sm:$0xff]  ;;  %v2066_v24 = vld [vmem:[%s9085_s21 + $0x70] sm:$0xff] }
 0x36b   :  { %v1554_v27 = vpop.f32.mrf.mxu0  ;;  %v1625_v28 = vpop.f32.mrf.mxu1 }
 0x36c   :  { %v9056_v30 = vsub.f32 %v12375_v29, %v1631_v25  ;;  %v9059_v31 = vsub.f32 %v8953_v61, %v1639_v26  ;;  %v1635_v32 = vrot.slane %v1554_v27, %v9051_v21  ;;  %v1643_v33 = vrot.slane %v1625_v28, %v9051_v21  ;;  %v2065_v25 = vld [vmem:[%s9085_s21 + $0x68] sm:$0xff]  ;;  %v2064_v26 = vld [vmem:[%s9085_s21 + $0x60] sm:$0xff]  ;;  %v2063_v27 = vld [vmem:[%s9085_s21 + $0x58] sm:$0xff] }
 0x36d   :  { %v2062_v28 = vld [vmem:[%s9085_s21 + $0x50] sm:$0xff]  ;;  %v2061_v29 = vld [vmem:[%s9085_s21 + $0x48] sm:$0xff] }
 0x36e   :  { %v1648_v34 = vmul.f32 %v9056_v30, %v9056_v30  ;;  %v1650_v35 = vmul.f32 %v9059_v31, %v9059_v31  ;;  %v9068_v37 = vsub.f32 %v12376_v36, %v1635_v32  ;;  %v9071_v38 = vsub.f32 %v8956_v22, %v1643_v33  ;;  %v2060_v32 = vld [vmem:[%s9085_s21 + $0x40] sm:$0xff]  ;;  %v2059_v33 = vld [vmem:[%s9085_s21 + $0x38] sm:$0xff] }
 0x36f   :  { %v2056_v36 = vld [vmem:[%s9085_s21 + $0x20] sm:$0xff] }
 0x370   :  { %v1652_v39 = vrot.slane %v1648_v34, 4  ;;  %v1664_v40 = vrot.slane %v1650_v35, 4  ;;  %v1649_v41 = vmul.f32 %v9068_v37, %v9068_v37  ;;  %v1651_v42 = vmul.f32 %v9071_v38, %v9071_v38 }
 0x372   :  { %v1653_v43 = vadd.f32 %v1652_v39, %v1648_v34  ;;  %v1665_v44 = vadd.f32 %v1664_v40, %v1650_v35  ;;  %v1658_v45 = vrot.slane %v1649_v41, 4  ;;  %v1670_v46 = vsel %vm1278_vm0, %v1651_v42, 0.0  ;;  %v2058_v34 = vld [vmem:[%s9085_s21 + $0x30] sm:$0xff]  ;;  %v2057_v35 = vld [vmem:[%s9085_s21 + $0x28] sm:$0xff]  ;;  %v2055_v39 = vld [vmem:[%s9085_s21 + $0x18] sm:$0xff] }
 0x373   :  { %v1671_v47 = vrot.slane %v1670_v46, 4  ;;  %v2054_v40 = vld [vmem:[%s9085_s21 + $0x10] sm:$0xff]  ;;  %v2052_v42 = vld [vmem:[%s9085_s21] sm:$0xff] }
 0x374   :  { %v1654_v48 = vrot.slane %v1653_v43, 2  ;;  %v1666_v49 = vrot.slane %v1665_v44, 2  ;;  %v1659_v50 = vadd.f32 %v1658_v45, %v1649_v41  ;;  %v2053_v41 = vld [vmem:[%s9085_s21 + $0x8] sm:$0xff] }
 0x375   :  { %v1672_v51 = vadd.f32 %v1671_v47, %v1670_v46  ;;  %v2113_v45 = vld [vmem:[%s9085_s21 + $0x1e8] sm:$0xff]  ;;  %v2112_v46 = vld [vmem:[%s9085_s21 + $0x1e0] sm:$0xff]  ;;  %v2111_v47 = vld [vmem:[%s9085_s21 + $0x1d8] sm:$0xff] }
 0x376   :  { %v1655_v22 = vadd.f32 %v1654_v48, %v1653_v43  ;;  %v1667_v52 = vadd.f32 %v1666_v49, %v1665_v44  ;;  %v1660_v53 = vrot.slane %v1659_v50, 2  ;;  %v2115_v43 = vld [vmem:[%s9085_s21 + $0x1f8] sm:$0xff]  ;;  %v2114_v44 = vld [vmem:[%s9085_s21 + $0x1f0] sm:$0xff]  ;;  %v2109_v49 = vld [vmem:[%s9085_s21 + $0x1c8] sm:$0xff] }
 0x377   :  { %v1673_v4 = vrot.slane %v1672_v51, 2  ;;  %v2110_v48 = vld [vmem:[%s9085_s21 + $0x1d0] sm:$0xff] }
 0x378   :  { %v1661_v7 = vadd.f32 %v1660_v53, %v1659_v50  ;;  %v1656_v10 = vrot.slane %v1655_v22, 1  ;;  %v1668_v58 = vrot.slane %v1667_v52, 1  ;;  %v2108_v50 = vld [vmem:[%s9085_s21 + $0x1c0] sm:$0xff] }
 0x379   :  { %v1674_v14 = vadd.f32 %v1673_v4, %v1672_v51  ;;  %v2107_v51 = vld [vmem:[%s9085_s21 + $0x1b8] sm:$0xff]  ;;  %v2104_v53 = vld [vmem:[%s9085_s21 + $0x1a0] sm:$0xff] }
 0x37a   :  { %v1662_v55 = vrot.slane %v1661_v7, 1  ;;  %v1657_v0 = vadd.f32 %v1656_v10, %v1655_v22  ;;  %v1669_v16 = vadd.f32 %v1668_v58, %v1667_v52  ;;  %v2106_v22 = vld [vmem:[%s9085_s21 + $0x1b0] sm:$0xff]  ;;  %v2105_v52 = vld [vmem:[%s9085_s21 + $0x1a8] sm:$0xff]  ;;  %v2103_v4 = vld [vmem:[%s9085_s21 + $0x198] sm:$0xff] }
 0x37b   :  { %v1675_v60 = vrot.slane %v1674_v14, 1  ;;  %v2101_v10 = vld [vmem:[%s9085_s21 + $0x188] sm:$0xff] }
 0x37c   :  { %v1663_v63 = vadd.f32 %v1662_v55, %v1661_v7  ;;  %v2102_v7 = vld [vmem:[%s9085_s21 + $0x190] sm:$0xff]  ;;  %v2099_v55 = vld [vmem:[%s9085_s21 + $0x178] sm:$0xff] }
 0x37d   :  { %v1676_v61 = vadd.f32 %v1675_v60, %v1674_v14  ;;  %v2100_v14 = vld [vmem:[%s9085_s21 + $0x180] sm:$0xff] }
 0x37e   :  { %1744 = vmatprep.mubr.f32.mxu0 %v1663_v63 }
 0x37f   :  { %1745 = vmatmul.mubr.f32.vlgmr.msra.gmra.mxu0 %v1657_v0  ;;  %7579 = vmatprep.mubr.msk.f32.mxu1 %vm1278_vm0, %v1676_v61 }
 0x380   :  { %1815 = vmatmul.mubr.f32.vlgmr.msra.gmra.mxu1 %v1669_v16  ;;  %1857 = vmatpush1.msra.mxu0 %v8971_v2  ;;  %v2078_v2 = vld [vmem:[%s9085_s21 + $0xd0] sm:$0xff] }
 0x381   :  { %1890 = vmatprep.mubr.f32.mxu0 %v12369_v6  ;;  %1927 = vmatprep.subr.mxu0 %v8968_v54  ;;  %v2079_v54 = vld [vmem:[%s9085_s21 + $0xd8] sm:$0xff] }
 0x382   :  { %2154 = vmatpush1.msra.mxu1 %v2082_v56 }
 0x383   :  { %2155 = vmatprep.subr.mxu1 %v2081_v57 }
 0x384   :  { %2156 = vmatpush1.msra.mxu1 %v2080_v1  ;;  %v2147_v1 = vld [vmem:[%s9085_s21 + $0x2f8] sm:$0xff] }
 0x385   :  { %2157 = vmatprep.subr.mxu1 %v2079_v54  ;;  %v2146_v54 = vld [vmem:[%s9085_s21 + $0x2f0] sm:$0xff] }
 0x386   :  { %2158 = vmatpush1.msra.mxu1 %v2078_v2  ;;  %v2145_v2 = vld [vmem:[%s9085_s21 + $0x2e8] sm:$0xff] }
 0x387   :  { %2159 = vmatprep.subr.mxu1 %v2077_v59  ;;  %v2144_v59 = vld [vmem:[%s9085_s21 + $0x2e0] sm:$0xff] }
 0x388   :  { %2160 = vmatpush1.msra.mxu1 %v2076_v62  ;;  %v2143_v62 = vld [vmem:[%s9085_s21 + $0x2d8] sm:$0xff] }
 0x389   :  { %2161 = vmatprep.subr.mxu1 %v2075_v5  ;;  %v2142_v5 = vld [vmem:[%s9085_s21 + $0x2d0] sm:$0xff] }
 0x38a   :  { %2162 = vmatpush1.msra.mxu1 %v2074_v8  ;;  %v2140_v8 = vld [vmem:[%s9085_s21 + $0x2c0] sm:$0xff] }
 0x38b   :  { %2163 = vmatprep.subr.mxu1 %v2073_v9  ;;  %v2139_v9 = vld [vmem:[%s9085_s21 + $0x2b8] sm:$0xff] }
 0x38c   :  { %2164 = vmatpush1.msra.mxu1 %v2072_v11  ;;  %v2138_v11 = vld [vmem:[%s9085_s21 + $0x2b0] sm:$0xff] }
 0x38d   :  { %2165 = vmatprep.subr.mxu1 %v2071_v12  ;;  %v2137_v12 = vld [vmem:[%s9085_s21 + $0x2a8] sm:$0xff] }
 0x38e   :  { %2166 = vmatpush1.msra.mxu1 %v2070_v13  ;;  %v2136_v13 = vld [vmem:[%s9085_s21 + $0x2a0] sm:$0xff] }
 0x38f   :  { %2167 = vmatprep.subr.mxu1 %v2069_v15  ;;  %v2135_v15 = vld [vmem:[%s9085_s21 + $0x298] sm:$0xff] }
 0x390   :  { %2168 = vmatpush1.msra.mxu1 %v2068_v18  ;;  %v2134_v18 = vld [vmem:[%s9085_s21 + $0x290] sm:$0xff] }
 0x391   :  { %2169 = vmatprep.subr.mxu1 %v2067_v23  ;;  %v2133_v23 = vld [vmem:[%s9085_s21 + $0x288] sm:$0xff] }
 0x392   :  { %2170 = vmatpush1.msra.mxu1 %v2066_v24  ;;  %v2098_v24 = vld [vmem:[%s9085_s21 + $0x170] sm:$0xff] }
 0x393   :  { %2171 = vmatprep.subr.mxu1 %v2065_v25  ;;  %v2132_v25 = vld [vmem:[%s9085_s21 + $0x280] sm:$0xff] }
 0x394   :  { %2172 = vmatpush1.msra.mxu1 %v2064_v26  ;;  %v2097_v26 = vld [vmem:[%s9085_s21 + $0x168] sm:$0xff] }
 0x395   :  { %2173 = vmatprep.subr.mxu1 %v2063_v27  ;;  %v2131_v27 = vld [vmem:[%s9085_s21 + $0x278] sm:$0xff] }
 0x396   :  { %2174 = vmatpush1.msra.mxu1 %v2062_v28  ;;  %v2096_v28 = vld [vmem:[%s9085_s21 + $0x160] sm:$0xff] }
 0x397   :  { %2175 = vmatprep.subr.mxu1 %v2061_v29  ;;  %v2130_v29 = vld [vmem:[%s9085_s21 + $0x270] sm:$0xff] }
 0x398   :  { %2176 = vmatpush1.msra.mxu1 %v2060_v32  ;;  %v2095_v32 = vld [vmem:[%s9085_s21 + $0x158] sm:$0xff] }
 0x399   :  { %2177 = vmatprep.subr.mxu1 %v2059_v33  ;;  %v2129_v33 = vld [vmem:[%s9085_s21 + $0x268] sm:$0xff] }
 0x39a   :  { %2178 = vmatpush1.msra.mxu1 %v2058_v34  ;;  %v2094_v34 = vld [vmem:[%s9085_s21 + $0x150] sm:$0xff] }
 0x39b   :  { %2179 = vmatprep.subr.mxu1 %v2057_v35  ;;  %v2128_v35 = vld [vmem:[%s9085_s21 + $0x260] sm:$0xff] }
 0x39c   :  { %2180 = vmatpush1.msra.mxu1 %v2056_v36  ;;  %v2093_v36 = vld [vmem:[%s9085_s21 + $0x148] sm:$0xff] }
 0x39d   :  { %2181 = vmatprep.subr.mxu1 %v2055_v39  ;;  %v2127_v39 = vld [vmem:[%s9085_s21 + $0x258] sm:$0xff] }
 0x39e   :  { %2182 = vmatpush1.msra.mxu1 %v2054_v40  ;;  %v2092_v40 = vld [vmem:[%s9085_s21 + $0x140] sm:$0xff] }
 0x39f   :  { %2183 = vmatprep.subr.mxu1 %v2053_v41  ;;  %v2126_v41 = vld [vmem:[%s9085_s21 + $0x250] sm:$0xff] }
 0x3a0   :  { %2184 = vmatpush1.msra.mxu1 %v2052_v42  ;;  %v2091_v42 = vld [vmem:[%s9085_s21 + $0x138] sm:$0xff] }
 0x3a1   :  { %2185 = vmatprep.subr.mxu1 %v2115_v43  ;;  %v2125_v43 = vld [vmem:[%s9085_s21 + $0x248] sm:$0xff] }
 0x3a2   :  { %2186 = vmatpush2.msra.mxu1 %v2114_v44  ;;  %v2090_v44 = vld [vmem:[%s9085_s21 + $0x130] sm:$0xff] }
 0x3a3   :  { %2187 = vmatprep.subr.mxu1 %v2113_v45  ;;  %v2124_v45 = vld [vmem:[%s9085_s21 + $0x240] sm:$0xff] }
 0x3a4   :  { %2188 = vmatpush2.msra.mxu1 %v2112_v46  ;;  %v2089_v46 = vld [vmem:[%s9085_s21 + $0x128] sm:$0xff] }
 0x3a5   :  { %2189 = vmatprep.subr.mxu1 %v2111_v47  ;;  %v2123_v47 = vld [vmem:[%s9085_s21 + $0x238] sm:$0xff] }
 0x3a6   :  { %2190 = vmatpush2.msra.mxu1 %v2110_v48  ;;  %v2088_v48 = vld [vmem:[%s9085_s21 + $0x120] sm:$0xff] }
 0x3a7   :  { %2191 = vmatprep.subr.mxu1 %v2109_v49  ;;  %v2122_v49 = vld [vmem:[%s9085_s21 + $0x230] sm:$0xff] }
 0x3a8   :  { %2192 = vmatpush2.msra.mxu1 %v2108_v50  ;;  %v2087_v50 = vld [vmem:[%s9085_s21 + $0x118] sm:$0xff] }
 0x3a9   :  { %2193 = vmatprep.subr.mxu1 %v2107_v51  ;;  %v2121_v51 = vld [vmem:[%s9085_s21 + $0x228] sm:$0xff] }
 0x3aa   :  { %2194 = vmatpush2.msra.mxu1 %v2106_v22  ;;  %v2086_v22 = vld [vmem:[%s9085_s21 + $0x110] sm:$0xff] }
 0x3ab   :  { %2195 = vmatprep.subr.mxu1 %v2105_v52  ;;  %v2120_v52 = vld [vmem:[%s9085_s21 + $0x220] sm:$0xff] }
 0x3ac   :  { %2196 = vmatpush2.msra.mxu1 %v2104_v53  ;;  %v2085_v53 = vld [vmem:[%s9085_s21 + $0x108] sm:$0xff] }
 0x3ad   :  { %2197 = vmatprep.subr.mxu1 %v2103_v4  ;;  %v2119_v4 = vld [vmem:[%s9085_s21 + $0x218] sm:$0xff] }
 0x3ae   :  { %2198 = vmatpush2.msra.mxu1 %v2102_v7  ;;  %v2084_v7 = vld [vmem:[%s9085_s21 + $0x100] sm:$0xff] }
 0x3af   :  { %2199 = vmatprep.subr.mxu1 %v2101_v10  ;;  %v2118_v10 = vld [vmem:[%s9085_s21 + $0x210] sm:$0xff] }
 0x3b0   :  { %2200 = vmatpush2.msra.mxu1 %v2100_v14  ;;  %v2117_v14 = vld [vmem:[%s9085_s21 + $0x208] sm:$0xff] }
 0x3b1   :  { %2201 = vmatprep.subr.mxu1 %v2099_v55  ;;  %v2116_v55 = vld [vmem:[%s9085_s21 + $0x200] sm:$0xff] }
 0x3b2   :  { %2202 = vmatpush2.msra.mxu1 %v2098_v24 }
 0x3b3   :  { %2203 = vmatprep.subr.mxu1 %v2097_v26 }
 0x3b4   :  { %2204 = vmatpush2.msra.mxu1 %v2096_v28 }
 0x3b5   :  { %2205 = vmatprep.subr.mxu1 %v2095_v32 }
 0x3b6   :  { %2206 = vmatpush2.msra.mxu1 %v2094_v34 }
 0x3b7   :  { %2207 = vmatprep.subr.mxu1 %v2093_v36 }
 0x3b8   :  { %2208 = vmatpush2.msra.mxu1 %v2092_v40 }
 0x3b9   :  { %2209 = vmatprep.subr.mxu1 %v2091_v42  ;;  %v9220_v42 = vld [vmem:[%s9216_s3 + $0x78] sm:$0xff] }
 0x3ba   :  { %2210 = vmatpush2.msra.mxu1 %v2090_v44  ;;  %v9224_v44 = vld [vmem:[%s9216_s3 + $0x70] sm:$0xff] }
 0x3bb   :  { %2211 = vmatprep.subr.mxu1 %v2089_v46  ;;  %v9234_v46 = vld [vmem:[%s9216_s3 + $0x60] sm:$0xff] }
 0x3bc   :  { %2212 = vmatpush2.msra.mxu1 %v2088_v48  ;;  %v9244_v48 = vld [vmem:[%s9216_s3 + $0x50] sm:$0xff] }
 0x3bd   :  { %2213 = vmatprep.subr.mxu1 %v2087_v50  ;;  %v9256_v50 = vld [vmem:[%s9216_s3 + $0x40] sm:$0xff] }
 0x3be   :  { %2214 = vmatpush2.msra.mxu1 %v2086_v22  ;;  %v9266_v22 = vld [vmem:[%s9216_s3 + $0x30] sm:$0xff] }
 0x3bf   :  { %2215 = vmatprep.subr.mxu1 %v2085_v53  ;;  %v9276_v53 = vld [vmem:[%s9216_s3 + $0x20] sm:$0xff] }
 0x3c0   :  { %2216 = vmatpush2.msra.mxu1 %v2084_v7  ;;  %v9286_v7 = vld [vmem:[%s9216_s3 + $0x10] sm:$0xff] }
 0x43f   :  { %v7690_v58 = vpop.f32.mrf.mxu0 }
 0x440   :  { %v1816_v60 = vpop.f32.mrf.mxu1 }
 0x441   :  { %v7691_v63 = vpop.f32.mrf.mxu0 }
 0x442   :  { %v7692_v0 = vadd.f32 %v7691_v63, %v7690_v58  ;;  %v1818_v61 = vpop.f32.mrf.mxu1  ;;  %v2149_v58 = vld [vmem:[%s9085_s21 + $0x308] sm:$0xff]  ;;  %v1988_v63 = vld [vmem:[%s7539_s25] sm:$0xf]  ;;  %s7555_s25 = sld [smem:[%s12219_s0 + %s8160_s22]]   ;;  %s8176_s22 = smov 30  }
 0x444   :  { %v1817_v16 = vadd.f32 %v7692_v0, %v1816_v60  ;;  %v2148_v60 = vld [vmem:[%s9085_s21 + $0x300] sm:$0xff]  ;;  %v9197_v0 = vsub.s32 1, %v9048_v20 }
 0x446   :  { %v1820_v17 = vmul.f32 0.0025510204, %v1817_v16  ;;  %12377 = vst [vmem:[#allocation9_spill] sm:$0xff] %v9197_v0  ;;  %v2014_v16 = vld [vmem:[%s7540_s29] sm:$0xf]  ;;  %s7557_s29 = sld [smem:[%s12219_s0 + %s8161_s26]]   ;;  %s8177_s26 = smov 31  }
 0x448   :  { %v1821_v56 = vadd.f32 1e-05, %v1820_v17  ;;  %v2000_v17 = vsub.s32 2, %v9048_v20 }
 0x44a   :  { %8051 = vrsqrt.f32 %v1821_v56 }
 0x457   :  { %v8052_v57 = vpop.eup %8051 }
 0x458   :  { %7580 = vmatmul.mubr.msk.f32.vlgmr.msra.gmra.mxu0 %vm1278_vm0, %v8052_v57 }
 0x459   :  { %1928 = vmatpush1.msra.mxu0 %v8974_v3  ;;  %1961 = vmatprep.mubr.f32.mxu0 %v12369_v6  ;;  %v2141_v3 = vld [vmem:[%s9085_s21 + $0x2c8] sm:$0xff]  ;;  %s7554_s21 = sld [smem:[%s12219_s0 + %s8159_s18]]   ;;  %s8175_s18 = smov 36  }
 0x45a   :  { %2224 = vmatprep.subr.mxu0 %v2147_v1 }
 0x45c   :  { %7581 = vmatmul.mubr.msk.f32.vlgmr.msra.gmra.mxu0 %vm1278_vm0, %v8052_v57  ;;  %v1993_v57 = vrot.slane %v1988_v63, %v9051_v21 }
 0x45d   :  { %2225 = vmatpush1.msra.mxu0 %v2146_v54  ;;  %v2004_v54 = vsub.s32 3, %v9048_v20 }
 0x45e   :  { %2226 = vmatprep.subr.mxu0 %v2145_v2 }
 0x45f   :  { %2227 = vmatpush1.msra.mxu0 %v2144_v59  ;;  %v2019_v59 = vrot.slane %v2014_v16, %v9051_v21 }
 0x460   :  { %2228 = vmatprep.subr.mxu0 %v2143_v62 }
 0x461   :  { %2229 = vmatpush1.msra.mxu0 %v2142_v5  ;;  %v1997_v5 = vrot.slane %v1988_v63, %v9197_v0 }
 0x462   :  { %2230 = vmatprep.subr.mxu0 %v2141_v3 }
 0x463   :  { %2231 = vmatpush1.msra.mxu0 %v2140_v8  ;;  %v2001_v8 = vrot.slane %v1988_v63, %v2000_v17 }
 0x464   :  { %2232 = vmatprep.subr.mxu0 %v2139_v9 }
 0x465   :  { %2233 = vmatpush1.msra.mxu0 %v2138_v11 }
 0x466   :  { %2234 = vmatprep.subr.mxu0 %v2137_v12 }
 0x467   :  { %2235 = vmatpush1.msra.mxu0 %v2136_v13  ;;  %v2023_v13 = vrot.slane %v2014_v16, %v9197_v0 }
 0x468   :  { %2236 = vmatprep.subr.mxu0 %v2135_v15  ;;  %v2027_v15 = vrot.slane %v2014_v16, %v2000_v17 }
 0x469   :  { %2237 = vmatpush1.msra.mxu0 %v2134_v18 }
 0x46a   :  { %2238 = vmatprep.subr.mxu0 %v2133_v23  ;;  %v2005_v23 = vrot.slane %v1988_v63, %v2004_v54  ;;  %v2403_v63 = vld [vmem:[%s9312_s7 + $0x10] sm:$0xff] }
 0x46b   :  { %2239 = vmatpush1.msra.mxu0 %v2132_v25 }
 0x46c   :  { %2240 = vmatprep.subr.mxu0 %v2131_v27 }
 0x46d   :  { %2241 = vmatpush1.msra.mxu0 %v2130_v29  ;;  %v2031_v29 = vrot.slane %v2014_v16, %v2004_v54 }
 0x46e   :  { %2242 = vmatprep.subr.mxu0 %v2129_v33 }
 0x46f   :  { %2243 = vmatpush1.msra.mxu0 %v2128_v35 }
 0x470   :  { %2244 = vmatprep.subr.mxu0 %v2127_v39 }
 0x471   :  { %2245 = vmatpush1.msra.mxu0 %v2126_v41 }
 0x472   :  { %2246 = vmatprep.subr.mxu0 %v2125_v43 }
 0x473   :  { %2247 = vmatpush1.msra.mxu0 %v2124_v45  ;;  %v9229_v45 = vld [vmem:[%s9216_s3 + $0x68] sm:$0xff] }
 0x474   :  { %2248 = vmatprep.subr.mxu0 %v2123_v47  ;;  %v9239_v47 = vld [vmem:[%s9216_s3 + $0x58] sm:$0xff] }
 0x475   :  { %2249 = vmatpush1.msra.mxu0 %v2122_v49  ;;  %v9251_v49 = vld [vmem:[%s9216_s3 + $0x48] sm:$0xff] }
 0x476   :  { %2250 = vmatprep.subr.mxu0 %v2121_v51  ;;  %v9261_v51 = vld [vmem:[%s9216_s3 + $0x38] sm:$0xff] }
 0x477   :  { %2251 = vmatpush1.msra.mxu0 %v2120_v52  ;;  %v9271_v52 = vld [vmem:[%s9216_s3 + $0x28] sm:$0xff] }
 0x478   :  { %2252 = vmatprep.subr.mxu0 %v2119_v4  ;;  %v9281_v4 = vld [vmem:[%s9216_s3 + $0x18] sm:$0xff] }
 0x479   :  { %2253 = vmatpush1.msra.mxu0 %v2118_v10  ;;  %v9291_v10 = vld [vmem:[%s9216_s3 + $0x8] sm:$0xff] }
 0x47a   :  { %2254 = vmatprep.subr.mxu0 %v2117_v14  ;;  %v9296_v14 = vld [vmem:[%s9216_s3] sm:$0xff] }
 0x47b   :  { %2255 = vmatpush1.msra.mxu0 %v2116_v55  ;;  %v9299_v55 = vld [vmem:[%s9216_s3 + $0x88] sm:$0xff] }
 0x47c   :  { %2286 = vmatprep.subr.mxu0 %v2149_v58  ;;  %v9304_v58 = vld [vmem:[%s9216_s3 + $0x80] sm:$0xff]  ;;  %s7558_s3 = sld [smem:[%s12219_s0 + %s8162_s30]]   ;;  %s8178_s30 = smov 37  }
 0x47d   :  { %2287 = vmatpush2.msra.mxu0 %v2148_v60  ;;  %v2404_v60 = vld [vmem:[%s9312_s7 + $0x18] sm:$0xff] }
 0x47e   :  { %2330 = vmatprep.subr.mxu0 %v12369_v6  ;;  %2436 = vmatprep.subr.mxu1 %v2404_v60 }
 0x518   :  { %v1892_v61 = vpop.f32.mrf.mxu0 }
 0x519   :  { %v1971_v56 = vrot.slane %v1892_v61, %v9051_v21 }
 0x51a   :  { %v1894_v1 = vpop.f32.mrf.mxu0 }
 0x51b   :  { %v1984_v2 = vmul.f32 %v1971_v56, %v9056_v30  ;;  %v1975_v62 = vrot.slane %v1894_v1, %v9051_v21 }
 0x51c   :  { %v1963_v3 = vpop.f32.mrf.mxu0 }
 0x51d   :  { %v2010_v9 = vmul.f32 %v1993_v57, %v1984_v2  ;;  %v1985_v11 = vmul.f32 %v1975_v62, %v9068_v37  ;;  %v1979_v12 = vrot.slane %v1963_v3, %v9051_v21 }
 0x51e   :  { %v1965_v18 = vpop.f32.mrf.mxu0 }
 0x51f   :  { %v2036_v24 = vadd.f32 %v2019_v59, %v2010_v9  ;;  %v2011_v30 = vmul.f32 %v1997_v5, %v1985_v11  ;;  %v1986_v25 = vmul.f32 %v1979_v12, %v9059_v31  ;;  %v1983_v26 = vrot.slane %v1965_v18, %v9051_v21 }
 0x521   :  { %v2012_v27 = vmul.f32 %v2001_v8, %v1986_v25  ;;  %v1987_v28 = vmul.f32 %v1983_v26, %v9071_v38  ;;  %v2037_v32 = vadd.f32 %v2023_v13, %v2011_v30  ;;  %vm2040_vm1 = vcmp.ge.f32.partialorder %v2036_v24, 0.0 }
 0x522   :  { %v2044_v37 = vmul.f32 0.01, %v2036_v24 }
 0x523   :  { %v2038_v33 = vadd.f32 %v2027_v15, %v2012_v27  ;;  %v2013_v34 = vmul.f32 %v2005_v23, %v1987_v28  ;;  %vm2041_vm2 = vcmp.ge.f32.partialorder %v2037_v32, 0.0  ;;  %v2045_v31 = vmul.f32 0.01, %v2037_v32  ;;  %v2402_v23 = vld [vmem:[%s9312_s7 + $0x8] sm:$0xff] }
 0x524   :  { %v2048_v38 = vsel %vm2040_vm1, %v2036_v24, %v2044_v37  ;;  %v2401_v24 = vld [vmem:[%s9312_s7] sm:$0xff]  ;;  %s7561_s7 = sld [smem:[%s12219_s0 + %s8163_s4]]   ;;  %s8179_s4 = smov 38  }
 0x525   :  { %v2039_v35 = vadd.f32 %v2031_v29, %v2013_v34  ;;  %v2049_v36 = vsel %vm2041_vm2, %v2037_v32, %v2045_v31  ;;  %v2046_v39 = vmul.f32 0.01, %v2038_v33  ;;  %vm2042_vm4 = vcmp.ge.f32.partialorder %v2038_v33, 0.0 }
 0x526   :  { %2217 = vmatprep.mubr.f32.mxu1 %v2049_v36 }
 0x527   :  { %2218 = vmatmul.mubr.f32.vlgmr.msra.gmra.mxu1 %v2048_v38  ;;  %vm2043_vm3 = vcmp.ge.f32.partialorder %v2039_v35, 0.0  ;;  %v2047_v40 = vmul.f32 0.01, %v2039_v35  ;;  %v2050_v43 = vsel %vm2042_vm4, %v2038_v33, %v2046_v39 }
 0x528   :  { %2472 = vmatprep.mubr.f32.mxu1 %v12369_v6  ;;  %2437 = vmatpush1.msra.mxu1 %v2403_v63 }
 0x529   :  { %v2051_v41 = vsel %vm2043_vm3, %v2039_v35, %v2047_v40  ;;  %2438 = vmatprep.subr.mxu1 %v2402_v23 }
 0x52a   :  { %7582 = vmatprep.mubr.msk.f32.mxu0 %vm1278_vm0, %v2051_v41  ;;  %2439 = vmatpush1.msra.mxu1 %v2401_v24 }
 0x52b   :  { %2289 = vmatmul.mubr.f32.vlgmr.msra.gmra.mxu0 %v2050_v43  ;;  %2507 = vmatprep.subr.mxu1 %v12369_v6 }
 0x52c   :  { %2331 = vmatpush1.msra.mxu0 %v9220_v42 }
 0x52d   :  { %2332 = vmatprep.subr.mxu0 %v12369_v6 }
 0x52e   :  { %2333 = vmatpush1.msra.mxu0 %v9224_v44 }
 0x52f   :  { %2334 = vmatprep.subr.mxu0 %v12369_v6 }
 0x530   :  { %2335 = vmatpush1.msra.mxu0 %v9229_v45 }
 0x531   :  { %2336 = vmatprep.subr.mxu0 %v12369_v6 }
 0x532   :  { %2337 = vmatpush1.msra.mxu0 %v9234_v46 }
 0x533   :  { %2338 = vmatprep.subr.mxu0 %v12369_v6 }
 0x534   :  { %2339 = vmatpush1.msra.mxu0 %v9239_v47 }
 0x535   :  { %2340 = vmatprep.subr.mxu0 %v12369_v6 }
 0x536   :  { %2341 = vmatpush1.msra.mxu0 %v9244_v48 }
 0x537   :  { %2342 = vmatprep.subr.mxu0 %v12369_v6 }
 0x538   :  { %2343 = vmatpush1.msra.mxu0 %v9251_v49 }
 0x539   :  { %2344 = vmatprep.subr.mxu0 %v12369_v6 }
 0x53a   :  { %2345 = vmatpush1.msra.mxu0 %v9256_v50 }
 0x53b   :  { %2346 = vmatprep.subr.mxu0 %v12369_v6 }
 0x53c   :  { %2347 = vmatpush1.msra.mxu0 %v9261_v51 }
 0x53d   :  { %2348 = vmatprep.subr.mxu0 %v12369_v6 }
 0x53e   :  { %2349 = vmatpush1.msra.mxu0 %v9266_v22 }
 0x53f   :  { %2350 = vmatprep.subr.mxu0 %v12369_v6 }
 0x540   :  { %2351 = vmatpush1.msra.mxu0 %v9271_v52 }
 0x541   :  { %2352 = vmatprep.subr.mxu0 %v12369_v6 }
 0x542   :  { %2353 = vmatpush1.msra.mxu0 %v9276_v53 }
 0x543   :  { %2354 = vmatprep.subr.mxu0 %v12369_v6 }
 0x544   :  { %2355 = vmatpush1.msra.mxu0 %v9281_v4 }
 0x545   :  { %2356 = vmatprep.subr.mxu0 %v12369_v6 }
 0x546   :  { %2357 = vmatpush1.msra.mxu0 %v9286_v7 }
 0x547   :  { %2358 = vmatprep.subr.mxu0 %v12369_v6 }
 0x548   :  { %2359 = vmatpush1.msra.mxu0 %v9291_v10 }
 0x549   :  { %2360 = vmatprep.subr.mxu0 %v12369_v6 }
 0x54a   :  { %2361 = vmatpush1.msra.mxu0 %v9296_v14 }
 0x54b   :  { %2390 = vmatprep.subr.mxu0 %v12369_v6 }
 0x54c   :  { %2391 = vmatpush2.msra.mxu0 %v9299_v55 }
 0x54d   :  { %2392 = vmatprep.subr.mxu0 %v12369_v6 }
 0x54e   :  { %2393 = vmatpush2.msra.mxu0 %v9304_v58 }
 0x54f   :  { %2611 = vmatprep.subr.mxu0 %v2404_v60  ;;  %v2706_v60 = vld [vmem:[%s9384_s11 + $0x40] sm:$0xff] }
 0x5e7   :  { %v2219_v61 = vpop.f32.mrf.mxu1 }
 0x5e9   :  { %v2221_v56 = vpop.f32.mrf.mxu1 }
 0x5eb   :  { %v2290_v16 = vpop.f32.mrf.mxu0 }
 0x5ec   :  { %v9316_v17 = vadd.f32 %v2290_v16, %v2219_v61  ;;  %v2704_v61 = vld [vmem:[%s9384_s11 + $0x30] sm:$0xff]  ;;  %v2703_v16 = vld [vmem:[%s9384_s11 + $0x28] sm:$0xff] }
 0x5ed   :  { %v2292_v57 = vpop.f32.mrf.mxu0 }
 0x5ee   :  { %v2295_v1 = vrot.slane %v9316_v17, 4  ;;  %v9319_v54 = vadd.f32 %v2292_v57, %v2221_v56  ;;  %v2701_v56 = vld [vmem:[%s9384_s11 + $0x18] sm:$0xff]  ;;  %v2700_v57 = vld [vmem:[%s9384_s11 + $0x10] sm:$0xff] }
 0x5f0   :  { %v2296_v2 = vadd.f32 %v2295_v1, %v9316_v17  ;;  %v2302_v59 = vsel %vm2301_vm5, %v9319_v54, 0.0  ;;  %v2699_v1 = vld [vmem:[%s9384_s11 + $0x8] sm:$0xff] }
 0x5f1   :  { %v2303_v62 = vrot.slane %v2302_v59, 4 }
 0x5f2   :  { %v2297_v5 = vrot.slane %v2296_v2, 2 }
 0x5f3   :  { %v2304_v3 = vadd.f32 %v2303_v62, %v2302_v59  ;;  %v2714_v59 = vld [vmem:[%s9384_s11 + $0x80] sm:$0xff] }
 0x5f4   :  { %v2298_v8 = vadd.f32 %v2297_v5, %v2296_v2  ;;  %v2715_v2 = vld [vmem:[%s9384_s11 + $0x88] sm:$0xff]  ;;  %v2664_v62 = vld [vmem:[%s7544_s15] sm:$0x3]  ;;  %s7560_s15 = sld [smem:[%s12219_s0 + %s8165_s12]]   ;;  %s8181_s12 = smov 40  }
 0x5f5   :  { %v2305_v9 = vrot.slane %v2304_v3, 2 }
 0x5f6   :  { %v2299_v12 = vrot.slane %v2298_v8, 1 }
 0x5f7   :  { %v2306_v11 = vadd.f32 %v2305_v9, %v2304_v3  ;;  %v2678_v3 = vld [vmem:[%s7545_s19] sm:$0x3]  ;;  %v2669_v9 = vrot.slane %v2664_v62, %v9051_v21  ;;  %s7562_s19 = sld [smem:[%s12219_s0 + %s8166_s16]]   ;;  %s8182_s16 = smov 41  }
 0x5f8   :  { %v2300_v18 = vadd.f32 %v2299_v12, %v2298_v8 }
 0x5f9   :  { %v2307_v13 = vrot.slane %v2306_v11, 1 }
 0x5fb   :  { %v2308_v15 = vadd.f32 %v2307_v13, %v2306_v11  ;;  %v2683_v13 = vrot.slane %v2678_v3, %v9051_v21 }
 0x5fd   :  { %7583 = vmatprep.mubr.msk.f32.mxu0 %vm2301_vm5, %v2308_v15 }
 0x5fe   :  { %2395 = vmatmul.mubr.f32.vlgmr.msra.gmra.mxu0 %v2300_v18  ;;  %v2673_v18 = vrot.slane %v2664_v62, %v9197_v0 }
 0x5ff   :  { %2612 = vmatpush1.msra.mxu0 %v2403_v63  ;;  %2647 = vmatprep.mubr.f32.mxu0 %v12369_v6  ;;  %v2705_v63 = vld [vmem:[%s9384_s11 + $0x38] sm:$0xff] }
 0x600   :  { %2613 = vmatprep.subr.mxu0 %v2402_v23 }
 0x601   :  { %2614 = vmatpush1.msra.mxu0 %v2401_v24 }
 0x602   :  { %2719 = vmatprep.subr.mxu0 %v12369_v6 }
 0x6be   :  { %v2396_v30 = vpop.f32.mrf.mxu0 }
 0x6bf   :  { %v2400_v25 = vmul.f32 0.013888889, %v2396_v30  ;;  %v2687_v30 = vrot.slane %v2678_v3, %v9197_v0 }
 0x6c0   :  { %v2398_v26 = vpop.f32.mrf.mxu0 }
 0x6c1   :  { %7584 = vmatmul.mubr.msk.f32.vlgmr.msra.gmra.mxu1 %vm2301_vm5, %v2400_v25 }
 0x6c2   :  { %2508 = vmatpush1.msra.mxu1 %v9220_v42 }
 0x6c3   :  { %2509 = vmatprep.subr.mxu1 %v12369_v6 }
 0x6c4   :  { %2510 = vmatpush1.msra.mxu1 %v9224_v44 }
 0x6c5   :  { %2511 = vmatprep.subr.mxu1 %v12369_v6 }
 0x6c6   :  { %2512 = vmatpush1.msra.mxu1 %v9229_v45 }
 0x6c7   :  { %2513 = vmatprep.subr.mxu1 %v12369_v6 }
 0x6c8   :  { %2514 = vmatpush1.msra.mxu1 %v9234_v46 }
 0x6c9   :  { %2515 = vmatprep.subr.mxu1 %v12369_v6 }
 0x6ca   :  { %2516 = vmatpush1.msra.mxu1 %v9239_v47 }
 0x6cb   :  { %2517 = vmatprep.subr.mxu1 %v12369_v6 }
 0x6cc   :  { %2518 = vmatpush1.msra.mxu1 %v9244_v48 }
 0x6cd   :  { %2519 = vmatprep.subr.mxu1 %v12369_v6 }
 0x6ce   :  { %2520 = vmatpush1.msra.mxu1 %v9251_v49 }
 0x6cf   :  { %2521 = vmatprep.subr.mxu1 %v12369_v6 }
 0x6d0   :  { %2522 = vmatpush1.msra.mxu1 %v9256_v50 }
 0x6d1   :  { %2523 = vmatprep.subr.mxu1 %v12369_v6 }
 0x6d2   :  { %2524 = vmatpush1.msra.mxu1 %v9261_v51 }
 0x6d3   :  { %2525 = vmatprep.subr.mxu1 %v12369_v6 }
 0x6d4   :  { %2526 = vmatpush1.msra.mxu1 %v9266_v22 }
 0x6d5   :  { %2527 = vmatprep.subr.mxu1 %v12369_v6 }
 0x6d6   :  { %2528 = vmatpush1.msra.mxu1 %v9271_v52  ;;  %v2713_v52 = vld [vmem:[%s9384_s11 + $0x78] sm:$0xff] }
 0x6d7   :  { %2529 = vmatprep.subr.mxu1 %v12369_v6 }
 0x6d8   :  { %2530 = vmatpush1.msra.mxu1 %v9276_v53 }
 0x6d9   :  { %2531 = vmatprep.subr.mxu1 %v12369_v6 }
 0x6da   :  { %2532 = vmatpush1.msra.mxu1 %v9281_v4  ;;  %v2712_v4 = vld [vmem:[%s9384_s11 + $0x70] sm:$0xff] }
 0x6db   :  { %2533 = vmatprep.subr.mxu1 %v12369_v6 }
 0x6dc   :  { %2534 = vmatpush1.msra.mxu1 %v9286_v7  ;;  %v2711_v7 = vld [vmem:[%s9384_s11 + $0x68] sm:$0xff] }
 0x6dd   :  { %2535 = vmatprep.subr.mxu1 %v12369_v6 }
 0x6de   :  { %2536 = vmatpush1.msra.mxu1 %v9291_v10  ;;  %v2710_v10 = vld [vmem:[%s9384_s11 + $0x60] sm:$0xff] }
 0x6df   :  { %2537 = vmatprep.subr.mxu1 %v12369_v6 }
 0x6e0   :  { %2538 = vmatpush1.msra.mxu1 %v9296_v14  ;;  %v2709_v14 = vld [vmem:[%s9384_s11 + $0x58] sm:$0xff] }
 0x6e1   :  { %2567 = vmatprep.subr.mxu1 %v12369_v6 }
 0x6e2   :  { %2568 = vmatpush2.msra.mxu1 %v9299_v55  ;;  %v2708_v55 = vld [vmem:[%s9384_s11 + $0x50] sm:$0xff] }
 0x6e3   :  { %2569 = vmatprep.subr.mxu1 %v12369_v6 }
 0x6e4   :  { %2570 = vmatpush2.msra.mxu1 %v9304_v58  ;;  %v2707_v58 = vld [vmem:[%s9384_s11 + $0x48] sm:$0xff] }
 0x6e5   :  { %7838 = vmatprep.subr.mxu1 %v12369_v6 }
 0x781   :  { %v2474_v27 = vpop.f32.mrf.mxu1 }
 0x782   :  { %v2482_v28 = vrot.slane %v2474_v27, %v9051_v21 }
 0x783   :  { %v2476_v29 = vpop.f32.mrf.mxu1 }
 0x784   :  { %v9369_v32 = vsub.f32 %v9316_v17, %v2482_v28  ;;  %v2486_v37 = vrot.slane %v2476_v29, %v9051_v21  ;;  %v2702_v17 = vld [vmem:[%s9384_s11 + $0x20] sm:$0xff] }
 0x786   :  { %v2489_v33 = vmul.f32 %v9369_v32, %v9369_v32  ;;  %v9375_v34 = vsub.f32 %v9319_v54, %v2486_v37  ;;  %v2698_v54 = vld [vmem:[%s9384_s11] sm:$0xff]  ;;  %s7559_s11 = sld [smem:[%s12219_s0 + %s8164_s8]]   ;;  %s8180_s8 = smov 39  }
 0x788   :  { %v2491_v31 = vrot.slane %v2489_v33, 4  ;;  %v2490_v35 = vmul.f32 %v9375_v34, %v9375_v34 }
 0x78a   :  { %v2492_v36 = vadd.f32 %v2491_v31, %v2489_v33  ;;  %v2497_v38 = vsel %vm2301_vm5, %v2490_v35, 0.0  ;;  %v2797_v33 = vld [vmem:[%s7547_s23 + $0x8] sm:$0xff] }
 0x78b   :  { %v2498_v39 = vrot.slane %v2497_v38, 4  ;;  %v2873_v31 = vld [vmem:[%s7548_s27 + $0x8] sm:$0xff] }
 0x78c   :  { %v2493_v40 = vrot.slane %v2492_v36, 2 }
 0x78d   :  { %v2499_v41 = vadd.f32 %v2498_v39, %v2497_v38 }
 0x78e   :  { %v2494_v42 = vadd.f32 %v2493_v40, %v2492_v36 }
 0x78f   :  { %v2500_v43 = vrot.slane %v2499_v41, 2 }
 0x790   :  { %v2495_v45 = vrot.slane %v2494_v42, 1 }
 0x791   :  { %v2501_v44 = vadd.f32 %v2500_v43, %v2499_v41 }
 0x792   :  { %v2496_v48 = vadd.f32 %v2495_v45, %v2494_v42  ;;  %v2872_v45 = vld [vmem:[%s7548_s27] sm:$0xff]  ;;  %s9624_s27 = sld [smem:[%s12219_s0 + %s8168_s24]]  }
 0x793   :  { %v2502_v46 = vrot.slane %v2501_v44, 1 }
 0x795   :  { %v2503_v47 = vadd.f32 %v2502_v46, %v2501_v44 }
 0x797   :  { %7585 = vmatprep.mubr.msk.f32.mxu1 %vm2301_vm5, %v2503_v47 }
 0x798   :  { %2572 = vmatmul.mubr.f32.vlgmr.msra.gmra.mxu1 %v2496_v48 }
 0x799   :  { %7839 = vmatpush3.msra.mxu1 %v2797_v33  ;;  %7842 = vmatprep.mubr.msk.f32.mxu1 %vm8152_vm8, %v12369_v6 }
 0x79a   :  { %7840 = vmatprep.subr.mxu1 %v12369_v6 }
 0x858   :  { %v2573_v49 = vpop.f32.mrf.mxu1 }
 0x859   :  { %v2577_v50 = vmul.f32 0.013888889, %v2573_v49 }
 0x85a   :  { %v2575_v51 = vpop.f32.mrf.mxu1 }
 0x85b   :  { %v2578_v22 = vadd.f32 1e-05, %v2577_v50 }
 0x85d   :  { %8053 = vrsqrt.f32 %v2578_v22 }
 0x86a   :  { %v8054_v53 = vpop.eup %8053 }
 0x86b   :  { %7586 = vmatmul.mubr.msk.f32.vlgmr.msra.gmra.mxu0 %vm2301_vm5, %v8054_v53 }
 0x86c   :  { %2720 = vmatpush1.msra.mxu0 %v2713_v52 }
 0x86d   :  { %2721 = vmatprep.subr.mxu0 %v12369_v6 }
 0x86e   :  { %2722 = vmatpush1.msra.mxu0 %v2712_v4 }
 0x86f   :  { %2723 = vmatprep.subr.mxu0 %v12369_v6 }
 0x870   :  { %2724 = vmatpush1.msra.mxu0 %v2711_v7 }
 0x871   :  { %2725 = vmatprep.subr.mxu0 %v12369_v6 }
 0x872   :  { %2726 = vmatpush1.msra.mxu0 %v2710_v10 }
 0x873   :  { %2727 = vmatprep.subr.mxu0 %v12369_v6 }
 0x874   :  { %2728 = vmatpush1.msra.mxu0 %v2709_v14 }
 0x875   :  { %2729 = vmatprep.subr.mxu0 %v12369_v6 }
 0x876   :  { %2730 = vmatpush1.msra.mxu0 %v2708_v55 }
 0x877   :  { %2731 = vmatprep.subr.mxu0 %v12369_v6 }
 0x878   :  { %2732 = vmatpush1.msra.mxu0 %v2707_v58 }
 0x879   :  { %2733 = vmatprep.subr.mxu0 %v12369_v6 }
 0x87a   :  { %2734 = vmatpush1.msra.mxu0 %v2706_v60  ;;  %v3137_v60 = vld [vmem:[%s7551_s1 + $0x18] sm:$0xff] }
 0x87b   :  { %2735 = vmatprep.subr.mxu0 %v12369_v6 }
 0x87c   :  { %2736 = vmatpush1.msra.mxu0 %v2705_v63  ;;  %v3136_v63 = vld [vmem:[%s7551_s1 + $0x10] sm:$0xff] }
 0x87d   :  { %2737 = vmatprep.subr.mxu0 %v12369_v6 }
 0x87e   :  { %2738 = vmatpush1.msra.mxu0 %v2704_v61  ;;  %v3135_v61 = vld [vmem:[%s7551_s1 + $0x8] sm:$0xff] }
 0x87f   :  { %2739 = vmatprep.subr.mxu0 %v12369_v6 }
 0x880   :  { %2740 = vmatpush1.msra.mxu0 %v2703_v16  ;;  %v3134_v16 = vld [vmem:[%s7551_s1] sm:$0xff]  ;;  %s7549_s1 = sld [smem:[%s12219_s0 + %s8169_s28]]  }
 0x881   :  { %2741 = vmatprep.subr.mxu0 %v12369_v6 }
 0x882   :  { %2742 = vmatpush1.msra.mxu0 %v2702_v17  ;;  %v3133_v17 = vld [vmem:[%s7535_s5] sm:$0xff]  ;;  %s7550_s5 = sld [smem:[%s12219_s0 + %s8170_s2]]  }
 0x883   :  { %2743 = vmatprep.subr.mxu0 %v12369_v6 }
 0x884   :  { %2744 = vmatpush1.msra.mxu0 %v2701_v56 }
 0x885   :  { %2745 = vmatprep.subr.mxu0 %v12369_v6 }
 0x886   :  { %2746 = vmatpush1.msra.mxu0 %v2700_v57 }
 0x887   :  { %2747 = vmatprep.subr.mxu0 %v12369_v6 }
 0x888   :  { %2748 = vmatpush1.msra.mxu0 %v2699_v1 }
 0x889   :  { %2749 = vmatprep.subr.mxu0 %v12369_v6 }
 0x88a   :  { %2750 = vmatpush1.msra.mxu0 %v2698_v54 }
 0x88b   :  { %2779 = vmatprep.subr.mxu0 %v12369_v6 }
 0x88c   :  { %2780 = vmatpush2.msra.mxu0 %v2715_v2 }
 0x88d   :  { %2781 = vmatprep.subr.mxu0 %v12369_v6 }
 0x88e   :  { %2782 = vmatpush2.msra.mxu0 %v2714_v59 }
 0x88f   :  { %7859 = vmatprep.subr.mxu0 %v12369_v6 }
 0x92b   :  { %v2649_v5 = vpop.f32.mrf.mxu0 }
 0x92c   :  { %v2657_v8 = vrot.slane %v2649_v5, %v9051_v21 }
 0x92d   :  { %v2651_v11 = vpop.f32.mrf.mxu0 }
 0x92e   :  { %v2662_v12 = vmul.f32 %v2657_v8, %v9369_v32  ;;  %v2661_v15 = vrot.slane %v2651_v11, %v9051_v21  ;;  %v3226_v8 = vld [vmem:[%s7552_s9 + $0x30] sm:$0xf] }
 0x930   :  { %v2676_v23 = vmul.f32 %v2669_v9, %v2662_v12  ;;  %v2663_v24 = vmul.f32 %v2661_v15, %v9375_v34  ;;  %v2796_v34 = vld [vmem:[%s7547_s23] sm:$0xff]  ;;  %v3225_v12 = vld [vmem:[%s7552_s9 + $0x28] sm:$0xff]  ;;  %s7563_s23 = sld [smem:[%s12219_s0 + %s8167_s20]]  }
 0x931   :  { %7841 = vmatpush3.msra.mxu1 %v2796_v34 }
 0x932   :  { %v2690_v25 = vadd.f32 %v2683_v13, %v2676_v23  ;;  %v2677_v26 = vmul.f32 %v2673_v18, %v2663_v24  ;;  %7845 = vmatprep.subr.mxu1 %v12369_v6  ;;  %v3224_v13 = vld [vmem:[%s7552_s9 + $0x20] sm:$0xff]  ;;  %v3223_v18 = vld [vmem:[%s7552_s9 + $0x18] sm:$0xff]  ;;  %v3222_v23 = vld [vmem:[%s7552_s9 + $0x10] sm:$0xff] }
 0x934   :  { %v2691_v27 = vadd.f32 %v2687_v30, %v2677_v26  ;;  %v2694_v28 = vmul.f32 0.01, %v2690_v25  ;;  %vm2692_vm7 = vcmp.ge.f32.partialorder %v2690_v25, 0.0  ;;  %v3221_v30 = vld [vmem:[%s7552_s9 + $0x8] sm:$0xff] }
 0x936   :  { %vm2693_vm6 = vcmp.ge.f32.partialorder %v2691_v27, 0.0  ;;  %v2695_v29 = vmul.f32 0.01, %v2691_v27  ;;  %v2696_v32 = vsel %vm2692_vm7, %v2690_v25, %v2694_v28  ;;  %v3220_v25 = vld [vmem:[%s7552_s9] sm:$0xff]  ;;  %s9645_s9 = sld [smem:[%s12219_s0 + %s8171_s6]]  }
 0x938   :  { %v2697_v37 = vsel %vm2693_vm6, %v2691_v27, %v2695_v29  ;;  %v3305_v27 = vld [vmem:[%s7553_s13] sm:$0xf]  ;;  %s7568_s13 = sld [smem:[%s12219_s0 + %s8172_s10]]  }
 0x939   :  { %7587 = vmatprep.mubr.msk.f32.mxu0 %vm2301_vm5, %v2697_v37 }
 0x93a   :  { %2784 = vmatmul.mubr.f32.vlgmr.msra.gmra.mxu0 %v2696_v32 }
 0x93b   :  { %7863 = vmatprep.mubr.msk.f32.mxu0 %vm8152_vm8, %v12369_v6  ;;  %7860 = vmatpush3.msra.mxu0 %v2873_v31 }
 0x93c   :  { %7861 = vmatprep.subr.mxu0 %v12369_v6  ;;  %v9885_v19 = vld [vmem:[%s9645_s9 + $0x128] sm:$0xff]  ;;  %v9893_v20 = vld [vmem:[%s9645_s9 + $0x118] sm:$0xff]  ;;  %v9897_v0 = vld [vmem:[%s9645_s9 + $0x110] sm:$0xff] }
 0x93d   :  { %7862 = vmatpush3.msra.mxu0 %v2872_v45  ;;  %12390 = vst [vmem:[#allocation20_spill] sm:$0xff] %v9885_v19  ;;  %12392 = vst [vmem:[#allocation22_spill] sm:$0xff] %v9893_v20 }
 0x93e   :  { %7877 = vmatprep.subr.mxu0 %v12369_v6  ;;  %12393 = vst [vmem:[#allocation23_spill] sm:$0xff] %v9897_v0 }
 0x9fa   :  { %v2785_v35 = vpop.f32.mrf.mxu0 }
 0x9fb   :  { %v2789_v36 = vsel %vm2301_vm5, %v2785_v35, 0.0 }
 0x9fc   :  { %v2790_v38 = vrot.slane %v2789_v36, 4  ;;  %v2787_v39 = vpop.f32.mrf.mxu0 }
 0x9fe   :  { %v2791_v40 = vadd.f32 %v2790_v38, %v2789_v36 }
 0xa00   :  { %v2792_v41 = vrot.slane %v2791_v40, 2 }
 0xa02   :  { %v2793_v42 = vadd.f32 %v2792_v41, %v2791_v40 }
 0xa04   :  { %v2794_v43 = vrot.slane %v2793_v42, 1 }
 0xa06   :  { %v2795_v44 = vadd.f32 %v2794_v43, %v2793_v42 }
 0xa08   :  { %7843 = vmatmul.mubr.msk.f32.vlgmr.msra.gmra.mxu1 %vm2301_vm5, %v2795_v44 }
 0xa09   :  { %7846 = vmatpush3.msra.mxu1 %v2873_v31  ;;  %7849 = vmatprep.mubr.msk.f32.mxu1 %vm8152_vm8, %v12369_v6 }
 0xa0a   :  { %7847 = vmatprep.subr.mxu1 %v12369_v6 }
 0xa0b   :  { %7848 = vmatpush3.msra.mxu1 %v2872_v45 }
 0xa0c   :  { %7852 = vmatprep.subr.mxu1 %v12369_v6 }
 0xac8   :  { %v2867_v46 = vpop.f32.mrf.mxu1 }
 0xac9   :  { %v2871_v47 = vmul.f32 0.125, %v2867_v46 }
 0xaca   :  { %v7844_v48 = vpop.f32.mrf.mxu1 }
 0xacb   :  { %7850 = vmatmul.mubr.msk.f32.vlgmr.msra.gmra.mxu1 %vm2301_vm5, %v2871_v47 }
 0xacc   :  { %7853 = vmatpush3.msra.mxu1 %v2797_v33  ;;  %7856 = vmatprep.mubr.msk.f32.mxu1 %vm8152_vm8, %v12369_v6 }
 0xacd   :  { %7854 = vmatprep.subr.mxu1 %v12369_v6 }
 0xace   :  { %7855 = vmatpush3.msra.mxu1 %v2796_v34 }
 0xacf   :  { %7866 = vmatprep.subr.mxu1 %v12369_v6 }
 0xb8b   :  { %v2943_v49 = vpop.f32.mrf.mxu1 }
 0xb8c   :  { %v2950_v50 = vrot.slane %v2943_v49, %v9051_v21 }
 0xb8d   :  { %v7851_v51 = vpop.f32.mrf.mxu1 }
 0xb8e   :  { %v9464_v22 = vsub.f32 %v2785_v35, %v2950_v50  ;;  %v3575_v50 = vld [vmem:[%s7556_s17 + $0x30] sm:$0xf] }
 0xb90   :  { %v2952_v52 = vmul.f32 %v9464_v22, %v9464_v22 }
 0xb92   :  { %v2953_v53 = vsel %vm2301_vm5, %v2952_v52, 0.0  ;;  %v3574_v52 = vld [vmem:[%s7556_s17 + $0x28] sm:$0xff] }
 0xb93   :  { %v2954_v4 = vrot.slane %v2953_v53, 4 }
 0xb95   :  { %v2955_v7 = vadd.f32 %v2954_v4, %v2953_v53  ;;  %v3573_v53 = vld [vmem:[%s7556_s17 + $0x20] sm:$0xff]  ;;  %v3572_v4 = vld [vmem:[%s7556_s17 + $0x18] sm:$0xff] }
 0xb97   :  { %v2956_v10 = vrot.slane %v2955_v7, 2 }
 0xb99   :  { %v2957_v14 = vadd.f32 %v2956_v10, %v2955_v7  ;;  %v3571_v7 = vld [vmem:[%s7556_s17 + $0x10] sm:$0xff]  ;;  %v3570_v10 = vld [vmem:[%s7556_s17 + $0x8] sm:$0xff] }
 0xb9b   :  { %v2958_v55 = vrot.slane %v2957_v14, 1 }
 0xb9d   :  { %v2959_v58 = vadd.f32 %v2958_v55, %v2957_v14  ;;  %v3569_v14 = vld [vmem:[%s7556_s17] sm:$0xff]  ;;  %s7569_s17 = sld [smem:[%s12219_s0 + %s8174_s14]]  }
 0xb9f   :  { %7857 = vmatmul.mubr.msk.f32.vlgmr.msra.gmra.mxu1 %vm2301_vm5, %v2959_v58 }
 0xba0   :  { %7867 = vmatpush3.msra.mxu1 %v3137_v60  ;;  %7874 = vmatprep.mubr.msk.f32.mxu1 %vm8152_vm8, %v12369_v6  ;;  %v7603_v60 = vld [vmem:[%s7554_s21] ss:$0 sm:$0xff]  ;;  %s9998_s21 = sld [smem:[%s12219_s0 + %s8175_s18]]  }
 0xba1   :  { %7868 = vmatprep.subr.mxu1 %v12369_v6 }
 0xba2   :  { %7869 = vmatpush3.msra.mxu1 %v3136_v63 }
 0xba3   :  { %7870 = vmatprep.subr.mxu1 %v12369_v6 }
 0xba4   :  { %7871 = vmatpush3.msra.mxu1 %v3135_v61 }
 0xba5   :  { %7872 = vmatprep.subr.mxu1 %v12369_v6 }
 0xba6   :  { %7873 = vmatpush3.msra.mxu1 %v3134_v16  ;;  %v7604_v16 = vld [vmem:[%s7555_s25] ss:$0 sm:$0xff]  ;;  %s7564_s25 = sld [smem:[%s12219_s0 + %s8176_s22]]  }
 0xba7   :  { %7875 = vmatmul.mubr.msk.f32.vlgmr.msra.gmra.mxu1 %vm3138_vm9, %v3133_v17  ;;  %7894 = vmatprep.subr.mxu1 %v12369_v6 }
 0xba8   :  { %7896 = vmatprep.mubr.msk.f32.mxu1 %vm8152_vm8, %v12369_v6  ;;  %7895 = vmatpush3.msk.msra.mxu1 %vm3230_vm11, %v3305_v27 }
 0xba9   :  { %7899 = vmatprep.subr.mxu1 %v12369_v6 }
 0xc5f   :  { %v3029_v56 = vpop.f32.mrf.mxu1 }
 0xc60   :  { %v3033_v57 = vmul.f32 0.125, %v3029_v56 }
 0xc61   :  { %v7858_v1 = vpop.f32.mrf.mxu1 }
 0xc62   :  { %v3034_v54 = vadd.f32 1e-05, %v3033_v57 }
 0xc64   :  { %8055 = vrsqrt.f32 %v3034_v54  ;;  %v3664_v54 = vld [vmem:[%s7557_s29 + $0x20] sm:$0xff] }
 0xc67   :  { %v9484_v2 = vpop.f32.mrf.mxu1 }
 0xc68   :  { %v3213_v59 = vsel %vm3212_vm10, %v9484_v2, 0.0 }
 0xc69   :  { %v7876_v62 = vpop.f32.mrf.mxu1  ;;  %v3214_v5 = vrot.slane %v3213_v59, 4 }
 0xc6a   :  { %v3661_v62 = vld [vmem:[%s7557_s29 + $0x8] sm:$0xff] }
 0xc6b   :  { %v3215_v3 = vadd.f32 %v3214_v5, %v3213_v59  ;;  %v3662_v59 = vld [vmem:[%s7557_s29 + $0x10] sm:$0xff]  ;;  %v3660_v5 = vld [vmem:[%s7557_s29] sm:$0xff] }
 0xc6d   :  { %v3216_v11 = vrot.slane %v3215_v3, 2 }
 0xc6f   :  { %v3217_v15 = vadd.f32 %v3216_v11, %v3215_v3  ;;  %v3739_v3 = vld [vmem:[%s7558_s3] sm:$0xff]  ;;  %s7571_s3 = sld [smem:[%s12219_s0 + %s8178_s30]]  }
 0xc71   :  { %v8056_v9 = vpop.eup %8055  ;;  %v3218_v24 = vrot.slane %v3217_v15, 1 }
 0xc72   :  { %7864 = vmatmul.mubr.msk.f32.vlgmr.msra.gmra.mxu0 %vm2301_vm5, %v8056_v9 }
 0xc73   :  { %7878 = vmatpush3.msk.msra.mxu0 %vm3230_vm11, %v3226_v8  ;;  %7891 = vmatprep.mubr.msk.f32.mxu0 %vm8152_vm8, %v12369_v6  ;;  %v3219_v26 = vadd.f32 %v3218_v24, %v3217_v15 }
 0xc74   :  { %7879 = vmatprep.subr.mxu0 %v12369_v6 }
 0xc75   :  { %7880 = vmatpush3.msra.mxu0 %v3225_v12 }
 0xc76   :  { %7881 = vmatprep.subr.mxu0 %v12369_v6 }
 0xc77   :  { %7882 = vmatpush3.msra.mxu0 %v3224_v13 }
 0xc78   :  { %7883 = vmatprep.subr.mxu0 %v12369_v6 }
 0xc79   :  { %7884 = vmatpush3.msra.mxu0 %v3223_v18 }
 0xc7a   :  { %7885 = vmatprep.subr.mxu0 %v12369_v6 }
 0xc7b   :  { %7886 = vmatpush3.msra.mxu0 %v3222_v23 }
 0xc7c   :  { %7887 = vmatprep.subr.mxu0 %v12369_v6 }
 0xc7d   :  { %7888 = vmatpush3.msra.mxu0 %v3221_v30 }
 0xc7e   :  { %7889 = vmatprep.subr.mxu0 %v12369_v6 }
 0xc7f   :  { %7890 = vmatpush3.msra.mxu0 %v3220_v25 }
 0xc80   :  { %7892 = vmatmul.mubr.msk.f32.vlgmr.msra.gmra.mxu0 %vm3212_vm10, %v3219_v26  ;;  %7916 = vmatprep.subr.mxu0 %v12369_v6 }
 0xc81   :  { %7918 = vmatprep.mubr.msk.f32.mxu0 %vm8152_vm8, %v12369_v6  ;;  %7917 = vmatpush3.msk.msra.mxu0 %vm3230_vm11, %v3305_v27 }
 0xc82   :  { %7921 = vmatprep.subr.mxu0 %v12369_v6 }
 0xd32   :  { %v9512_v28 = vpop.f32.mrf.mxu0 }
 0xd34   :  { %v7865_v29 = vpop.f32.mrf.mxu0 }
 0xd40   :  { %v3300_v37 = vpop.f32.mrf.mxu0 }
 0xd41   :  { %v3304_v32 = vmul.f32 0.009615385, %v3300_v37 }
 0xd42   :  { %v7893_v33 = vpop.f32.mrf.mxu0 }
 0xd43   :  { %7897 = vmatmul.mubr.msk.f32.vlgmr.msra.gmra.mxu1 %vm3306_vm12, %v3304_v32 }
 0xd44   :  { %7900 = vmatpush3.msk.msra.mxu1 %vm3230_vm11, %v3226_v8  ;;  %7913 = vmatprep.mubr.msk.f32.mxu1 %vm8152_vm8, %v12369_v6 }
 0xd45   :  { %7901 = vmatprep.subr.mxu1 %v12369_v6 }
 0xd46   :  { %7902 = vmatpush3.msra.mxu1 %v3225_v12 }
 0xd47   :  { %7903 = vmatprep.subr.mxu1 %v12369_v6 }
 0xd48   :  { %7904 = vmatpush3.msra.mxu1 %v3224_v13 }
 0xd49   :  { %7905 = vmatprep.subr.mxu1 %v12369_v6 }
 0xd4a   :  { %7906 = vmatpush3.msra.mxu1 %v3223_v18 }
 0xd4b   :  { %7907 = vmatprep.subr.mxu1 %v12369_v6 }
 0xd4c   :  { %7908 = vmatpush3.msra.mxu1 %v3222_v23 }
 0xd4d   :  { %7909 = vmatprep.subr.mxu1 %v12369_v6 }
 0xd4e   :  { %7910 = vmatpush3.msra.mxu1 %v3221_v30 }
 0xd4f   :  { %7911 = vmatprep.subr.mxu1 %v12369_v6 }
 0xd50   :  { %7912 = vmatpush3.msra.mxu1 %v3220_v25 }
 0xd51   :  { %7938 = vmatprep.subr.mxu1 %v12369_v6 }
 0xe03   :  { %v3379_v34 = vpop.f32.mrf.mxu1 }
 0xe04   :  { %v3386_v31 = vrot.slane %v3379_v34, %v9051_v21 }
 0xe05   :  { %v7898_v35 = vpop.f32.mrf.mxu1 }
 0xe06   :  { %v3387_v36 = vsub.f32 %v9484_v2, %v3386_v31  ;;  %v3663_v2 = vld [vmem:[%s7557_s29 + $0x18] sm:$0xff]  ;;  %s7565_s29 = sld [smem:[%s12219_s0 + %s8177_s26]]  }
 0xe08   :  { %v3388_v38 = vmul.f32 %v3387_v36, %v3387_v36 }
 0xe0a   :  { %v3389_v39 = vsel %vm3212_vm10, %v3388_v38, 0.0 }
 0xe0b   :  { %v3390_v40 = vrot.slane %v3389_v39, 4 }
 0xe0d   :  { %v3391_v41 = vadd.f32 %v3390_v40, %v3389_v39 }
 0xe0f   :  { %v3392_v42 = vrot.slane %v3391_v41, 2 }
 0xe11   :  { %v3393_v43 = vadd.f32 %v3392_v42, %v3391_v41 }
 0xe13   :  { %v3394_v44 = vrot.slane %v3393_v43, 1 }
 0xe15   :  { %v3395_v45 = vadd.f32 %v3394_v44, %v3393_v43 }
 0xe17   :  { %7914 = vmatmul.mubr.msk.f32.vlgmr.msra.gmra.mxu1 %vm3212_vm10, %v3395_v45 }
 0xe18   :  { %7948 = vmatprep.mubr.msk.f32.mxu1 %vm8152_vm8, %v12369_v6  ;;  %7939 = vmatpush3.msra.mxu1 %v3664_v54 }
 0xe19   :  { %7940 = vmatprep.subr.mxu1 %v12369_v6 }
 0xe1a   :  { %7941 = vmatpush3.msra.mxu1 %v3663_v2 }
 0xe1b   :  { %7942 = vmatprep.subr.mxu1 %v12369_v6 }
 0xe1c   :  { %7943 = vmatpush3.msra.mxu1 %v3662_v59 }
 0xe1d   :  { %7944 = vmatprep.subr.mxu1 %v12369_v6 }
 0xe1e   :  { %7945 = vmatpush3.msra.mxu1 %v3661_v62 }
 0xe1f   :  { %7946 = vmatprep.subr.mxu1 %v12369_v6 }
 0xe20   :  { %7947 = vmatpush3.msra.mxu1 %v3660_v5 }
 0xe21   :  { %7956 = vmatprep.subr.mxu1 %v12369_v6 }
 0xed7   :  { %v3465_v46 = vpop.f32.mrf.mxu1 }
 0xed8   :  { %v3469_v47 = vmul.f32 0.009615385, %v3465_v46  ;;  %v4003_v46 = vld [vmem:[%s7561_s7 + $0x20] sm:$0xff] }
 0xed9   :  { %v7915_v48 = vpop.f32.mrf.mxu1 }
 0xeda   :  { %v3470_v49 = vadd.f32 1e-05, %v3469_v47  ;;  %v4002_v47 = vld [vmem:[%s7561_s7 + $0x18] sm:$0xff]  ;;  %v4001_v48 = vld [vmem:[%s7561_s7 + $0x10] sm:$0xff] }
 0xedc   :  { %8057 = vrsqrt.f32 %v3470_v49  ;;  %v4000_v49 = vld [vmem:[%s7561_s7 + $0x8] sm:$0xff] }
 0xee9   :  { %v8058_v51 = vpop.eup %8057 }
 0xeea   :  { %7919 = vmatmul.mubr.msk.f32.vlgmr.msra.gmra.mxu0 %vm3306_vm12, %v8058_v51 }
 0xeeb   :  { %7922 = vmatpush3.msk.msra.mxu0 %vm3230_vm11, %v3575_v50  ;;  %7935 = vmatprep.mubr.msk.f32.mxu0 %vm8152_vm8, %v12369_v6  ;;  %v3999_v50 = vld [vmem:[%s7561_s7] sm:$0xff]  ;;  %s12125_s7 = sld [smem:[%s12219_s0 + %s8179_s4]]  }
 0xeec   :  { %7923 = vmatprep.subr.mxu0 %v12369_v6 }
 0xeed   :  { %7924 = vmatpush3.msra.mxu0 %v3574_v52 }
 0xeee   :  { %7925 = vmatprep.subr.mxu0 %v12369_v6 }
 0xeef   :  { %7926 = vmatpush3.msra.mxu0 %v3573_v53  ;;  %v7611_v53 = vld [vmem:[%s7559_s11] ss:$0 sm:$0xff]  ;;  %s12173_s11 = sld [smem:[%s12219_s0 + %s8180_s8]]  }
 0xef0   :  { %7927 = vmatprep.subr.mxu0 %v12369_v6 }
 0xef1   :  { %7928 = vmatpush3.msra.mxu0 %v3572_v4 }
 0xef2   :  { %7929 = vmatprep.subr.mxu0 %v12369_v6 }
 0xef3   :  { %7930 = vmatpush3.msra.mxu0 %v3571_v7 }
 0xef4   :  { %7931 = vmatprep.subr.mxu0 %v12369_v6 }
 0xef5   :  { %7932 = vmatpush3.msra.mxu0 %v3570_v10  ;;  %v7612_v10 = vld [vmem:[%s7560_s15] ss:$0 sm:$0xff]  ;;  %s7574_s15 = sld [smem:[%s12219_s0 + %s8181_s12]]  }
 0xef6   :  { %7933 = vmatprep.subr.mxu0 %v12369_v6 }
 0xef7   :  { %7934 = vmatpush3.msra.mxu0 %v3569_v14 }
 0xef8   :  { %7951 = vmatprep.subr.mxu0 %v12369_v6 }
 0xfaa   :  { %v3541_v55 = vpop.f32.mrf.mxu0 }
 0xfab   :  { %v3548_v58 = vrot.slane %v3541_v55, %v9051_v21 }
 0xfac   :  { %v7920_v63 = vpop.f32.mrf.mxu0 }
 0xfad   :  { %v3549_v61 = vmul.f32 %v3548_v58, %v3387_v36  ;;  %v4084_v63 = vld [vmem:[%s7562_s19] sm:$0xff]  ;;  %s7575_s19 = sld [smem:[%s12219_s0 + %s8182_s16]]  }
 0xfaf   :  { %v3557_v17 = vmul.f32 %v7603_v60, %v3549_v61 }
 0xfb1   :  { %v3565_v56 = vadd.f32 %v7604_v16, %v3557_v17 }
 0xfb3   :  { %vm3566_vm13 = vcmp.ge.f32.partialorder %v3565_v56, 0.0  ;;  %v3567_v57 = vmul.f32 0.01, %v3565_v56 }
 0xfb5   :  { %v3568_v1 = vsel %vm3566_vm13, %v3565_v56, %v3567_v57 }
 0xfb6   :  { %7936 = vmatmul.mubr.msk.f32.vlgmr.msra.gmra.mxu0 %vm3212_vm10, %v3568_v1 }
 0xfb7   :  { %7953 = vmatprep.mubr.msk.f32.mxu0 %vm8152_vm8, %v12369_v6  ;;  %7952 = vmatpush3.msra.mxu0 %v3739_v3 }
 0xfb8   :  { %7969 = vmatprep.subr.mxu0 %v12369_v6 }
0x1076   :  { %v3648_v8 = vpop.f32.mrf.mxu0 }
0x1077   :  { %v3653_v9 = vsel %vm3652_vm14, %v3648_v8, 0.0 }
0x1078   :  { %v3654_v11 = vrot.slane %v3653_v9, 4  ;;  %v7937_v12 = vpop.f32.mrf.mxu0 }
0x107a   :  { %v3655_v13 = vadd.f32 %v3654_v11, %v3653_v9  ;;  %v4422_v9 = vld [vmem:[%s9624_s27 + $0x18] sm:$0xff] }
0x107c   :  { %v3656_v15 = vrot.slane %v3655_v13, 2 }
0x107e   :  { %v3657_v18 = vadd.f32 %v3656_v15, %v3655_v13  ;;  %v3112_v15 = vrot.slane %v9512_v28, %v9051_v21 }
0x1080   :  { %v3658_v23 = vrot.slane %v3657_v18, 1 }
0x1082   :  { %v3659_v24 = vadd.f32 %v3658_v23, %v3657_v18 }
0x1084   :  { %7949 = vmatmul.mubr.msk.f32.vlgmr.msra.gmra.mxu1 %vm3652_vm14, %v3659_v24  ;;  %v3113_v24 = vmul.f32 %v3112_v15, %v9464_v22  ;;  %v9809_v15 = vld [vmem:[%s9645_s9 + $0x1c0] sm:$0xff] }
0x1085   :  { %7957 = vmatpush3.msra.mxu1 %v3664_v54  ;;  %7966 = vmatprep.mubr.msk.f32.mxu1 %vm8152_vm8, %v12369_v6 }
0x1086   :  { %7958 = vmatprep.subr.mxu1 %v12369_v6 }
0x1087   :  { %7959 = vmatpush3.msra.mxu1 %v3663_v2 }
0x1088   :  { %7960 = vmatprep.subr.mxu1 %v12369_v6 }
0x1089   :  { %7961 = vmatpush3.msra.mxu1 %v3662_v59 }
0x108a   :  { %7962 = vmatprep.subr.mxu1 %v12369_v6 }
0x108b   :  { %7963 = vmatpush3.msra.mxu1 %v3661_v62  ;;  %v4159_v62 = vld [vmem:[%s7563_s23] sm:$0xff] }
0x108c   :  { %7964 = vmatprep.subr.mxu1 %v12369_v6 }
0x108d   :  { %7965 = vmatpush3.msra.mxu1 %v3660_v5 }
0x108e   :  { %7987 = vmatprep.subr.mxu1 %v12369_v6 }
0x1144   :  { %v3734_v30 = vpop.f32.mrf.mxu1 }
0x1145   :  { %v3738_v25 = vmul.f32 0.025, %v3734_v30 }
0x1146   :  { %v7950_v26 = vpop.f32.mrf.mxu1 }
0x1147   :  { %7954 = vmatmul.mubr.msk.f32.vlgmr.msra.gmra.mxu0 %vm1278_vm0, %v3738_v25  ;;  %v7592_v25 = vld [vmem:[%s7549_s1] ss:$0 sm:$0xff] }
0x1148   :  { %7970 = vmatpush3.msra.mxu0 %v3739_v3  ;;  %7971 = vmatprep.mubr.msk.f32.mxu0 %vm8152_vm8, %v12369_v6 }
0x1149   :  { %7974 = vmatprep.subr.mxu0 %v12369_v6 }
0x1207   :  { %v3809_v27 = vpop.f32.mrf.mxu0 }
0x1208   :  { %v3816_v29 = vrot.slane %v3809_v27, %v9051_v21  ;;  %v3121_v27 = vmul.f32 %v7592_v25, %v3113_v24  ;;  %v9817_v24 = vld [vmem:[%s9645_s9 + $0x1b0] sm:$0xff]  ;;  %v9825_v25 = vld [vmem:[%s9645_s9 + $0x1a0] sm:$0xff] }
0x1209   :  { %v7955_v37 = vpop.f32.mrf.mxu0 }
0x120a   :  { %v3817_v32 = vsub.f32 %v3648_v8, %v3816_v29  ;;  %v7593_v29 = vld [vmem:[%s7550_s5] ss:$0 sm:$0xff] }
0x120c   :  { %v3818_v33 = vmul.f32 %v3817_v32, %v3817_v32 }
0x120e   :  { %v3819_v34 = vsel %vm3652_vm14, %v3818_v33, 0.0  ;;  %v3129_v33 = vadd.f32 %v7593_v29, %v3121_v27  ;;  %v9837_v27 = vld [vmem:[%s9645_s9 + $0x188] sm:$0xff]  ;;  %v9841_v29 = vld [vmem:[%s9645_s9 + $0x180] sm:$0xff] }
0x120f   :  { %v3820_v31 = vrot.slane %v3819_v34, 4 }
0x1210   :  { %vm3130_vm1 = vcmp.ge.f32.partialorder %v3129_v33, 0.0 }
0x1211   :  { %v3821_v35 = vadd.f32 %v3820_v31, %v3819_v34  ;;  %v4421_v31 = vld [vmem:[%s9624_s27 + $0x10] sm:$0xff] }
0x1213   :  { %v3822_v36 = vrot.slane %v3821_v35, 2 }
0x1215   :  { %v3823_v38 = vadd.f32 %v3822_v36, %v3821_v35  ;;  %v4420_v35 = vld [vmem:[%s9624_s27 + $0x8] sm:$0xff]  ;;  %v3131_v36 = vmul.f32 0.01, %v3129_v33 }
0x1217   :  { %v3824_v39 = vrot.slane %v3823_v38, 1 }
0x1219   :  { %v3825_v40 = vadd.f32 %v3824_v39, %v3823_v38  ;;  %v4419_v38 = vld [vmem:[%s9624_s27] sm:$0xff]  ;;  %v9653_v39 = vld [vmem:[%s9645_s9 + $0xf8] sm:$0xff] }
0x121b   :  { %7967 = vmatmul.mubr.msk.f32.vlgmr.msra.gmra.mxu1 %vm3652_vm14, %v3825_v40  ;;  %v9656_v40 = vld [vmem:[%s9645_s9 + $0xf0] sm:$0xff] }
0x121c   :  { %7989 = vmatprep.mubr.msk.f32.mxu1 %vm8152_vm8, %v12369_v6  ;;  %7988 = vmatpush3.msra.mxu1 %v4084_v63 }
0x121d   :  { %7992 = vmatprep.subr.mxu1 %v12369_v6 }
0x12db   :  { %v3895_v41 = vpop.f32.mrf.mxu1 }
0x12dc   :  { %v3899_v42 = vmul.f32 0.025, %v3895_v41  ;;  %v3132_v41 = vsel %vm3130_vm1, %v3129_v33, %v3131_v36  ;;  %v9853_v33 = vld [vmem:[%s9645_s9 + $0x168] sm:$0xff]  ;;  %v9873_v36 = vld [vmem:[%s9645_s9 + $0x140] sm:$0xff] }
0x12dd   :  { %v7968_v43 = vpop.f32.mrf.mxu1  ;;  %12382 = vst [vmem:[#allocation12_spill] sm:$0xff] %v9853_v33  ;;  %12387 = vst [vmem:[#allocation17_spill] sm:$0xff] %v9873_v36 }
0x12de   :  { %v3900_v44 = vadd.f32 1e-05, %v3899_v42  ;;  %v9659_v42 = vld [vmem:[%s9645_s9 + $0xe8] sm:$0xff]  ;;  %v9664_v43 = vld [vmem:[%s9645_s9 + $0xe0] sm:$0xff] }
0x12e0   :  { %8059 = vrsqrt.f32 %v3900_v44  ;;  %v9668_v44 = vld [vmem:[%s9645_s9 + $0xd8] sm:$0xff] }
0x12ed   :  { %v8060_v45 = vpop.eup %8059 }
0x12ee   :  { %7972 = vmatmul.mubr.msk.f32.vlgmr.msra.gmra.mxu0 %vm1278_vm0, %v8060_v45  ;;  %v9673_v45 = vld [vmem:[%s9645_s9 + $0xd0] sm:$0xff] }
0x12ef   :  { %7984 = vmatprep.mubr.msk.f32.mxu0 %vm8152_vm8, %v12369_v6  ;;  %7975 = vmatpush3.msra.mxu0 %v4003_v46  ;;  %v9677_v46 = vld [vmem:[%s9645_s9 + $0xc8] sm:$0xff] }
0x12f0   :  { %7976 = vmatprep.subr.mxu0 %v12369_v6 }
0x12f1   :  { %7977 = vmatpush3.msra.mxu0 %v4002_v47  ;;  %v9681_v47 = vld [vmem:[%s9645_s9 + $0xc0] sm:$0xff] }
0x12f2   :  { %7978 = vmatprep.subr.mxu0 %v12369_v6 }
0x12f3   :  { %7979 = vmatpush3.msra.mxu0 %v4001_v48  ;;  %v9685_v48 = vld [vmem:[%s9645_s9 + $0xb8] sm:$0xff] }
0x12f4   :  { %7980 = vmatprep.subr.mxu0 %v12369_v6 }
0x12f5   :  { %7981 = vmatpush3.msra.mxu0 %v4000_v49  ;;  %v9689_v49 = vld [vmem:[%s9645_s9 + $0xb0] sm:$0xff] }
0x12f6   :  { %7982 = vmatprep.subr.mxu0 %v12369_v6 }
0x12f7   :  { %7983 = vmatpush3.msra.mxu0 %v3999_v50  ;;  %v9693_v50 = vld [vmem:[%s9645_s9 + $0xa8] sm:$0xff] }
0x12f8   :  { %7997 = vmatprep.subr.mxu0 %v12369_v6 }
0x13ae   :  { %v3971_v51 = vpop.f32.mrf.mxu0 }
0x13af   :  { %v3978_v52 = vrot.slane %v3971_v51, %v9051_v21  ;;  %v9697_v51 = vld [vmem:[%s9645_s9 + $0xa0] sm:$0xff] }
0x13b0   :  { %v7973_v4 = vpop.f32.mrf.mxu0 }
0x13b1   :  { %v3979_v7 = vmul.f32 %v3978_v52, %v3817_v32  ;;  %v9701_v52 = vld [vmem:[%s9645_s9 + $0x98] sm:$0xff]  ;;  %v9709_v4 = vld [vmem:[%s9645_s9 + $0x88] sm:$0xff] }
0x13b3   :  { %v3987_v14 = vmul.f32 %v7611_v53, %v3979_v7  ;;  %v9705_v53 = vld [vmem:[%s9645_s9 + $0x90] sm:$0xff]  ;;  %v9713_v7 = vld [vmem:[%s9645_s9 + $0x80] sm:$0xff] }
0x13b5   :  { %v3995_v55 = vadd.f32 %v7612_v10, %v3987_v14  ;;  %v9717_v10 = vld [vmem:[%s9645_s9 + $0x78] sm:$0xff]  ;;  %v9721_v14 = vld [vmem:[%s9645_s9 + $0x70] sm:$0xff] }
0x13b7   :  { %vm3996_vm15 = vcmp.ge.f32.partialorder %v3995_v55, 0.0  ;;  %v3997_v58 = vmul.f32 0.01, %v3995_v55 }
0x13b9   :  { %v3998_v60 = vsel %vm3996_vm15, %v3995_v55, %v3997_v58  ;;  %v9725_v55 = vld [vmem:[%s9645_s9 + $0x68] sm:$0xff]  ;;  %v9729_v58 = vld [vmem:[%s9645_s9 + $0x60] sm:$0xff] }
0x13ba   :  { %7985 = vmatmul.mubr.msk.f32.vlgmr.msra.gmra.mxu0 %vm3652_vm14, %v3998_v60  ;;  %v9733_v60 = vld [vmem:[%s9645_s9 + $0x58] sm:$0xff] }
0x13bb   :  { %7999 = vmatprep.mubr.msk.f32.mxu0 %vm8152_vm8, %v12369_v6  ;;  %7998 = vmatpush3.msra.mxu0 %v4084_v63  ;;  %v9737_v63 = vld [vmem:[%s9645_s9 + $0x50] sm:$0xff] }
0x13bc   :  { %4466 = vmatprep.subr.mxu0 %v4422_v9  ;;  %v9793_v9 = vld [vmem:[%s9645_s9 + $0x1e0] sm:$0xff] }
0x147a   :  { %v4073_v61 = vpop.f32.mrf.mxu0 }
0x147b   :  { %v4077_v16 = vsel %vm1278_vm0, %v4073_v61, 0.0 }
0x147c   :  { %v4078_v17 = vrot.slane %v4077_v16, 4  ;;  %v7986_v56 = vpop.f32.mrf.mxu0 }
0x147d   :  { %v9753_v56 = vld [vmem:[%s9645_s9 + $0x30] sm:$0xff] }
0x147e   :  { %v4079_v57 = vadd.f32 %v4078_v17, %v4077_v16  ;;  %v9745_v16 = vld [vmem:[%s9645_s9 + $0x40] sm:$0xff]  ;;  %v9749_v17 = vld [vmem:[%s9645_s9 + $0x38] sm:$0xff] }
0x1480   :  { %v4080_v1 = vrot.slane %v4079_v57, 2 }
0x1482   :  { %v4081_v54 = vadd.f32 %v4080_v1, %v4079_v57  ;;  %v9757_v57 = vld [vmem:[%s9645_s9 + $0x28] sm:$0xff]  ;;  %v9761_v1 = vld [vmem:[%s9645_s9 + $0x20] sm:$0xff] }
0x1484   :  { %v4082_v2 = vrot.slane %v4081_v54, 1 }
0x1486   :  { %v4083_v59 = vadd.f32 %v4082_v2, %v4081_v54  ;;  %v9765_v54 = vld [vmem:[%s9645_s9 + $0x18] sm:$0xff]  ;;  %v9769_v2 = vld [vmem:[%s9645_s9 + $0x10] sm:$0xff] }
0x1488   :  { %7990 = vmatmul.mubr.msk.f32.vlgmr.msra.gmra.mxu1 %vm1278_vm0, %v4083_v59  ;;  %v9773_v59 = vld [vmem:[%s9645_s9 + $0x8] sm:$0xff] }
0x1489   :  { %7993 = vmatpush3.msra.mxu1 %v4159_v62  ;;  %7994 = vmatprep.mubr.msk.f32.mxu1 %vm8152_vm8, %v12369_v6 }
0x148a   :  { %8002 = vmatprep.subr.mxu1 %v12369_v6 }
0x1548   :  { %v4154_v5 = vpop.f32.mrf.mxu1 }
0x1549   :  { %v4158_v3 = vmul.f32 0.125, %v4154_v5  ;;  %v9781_v5 = vld [vmem:[%s9645_s9 + $0x1f8] sm:$0xff] }
0x154a   :  { %v7991_v8 = vpop.f32.mrf.mxu1 }
0x154b   :  { %7995 = vmatmul.mubr.msk.f32.vlgmr.msra.gmra.mxu1 %vm1278_vm0, %v4158_v3  ;;  %v9785_v3 = vld [vmem:[%s9645_s9 + $0x1f0] sm:$0xff]  ;;  %v9789_v8 = vld [vmem:[%s9645_s9 + $0x1e8] sm:$0xff] }
0x154c   :  { %8003 = vmatpush3.msra.mxu1 %v4159_v62  ;;  %8004 = vmatprep.mubr.msk.f32.mxu1 %vm8152_vm8, %v12369_v6  ;;  %v9777_v62 = vld [vmem:[%s9645_s9] sm:$0xff] }
0x160b   :  { %v4229_v11 = vpop.f32.mrf.mxu1 }
0x160c   :  { %v4236_v12 = vrot.slane %v4229_v11, %v9051_v21  ;;  %v9797_v11 = vld [vmem:[%s9645_s9 + $0x1d8] sm:$0xff]  ;;  %v9901_v21 = vld [vmem:[%s9645_s9 + $0x108] sm:$0xff] }
0x160d   :  { %v7996_v13 = vpop.f32.mrf.mxu1  ;;  %12394 = vst [vmem:[#allocation24_spill] sm:$0xff] %v9901_v21 }
0x160e   :  { %v9633_v18 = vsub.f32 %v4073_v61, %v4236_v12  ;;  %v9741_v61 = vld [vmem:[%s9645_s9 + $0x48] sm:$0xff]  ;;  %v9801_v12 = vld [vmem:[%s9645_s9 + $0x1d0] sm:$0xff] }
0x160f   :  { %v9805_v13 = vld [vmem:[%s9645_s9 + $0x1c8] sm:$0xff] }
0x1610   :  { %12378 = vst [vmem:[#allocation6_spill] sm:$0xff] %v9633_v18  ;;  %v4238_v23 = vmul.f32 %v9633_v18, %v9633_v18  ;;  %v9889_v18 = vld [vmem:[%s9645_s9 + $0x120] sm:$0xff] }
0x1611   :  { %12391 = vst [vmem:[#allocation21_spill] sm:$0xff] %v9889_v18 }
0x1612   :  { %v4239_v30 = vsel %vm1278_vm0, %v4238_v23, 0.0  ;;  %v9813_v23 = vld [vmem:[%s9645_s9 + $0x1b8] sm:$0xff] }
0x1613   :  { %v4240_v26 = vrot.slane %v4239_v30, 4 }
0x1615   :  { %v4241_v28 = vadd.f32 %v4240_v26, %v4239_v30  ;;  %v9821_v30 = vld [vmem:[%s9645_s9 + $0x1a8] sm:$0xff]  ;;  %v9829_v26 = vld [vmem:[%s9645_s9 + $0x198] sm:$0xff] }
0x1616   :  { %12379 = vst [vmem:[#allocation7_spill] sm:$0xff] %v9829_v26 }
0x1617   :  { %v4242_v37 = vrot.slane %v4241_v28, 2 }
0x1619   :  { %v4243_v32 = vadd.f32 %v4242_v37, %v4241_v28  ;;  %v9833_v28 = vld [vmem:[%s9645_s9 + $0x190] sm:$0xff]  ;;  %v9845_v37 = vld [vmem:[%s9645_s9 + $0x178] sm:$0xff] }
0x161a   :  { %12380 = vst [vmem:[#allocation10_spill] sm:$0xff] %v9845_v37 }
0x161b   :  { %v4244_v22 = vrot.slane %v4243_v32, 1 }
0x161d   :  { %v4245_v34 = vadd.f32 %v4244_v22, %v4243_v32  ;;  %v9849_v32 = vld [vmem:[%s9645_s9 + $0x170] sm:$0xff]  ;;  %v9857_v22 = vld [vmem:[%s9645_s9 + $0x160] sm:$0xff] }
0x161e   :  { %12381 = vst [vmem:[#allocation11_spill] sm:$0xff] %v9849_v32  ;;  %12383 = vst [vmem:[#allocation13_spill] sm:$0xff] %v9857_v22 }
0x161f   :  { %8000 = vmatmul.mubr.msk.f32.vlgmr.msra.gmra.mxu0 %vm1278_vm0, %v4245_v34  ;;  %v9861_v34 = vld [vmem:[%s9645_s9 + $0x158] sm:$0xff] }
0x1620   :  { %4467 = vmatpush1.msra.mxu0 %v4421_v31  ;;  %4502 = vmatprep.mubr.f32.mxu0 %v12369_v6  ;;  %12384 = vst [vmem:[#allocation14_spill] sm:$0xff] %v9861_v34  ;;  %v9865_v31 = vld [vmem:[%s9645_s9 + $0x150] sm:$0xff] }
0x1621   :  { %4468 = vmatprep.subr.mxu0 %v4420_v35  ;;  %12385 = vst [vmem:[#allocation15_spill] sm:$0xff] %v9865_v31  ;;  %v9869_v35 = vld [vmem:[%s9645_s9 + $0x148] sm:$0xff] }
0x1622   :  { %4469 = vmatpush1.msra.mxu0 %v4419_v38  ;;  %12386 = vst [vmem:[#allocation16_spill] sm:$0xff] %v9869_v35  ;;  %v9877_v38 = vld [vmem:[%s9645_s9 + $0x138] sm:$0xff] }
0x1623   :  { %4661 = vmatprep.subr.mxu0 %v9653_v39  ;;  %7620 = vmatmul.mubr.msk.f32.vlgmr.msra.gmra.mxu0 %vm2301_vm5, %v3132_v41  ;;  %12388 = vst [vmem:[#allocation18_spill] sm:$0xff] %v9877_v38  ;;  %v9881_v41 = vld [vmem:[%s9645_s9 + $0x130] sm:$0xff] }
0x1624   :  { %4662 = vmatpush1.msra.mxu0 %v9656_v40  ;;  %4725 = vmatprep.mubr.f32.mxu0 %v12369_v6  ;;  %12389 = vst [vmem:[#allocation19_spill] sm:$0xff] %v9881_v41 }
0x1625   :  { %4663 = vmatprep.subr.mxu0 %v9659_v42 }
0x1626   :  { %4664 = vmatpush1.msra.mxu0 %v9664_v43 }
0x1627   :  { %4665 = vmatprep.subr.mxu0 %v9668_v44 }
0x1628   :  { %4666 = vmatpush1.msra.mxu0 %v9673_v45 }
0x1629   :  { %4667 = vmatprep.subr.mxu0 %v9677_v46 }
0x162a   :  { %4668 = vmatpush1.msra.mxu0 %v9681_v47 }
0x162b   :  { %4669 = vmatprep.subr.mxu0 %v9685_v48 }
0x162c   :  { %4670 = vmatpush1.msra.mxu0 %v9689_v49 }
0x162d   :  { %4671 = vmatprep.subr.mxu0 %v9693_v50 }
0x162e   :  { %4672 = vmatpush1.msra.mxu0 %v9697_v51 }
0x162f   :  { %4673 = vmatprep.subr.mxu0 %v9701_v52 }
0x1630   :  { %4674 = vmatpush1.msra.mxu0 %v9705_v53 }
0x1631   :  { %4675 = vmatprep.subr.mxu0 %v9709_v4 }
0x1632   :  { %4676 = vmatpush1.msra.mxu0 %v9713_v7 }
0x1633   :  { %4677 = vmatprep.subr.mxu0 %v9717_v10 }
0x1634   :  { %4678 = vmatpush1.msra.mxu0 %v9721_v14 }
0x1635   :  { %4679 = vmatprep.subr.mxu0 %v9725_v55 }
0x1636   :  { %4680 = vmatpush1.msra.mxu0 %v9729_v58 }
0x1637   :  { %4681 = vmatprep.subr.mxu0 %v9733_v60 }
0x1638   :  { %4682 = vmatpush1.msra.mxu0 %v9737_v63 }
0x1639   :  { %4683 = vmatprep.subr.mxu0 %v9741_v61 }
0x163a   :  { %4684 = vmatpush1.msra.mxu0 %v9745_v16 }
0x163b   :  { %4685 = vmatprep.subr.mxu0 %v9749_v17 }
0x163c   :  { %4686 = vmatpush1.msra.mxu0 %v9753_v56 }
0x163d   :  { %4687 = vmatprep.subr.mxu0 %v9757_v57 }
0x163e   :  { %4688 = vmatpush1.msra.mxu0 %v9761_v1 }
0x163f   :  { %4689 = vmatprep.subr.mxu0 %v9765_v54 }
0x1640   :  { %4690 = vmatpush1.msra.mxu0 %v9769_v2 }
0x1641   :  { %4691 = vmatprep.subr.mxu0 %v9773_v59 }
0x1642   :  { %4692 = vmatpush1.msra.mxu0 %v9777_v62 }
0x1643   :  { %4693 = vmatprep.subr.mxu0 %v9781_v5 }
0x1644   :  { %4694 = vmatpush2.msra.mxu0 %v9785_v3 }
0x1645   :  { %4695 = vmatprep.subr.mxu0 %v9789_v8 }
0x1646   :  { %4696 = vmatpush2.msra.mxu0 %v9793_v9 }
0x1647   :  { %4697 = vmatprep.subr.mxu0 %v9797_v11 }
0x1648   :  { %4698 = vmatpush2.msra.mxu0 %v9801_v12 }
0x1649   :  { %4699 = vmatprep.subr.mxu0 %v9805_v13 }
0x164a   :  { %4700 = vmatpush2.msra.mxu0 %v9809_v15 }
0x164b   :  { %4701 = vmatprep.subr.mxu0 %v9813_v23 }
0x164c   :  { %4702 = vmatpush2.msra.mxu0 %v9817_v24 }
0x164d   :  { %4703 = vmatprep.subr.mxu0 %v9821_v30 }
0x164e   :  { %4704 = vmatpush2.msra.mxu0 %v9825_v25 }
0x164f   :  { %4705 = vmatprep.subr.mxu0 %v9829_v26 }
0x1650   :  { %4706 = vmatpush2.msra.mxu0 %v9833_v28 }
0x1651   :  { %4707 = vmatprep.subr.mxu0 %v9837_v27 }
0x1652   :  { %4708 = vmatpush2.msra.mxu0 %v9841_v29 }
0x1653   :  { %4709 = vmatprep.subr.mxu0 %v9845_v37 }
0x1654   :  { %4710 = vmatpush2.msra.mxu0 %v9849_v32 }
0x1655   :  { %4711 = vmatprep.subr.mxu0 %v9853_v33 }
0x1656   :  { %4712 = vmatpush2.msra.mxu0 %v9857_v22 }
0x1657   :  { %4713 = vmatprep.subr.mxu0 %v9861_v34 }
0x1658   :  { %4714 = vmatpush2.msra.mxu0 %v9865_v31 }
0x1659   :  { %4715 = vmatprep.subr.mxu0 %v9869_v35 }
0x165a   :  { %4716 = vmatpush2.msra.mxu0 %v9873_v36  ;;  %v9905_v36 = vld [vmem:[%s9645_s9 + $0x100] sm:$0xff] }
0x165b   :  { %4717 = vmatprep.subr.mxu0 %v9877_v38  ;;  %12395 = vst [vmem:[#allocation25_spill] sm:$0xff] %v9905_v36 }
0x165c   :  { %4718 = vmatpush2.msra.mxu0 %v9881_v41 }
0x165d   :  { %4719 = vmatprep.subr.mxu0 %v9885_v19 }
0x165e   :  { %4720 = vmatpush2.msra.mxu0 %v9889_v18 }
0x165f   :  { %4721 = vmatprep.subr.mxu0 %v9893_v20 }
0x1660   :  { %4722 = vmatpush2.msra.mxu0 %v9897_v0 }
0x1661   :  { %4723 = vmatprep.subr.mxu0 %v9901_v21 }
0x1662   :  { %4724 = vmatpush2.msra.mxu0 %v9905_v36 }
0x1663   :  { %4726 = vmatmul.mubr.f32.vlgmr.msra.gmra.mxu0 %v12369_v6  ;;  %4983 = vmatprep.subr.mxu0 %v9653_v39 }
0x1664   :  { %4984 = vmatpush1.msra.mxu0 %v9656_v40 }
0x1665   :  { %4985 = vmatprep.subr.mxu0 %v9659_v42 }
0x1666   :  { %4986 = vmatpush1.msra.mxu0 %v9664_v43 }
0x1667   :  { %4987 = vmatprep.subr.mxu0 %v9668_v44 }
0x1668   :  { %4988 = vmatpush1.msra.mxu0 %v9673_v45 }
0x1669   :  { %4989 = vmatprep.subr.mxu0 %v9677_v46 }
0x166a   :  { %4990 = vmatpush1.msra.mxu0 %v9681_v47 }
0x166b   :  { %4991 = vmatprep.subr.mxu0 %v9685_v48 }
0x166c   :  { %4992 = vmatpush1.msra.mxu0 %v9689_v49 }
0x166d   :  { %4993 = vmatprep.subr.mxu0 %v9693_v50 }
0x166e   :  { %4994 = vmatpush1.msra.mxu0 %v9697_v51 }
0x166f   :  { %4995 = vmatprep.subr.mxu0 %v9701_v52 }
0x1670   :  { %4996 = vmatpush1.msra.mxu0 %v9705_v53 }
0x1671   :  { %4997 = vmatprep.subr.mxu0 %v9709_v4 }
0x1672   :  { %4998 = vmatpush1.msra.mxu0 %v9713_v7 }
0x1673   :  { %4999 = vmatprep.subr.mxu0 %v9717_v10 }
0x1674   :  { %5000 = vmatpush1.msra.mxu0 %v9721_v14 }
0x1675   :  { %5001 = vmatprep.subr.mxu0 %v9725_v55 }
0x1676   :  { %5002 = vmatpush1.msra.mxu0 %v9729_v58 }
0x1677   :  { %5003 = vmatprep.subr.mxu0 %v9733_v60 }
0x1678   :  { %5004 = vmatpush1.msra.mxu0 %v9737_v63 }
0x1679   :  { %5005 = vmatprep.subr.mxu0 %v9741_v61 }
0x167a   :  { %5006 = vmatpush1.msra.mxu0 %v9745_v16 }
0x167b   :  { %5007 = vmatprep.subr.mxu0 %v9749_v17 }
0x167c   :  { %5008 = vmatpush1.msra.mxu0 %v9753_v56 }
0x167d   :  { %5009 = vmatprep.subr.mxu0 %v9757_v57 }
0x167e   :  { %5010 = vmatpush1.msra.mxu0 %v9761_v1 }
0x167f   :  { %5011 = vmatprep.subr.mxu0 %v9765_v54 }
0x1680   :  { %5012 = vmatpush1.msra.mxu0 %v9769_v2 }
0x1681   :  { %5013 = vmatprep.subr.mxu0 %v9773_v59 }
0x1682   :  { %5014 = vmatpush1.msra.mxu0 %v9777_v62 }
0x1683   :  { %5015 = vmatprep.subr.mxu0 %v9781_v5 }
0x1684   :  { %5016 = vmatpush2.msra.mxu0 %v9785_v3 }
0x1685   :  { %5017 = vmatprep.subr.mxu0 %v9789_v8 }
0x1686   :  { %5018 = vmatpush2.msra.mxu0 %v9793_v9 }
0x1687   :  { %5019 = vmatprep.subr.mxu0 %v9797_v11 }
0x1688   :  { %5020 = vmatpush2.msra.mxu0 %v9801_v12 }
0x1689   :  { %5021 = vmatprep.subr.mxu0 %v9805_v13 }
0x168a   :  { %5022 = vmatpush2.msra.mxu0 %v9809_v15 }
0x168b   :  { %5023 = vmatprep.subr.mxu0 %v9813_v23 }
0x168c   :  { %5024 = vmatpush2.msra.mxu0 %v9817_v24 }
0x168d   :  { %5025 = vmatprep.subr.mxu0 %v9821_v30 }
0x168e   :  { %5026 = vmatpush2.msra.mxu0 %v9825_v25 }
0x168f   :  { %5027 = vmatprep.subr.mxu0 %v9829_v26  ;;  %v12396_v26 = vld [vmem:[#allocation17_spill] sm:$0xff] }
0x1690   :  { %5028 = vmatpush2.msra.mxu0 %v9833_v28 }
0x1691   :  { %5029 = vmatprep.subr.mxu0 %v9837_v27 }
0x1692   :  { %5030 = vmatpush2.msra.mxu0 %v9841_v29 }
0x1693   :  { %5031 = vmatprep.subr.mxu0 %v9845_v37 }
0x1694   :  { %5032 = vmatpush2.msra.mxu0 %v9849_v32 }
0x1695   :  { %5033 = vmatprep.subr.mxu0 %v9853_v33 }
0x1696   :  { %5034 = vmatpush2.msra.mxu0 %v9857_v22 }
0x1697   :  { %5035 = vmatprep.subr.mxu0 %v9861_v34  ;;  %v8173_v34 = vmov 1966171168  }
0x1698   :  { %5036 = vmatpush2.msra.mxu0 %v9865_v31  ;;  %v4879_v22 = vunpack.c.l.s4 %v8173_v34  ;;  %v10149_v34 = vld [vmem:[%s9998_s21 + $0x70] sm:$0xff] }
0x1699   :  { %5037 = vmatprep.subr.mxu0 %v9869_v35 }
0x169a   :  { %5038 = vmatpush2.msra.mxu0 %v12396_v26  ;;  %v4880_v33 = vunpack.c.0.s8 %v4879_v22  ;;  %v10145_v22 = vld [vmem:[%s9998_s21 + $0x78] sm:$0xff] }
0x169b   :  { %5039 = vmatprep.subr.mxu0 %v9877_v38 }
0x169c   :  { %5040 = vmatpush2.msra.mxu0 %v9881_v41 }
0x169d   :  { %5041 = vmatprep.subr.mxu0 %v9885_v19 }
0x169e   :  { %5042 = vmatpush2.msra.mxu0 %v9889_v18 }
0x169f   :  { %5043 = vmatprep.subr.mxu0 %v9893_v20 }
0x16a0   :  { %5044 = vmatpush2.msra.mxu0 %v9897_v0 }
0x16a1   :  { %5045 = vmatprep.subr.mxu0 %v9901_v21  ;;  %v4423_v21 = vld [vmem:[%s7568_s13] sm:$0x3] }
0x16a2   :  { %5046 = vmatpush2.msra.mxu0 %v9905_v36  ;;  %v12397_v36 = vld [vmem:[#allocation5_spill] sm:$0xff] }
0x16a3   :  { %5321 = vmatprep.subr.mxu0 %v9653_v39  ;;  %v4428_v20 = vrot.slane %v4423_v21, %v12397_v36  ;;  %v12398_v39 = vld [vmem:[#allocation9_spill] sm:$0xff]  ;;  %v12399_v36 = vld [vmem:[#allocation8_spill] sm:$0xff] }
0x16a4   :  { %v4432_v18 = vrot.slane %v4423_v21, %v12398_v39  ;;  %v9990_v37 = vsub.s32 %v4880_v33, %v12399_v36  ;;  %v4509_v33 = vld [vmem:[%s7569_s17] sm:$0xff]  ;;  %v10153_v36 = vld [vmem:[%s9998_s21 + $0x68] sm:$0xff]  ;;  %v10309_v39 = vld [vmem:[%s9998_s21 + $0x130] sm:$0xff] }
0x16df   :  { %v4315_v35 = vpop.f32.mrf.mxu0 }
0x16e0   :  { %v4319_v26 = vmul.f32 0.125, %v4315_v35 }
0x16e1   :  { %v8001_v31 = vpop.f32.mrf.mxu0 }
0x16e2   :  { %v4320_v38 = vadd.f32 1e-05, %v4319_v26 }
0x16e3   :  { %v4504_v0 = vpop.f32.mrf.mxu0 }
0x16e4   :  { %8061 = vrsqrt.f32 %v4320_v38  ;;  %v9983_v31 = vadd.f32 %v4504_v0, %v4428_v20 }
0x16e5   :  { %v4506_v35 = vpop.f32.mrf.mxu0 }
0x16e6   :  { %v9985_v38 = vadd.f32 %v4506_v35, %v4432_v18  ;;  %v10157_v35 = vld [vmem:[%s9998_s21 + $0x60] sm:$0xff] }
0x16f1   :  { %v8062_v41 = vpop.eup %8061 }
0x16f2   :  { %8005 = vmatmul.mubr.msk.f32.vlgmr.msra.gmra.mxu1 %vm1278_vm0, %v8062_v41 }
0x16f3   :  { %4590 = vmatprep.mubr.f32.mxu1 %v12369_v6 }
0x1723   :  { %v4727_v26 = vpop.f32.mrf.mxu0 }
0x1724   :  { %v4732_v41 = vadd.f32 %v4727_v26, %v9983_v31  ;;  %v10161_v26 = vld [vmem:[%s9998_s21 + $0x58] sm:$0xff] }
0x1725   :  { %v4729_v6 = vpop.f32.mrf.mxu0 }
0x1726   :  { %v4733_v19 = vadd.f32 %v4729_v6, %v9985_v38  ;;  %8063 = vtanh.f32 %v4732_v41  ;;  %v10165_v41 = vld [vmem:[%s9998_s21 + $0x50] sm:$0xff] }
0x1728   :  { %8065 = vtanh.f32 %v4733_v19  ;;  %v12400_v19 = vlaneseq }
0x172a   :  { %vm10003_vm2 = vcmp.lt.s32.totalorder %v12400_v19, 256  ;;  %v10181_v19 = vld [vmem:[%s9998_s21 + $0x30] sm:$0xff] }
0x1733   :  { %v8064_v32 = vpop.eup %8063 }
0x1735   :  { %v8066_v21 = vpop.eup %8065 }
0x1736   :  { %v4877_v20 = vcombine.low %v8064_v32, %v8066_v21  ;;  %5047 = vmatprep.mubr.f32.mxu0 %v8066_v21  ;;  %v10169_v21 = vld [vmem:[%s9998_s21 + $0x48] sm:$0xff] }
0x1737   :  { %5048 = vmatmul.mubr.f32.vlgmr.msra.gmra.mxu0 %v8064_v32  ;;  %v4510_v32 = vld [vmem:[%s7569_s17 + $0x8] sm:$0xff] }
0x1738   :  { %v4884_v6 = vrot.slane %v4877_v20, %v9990_v37  ;;  %5322 = vmatpush1.msra.mxu0 %v9656_v40  ;;  %4556 = vmatprep.subr.mxu1 %v4510_v32  ;;  %v10015_v40 = vld [vmem:[%s9998_s21 + $0xf8] sm:$0xff]  ;;  %v10173_v20 = vld [vmem:[%s9998_s21 + $0x40] sm:$0xff] }
0x1739   :  { %5323 = vmatprep.subr.mxu0 %v9659_v42  ;;  %4557 = vmatpush1.msra.mxu1 %v4509_v33  ;;  %v12403_v42 = vld [vmem:[#allocation7_spill] sm:$0xff]  ;;  %v10189_v32 = vld [vmem:[%s9998_s21 + $0x20] sm:$0xff] }
0x173a   :  { %v4891_v18 = vrot.slane %v4884_v6, %v9990_v37  ;;  %5324 = vmatpush1.msra.mxu0 %v9664_v43  ;;  %4800 = vmatprep.subr.mxu1 %v10015_v40  ;;  %v12404_v43 = vld [vmem:[#allocation10_spill] sm:$0xff]  ;;  %v10177_v6 = vld [vmem:[%s9998_s21 + $0x38] sm:$0xff] }
0x173b   :  { %5325 = vmatprep.subr.mxu0 %v9668_v44  ;;  %v12405_v44 = vld [vmem:[#allocation11_spill] sm:$0xff] }
0x173c   :  { %4897 = vst.msk [vmem:[#allocation2] ss:$8 sm:$0x3] %vm10003_vm2, %v4891_v18  ;;  %5326 = vmatpush1.msra.mxu0 %v9673_v45  ;;  %v12406_v45 = vld [vmem:[#allocation12_spill] sm:$0xff]  ;;  %v10185_v18 = vld [vmem:[%s9998_s21 + $0x28] sm:$0xff] }
0x173d   :  { %5327 = vmatprep.subr.mxu0 %v9677_v46  ;;  %v12407_v46 = vld [vmem:[#allocation13_spill] sm:$0xff]  ;;  %v10193_v33 = vld [vmem:[%s9998_s21 + $0x18] sm:$0xff] }
0x173e   :  { %5328 = vmatpush1.msra.mxu0 %v9681_v47  ;;  %v12408_v47 = vld [vmem:[#allocation14_spill] sm:$0xff] }
0x173f   :  { %5329 = vmatprep.subr.mxu0 %v9685_v48  ;;  %v12409_v48 = vld [vmem:[#allocation15_spill] sm:$0xff] }
0x1740   :  { %5330 = vmatpush1.msra.mxu0 %v9689_v49  ;;  %v12410_v49 = vld [vmem:[#allocation16_spill] sm:$0xff] }
0x1741   :  { %5331 = vmatprep.subr.mxu0 %v9693_v50  ;;  %v12411_v50 = vld [vmem:[#allocation17_spill] sm:$0xff] }
0x1742   :  { %5332 = vmatpush1.msra.mxu0 %v9697_v51  ;;  %v12412_v51 = vld [vmem:[#allocation18_spill] sm:$0xff]  ;;  %12432 = vst [vmem:[#allocation17_spill] sm:$0xff] %v10309_v39 }
0x1743   :  { %5333 = vmatprep.subr.mxu0 %v9701_v52  ;;  %v12413_v52 = vld [vmem:[#allocation19_spill] sm:$0xff] }
0x1744   :  { %5334 = vmatpush1.msra.mxu0 %v9705_v53  ;;  %v12414_v53 = vld [vmem:[#allocation20_spill] sm:$0xff] }
0x1745   :  { %5335 = vmatprep.subr.mxu0 %v9709_v4  ;;  %v12415_v4 = vld [vmem:[#allocation21_spill] sm:$0xff] }
0x1746   :  { %5336 = vmatpush1.msra.mxu0 %v9713_v7  ;;  %v12416_v7 = vld [vmem:[#allocation22_spill] sm:$0xff] }
0x1747   :  { %5337 = vmatprep.subr.mxu0 %v9717_v10  ;;  %v12417_v10 = vld [vmem:[#allocation23_spill] sm:$0xff] }
0x1748   :  { %5338 = vmatpush1.msra.mxu0 %v9721_v14  ;;  %v12418_v14 = vld [vmem:[#allocation24_spill] sm:$0xff] }
0x1749   :  { %5339 = vmatprep.subr.mxu0 %v9725_v55  ;;  %v12419_v55 = vld [vmem:[#allocation25_spill] sm:$0xff] }
0x174a   :  { %5340 = vmatpush1.msra.mxu0 %v9729_v58 }
0x174b   :  { %5341 = vmatprep.subr.mxu0 %v9733_v60  ;;  %v12420_v60 = vld [vmem:[#allocation5_spill] sm:$0xff] }
0x174c   :  { %5342 = vmatpush1.msra.mxu0 %v9737_v63 }
0x174d   :  { %5343 = vmatprep.subr.mxu0 %v9741_v61  ;;  %v7618_v61 = vld [vmem:[%s7564_s25] ss:$0 sm:$0xff] }
0x174e   :  { %5344 = vmatpush1.msra.mxu0 %v9745_v16 }
0x174f   :  { %5345 = vmatprep.subr.mxu0 %v9749_v17  ;;  %v12421_v17 = vld [vmem:[#allocation6_spill] sm:$0xff] }
0x1750   :  { %5346 = vmatpush1.msra.mxu0 %v9753_v56 }
0x1751   :  { %5347 = vmatprep.subr.mxu0 %v9757_v57  ;;  %v7619_v57 = vld [vmem:[%s7565_s29] ss:$0 sm:$0xff] }
0x1752   :  { %5348 = vmatpush1.msra.mxu0 %v9761_v1 }
0x1753   :  { %5349 = vmatprep.subr.mxu0 %v9765_v54 }
0x1754   :  { %5350 = vmatpush1.msra.mxu0 %v9769_v2 }
0x1755   :  { %5351 = vmatprep.subr.mxu0 %v9773_v59  ;;  %v10085_v59 = vld [vmem:[%s9998_s21 + $0xf0] sm:$0xff] }
0x1756   :  { %5352 = vmatpush1.msra.mxu0 %v9777_v62 }
0x1757   :  { %5353 = vmatprep.subr.mxu0 %v9781_v5  ;;  %v10088_v5 = vld [vmem:[%s9998_s21 + $0xe8] sm:$0xff] }
0x1758   :  { %5354 = vmatpush2.msra.mxu0 %v9785_v3  ;;  %v10092_v3 = vld [vmem:[%s9998_s21 + $0xe0] sm:$0xff] }
0x1759   :  { %5355 = vmatprep.subr.mxu0 %v9789_v8  ;;  %v10096_v8 = vld [vmem:[%s9998_s21 + $0xd8] sm:$0xff] }
0x175a   :  { %5356 = vmatpush2.msra.mxu0 %v9793_v9  ;;  %v12422_v9 = vmov 0.0  }
0x175b   :  { %5357 = vmatprep.subr.mxu0 %v9797_v11  ;;  %v10101_v11 = vld [vmem:[%s9998_s21 + $0xd0] sm:$0xff] }
0x175c   :  { %5358 = vmatpush2.msra.mxu0 %v9801_v12  ;;  %v10105_v12 = vld [vmem:[%s9998_s21 + $0xc8] sm:$0xff] }
0x175d   :  { %5359 = vmatprep.subr.mxu0 %v9805_v13  ;;  %v10109_v13 = vld [vmem:[%s9998_s21 + $0xc0] sm:$0xff] }
0x175e   :  { %5360 = vmatpush2.msra.mxu0 %v9809_v15  ;;  %v10113_v15 = vld [vmem:[%s9998_s21 + $0xb8] sm:$0xff] }
0x175f   :  { %5361 = vmatprep.subr.mxu0 %v9813_v23  ;;  %v10117_v23 = vld [vmem:[%s9998_s21 + $0xb0] sm:$0xff] }
0x1760   :  { %5362 = vmatpush2.msra.mxu0 %v9817_v24  ;;  %v10121_v24 = vld [vmem:[%s9998_s21 + $0xa8] sm:$0xff] }
0x1761   :  { %5363 = vmatprep.subr.mxu0 %v9821_v30  ;;  %v10125_v30 = vld [vmem:[%s9998_s21 + $0xa0] sm:$0xff] }
0x1762   :  { %5364 = vmatpush2.msra.mxu0 %v9825_v25  ;;  %v10129_v25 = vld [vmem:[%s9998_s21 + $0x98] sm:$0xff] }
0x1763   :  { %5365 = vmatprep.subr.mxu0 %v12403_v42  ;;  %v10197_v42 = vld [vmem:[%s9998_s21 + $0x10] sm:$0xff] }
0x1764   :  { %5366 = vmatpush2.msra.mxu0 %v9833_v28  ;;  %v10133_v28 = vld [vmem:[%s9998_s21 + $0x90] sm:$0xff] }
0x1765   :  { %5367 = vmatprep.subr.mxu0 %v9837_v27  ;;  %v10137_v27 = vld [vmem:[%s9998_s21 + $0x88] sm:$0xff] }
0x1766   :  { %5368 = vmatpush2.msra.mxu0 %v9841_v29  ;;  %v10141_v29 = vld [vmem:[%s9998_s21 + $0x80] sm:$0xff] }
0x1767   :  { %5369 = vmatprep.subr.mxu0 %v12404_v43  ;;  %v10201_v43 = vld [vmem:[%s9998_s21 + $0x8] sm:$0xff] }
0x1768   :  { %5370 = vmatpush2.msra.mxu0 %v12405_v44  ;;  %v10205_v44 = vld [vmem:[%s9998_s21] sm:$0xff] }
0x1769   :  { %5371 = vmatprep.subr.mxu0 %v12406_v45  ;;  %v10209_v45 = vld [vmem:[%s9998_s21 + $0x1f8] sm:$0xff] }
0x176a   :  { %5372 = vmatpush2.msra.mxu0 %v12407_v46  ;;  %v10213_v46 = vld [vmem:[%s9998_s21 + $0x1f0] sm:$0xff] }
0x176b   :  { %5373 = vmatprep.subr.mxu0 %v12408_v47  ;;  %v10217_v47 = vld [vmem:[%s9998_s21 + $0x1e8] sm:$0xff] }
0x176c   :  { %5374 = vmatpush2.msra.mxu0 %v12409_v48  ;;  %v10221_v48 = vld [vmem:[%s9998_s21 + $0x1e0] sm:$0xff] }
0x176d   :  { %5375 = vmatprep.subr.mxu0 %v12410_v49  ;;  %v10225_v49 = vld [vmem:[%s9998_s21 + $0x1d8] sm:$0xff] }
0x176e   :  { %5376 = vmatpush2.msra.mxu0 %v12411_v50  ;;  %v10229_v50 = vld [vmem:[%s9998_s21 + $0x1d0] sm:$0xff] }
0x176f   :  { %5377 = vmatprep.subr.mxu0 %v12412_v51  ;;  %v10233_v51 = vld [vmem:[%s9998_s21 + $0x1c8] sm:$0xff] }
0x1770   :  { %5378 = vmatpush2.msra.mxu0 %v12413_v52  ;;  %v10237_v52 = vld [vmem:[%s9998_s21 + $0x1c0] sm:$0xff] }
0x1771   :  { %5379 = vmatprep.subr.mxu0 %v12414_v53  ;;  %v10241_v53 = vld [vmem:[%s9998_s21 + $0x1b8] sm:$0xff] }
0x1772   :  { %5380 = vmatpush2.msra.mxu0 %v12415_v4  ;;  %v10245_v4 = vld [vmem:[%s9998_s21 + $0x1b0] sm:$0xff] }
0x1773   :  { %5381 = vmatprep.subr.mxu0 %v12416_v7  ;;  %v10249_v7 = vld [vmem:[%s9998_s21 + $0x1a8] sm:$0xff] }
0x1774   :  { %5382 = vmatpush2.msra.mxu0 %v12417_v10  ;;  %v10253_v10 = vld [vmem:[%s9998_s21 + $0x1a0] sm:$0xff] }
0x1775   :  { %5383 = vmatprep.subr.mxu0 %v12418_v14  ;;  %v10257_v14 = vld [vmem:[%s9998_s21 + $0x198] sm:$0xff] }
0x1776   :  { %5384 = vmatpush2.msra.mxu0 %v12419_v55  ;;  %v10261_v55 = vld [vmem:[%s9998_s21 + $0x190] sm:$0xff] }
0x17b2   :  { %v4391_v58 = vpop.f32.mrf.mxu1 }
0x17b3   :  { %v4398_v63 = vrot.slane %v4391_v58, %v12420_v60  ;;  %v10265_v58 = vld [vmem:[%s9998_s21 + $0x188] sm:$0xff] }
0x17b4   :  { %v8006_v16 = vpop.f32.mrf.mxu1  ;;  %v10313_v60 = vld [vmem:[%s9998_s21 + $0x128] sm:$0xff] }
0x17b5   :  { %v4399_v56 = vmul.f32 %v4398_v63, %v12421_v17  ;;  %v10269_v63 = vld [vmem:[%s9998_s21 + $0x180] sm:$0xff]  ;;  %v10277_v16 = vld [vmem:[%s9998_s21 + $0x170] sm:$0xff]  ;;  %v10281_v17 = vld [vmem:[%s9998_s21 + $0x168] sm:$0xff] }
0x17b6   :  { %12424 = vst [vmem:[#allocation7_spill] sm:$0xff] %v10277_v16  ;;  %12425 = vst [vmem:[#allocation10_spill] sm:$0xff] %v10281_v17 }
0x17b7   :  { %v4407_v1 = vmul.f32 %v7618_v61, %v4399_v56  ;;  %v10273_v61 = vld [vmem:[%s9998_s21 + $0x178] sm:$0xff]  ;;  %v10285_v56 = vld [vmem:[%s9998_s21 + $0x160] sm:$0xff] }
0x17b8   :  { %12423 = vst [vmem:[#allocation8_spill] sm:$0xff] %v10273_v61  ;;  %12426 = vst [vmem:[#allocation11_spill] sm:$0xff] %v10285_v56 }
0x17b9   :  { %v4415_v54 = vadd.f32 %v7619_v57, %v4407_v1  ;;  %v10289_v57 = vld [vmem:[%s9998_s21 + $0x158] sm:$0xff]  ;;  %v10293_v1 = vld [vmem:[%s9998_s21 + $0x150] sm:$0xff] }
0x17ba   :  { %12427 = vst [vmem:[#allocation12_spill] sm:$0xff] %v10289_v57  ;;  %12428 = vst [vmem:[#allocation13_spill] sm:$0xff] %v10293_v1 }
0x17bb   :  { %vm4416_vm3 = vcmp.ge.f32.partialorder %v4415_v54, 0.0  ;;  %v4417_v2 = vmul.f32 0.01, %v4415_v54 }
0x17bd   :  { %v4418_v62 = vsel %vm4416_vm3, %v4415_v54, %v4417_v2  ;;  %v10297_v54 = vld [vmem:[%s9998_s21 + $0x148] sm:$0xff]  ;;  %v10301_v2 = vld [vmem:[%s9998_s21 + $0x140] sm:$0xff] }
0x17be   :  { %7621 = vmatmul.mubr.msk.f32.vlgmr.msra.gmra.mxu1 %vm1278_vm0, %v4418_v62  ;;  %12429 = vst [vmem:[#allocation14_spill] sm:$0xff] %v10297_v54  ;;  %12430 = vst [vmem:[#allocation15_spill] sm:$0xff] %v10301_v2  ;;  %v10305_v62 = vld [vmem:[%s9998_s21 + $0x138] sm:$0xff]  ;;  %vm7529_vm0 = vcmask 7168  }
0x17bf   :  { %4801 = vmatpush1.msra.mxu1 %v10085_v59  ;;  %4864 = vmatprep.mubr.f32.mxu1 %v12422_v9  ;;  %12431 = vst [vmem:[#allocation16_spill] sm:$0xff] %v10305_v62 }
0x17c0   :  { %4802 = vmatprep.subr.mxu1 %v10088_v5 }
0x17c1   :  { %4803 = vmatpush1.msra.mxu1 %v10092_v3 }
0x17c2   :  { %4804 = vmatprep.subr.mxu1 %v10096_v8 }
0x17c3   :  { %4805 = vmatpush1.msra.mxu1 %v10101_v11 }
0x17c4   :  { %4806 = vmatprep.subr.mxu1 %v10105_v12 }
0x17c5   :  { %4807 = vmatpush1.msra.mxu1 %v10109_v13 }
0x17c6   :  { %4808 = vmatprep.subr.mxu1 %v10113_v15 }
0x17c7   :  { %4809 = vmatpush1.msra.mxu1 %v10117_v23 }
0x17c8   :  { %4810 = vmatprep.subr.mxu1 %v10121_v24 }
0x17c9   :  { %4811 = vmatpush1.msra.mxu1 %v10125_v30 }
0x17ca   :  { %4812 = vmatprep.subr.mxu1 %v10129_v25 }
0x17cb   :  { %4813 = vmatpush1.msra.mxu1 %v10133_v28 }
0x17cc   :  { %4814 = vmatprep.subr.mxu1 %v10137_v27 }
0x17cd   :  { %4815 = vmatpush1.msra.mxu1 %v10141_v29 }
0x17ce   :  { %4816 = vmatprep.subr.mxu1 %v10145_v22 }
0x17cf   :  { %4817 = vmatpush1.msra.mxu1 %v10149_v34 }
0x17d0   :  { %4818 = vmatprep.subr.mxu1 %v10153_v36 }
0x17d1   :  { %4819 = vmatpush1.msra.mxu1 %v10157_v35 }
0x17d2   :  { %4820 = vmatprep.subr.mxu1 %v10161_v26 }
0x17d3   :  { %4821 = vmatpush1.msra.mxu1 %v10165_v41 }
0x17d4   :  { %4822 = vmatprep.subr.mxu1 %v10169_v21 }
0x17d5   :  { %4823 = vmatpush1.msra.mxu1 %v10173_v20 }
0x17d6   :  { %4824 = vmatprep.subr.mxu1 %v10177_v6 }
0x17d7   :  { %4825 = vmatpush1.msra.mxu1 %v10181_v19 }
0x17d8   :  { %4826 = vmatprep.subr.mxu1 %v10185_v18 }
0x17d9   :  { %4827 = vmatpush1.msra.mxu1 %v10189_v32 }
0x17da   :  { %4828 = vmatprep.subr.mxu1 %v10193_v33 }
0x17db   :  { %4829 = vmatpush1.msra.mxu1 %v10197_v42 }
0x17dc   :  { %4830 = vmatprep.subr.mxu1 %v10201_v43 }
0x17dd   :  { %4831 = vmatpush1.msra.mxu1 %v10205_v44 }
0x17de   :  { %4832 = vmatprep.subr.mxu1 %v10209_v45 }
0x17df   :  { %4833 = vmatpush2.msra.mxu1 %v10213_v46 }
0x17e0   :  { %4834 = vmatprep.subr.mxu1 %v10217_v47 }
0x17e1   :  { %4835 = vmatpush2.msra.mxu1 %v10221_v48 }
0x17e2   :  { %4836 = vmatprep.subr.mxu1 %v10225_v49 }
0x17e3   :  { %4837 = vmatpush2.msra.mxu1 %v10229_v50 }
0x17e4   :  { %4838 = vmatprep.subr.mxu1 %v10233_v51 }
0x17e5   :  { %4839 = vmatpush2.msra.mxu1 %v10237_v52 }
0x17e6   :  { %4840 = vmatprep.subr.mxu1 %v10241_v53 }
0x17e7   :  { %4841 = vmatpush2.msra.mxu1 %v10245_v4 }
0x17e8   :  { %4842 = vmatprep.subr.mxu1 %v10249_v7 }
0x17e9   :  { %4843 = vmatpush2.msra.mxu1 %v10253_v10 }
0x17ea   :  { %4844 = vmatprep.subr.mxu1 %v10257_v14 }
0x17eb   :  { %4845 = vmatpush2.msra.mxu1 %v10261_v55 }
0x17ec   :  { %4846 = vmatprep.subr.mxu1 %v10265_v58 }
0x17ed   :  { %4847 = vmatpush2.msra.mxu1 %v10269_v63 }
0x17ee   :  { %4848 = vmatprep.subr.mxu1 %v10273_v61 }
0x17ef   :  { %4849 = vmatpush2.msra.mxu1 %v10277_v16  ;;  %v10329_v16 = vld [vmem:[%s9998_s21 + $0x108] sm:$0xff] }
0x17f0   :  { %4850 = vmatprep.subr.mxu1 %v10281_v17 }
0x17f1   :  { %4851 = vmatpush2.msra.mxu1 %v10285_v56  ;;  %v10317_v56 = vld [vmem:[%s9998_s21 + $0x120] sm:$0xff] }
0x17f2   :  { %4852 = vmatprep.subr.mxu1 %v10289_v57 }
0x17f3   :  { %4853 = vmatpush2.msra.mxu1 %v10293_v1  ;;  %v10321_v1 = vld [vmem:[%s9998_s21 + $0x118] sm:$0xff] }
0x17f4   :  { %4854 = vmatprep.subr.mxu1 %v10297_v54  ;;  %v10325_v54 = vld [vmem:[%s9998_s21 + $0x110] sm:$0xff] }
0x17f5   :  { %4855 = vmatpush2.msra.mxu1 %v10301_v2 }
0x17f6   :  { %4856 = vmatprep.subr.mxu1 %v10305_v62 }
0x17f7   :  { %4857 = vmatpush2.msra.mxu1 %v10309_v39  ;;  %v5049_v57 = vpop.f32.mrf.mxu0  ;;  %v10334_v39 = vld [vmem:[%s9998_s21 + $0x100] sm:$0xff] }
0x17f8   :  { %v5056_v17 = vrot.slane %v5049_v57, 7  ;;  %4858 = vmatprep.subr.mxu1 %v10313_v60 }
0x17f9   :  { %4859 = vmatpush2.msra.mxu1 %v10317_v56  ;;  %v5051_v2 = vpop.f32.mrf.mxu0 }
0x17fa   :  { %v5060_v62 = vadd.f32 %v5056_v17, %v9983_v31  ;;  %v5057_v61 = vrot.slane %v5051_v2, 7  ;;  %4860 = vmatprep.subr.mxu1 %v10321_v1  ;;  %v10346_v17 = vld [vmem:[%s9645_s9 + $0xf8] sm:$0xff]  ;;  %v10566_v2 = vld [vmem:[%s9645_s9 + $0x1c0] sm:$0xff] }
0x17fb   :  { %4861 = vmatpush2.msra.mxu1 %v10325_v54  ;;  %5663 = vmatprep.subr.mxu0 %v10346_v17 }
0x17fc   :  { %v5061_v57 = vadd.f32 %v5057_v61, %v9985_v38  ;;  %4862 = vmatprep.subr.mxu1 %v10329_v16  ;;  %8067 = vtanh.f32 %v5060_v62  ;;  %v10546_v61 = vld [vmem:[%s9645_s9 + $0x1e8] sm:$0xff]  ;;  %v10570_v62 = vld [vmem:[%s9645_s9 + $0x1b8] sm:$0xff] }
0x17fd   :  { %4863 = vmatpush2.msra.mxu1 %v10334_v39 }
0x17fe   :  { %8069 = vtanh.f32 %v5061_v57  ;;  %4865 = vmatmul.mubr.f32.vlgmr.msra.gmra.mxu1 %v12422_v9  ;;  %5128 = vmatprep.subr.mxu1 %v10015_v40  ;;  %v10362_v9 = vld [vmem:[%s9645_s9 + $0xf0] sm:$0xff] }
0x17ff   :  { %5129 = vmatpush1.msra.mxu1 %v10085_v59  ;;  %v10574_v57 = vld [vmem:[%s9645_s9 + $0x1b0] sm:$0xff] }
0x1800   :  { %5130 = vmatprep.subr.mxu1 %v10088_v5 }
0x1801   :  { %5131 = vmatpush1.msra.mxu1 %v10092_v3 }
0x1802   :  { %5132 = vmatprep.subr.mxu1 %v10096_v8 }
0x1803   :  { %5133 = vmatpush1.msra.mxu1 %v10101_v11 }
0x1804   :  { %5134 = vmatprep.subr.mxu1 %v10105_v12  ;;  %v10367_v12 = vld [vmem:[%s9645_s9 + $0xe8] sm:$0xff] }
0x1805   :  { %5135 = vmatpush1.msra.mxu1 %v10109_v13  ;;  %v10371_v13 = vld [vmem:[%s9645_s9 + $0xe0] sm:$0xff] }
0x1806   :  { %5136 = vmatprep.subr.mxu1 %v10113_v15 }
0x1807   :  { %5137 = vmatpush1.msra.mxu1 %v10117_v23  ;;  %v10376_v23 = vld [vmem:[%s9645_s9 + $0xd8] sm:$0xff] }
0x1808   :  { %5138 = vmatprep.subr.mxu1 %v10121_v24  ;;  %v10381_v24 = vld [vmem:[%s9645_s9 + $0xd0] sm:$0xff] }
0x1809   :  { %5139 = vmatpush1.msra.mxu1 %v10125_v30  ;;  %v8068_v40 = vpop.eup %8067 }
0x180a   :  { %5140 = vmatprep.subr.mxu1 %v10129_v25  ;;  %v5317_v8 = vrot.slane %v8068_v40, 1  ;;  %v10387_v25 = vld [vmem:[%s9645_s9 + $0xc8] sm:$0xff] }
0x180b   :  { %v8070_v59 = vpop.eup %8069  ;;  %5141 = vmatpush1.msra.mxu1 %v10133_v28  ;;  %v10392_v28 = vld [vmem:[%s9645_s9 + $0xc0] sm:$0xff] }
0x180c   :  { %v5211_v5 = vcombine.low %v8068_v40, %v8070_v59  ;;  %v5318_v3 = vrot.slane %v8070_v59, 1  ;;  %5142 = vmatprep.subr.mxu1 %v10137_v27  ;;  %v10399_v27 = vld [vmem:[%s9645_s9 + $0xb8] sm:$0xff]  ;;  %v10578_v40 = vld [vmem:[%s9645_s9 + $0x1a8] sm:$0xff]  ;;  %v10582_v59 = vld [vmem:[%s9645_s9 + $0x1a0] sm:$0xff] }
0x180d   :  { %5143 = vmatpush1.msra.mxu1 %v10141_v29  ;;  %v10404_v29 = vld [vmem:[%s9645_s9 + $0xb0] sm:$0xff] }
0x180e   :  { %v5218_v11 = vrot.slane %v5211_v5, %v9990_v37  ;;  %5385 = vmatprep.mubr.f32.mxu0 %v5318_v3  ;;  %5144 = vmatprep.subr.mxu1 %v10145_v22  ;;  %v10409_v22 = vld [vmem:[%s9645_s9 + $0xa8] sm:$0xff]  ;;  %v10586_v5 = vld [vmem:[%s9645_s9 + $0x198] sm:$0xff]  ;;  %v10590_v3 = vld [vmem:[%s9645_s9 + $0x190] sm:$0xff] }
0x180f   :  { %5386 = vmatmul.mubr.f32.vlgmr.msra.gmra.mxu0 %v5317_v8  ;;  %5145 = vmatpush1.msra.mxu1 %v10149_v34  ;;  %v10414_v34 = vld [vmem:[%s9645_s9 + $0xa0] sm:$0xff]  ;;  %v10594_v8 = vld [vmem:[%s9645_s9 + $0x188] sm:$0xff] }
0x1810   :  { %v5219_v15 = vcombine.high %v5218_v11, %v5218_v11  ;;  %5146 = vmatprep.subr.mxu1 %v10153_v36  ;;  %5664 = vmatpush1.msra.mxu0 %v10362_v9  ;;  %v10419_v36 = vld [vmem:[%s9645_s9 + $0x98] sm:$0xff]  ;;  %12443 = vst [vmem:[#allocation18_spill] sm:$0xff] %v10594_v8  ;;  %v10598_v11 = vld [vmem:[%s9645_s9 + $0x180] sm:$0xff] }
0x1811   :  { %5147 = vmatpush1.msra.mxu1 %v10157_v35  ;;  %5665 = vmatprep.subr.mxu0 %v10367_v12  ;;  %v10424_v35 = vld [vmem:[%s9645_s9 + $0x90] sm:$0xff]  ;;  %12444 = vst [vmem:[#allocation19_spill] sm:$0xff] %v10598_v11 }
0x1812   :  { %v5226_v30 = vrot.slane %v5219_v15, %v9990_v37  ;;  %5148 = vmatprep.subr.mxu1 %v10161_v26  ;;  %5666 = vmatpush1.msra.mxu0 %v10371_v13  ;;  %v10429_v26 = vld [vmem:[%s9645_s9 + $0x88] sm:$0xff]  ;;  %v10602_v15 = vld [vmem:[%s9645_s9 + $0x178] sm:$0xff] }
0x1813   :  { %5149 = vmatpush1.msra.mxu1 %v10165_v41  ;;  %5667 = vmatprep.subr.mxu0 %v10376_v23  ;;  %v10434_v41 = vld [vmem:[%s9645_s9 + $0x80] sm:$0xff]  ;;  %12445 = vst [vmem:[#allocation20_spill] sm:$0xff] %v10602_v15 }
0x1814   :  { %5229 = vst.msk [vmem:[#allocation2 + $0x1] ss:$8 sm:$0x3] %vm10003_vm2, %v5226_v30  ;;  %5150 = vmatprep.subr.mxu1 %v10169_v21  ;;  %5668 = vmatpush1.msra.mxu0 %v10381_v24  ;;  %v10439_v21 = vld [vmem:[%s9645_s9 + $0x78] sm:$0xff]  ;;  %v10606_v30 = vld [vmem:[%s9645_s9 + $0x170] sm:$0xff] }
0x1815   :  { %5151 = vmatpush1.msra.mxu1 %v10173_v20  ;;  %5669 = vmatprep.subr.mxu0 %v10387_v25  ;;  %v10444_v20 = vld [vmem:[%s9645_s9 + $0x70] sm:$0xff]  ;;  %12446 = vst [vmem:[#allocation21_spill] sm:$0xff] %v10606_v30 }
0x1816   :  { %5152 = vmatprep.subr.mxu1 %v10177_v6  ;;  %5670 = vmatpush1.msra.mxu0 %v10392_v28  ;;  %v10449_v6 = vld [vmem:[%s9645_s9 + $0x68] sm:$0xff] }
0x1817   :  { %5153 = vmatpush1.msra.mxu1 %v10181_v19  ;;  %5671 = vmatprep.subr.mxu0 %v10399_v27  ;;  %v10454_v19 = vld [vmem:[%s9645_s9 + $0x60] sm:$0xff] }
0x1818   :  { %5154 = vmatprep.subr.mxu1 %v10185_v18  ;;  %5672 = vmatpush1.msra.mxu0 %v10404_v29  ;;  %v10459_v18 = vld [vmem:[%s9645_s9 + $0x58] sm:$0xff] }
0x1819   :  { %5155 = vmatpush1.msra.mxu1 %v10189_v32  ;;  %5673 = vmatprep.subr.mxu0 %v10409_v22  ;;  %v10464_v32 = vld [vmem:[%s9645_s9 + $0x50] sm:$0xff] }
0x181a   :  { %5156 = vmatprep.subr.mxu1 %v10193_v33  ;;  %5674 = vmatpush1.msra.mxu0 %v10414_v34  ;;  %v10469_v33 = vld [vmem:[%s9645_s9 + $0x48] sm:$0xff] }
0x181b   :  { %5157 = vmatpush1.msra.mxu1 %v10197_v42  ;;  %5675 = vmatprep.subr.mxu0 %v10419_v36  ;;  %v12433_v42 = vld [vmem:[#allocation8_spill] sm:$0xff] }
0x181c   :  { %5158 = vmatprep.subr.mxu1 %v10201_v43  ;;  %5676 = vmatpush1.msra.mxu0 %v10424_v35  ;;  %v12434_v43 = vld [vmem:[#allocation7_spill] sm:$0xff] }
0x181d   :  { %5159 = vmatpush1.msra.mxu1 %v10205_v44  ;;  %5677 = vmatprep.subr.mxu0 %v10429_v26  ;;  %v12435_v44 = vld [vmem:[#allocation10_spill] sm:$0xff] }
0x181e   :  { %5160 = vmatprep.subr.mxu1 %v10209_v45  ;;  %5678 = vmatpush1.msra.mxu0 %v10434_v41  ;;  %v12436_v45 = vld [vmem:[#allocation11_spill] sm:$0xff] }
0x181f   :  { %5161 = vmatpush2.msra.mxu1 %v10213_v46  ;;  %5679 = vmatprep.subr.mxu0 %v10439_v21  ;;  %v12437_v46 = vld [vmem:[#allocation12_spill] sm:$0xff] }
0x1820   :  { %5162 = vmatprep.subr.mxu1 %v10217_v47  ;;  %5680 = vmatpush1.msra.mxu0 %v10444_v20  ;;  %v12438_v47 = vld [vmem:[#allocation13_spill] sm:$0xff] }
0x1821   :  { %5163 = vmatpush2.msra.mxu1 %v10221_v48  ;;  %5681 = vmatprep.subr.mxu0 %v10449_v6  ;;  %v12439_v48 = vld [vmem:[#allocation14_spill] sm:$0xff] }
0x1822   :  { %5164 = vmatprep.subr.mxu1 %v10225_v49  ;;  %5682 = vmatpush1.msra.mxu0 %v10454_v19  ;;  %v12440_v49 = vld [vmem:[#allocation15_spill] sm:$0xff] }
0x1823   :  { %5165 = vmatpush2.msra.mxu1 %v10229_v50  ;;  %5683 = vmatprep.subr.mxu0 %v10459_v18  ;;  %v12441_v50 = vld [vmem:[#allocation16_spill] sm:$0xff] }
0x1824   :  { %5166 = vmatprep.subr.mxu1 %v10233_v51  ;;  %5684 = vmatpush1.msra.mxu0 %v10464_v32  ;;  %v12442_v51 = vld [vmem:[#allocation17_spill] sm:$0xff] }
0x1825   :  { %5167 = vmatpush2.msra.mxu1 %v10237_v52  ;;  %5685 = vmatprep.subr.mxu0 %v10469_v33  ;;  %v10501_v52 = vld [vmem:[%s9645_s9 + $0x40] sm:$0xff] }
0x1826   :  { %5168 = vmatprep.subr.mxu1 %v10241_v53  ;;  %5686 = vmatpush1.msra.mxu0 %v10501_v52  ;;  %v10506_v53 = vld [vmem:[%s9645_s9 + $0x38] sm:$0xff] }
0x1827   :  { %5169 = vmatpush2.msra.mxu1 %v10245_v4  ;;  %5687 = vmatprep.subr.mxu0 %v10506_v53  ;;  %v10514_v4 = vld [vmem:[%s9645_s9 + $0x28] sm:$0xff] }
0x1828   :  { %5170 = vmatprep.subr.mxu1 %v10249_v7  ;;  %v10518_v7 = vld [vmem:[%s9645_s9 + $0x20] sm:$0xff] }
0x1829   :  { %5171 = vmatpush2.msra.mxu1 %v10253_v10  ;;  %v10526_v10 = vld [vmem:[%s9645_s9 + $0x10] sm:$0xff] }
0x182a   :  { %5172 = vmatprep.subr.mxu1 %v10257_v14  ;;  %v10530_v14 = vld [vmem:[%s9645_s9 + $0x8] sm:$0xff] }
0x182b   :  { %5173 = vmatpush2.msra.mxu1 %v10261_v55  ;;  %v10534_v55 = vld [vmem:[%s9645_s9] sm:$0xff] }
0x182c   :  { %5174 = vmatprep.subr.mxu1 %v10265_v58  ;;  %v10538_v58 = vld [vmem:[%s9645_s9 + $0x1f8] sm:$0xff] }
0x182d   :  { %5175 = vmatpush2.msra.mxu1 %v10269_v63  ;;  %v10542_v63 = vld [vmem:[%s9645_s9 + $0x1f0] sm:$0xff] }
0x182e   :  { %5176 = vmatprep.subr.mxu1 %v12433_v42  ;;  %v10610_v42 = vld [vmem:[%s9645_s9 + $0x168] sm:$0xff] }
0x182f   :  { %5177 = vmatpush2.msra.mxu1 %v12434_v43  ;;  %12447 = vst [vmem:[#allocation22_spill] sm:$0xff] %v10610_v42  ;;  %v10614_v43 = vld [vmem:[%s9645_s9 + $0x160] sm:$0xff] }
0x1830   :  { %5178 = vmatprep.subr.mxu1 %v12435_v44  ;;  %12448 = vst [vmem:[#allocation23_spill] sm:$0xff] %v10614_v43  ;;  %v10618_v44 = vld [vmem:[%s9645_s9 + $0x158] sm:$0xff] }
0x1831   :  { %5179 = vmatpush2.msra.mxu1 %v12436_v45  ;;  %12449 = vst [vmem:[#allocation24_spill] sm:$0xff] %v10618_v44  ;;  %v10622_v45 = vld [vmem:[%s9645_s9 + $0x150] sm:$0xff] }
0x1832   :  { %5180 = vmatprep.subr.mxu1 %v12437_v46  ;;  %12450 = vst [vmem:[#allocation25_spill] sm:$0xff] %v10622_v45  ;;  %v10626_v46 = vld [vmem:[%s9645_s9 + $0x148] sm:$0xff] }
0x1833   :  { %5181 = vmatpush2.msra.mxu1 %v12438_v47  ;;  %12451 = vst [vmem:[#allocation6_spill] sm:$0xff] %v10626_v46  ;;  %v10630_v47 = vld [vmem:[%s9645_s9 + $0x140] sm:$0xff] }
0x1834   :  { %5182 = vmatprep.subr.mxu1 %v12439_v48  ;;  %12452 = vst [vmem:[#allocation8_spill] sm:$0xff] %v10630_v47  ;;  %v10634_v48 = vld [vmem:[%s9645_s9 + $0x138] sm:$0xff] }
0x1835   :  { %5183 = vmatpush2.msra.mxu1 %v12440_v49  ;;  %12453 = vst [vmem:[#allocation7_spill] sm:$0xff] %v10634_v48  ;;  %v10638_v49 = vld [vmem:[%s9645_s9 + $0x130] sm:$0xff] }
0x1836   :  { %5184 = vmatprep.subr.mxu1 %v12441_v50  ;;  %12454 = vst [vmem:[#allocation10_spill] sm:$0xff] %v10638_v49  ;;  %v10642_v50 = vld [vmem:[%s9645_s9 + $0x128] sm:$0xff] }
0x1837   :  { %5185 = vmatpush2.msra.mxu1 %v12442_v51  ;;  %12455 = vst [vmem:[#allocation11_spill] sm:$0xff] %v10642_v50  ;;  %v10646_v51 = vld [vmem:[%s9645_s9 + $0x120] sm:$0xff] }
0x1838   :  { %5186 = vmatprep.subr.mxu1 %v10313_v60  ;;  %v10510_v60 = vld [vmem:[%s9645_s9 + $0x30] sm:$0xff]  ;;  %12456 = vst [vmem:[#allocation12_spill] sm:$0xff] %v10646_v51 }
0x1839   :  { %5187 = vmatpush2.msra.mxu1 %v10317_v56  ;;  %5688 = vmatpush1.msra.mxu0 %v10510_v60  ;;  %v10554_v56 = vld [vmem:[%s9645_s9 + $0x1d8] sm:$0xff] }
0x183a   :  { %5188 = vmatprep.subr.mxu1 %v10321_v1  ;;  %5689 = vmatprep.subr.mxu0 %v10514_v4  ;;  %v10558_v1 = vld [vmem:[%s9645_s9 + $0x1d0] sm:$0xff] }
0x183b   :  { %5189 = vmatpush2.msra.mxu1 %v10325_v54  ;;  %5690 = vmatpush1.msra.mxu0 %v10518_v7  ;;  %v10562_v54 = vld [vmem:[%s9645_s9 + $0x1c8] sm:$0xff] }
0x183c   :  { %5190 = vmatprep.subr.mxu1 %v10329_v16  ;;  %v10550_v16 = vld [vmem:[%s9645_s9 + $0x1e0] sm:$0xff] }
0x183d   :  { %5191 = vmatpush2.msra.mxu1 %v10334_v39  ;;  %v10522_v39 = vld [vmem:[%s9645_s9 + $0x18] sm:$0xff] }
0x183e   :  { %5691 = vmatprep.subr.mxu0 %v10522_v39 }
0x183f   :  { %5692 = vmatpush1.msra.mxu0 %v10526_v10 }
0x1840   :  { %5693 = vmatprep.subr.mxu0 %v10530_v14 }
0x1841   :  { %5694 = vmatpush1.msra.mxu0 %v10534_v55 }
0x1842   :  { %5695 = vmatprep.subr.mxu0 %v10538_v58 }
0x1843   :  { %5696 = vmatpush2.msra.mxu0 %v10542_v63 }
0x1844   :  { %5697 = vmatprep.subr.mxu0 %v10546_v61 }
0x1845   :  { %5698 = vmatpush2.msra.mxu0 %v10550_v16 }
0x1846   :  { %5699 = vmatprep.subr.mxu0 %v10554_v56 }
0x1847   :  { %5700 = vmatpush2.msra.mxu0 %v10558_v1 }
0x1848   :  { %5701 = vmatprep.subr.mxu0 %v10562_v54 }
0x1849   :  { %5702 = vmatpush2.msra.mxu0 %v10566_v2 }
0x184a   :  { %5703 = vmatprep.subr.mxu0 %v10570_v62 }
0x184b   :  { %5704 = vmatpush2.msra.mxu0 %v10574_v57 }
0x184c   :  { %5705 = vmatprep.subr.mxu0 %v10578_v40 }
0x184d   :  { %5706 = vmatpush2.msra.mxu0 %v10582_v59 }
0x184e   :  { %5707 = vmatprep.subr.mxu0 %v10586_v5 }
0x184f   :  { %5708 = vmatpush2.msra.mxu0 %v10590_v3 }
0x1850   :  { %5709 = vmatprep.subr.mxu0 %v10594_v8 }
0x1851   :  { %5710 = vmatpush2.msra.mxu0 %v10598_v11 }
0x1852   :  { %5711 = vmatprep.subr.mxu0 %v10602_v15 }
0x1853   :  { %5712 = vmatpush2.msra.mxu0 %v10606_v30 }
0x1854   :  { %5713 = vmatprep.subr.mxu0 %v10610_v42 }
0x1855   :  { %5714 = vmatpush2.msra.mxu0 %v10614_v43 }
0x1856   :  { %5715 = vmatprep.subr.mxu0 %v10618_v44 }
0x1857   :  { %5716 = vmatpush2.msra.mxu0 %v10622_v45  ;;  %v12463_v45 = vld [vmem:[#allocation9_spill] sm:$0xff] }
0x1858   :  { %5717 = vmatprep.subr.mxu0 %v10626_v46  ;;  %v10650_v46 = vld [vmem:[%s9645_s9 + $0x118] sm:$0xff] }
0x1859   :  { %5718 = vmatpush2.msra.mxu0 %v10630_v47  ;;  %12457 = vst [vmem:[#allocation13_spill] sm:$0xff] %v10650_v46  ;;  %v10654_v47 = vld [vmem:[%s9645_s9 + $0x110] sm:$0xff] }
0x185a   :  { %5719 = vmatprep.subr.mxu0 %v10634_v48  ;;  %12458 = vst [vmem:[#allocation14_spill] sm:$0xff] %v10654_v47  ;;  %v10658_v48 = vld [vmem:[%s9645_s9 + $0x108] sm:$0xff] }
0x185b   :  { %5720 = vmatpush2.msra.mxu0 %v10638_v49  ;;  %12459 = vst [vmem:[#allocation15_spill] sm:$0xff] %v10658_v48  ;;  %v10662_v49 = vld [vmem:[%s9645_s9 + $0x100] sm:$0xff] }
0x185c   :  { %5721 = vmatprep.subr.mxu0 %v10642_v50  ;;  %12460 = vst [vmem:[#allocation16_spill] sm:$0xff] %v10662_v49  ;;  %v10667_v50 = vld [vmem:[%s9998_s21 + $0xf8] sm:$0xff] }
0x185d   :  { %5722 = vmatpush2.msra.mxu0 %v10646_v51  ;;  %12461 = vst [vmem:[#allocation17_spill] sm:$0xff] %v10667_v50  ;;  %5470 = vmatprep.subr.mxu1 %v10667_v50  ;;  %v12462_v51 = vld [vmem:[#allocation5_spill] sm:$0xff] }
0x185e   :  { %5723 = vmatprep.subr.mxu0 %v10650_v46 }
0x185f   :  { %5724 = vmatpush2.msra.mxu0 %v10654_v47  ;;  %v4511_v47 = vld [vmem:[%s7571_s3] sm:$0x3] }
0x1860   :  { %5725 = vmatprep.subr.mxu0 %v10658_v48  ;;  %v4516_v48 = vrot.slane %v4511_v47, %v12462_v51  ;;  %v4520_v44 = vrot.slane %v4511_v47, %v12463_v45 }
0x1861   :  { %5726 = vmatpush2.msra.mxu0 %v10662_v49 }
0x1862   :  { %6007 = vmatprep.subr.mxu0 %v10346_v17 }
0x187e   :  { %v4592_v46 = vpop.f32.mrf.mxu1 }
0x187f   :  { %v10675_v49 = vadd.f32 %v4592_v46, %v4516_v48  ;;  %v10682_v46 = vld [vmem:[%s9998_s21 + $0xf0] sm:$0xff] }
0x1880   :  { %v4594_v43 = vpop.f32.mrf.mxu1 }
0x1881   :  { %v10677_v42 = vadd.f32 %v4594_v43, %v4520_v44  ;;  %v10685_v44 = vld [vmem:[%s9998_s21 + $0xe8] sm:$0xff] }
0x1882   :  { %12465 = vst [vmem:[#allocation9_spill] sm:$0xff] %v10685_v44 }
0x1883   :  { %12464 = vst [vmem:[#allocation5_spill] sm:$0xff] %v10677_v42 }
0x18be   :  { %v4866_v17 = vpop.f32.mrf.mxu1 }
0x18bf   :  { %v4871_v50 = vadd.f32 %v4866_v17, %v10675_v49  ;;  %v10694_v17 = vld [vmem:[%s9998_s21 + $0xd8] sm:$0xff] }
0x18c0   :  { %v4868_v30 = vpop.f32.mrf.mxu1  ;;  %12467 = vst [vmem:[#allocation27_spill] sm:$0xff] %v10694_v17 }
0x18c1   :  { %v4872_v15 = vadd.f32 %v4868_v30, %v10677_v42  ;;  %8071 = vtanh.f32 %v4871_v50 }
0x18c3   :  { %8073 = vtanh.f32 %v4872_v15  ;;  %v10689_v15 = vld [vmem:[%s9998_s21 + $0xe0] sm:$0xff] }
0x18c4   :  { %12466 = vst [vmem:[#allocation26_spill] sm:$0xff] %v10689_v15 }
0x18ce   :  { %v8072_v11 = vpop.eup %8071 }
0x18cf   :  { %v5387_v51 = vpop.f32.mrf.mxu0 }
0x18d0   :  { %v8074_v8 = vpop.eup %8073  ;;  %v5394_v45 = vrot.slane %v5387_v51, 6  ;;  %v10699_v51 = vld [vmem:[%s9998_s21 + $0xd0] sm:$0xff] }
0x18d1   :  { %v4901_v47 = vcombine.low %v8072_v11, %v8074_v8  ;;  %5192 = vmatprep.mubr.f32.mxu1 %v8074_v8  ;;  %v5389_v43 = vpop.f32.mrf.mxu0  ;;  %12468 = vst [vmem:[#allocation28_spill] sm:$0xff] %v10699_v51 }
0x18d2   :  { %v5398_v48 = vadd.f32 %v5394_v45, %v9983_v31  ;;  %v5395_v30 = vrot.slane %v5389_v43, 6  ;;  %5193 = vmatmul.mubr.f32.vlgmr.msra.gmra.mxu1 %v8072_v11  ;;  %v10704_v45 = vld [vmem:[%s9998_s21 + $0xc8] sm:$0xff]  ;;  %v10714_v43 = vld [vmem:[%s9998_s21 + $0xb8] sm:$0xff] }
0x18d3   :  { %v4908_v50 = vrot.slane %v4901_v47, %v9990_v37  ;;  %5471 = vmatpush1.msra.mxu1 %v10682_v46  ;;  %12469 = vst [vmem:[#allocation29_spill] sm:$0xff] %v10704_v45  ;;  %v10708_v47 = vld [vmem:[%s9998_s21 + $0xc0] sm:$0xff]  ;;  %12471 = vst [vmem:[#allocation31_spill] sm:$0xff] %v10714_v43 }
0x18d4   :  { %v5399_v8 = vadd.f32 %v5395_v30, %v9985_v38  ;;  %5472 = vmatprep.subr.mxu1 %v10685_v44  ;;  %8075 = vtanh.f32 %v5398_v48  ;;  %12470 = vst [vmem:[#allocation30_spill] sm:$0xff] %v10708_v47  ;;  %v10718_v48 = vld [vmem:[%s9998_s21 + $0xb0] sm:$0xff]  ;;  %v10722_v30 = vld [vmem:[%s9998_s21 + $0xa8] sm:$0xff] }
0x18d5   :  { %v4915_v11 = vrot.slane %v4908_v50, %v9990_v37  ;;  %5473 = vmatpush1.msra.mxu1 %v10689_v15  ;;  %12472 = vst [vmem:[#allocation32_spill] sm:$0xff] %v10718_v48  ;;  %12473 = vst [vmem:[#allocation33_spill] sm:$0xff] %v10722_v30  ;;  %v10726_v50 = vld [vmem:[%s9998_s21 + $0xa0] sm:$0xff] }
0x18d6   :  { %8077 = vtanh.f32 %v5399_v8  ;;  %5474 = vmatprep.subr.mxu1 %v10694_v17  ;;  %12474 = vst [vmem:[#allocation34_spill] sm:$0xff] %v10726_v50  ;;  %v10730_v8 = vld [vmem:[%s9998_s21 + $0x98] sm:$0xff] }
0x18d7   :  { %4917 = vst.msk [vmem:[#allocation3] ss:$8 sm:$0x3] %vm10003_vm2, %v4915_v11  ;;  %5475 = vmatpush1.msra.mxu1 %v10699_v51  ;;  %12475 = vst [vmem:[#allocation35_spill] sm:$0xff] %v10730_v8  ;;  %v10734_v11 = vld [vmem:[%s9998_s21 + $0x90] sm:$0xff] }
0x18d8   :  { %5476 = vmatprep.subr.mxu1 %v10704_v45  ;;  %12476 = vst [vmem:[#allocation36_spill] sm:$0xff] %v10734_v11  ;;  %v10742_v45 = vld [vmem:[%s9998_s21 + $0x80] sm:$0xff] }
0x18d9   :  { %5477 = vmatpush1.msra.mxu1 %v10708_v47  ;;  %v10738_v47 = vld [vmem:[%s9998_s21 + $0x88] sm:$0xff]  ;;  %12478 = vst [vmem:[#allocation38_spill] sm:$0xff] %v10742_v45 }
0x18da   :  { %5478 = vmatprep.subr.mxu1 %v10714_v43  ;;  %12477 = vst [vmem:[#allocation37_spill] sm:$0xff] %v10738_v47  ;;  %v10754_v43 = vld [vmem:[%s9998_s21 + $0x68] sm:$0xff] }
0x18db   :  { %5479 = vmatpush1.msra.mxu1 %v10718_v48  ;;  %v10746_v48 = vld [vmem:[%s9998_s21 + $0x78] sm:$0xff] }
0x18dc   :  { %5480 = vmatprep.subr.mxu1 %v10722_v30  ;;  %12479 = vst [vmem:[#allocation39_spill] sm:$0xff] %v10746_v48  ;;  %v10750_v30 = vld [vmem:[%s9998_s21 + $0x70] sm:$0xff] }
0x18dd   :  { %5481 = vmatpush1.msra.mxu1 %v10726_v50  ;;  %12480 = vst [vmem:[#allocation40_spill] sm:$0xff] %v10750_v30 }
0x18de   :  { %5482 = vmatprep.subr.mxu1 %v10730_v8  ;;  %v10758_v8 = vld [vmem:[%s9998_s21 + $0x60] sm:$0xff] }
0x18df   :  { %5483 = vmatpush1.msra.mxu1 %v10734_v11  ;;  %v10762_v11 = vld [vmem:[%s9998_s21 + $0x58] sm:$0xff] }
0x18e0   :  { %5484 = vmatprep.subr.mxu1 %v10738_v47 }
0x18e1   :  { %5485 = vmatpush1.msra.mxu1 %v10742_v45  ;;  %v8076_v50 = vpop.eup %8075  ;;  %v10766_v45 = vld [vmem:[%s9998_s21 + $0x50] sm:$0xff] }
0x18e2   :  { %5486 = vmatprep.subr.mxu1 %v10746_v48  ;;  %v5659_v15 = vrot.slane %v8076_v50, 2  ;;  %v10770_v48 = vld [vmem:[%s9998_s21 + $0x48] sm:$0xff] }
0x18e3   :  { %v8078_v51 = vpop.eup %8077  ;;  %5487 = vmatpush1.msra.mxu1 %v10750_v30  ;;  %v10775_v30 = vld [vmem:[%s9998_s21 + $0x40] sm:$0xff] }
0x18e4   :  { %v5553_v47 = vcombine.low %v8076_v50, %v8078_v51  ;;  %v5660_v17 = vrot.slane %v8078_v51, 2  ;;  %5488 = vmatprep.subr.mxu1 %v10754_v43  ;;  %v10779_v51 = vld [vmem:[%s9998_s21 + $0x38] sm:$0xff] }
0x18e5   :  { %5489 = vmatpush1.msra.mxu1 %v10758_v8 }
0x18e6   :  { %v5560_v44 = vrot.slane %v5553_v47, %v9990_v37  ;;  %5727 = vmatprep.mubr.f32.mxu0 %v5660_v17  ;;  %5490 = vmatprep.subr.mxu1 %v10762_v11  ;;  %v10785_v47 = vld [vmem:[%s9998_s21 + $0x30] sm:$0xff] }
0x18e7   :  { %5728 = vmatmul.mubr.f32.vlgmr.msra.gmra.mxu0 %v5659_v15  ;;  %5491 = vmatpush1.msra.mxu1 %v10766_v45  ;;  %v10790_v15 = vld [vmem:[%s9998_s21 + $0x28] sm:$0xff] }
0x18e8   :  { %v5567_v50 = vrot.slane %v5560_v44, %v9990_v37  ;;  %5492 = vmatprep.subr.mxu1 %v10770_v48  ;;  %6008 = vmatpush1.msra.mxu0 %v10362_v9  ;;  %v10795_v44 = vld [vmem:[%s9998_s21 + $0x20] sm:$0xff]  ;;  %v10800_v9 = vld [vmem:[%s9998_s21 + $0x18] sm:$0xff] }
0x18e9   :  { %5493 = vmatpush1.msra.mxu1 %v10775_v30  ;;  %6009 = vmatprep.subr.mxu0 %v10367_v12  ;;  %v10807_v12 = vld [vmem:[%s9998_s21 + $0x10] sm:$0xff] }
0x18ea   :  { %v5568_v17 = vcombine.high %v5567_v50, %v5567_v50  ;;  %5494 = vmatprep.subr.mxu1 %v10779_v51  ;;  %6010 = vmatpush1.msra.mxu0 %v10371_v13  ;;  %v10812_v13 = vld [vmem:[%s9998_s21 + $0x8] sm:$0xff] }
0x18eb   :  { %5495 = vmatpush1.msra.mxu1 %v10785_v47  ;;  %6011 = vmatprep.subr.mxu0 %v10376_v23  ;;  %v10817_v23 = vld [vmem:[%s9998_s21] sm:$0xff]  ;;  %v10852_v50 = vld [vmem:[%s9998_s21 + $0x1c8] sm:$0xff] }
0x18ec   :  { %5571 = vst.msk [vmem:[#allocation2 + $0x2] ss:$8 sm:$0x3] %vm10003_vm2, %v5568_v17  ;;  %5496 = vmatprep.subr.mxu1 %v10790_v15  ;;  %6012 = vmatpush1.msra.mxu0 %v10381_v24  ;;  %v10822_v24 = vld [vmem:[%s9998_s21 + $0x1f8] sm:$0xff]  ;;  %v10984_v17 = vld [vmem:[%s9998_s21 + $0x120] sm:$0xff] }
0x18ed   :  { %5497 = vmatpush1.msra.mxu1 %v10795_v44  ;;  %6013 = vmatprep.subr.mxu0 %v10387_v25  ;;  %v10827_v25 = vld [vmem:[%s9998_s21 + $0x1f0] sm:$0xff] }
0x18ee   :  { %5498 = vmatprep.subr.mxu1 %v10800_v9  ;;  %6014 = vmatpush1.msra.mxu0 %v10392_v28  ;;  %v10832_v28 = vld [vmem:[%s9998_s21 + $0x1e8] sm:$0xff] }
0x18ef   :  { %5499 = vmatpush1.msra.mxu1 %v10807_v12  ;;  %6015 = vmatprep.subr.mxu0 %v10399_v27  ;;  %v10837_v27 = vld [vmem:[%s9998_s21 + $0x1e0] sm:$0xff] }
0x18f0   :  { %5500 = vmatprep.subr.mxu1 %v10812_v13  ;;  %6016 = vmatpush1.msra.mxu0 %v10404_v29  ;;  %v10842_v29 = vld [vmem:[%s9998_s21 + $0x1d8] sm:$0xff] }
0x18f1   :  { %5501 = vmatpush1.msra.mxu1 %v10817_v23  ;;  %6017 = vmatprep.subr.mxu0 %v10409_v22  ;;  %v10847_v22 = vld [vmem:[%s9998_s21 + $0x1d0] sm:$0xff] }
0x18f2   :  { %5502 = vmatprep.subr.mxu1 %v10822_v24  ;;  %6018 = vmatpush1.msra.mxu0 %v10414_v34  ;;  %v10857_v34 = vld [vmem:[%s9998_s21 + $0x1c0] sm:$0xff] }
0x18f3   :  { %5503 = vmatpush2.msra.mxu1 %v10827_v25  ;;  %6019 = vmatprep.subr.mxu0 %v10419_v36  ;;  %v10889_v36 = vld [vmem:[%s9998_s21 + $0x1b8] sm:$0xff] }
0x18f4   :  { %5504 = vmatprep.subr.mxu1 %v10832_v28  ;;  %6020 = vmatpush1.msra.mxu0 %v10424_v35  ;;  %v10894_v35 = vld [vmem:[%s9998_s21 + $0x1b0] sm:$0xff] }
0x18f5   :  { %5505 = vmatpush2.msra.mxu1 %v10837_v27  ;;  %6021 = vmatprep.subr.mxu0 %v10429_v26  ;;  %v10899_v26 = vld [vmem:[%s9998_s21 + $0x1a8] sm:$0xff] }
0x18f6   :  { %5506 = vmatprep.subr.mxu1 %v10842_v29  ;;  %6022 = vmatpush1.msra.mxu0 %v10434_v41  ;;  %v10904_v41 = vld [vmem:[%s9998_s21 + $0x1a0] sm:$0xff] }
0x18f7   :  { %5507 = vmatpush2.msra.mxu1 %v10847_v22  ;;  %6023 = vmatprep.subr.mxu0 %v10439_v21  ;;  %v10909_v21 = vld [vmem:[%s9998_s21 + $0x198] sm:$0xff] }
0x18f8   :  { %5508 = vmatprep.subr.mxu1 %v10852_v50  ;;  %6024 = vmatpush1.msra.mxu0 %v10444_v20  ;;  %v12481_v20 = vld [vmem:[#allocation18_spill] sm:$0xff] }
0x18f9   :  { %5509 = vmatpush2.msra.mxu1 %v10857_v34  ;;  %6025 = vmatprep.subr.mxu0 %v10449_v6  ;;  %v10914_v6 = vld [vmem:[%s9998_s21 + $0x190] sm:$0xff]  ;;  %12496 = vst [vmem:[#allocation18_spill] sm:$0xff] %v10984_v17 }
0x18fa   :  { %6026 = vmatpush1.msra.mxu0 %v10454_v19  ;;  %5510 = vmatprep.subr.mxu1 %v10889_v36  ;;  %v12482_v19 = vld [vmem:[#allocation19_spill] sm:$0xff] }
0x18fb   :  { %6027 = vmatprep.subr.mxu0 %v10459_v18  ;;  %5511 = vmatpush2.msra.mxu1 %v10894_v35  ;;  %v10919_v18 = vld [vmem:[%s9998_s21 + $0x188] sm:$0xff] }
0x18fc   :  { %6028 = vmatpush1.msra.mxu0 %v10464_v32  ;;  %5512 = vmatprep.subr.mxu1 %v10899_v26  ;;  %v12483_v32 = vld [vmem:[#allocation20_spill] sm:$0xff] }
0x18fd   :  { %6029 = vmatprep.subr.mxu0 %v10469_v33  ;;  %5513 = vmatpush2.msra.mxu1 %v10904_v41  ;;  %v10924_v33 = vld [vmem:[%s9998_s21 + $0x180] sm:$0xff] }
0x18fe   :  { %6030 = vmatpush1.msra.mxu0 %v10501_v52  ;;  %5514 = vmatprep.subr.mxu1 %v10909_v21  ;;  %v12484_v52 = vld [vmem:[#allocation21_spill] sm:$0xff] }
0x18ff   :  { %6031 = vmatprep.subr.mxu0 %v10506_v53  ;;  %5515 = vmatpush2.msra.mxu1 %v10914_v6  ;;  %v10929_v53 = vld [vmem:[%s9998_s21 + $0x178] sm:$0xff] }
0x1900   :  { %6032 = vmatpush1.msra.mxu0 %v10510_v60  ;;  %5516 = vmatprep.subr.mxu1 %v10919_v18  ;;  %v12485_v60 = vld [vmem:[#allocation22_spill] sm:$0xff] }
0x1901   :  { %6033 = vmatprep.subr.mxu0 %v10514_v4  ;;  %5517 = vmatpush2.msra.mxu1 %v10924_v33  ;;  %v10934_v4 = vld [vmem:[%s9998_s21 + $0x170] sm:$0xff] }
0x1902   :  { %6034 = vmatpush1.msra.mxu0 %v10518_v7  ;;  %5518 = vmatprep.subr.mxu1 %v10929_v53  ;;  %v12486_v7 = vld [vmem:[#allocation23_spill] sm:$0xff] }
0x1903   :  { %6035 = vmatprep.subr.mxu0 %v10522_v39  ;;  %5519 = vmatpush2.msra.mxu1 %v10934_v4  ;;  %v10939_v39 = vld [vmem:[%s9998_s21 + $0x168] sm:$0xff] }
0x1904   :  { %6036 = vmatpush1.msra.mxu0 %v10526_v10  ;;  %v12487_v10 = vld [vmem:[#allocation24_spill] sm:$0xff]  ;;  %5520 = vmatprep.subr.mxu1 %v10939_v39 }
0x1905   :  { %6037 = vmatprep.subr.mxu0 %v10530_v14  ;;  %v10944_v14 = vld [vmem:[%s9998_s21 + $0x160] sm:$0xff] }
0x1906   :  { %6038 = vmatpush1.msra.mxu0 %v10534_v55  ;;  %v12488_v55 = vld [vmem:[#allocation25_spill] sm:$0xff]  ;;  %5521 = vmatpush2.msra.mxu1 %v10944_v14 }
0x1907   :  { %6039 = vmatprep.subr.mxu0 %v10538_v58  ;;  %v10949_v58 = vld [vmem:[%s9998_s21 + $0x158] sm:$0xff] }
0x1908   :  { %6040 = vmatpush2.msra.mxu0 %v10542_v63  ;;  %v12489_v63 = vld [vmem:[#allocation6_spill] sm:$0xff]  ;;  %5522 = vmatprep.subr.mxu1 %v10949_v58 }
0x1909   :  { %6041 = vmatprep.subr.mxu0 %v10546_v61  ;;  %v10954_v61 = vld [vmem:[%s9998_s21 + $0x150] sm:$0xff] }
0x190a   :  { %6042 = vmatpush2.msra.mxu0 %v10550_v16  ;;  %v12490_v16 = vld [vmem:[#allocation8_spill] sm:$0xff]  ;;  %5523 = vmatpush2.msra.mxu1 %v10954_v61 }
0x190b   :  { %6043 = vmatprep.subr.mxu0 %v10554_v56  ;;  %v10959_v56 = vld [vmem:[%s9998_s21 + $0x148] sm:$0xff] }
0x190c   :  { %6044 = vmatpush2.msra.mxu0 %v10558_v1  ;;  %v12491_v1 = vld [vmem:[#allocation7_spill] sm:$0xff]  ;;  %5524 = vmatprep.subr.mxu1 %v10959_v56 }
0x190d   :  { %6045 = vmatprep.subr.mxu0 %v10562_v54  ;;  %v10964_v54 = vld [vmem:[%s9998_s21 + $0x140] sm:$0xff] }
0x190e   :  { %6046 = vmatpush2.msra.mxu0 %v10566_v2  ;;  %v12492_v2 = vld [vmem:[#allocation10_spill] sm:$0xff]  ;;  %5525 = vmatpush2.msra.mxu1 %v10964_v54 }
0x190f   :  { %6047 = vmatprep.subr.mxu0 %v10570_v62  ;;  %v10969_v62 = vld [vmem:[%s9998_s21 + $0x138] sm:$0xff] }
0x1910   :  { %6048 = vmatpush2.msra.mxu0 %v10574_v57  ;;  %v12493_v57 = vld [vmem:[#allocation11_spill] sm:$0xff]  ;;  %5526 = vmatprep.subr.mxu1 %v10969_v62 }
0x1911   :  { %6049 = vmatprep.subr.mxu0 %v10578_v40  ;;  %v10974_v40 = vld [vmem:[%s9998_s21 + $0x130] sm:$0xff] }
0x1912   :  { %6050 = vmatpush2.msra.mxu0 %v10582_v59  ;;  %v12494_v59 = vld [vmem:[#allocation12_spill] sm:$0xff]  ;;  %5527 = vmatpush2.msra.mxu1 %v10974_v40 }
0x1913   :  { %6051 = vmatprep.subr.mxu0 %v10586_v5  ;;  %v10979_v5 = vld [vmem:[%s9998_s21 + $0x128] sm:$0xff] }
0x1914   :  { %6052 = vmatpush2.msra.mxu0 %v10590_v3  ;;  %v12495_v3 = vld [vmem:[#allocation13_spill] sm:$0xff]  ;;  %5528 = vmatprep.subr.mxu1 %v10979_v5 }
0x1915   :  { %6053 = vmatprep.subr.mxu0 %v12481_v20  ;;  %v12497_v20 = vld [vmem:[#allocation14_spill] sm:$0xff]  ;;  %5529 = vmatpush2.msra.mxu1 %v10984_v17 }
0x1916   :  { %6054 = vmatpush2.msra.mxu0 %v12482_v19  ;;  %v10989_v19 = vld [vmem:[%s9998_s21 + $0x118] sm:$0xff] }
0x1917   :  { %6055 = vmatprep.subr.mxu0 %v12483_v32  ;;  %12498 = vst [vmem:[#allocation19_spill] sm:$0xff] %v10989_v19  ;;  %v12499_v32 = vld [vmem:[#allocation15_spill] sm:$0xff]  ;;  %5530 = vmatprep.subr.mxu1 %v10989_v19 }
0x1918   :  { %6056 = vmatpush2.msra.mxu0 %v12484_v52  ;;  %v10994_v52 = vld [vmem:[%s9998_s21 + $0x110] sm:$0xff] }
0x1919   :  { %6057 = vmatprep.subr.mxu0 %v12485_v60  ;;  %12500 = vst [vmem:[#allocation20_spill] sm:$0xff] %v10994_v52  ;;  %v12501_v60 = vld [vmem:[#allocation16_spill] sm:$0xff]  ;;  %5531 = vmatpush2.msra.mxu1 %v10994_v52 }
0x191a   :  { %6058 = vmatpush2.msra.mxu0 %v12486_v7  ;;  %v10999_v7 = vld [vmem:[%s9998_s21 + $0x108] sm:$0xff] }
0x191b   :  { %6059 = vmatprep.subr.mxu0 %v12487_v10  ;;  %12502 = vst [vmem:[#allocation21_spill] sm:$0xff] %v10999_v7  ;;  %5532 = vmatprep.subr.mxu1 %v10999_v7  ;;  %v11003_v10 = vld [vmem:[%s9998_s21 + $0x100] sm:$0xff] }
0x191c   :  { %6060 = vmatpush2.msra.mxu0 %v12488_v55  ;;  %12503 = vst [vmem:[#allocation22_spill] sm:$0xff] %v11003_v10  ;;  %5533 = vmatpush2.msra.mxu1 %v11003_v10  ;;  %v12504_v55 = vld [vmem:[#allocation17_spill] sm:$0xff] }
0x191d   :  { %6061 = vmatprep.subr.mxu0 %v12489_v63  ;;  %5812 = vmatprep.subr.mxu1 %v12504_v55  ;;  %v11008_v63 = vld [vmem:[%s9645_s9 + $0xf8] sm:$0xff] }
0x191e   :  { %6062 = vmatpush2.msra.mxu0 %v12490_v16  ;;  %12505 = vst [vmem:[#allocation23_spill] sm:$0xff] %v11008_v63 }
0x191f   :  { %6063 = vmatprep.subr.mxu0 %v12491_v1 }
0x1920   :  { %6064 = vmatpush2.msra.mxu0 %v12492_v2 }
0x1921   :  { %6065 = vmatprep.subr.mxu0 %v12493_v57 }
0x1922   :  { %6066 = vmatpush2.msra.mxu0 %v12494_v59 }
0x1923   :  { %6067 = vmatprep.subr.mxu0 %v12495_v3 }
0x1924   :  { %6068 = vmatpush2.msra.mxu0 %v12497_v20 }
0x1925   :  { %6069 = vmatprep.subr.mxu0 %v12499_v32 }
0x1926   :  { %6070 = vmatpush2.msra.mxu0 %v12501_v60 }
0x1927   :  { %6347 = vmatprep.subr.mxu0 %v11008_v63 }
0x1992   :  { %v5194_v16 = vpop.f32.mrf.mxu1 }
0x1993   :  { %v5201_v1 = vrot.slane %v5194_v16, 7 }
0x1994   :  { %v5196_v2 = vpop.f32.mrf.mxu1 }
0x1995   :  { %v5205_v57 = vadd.f32 %v5201_v1, %v10675_v49  ;;  %v5202_v59 = vrot.slane %v5196_v2, 7 }
0x1997   :  { %v5206_v3 = vadd.f32 %v5202_v59, %v10677_v42  ;;  %8079 = vtanh.f32 %v5205_v57  ;;  %v12506_v57 = vld [vmem:[#allocation9_spill] sm:$0xff] }
0x1999   :  { %8081 = vtanh.f32 %v5206_v3  ;;  %v12508_v3 = vld [vmem:[#allocation27_spill] sm:$0xff] }
0x19a4   :  { %v8080_v20 = vpop.eup %8079 }
0x19a5   :  { %v5466_v52 = vrot.slane %v8080_v20, 1 }
0x19a6   :  { %v8082_v32 = vpop.eup %8081 }
0x19a7   :  { %v5233_v60 = vcombine.low %v8080_v20, %v8082_v32  ;;  %v5729_v10 = vpop.f32.mrf.mxu0  ;;  %v5467_v7 = vrot.slane %v8082_v32, 1  ;;  %v12515_v20 = vld [vmem:[#allocation34_spill] sm:$0xff]  ;;  %v12516_v32 = vld [vmem:[#allocation35_spill] sm:$0xff] }
0x19a8   :  { %v5736_v55 = vrot.slane %v5729_v10, 5  ;;  %v12507_v10 = vld [vmem:[#allocation26_spill] sm:$0xff] }
0x19a9   :  { %v5240_v19 = vrot.slane %v5233_v60, %v9990_v37  ;;  %5534 = vmatprep.mubr.f32.mxu1 %v5467_v7  ;;  %v5731_v63 = vpop.f32.mrf.mxu0  ;;  %v12509_v7 = vld [vmem:[#allocation28_spill] sm:$0xff] }
0x19aa   :  { %v5740_v16 = vadd.f32 %v5736_v55, %v9983_v31  ;;  %v5737_v17 = vrot.slane %v5731_v63, 5  ;;  %5535 = vmatmul.mubr.f32.vlgmr.msra.gmra.mxu1 %v5466_v52  ;;  %v12513_v52 = vld [vmem:[#allocation32_spill] sm:$0xff]  ;;  %v12514_v63 = vld [vmem:[#allocation33_spill] sm:$0xff] }
0x19ab   :  { %v5241_v1 = vcombine.high %v5240_v19, %v5240_v19  ;;  %5813 = vmatpush1.msra.mxu1 %v10682_v46  ;;  %v12510_v19 = vld [vmem:[#allocation29_spill] sm:$0xff]  ;;  %v12511_v46 = vld [vmem:[#allocation30_spill] sm:$0xff]  ;;  %v12517_v60 = vld [vmem:[#allocation36_spill] sm:$0xff] }
0x19ac   :  { %v5741_v2 = vadd.f32 %v5737_v17, %v9985_v38  ;;  %5814 = vmatprep.subr.mxu1 %v12506_v57  ;;  %8083 = vtanh.f32 %v5740_v16  ;;  %v12512_v17 = vld [vmem:[#allocation31_spill] sm:$0xff]  ;;  %v12518_v55 = vld [vmem:[#allocation37_spill] sm:$0xff]  ;;  %v12519_v16 = vld [vmem:[#allocation38_spill] sm:$0xff] }
0x19ad   :  { %v5248_v59 = vrot.slane %v5241_v1, %v9990_v37  ;;  %5815 = vmatpush1.msra.mxu1 %v12507_v10 }
0x19ae   :  { %8085 = vtanh.f32 %v5741_v2  ;;  %5816 = vmatprep.subr.mxu1 %v12508_v3  ;;  %v12520_v2 = vld [vmem:[#allocation39_spill] sm:$0xff] }
0x19af   :  { %5251 = vst.msk [vmem:[#allocation3 + $0x1] ss:$8 sm:$0x3] %vm10003_vm2, %v5248_v59  ;;  %5817 = vmatpush1.msra.mxu1 %v12509_v7  ;;  %v12521_v59 = vld [vmem:[#allocation40_spill] sm:$0xff] }
0x19b0   :  { %5818 = vmatprep.subr.mxu1 %v12510_v19  ;;  %v11039_v19 = vld [vmem:[%s9645_s9 + $0xf0] sm:$0xff] }
0x19b1   :  { %5819 = vmatpush1.msra.mxu1 %v12511_v46 }
0x19b2   :  { %5820 = vmatprep.subr.mxu1 %v12512_v17  ;;  %v11044_v17 = vld [vmem:[%s9645_s9 + $0xe8] sm:$0xff] }
0x19b3   :  { %5821 = vmatpush1.msra.mxu1 %v12513_v52  ;;  %v11048_v52 = vld [vmem:[%s9645_s9 + $0xe0] sm:$0xff] }
0x19b4   :  { %5822 = vmatprep.subr.mxu1 %v12514_v63 }
0x19b5   :  { %5823 = vmatpush1.msra.mxu1 %v12515_v20  ;;  %v11074_v20 = vld [vmem:[%s9645_s9 + $0xb8] sm:$0xff] }
0x19b6   :  { %5824 = vmatprep.subr.mxu1 %v12516_v32  ;;  %v11239_v32 = vld [vmem:[%s9645_s9 + $0x1c0] sm:$0xff] }
0x19b7   :  { %5825 = vmatpush1.msra.mxu1 %v12517_v60  ;;  %v11243_v60 = vld [vmem:[%s9645_s9 + $0x1b8] sm:$0xff] }
0x19b8   :  { %5826 = vmatprep.subr.mxu1 %v12518_v55  ;;  %v11247_v55 = vld [vmem:[%s9645_s9 + $0x1b0] sm:$0xff] }
0x19b9   :  { %5827 = vmatpush1.msra.mxu1 %v12519_v16  ;;  %v8084_v1 = vpop.eup %8083  ;;  %v11251_v16 = vld [vmem:[%s9645_s9 + $0x1a8] sm:$0xff] }
0x19ba   :  { %5828 = vmatprep.subr.mxu1 %v12520_v2  ;;  %v6003_v7 = vrot.slane %v8084_v1, 3  ;;  %v11259_v2 = vld [vmem:[%s9645_s9 + $0x198] sm:$0xff] }
0x19bb   :  { %v8086_v57 = vpop.eup %8085  ;;  %5829 = vmatpush1.msra.mxu1 %v12521_v59  ;;  %v11267_v59 = vld [vmem:[%s9645_s9 + $0x188] sm:$0xff] }
0x19bc   :  { %v5895_v10 = vcombine.low %v8084_v1, %v8086_v57  ;;  %v6004_v3 = vrot.slane %v8086_v57, 3  ;;  %5830 = vmatprep.subr.mxu1 %v10754_v43  ;;  %v11255_v1 = vld [vmem:[%s9645_s9 + $0x1a0] sm:$0xff]  ;;  %v11263_v57 = vld [vmem:[%s9645_s9 + $0x190] sm:$0xff]  ;;  %12527 = vst [vmem:[#allocation24_spill] sm:$0xff] %v11267_v59 }
0x19bd   :  { %5831 = vmatpush1.msra.mxu1 %v10758_v8  ;;  %v11053_v8 = vld [vmem:[%s9645_s9 + $0xd8] sm:$0xff] }
0x19be   :  { %v5902_v46 = vrot.slane %v5895_v10, %v9990_v37  ;;  %6071 = vmatprep.mubr.f32.mxu0 %v6004_v3  ;;  %5832 = vmatprep.subr.mxu1 %v10762_v11  ;;  %v11058_v11 = vld [vmem:[%s9645_s9 + $0xd0] sm:$0xff]  ;;  %v11271_v10 = vld [vmem:[%s9645_s9 + $0x180] sm:$0xff]  ;;  %v11275_v3 = vld [vmem:[%s9645_s9 + $0x178] sm:$0xff] }
0x19bf   :  { %6072 = vmatmul.mubr.f32.vlgmr.msra.gmra.mxu0 %v6003_v7  ;;  %5833 = vmatpush1.msra.mxu1 %v10766_v45  ;;  %v11064_v45 = vld [vmem:[%s9645_s9 + $0xc8] sm:$0xff]  ;;  %12528 = vst [vmem:[#allocation25_spill] sm:$0xff] %v11271_v10  ;;  %12529 = vst [vmem:[#allocation6_spill] sm:$0xff] %v11275_v3  ;;  %v11279_v7 = vld [vmem:[%s9645_s9 + $0x170] sm:$0xff] }
0x19c0   :  { %v5903_v43 = vcombine.high %v5902_v46, %v5902_v46  ;;  %5834 = vmatprep.subr.mxu1 %v10770_v48  ;;  %6348 = vmatpush1.msra.mxu0 %v11039_v19  ;;  %v11069_v48 = vld [vmem:[%s9645_s9 + $0xc0] sm:$0xff]  ;;  %12530 = vst [vmem:[#allocation8_spill] sm:$0xff] %v11279_v7  ;;  %v11283_v46 = vld [vmem:[%s9645_s9 + $0x168] sm:$0xff] }
0x19c1   :  { %5835 = vmatpush1.msra.mxu1 %v10775_v30  ;;  %6349 = vmatprep.subr.mxu0 %v11044_v17  ;;  %12531 = vst [vmem:[#allocation7_spill] sm:$0xff] %v11283_v46 }
0x19c2   :  { %v5910_v63 = vrot.slane %v5903_v43, %v9990_v37  ;;  %5836 = vmatprep.subr.mxu1 %v10779_v51  ;;  %6350 = vmatpush1.msra.mxu0 %v11048_v52  ;;  %v11079_v51 = vld [vmem:[%s9645_s9 + $0xb0] sm:$0xff]  ;;  %v11287_v43 = vld [vmem:[%s9645_s9 + $0x160] sm:$0xff] }
0x19c3   :  { %5837 = vmatpush1.msra.mxu1 %v10785_v47  ;;  %6351 = vmatprep.subr.mxu0 %v11053_v8  ;;  %v11086_v47 = vld [vmem:[%s9645_s9 + $0xa8] sm:$0xff]  ;;  %12532 = vst [vmem:[#allocation10_spill] sm:$0xff] %v11287_v43 }
0x19c4   :  { %v5911_v30 = vcombine.high %v5910_v63, %v5910_v63  ;;  %5838 = vmatprep.subr.mxu1 %v10790_v15  ;;  %6352 = vmatpush1.msra.mxu0 %v11058_v11  ;;  %v11091_v15 = vld [vmem:[%s9645_s9 + $0xa0] sm:$0xff]  ;;  %v11291_v63 = vld [vmem:[%s9645_s9 + $0x158] sm:$0xff] }
0x19c5   :  { %5839 = vmatpush1.msra.mxu1 %v10795_v44  ;;  %6353 = vmatprep.subr.mxu0 %v11064_v45  ;;  %v11096_v44 = vld [vmem:[%s9645_s9 + $0x98] sm:$0xff]  ;;  %12533 = vst [vmem:[#allocation11_spill] sm:$0xff] %v11291_v63 }
0x19c6   :  { %5914 = vst.msk [vmem:[#allocation2 + $0x3] ss:$8 sm:$0x3] %vm10003_vm2, %v5911_v30  ;;  %5840 = vmatprep.subr.mxu1 %v10800_v9  ;;  %6354 = vmatpush1.msra.mxu0 %v11069_v48  ;;  %v11101_v9 = vld [vmem:[%s9645_s9 + $0x90] sm:$0xff] }
0x19c7   :  { %5841 = vmatpush1.msra.mxu1 %v10807_v12  ;;  %6355 = vmatprep.subr.mxu0 %v11074_v20  ;;  %v11106_v12 = vld [vmem:[%s9645_s9 + $0x88] sm:$0xff]  ;;  %v11295_v30 = vld [vmem:[%s9645_s9 + $0x150] sm:$0xff] }
0x19c8   :  { %5842 = vmatprep.subr.mxu1 %v10812_v13  ;;  %6356 = vmatpush1.msra.mxu0 %v11079_v51  ;;  %v11111_v13 = vld [vmem:[%s9645_s9 + $0x80] sm:$0xff]  ;;  %12534 = vst [vmem:[#allocation12_spill] sm:$0xff] %v11295_v30 }
0x19c9   :  { %5843 = vmatpush1.msra.mxu1 %v10817_v23  ;;  %6357 = vmatprep.subr.mxu0 %v11086_v47  ;;  %v11116_v23 = vld [vmem:[%s9645_s9 + $0x78] sm:$0xff] }
0x19ca   :  { %5844 = vmatprep.subr.mxu1 %v10822_v24  ;;  %6358 = vmatpush1.msra.mxu0 %v11091_v15  ;;  %v11121_v24 = vld [vmem:[%s9645_s9 + $0x70] sm:$0xff] }
0x19cb   :  { %5845 = vmatpush2.msra.mxu1 %v10827_v25  ;;  %6359 = vmatprep.subr.mxu0 %v11096_v44  ;;  %v11126_v25 = vld [vmem:[%s9645_s9 + $0x68] sm:$0xff] }
0x19cc   :  { %5846 = vmatprep.subr.mxu1 %v10832_v28  ;;  %6360 = vmatpush1.msra.mxu0 %v11101_v9  ;;  %v12522_v28 = vld [vmem:[#allocation18_spill] sm:$0xff] }
0x19cd   :  { %5847 = vmatpush2.msra.mxu1 %v10837_v27  ;;  %6361 = vmatprep.subr.mxu0 %v11106_v12  ;;  %v12523_v27 = vld [vmem:[#allocation19_spill] sm:$0xff] }
0x19ce   :  { %5848 = vmatprep.subr.mxu1 %v10842_v29  ;;  %6362 = vmatpush1.msra.mxu0 %v11111_v13  ;;  %v12524_v29 = vld [vmem:[#allocation20_spill] sm:$0xff] }
0x19cf   :  { %5849 = vmatpush2.msra.mxu1 %v10847_v22  ;;  %6363 = vmatprep.subr.mxu0 %v11116_v23  ;;  %v12525_v22 = vld [vmem:[#allocation21_spill] sm:$0xff] }
0x19d0   :  { %5850 = vmatprep.subr.mxu1 %v10852_v50  ;;  %6364 = vmatpush1.msra.mxu0 %v11121_v24  ;;  %v11158_v50 = vld [vmem:[%s9645_s9 + $0x60] sm:$0xff] }
0x19d1   :  { %5851 = vmatpush2.msra.mxu1 %v10857_v34  ;;  %6365 = vmatprep.subr.mxu0 %v11126_v25  ;;  %v12526_v34 = vld [vmem:[#allocation22_spill] sm:$0xff] }
0x19d2   :  { %5852 = vmatprep.subr.mxu1 %v10889_v36  ;;  %6366 = vmatpush1.msra.mxu0 %v11158_v50  ;;  %v11163_v36 = vld [vmem:[%s9645_s9 + $0x58] sm:$0xff] }
0x19d3   :  { %5853 = vmatpush2.msra.mxu1 %v10894_v35  ;;  %6367 = vmatprep.subr.mxu0 %v11163_v36  ;;  %v11167_v35 = vld [vmem:[%s9645_s9 + $0x50] sm:$0xff] }
0x19d4   :  { %5854 = vmatprep.subr.mxu1 %v10899_v26  ;;  %6368 = vmatpush1.msra.mxu0 %v11167_v35  ;;  %v11171_v26 = vld [vmem:[%s9645_s9 + $0x48] sm:$0xff] }
0x19d5   :  { %5855 = vmatpush2.msra.mxu1 %v10904_v41  ;;  %6369 = vmatprep.subr.mxu0 %v11171_v26  ;;  %v11175_v41 = vld [vmem:[%s9645_s9 + $0x40] sm:$0xff] }
0x19d6   :  { %5856 = vmatprep.subr.mxu1 %v10909_v21  ;;  %6370 = vmatpush1.msra.mxu0 %v11175_v41  ;;  %v11179_v21 = vld [vmem:[%s9645_s9 + $0x38] sm:$0xff] }
0x19d7   :  { %5857 = vmatpush2.msra.mxu1 %v10914_v6  ;;  %6371 = vmatprep.subr.mxu0 %v11179_v21  ;;  %v11183_v6 = vld [vmem:[%s9645_s9 + $0x30] sm:$0xff] }
0x19d8   :  { %5858 = vmatprep.subr.mxu1 %v10919_v18  ;;  %6372 = vmatpush1.msra.mxu0 %v11183_v6  ;;  %v11187_v18 = vld [vmem:[%s9645_s9 + $0x28] sm:$0xff] }
0x19d9   :  { %5859 = vmatpush2.msra.mxu1 %v10924_v33  ;;  %6373 = vmatprep.subr.mxu0 %v11187_v18  ;;  %v11191_v33 = vld [vmem:[%s9645_s9 + $0x20] sm:$0xff] }
0x19da   :  { %5860 = vmatprep.subr.mxu1 %v10929_v53  ;;  %6374 = vmatpush1.msra.mxu0 %v11191_v33  ;;  %v11195_v53 = vld [vmem:[%s9645_s9 + $0x18] sm:$0xff] }
0x19db   :  { %5861 = vmatpush2.msra.mxu1 %v10934_v4  ;;  %6375 = vmatprep.subr.mxu0 %v11195_v53  ;;  %v11199_v4 = vld [vmem:[%s9645_s9 + $0x10] sm:$0xff] }
0x19dc   :  { %5862 = vmatprep.subr.mxu1 %v10939_v39  ;;  %6376 = vmatpush1.msra.mxu0 %v11199_v4  ;;  %v11203_v39 = vld [vmem:[%s9645_s9 + $0x8] sm:$0xff] }
0x19dd   :  { %5863 = vmatpush2.msra.mxu1 %v10944_v14  ;;  %6377 = vmatprep.subr.mxu0 %v11203_v39  ;;  %v11207_v14 = vld [vmem:[%s9645_s9] sm:$0xff] }
0x19de   :  { %5864 = vmatprep.subr.mxu1 %v10949_v58  ;;  %6378 = vmatpush1.msra.mxu0 %v11207_v14  ;;  %v11211_v58 = vld [vmem:[%s9645_s9 + $0x1f8] sm:$0xff] }
0x19df   :  { %5865 = vmatpush2.msra.mxu1 %v10954_v61  ;;  %6379 = vmatprep.subr.mxu0 %v11211_v58  ;;  %v11215_v61 = vld [vmem:[%s9645_s9 + $0x1f0] sm:$0xff] }
0x19e0   :  { %5866 = vmatprep.subr.mxu1 %v10959_v56  ;;  %6380 = vmatpush2.msra.mxu0 %v11215_v61  ;;  %v11219_v56 = vld [vmem:[%s9645_s9 + $0x1e8] sm:$0xff] }
0x19e1   :  { %5867 = vmatpush2.msra.mxu1 %v10964_v54  ;;  %6381 = vmatprep.subr.mxu0 %v11219_v56  ;;  %v11223_v54 = vld [vmem:[%s9645_s9 + $0x1e0] sm:$0xff] }
0x19e2   :  { %5868 = vmatprep.subr.mxu1 %v10969_v62  ;;  %6382 = vmatpush2.msra.mxu0 %v11223_v54  ;;  %v11227_v62 = vld [vmem:[%s9645_s9 + $0x1d8] sm:$0xff] }
0x19e3   :  { %5869 = vmatpush2.msra.mxu1 %v10974_v40  ;;  %6383 = vmatprep.subr.mxu0 %v11227_v62  ;;  %v11231_v40 = vld [vmem:[%s9645_s9 + $0x1d0] sm:$0xff] }
0x19e4   :  { %5870 = vmatprep.subr.mxu1 %v10979_v5  ;;  %6384 = vmatpush2.msra.mxu0 %v11231_v40  ;;  %v11235_v5 = vld [vmem:[%s9645_s9 + $0x1c8] sm:$0xff] }
0x19e5   :  { %5871 = vmatpush2.msra.mxu1 %v12522_v28  ;;  %6385 = vmatprep.subr.mxu0 %v11235_v5  ;;  %v11299_v28 = vld [vmem:[%s9645_s9 + $0x148] sm:$0xff] }
0x19e6   :  { %5872 = vmatprep.subr.mxu1 %v12523_v27  ;;  %6386 = vmatpush2.msra.mxu0 %v11239_v32  ;;  %12535 = vst [vmem:[#allocation13_spill] sm:$0xff] %v11299_v28  ;;  %v11303_v27 = vld [vmem:[%s9645_s9 + $0x140] sm:$0xff] }
0x19e7   :  { %5873 = vmatpush2.msra.mxu1 %v12524_v29  ;;  %6387 = vmatprep.subr.mxu0 %v11243_v60  ;;  %12536 = vst [vmem:[#allocation14_spill] sm:$0xff] %v11303_v27  ;;  %v11307_v29 = vld [vmem:[%s9645_s9 + $0x138] sm:$0xff] }
0x19e8   :  { %5874 = vmatprep.subr.mxu1 %v12525_v22  ;;  %6388 = vmatpush2.msra.mxu0 %v11247_v55  ;;  %12537 = vst [vmem:[#allocation15_spill] sm:$0xff] %v11307_v29  ;;  %v11311_v22 = vld [vmem:[%s9645_s9 + $0x130] sm:$0xff] }
0x19e9   :  { %5875 = vmatpush2.msra.mxu1 %v12526_v34  ;;  %6389 = vmatprep.subr.mxu0 %v11251_v16  ;;  %12538 = vst [vmem:[#allocation16_spill] sm:$0xff] %v11311_v22  ;;  %v11315_v34 = vld [vmem:[%s9645_s9 + $0x128] sm:$0xff] }
0x19ea   :  { %6390 = vmatpush2.msra.mxu0 %v11255_v1  ;;  %12539 = vst [vmem:[#allocation17_spill] sm:$0xff] %v11315_v34 }
0x19eb   :  { %6391 = vmatprep.subr.mxu0 %v11259_v2 }
0x19ec   :  { %6392 = vmatpush2.msra.mxu0 %v11263_v57 }
0x19ed   :  { %6393 = vmatprep.subr.mxu0 %v11267_v59 }
0x19ee   :  { %6394 = vmatpush2.msra.mxu0 %v11271_v10 }
0x19ef   :  { %6395 = vmatprep.subr.mxu0 %v11275_v3 }
0x19f0   :  { %6396 = vmatpush2.msra.mxu0 %v11279_v7 }
0x19f1   :  { %6397 = vmatprep.subr.mxu0 %v11283_v46 }
0x19f2   :  { %6398 = vmatpush2.msra.mxu0 %v11287_v43 }
0x19f3   :  { %6399 = vmatprep.subr.mxu0 %v11291_v63  ;;  %v11340_v63 = vld [vmem:[%s9998_s21 + $0xf8] sm:$0xff] }
0x19f4   :  { %6400 = vmatpush2.msra.mxu0 %v11295_v30  ;;  %v11319_v30 = vld [vmem:[%s9645_s9 + $0x120] sm:$0xff]  ;;  %12546 = vst [vmem:[#allocation30_spill] sm:$0xff] %v11340_v63  ;;  %6156 = vmatprep.subr.mxu1 %v11340_v63 }
0x19f5   :  { %6401 = vmatprep.subr.mxu0 %v11299_v28  ;;  %12540 = vst [vmem:[#allocation9_spill] sm:$0xff] %v11319_v30  ;;  %v11323_v28 = vld [vmem:[%s9645_s9 + $0x118] sm:$0xff] }
0x19f6   :  { %6402 = vmatpush2.msra.mxu0 %v11303_v27  ;;  %12541 = vst [vmem:[#allocation26_spill] sm:$0xff] %v11323_v28  ;;  %v11327_v27 = vld [vmem:[%s9645_s9 + $0x110] sm:$0xff] }
0x19f7   :  { %6403 = vmatprep.subr.mxu0 %v11307_v29  ;;  %12542 = vst [vmem:[#allocation27_spill] sm:$0xff] %v11327_v27  ;;  %v11331_v29 = vld [vmem:[%s9645_s9 + $0x108] sm:$0xff] }
0x19f8   :  { %6404 = vmatpush2.msra.mxu0 %v11311_v22  ;;  %12543 = vst [vmem:[#allocation28_spill] sm:$0xff] %v11331_v29  ;;  %v11335_v22 = vld [vmem:[%s9645_s9 + $0x100] sm:$0xff] }
0x19f9   :  { %6405 = vmatprep.subr.mxu0 %v11315_v34  ;;  %12544 = vst [vmem:[#allocation29_spill] sm:$0xff] %v11335_v22  ;;  %v12545_v34 = vld [vmem:[#allocation23_spill] sm:$0xff] }
0x19fa   :  { %6406 = vmatpush2.msra.mxu0 %v11319_v30 }
0x19fb   :  { %6407 = vmatprep.subr.mxu0 %v11323_v28 }
0x19fc   :  { %6408 = vmatpush2.msra.mxu0 %v11327_v27 }
0x19fd   :  { %6409 = vmatprep.subr.mxu0 %v11331_v29 }
0x19fe   :  { %6410 = vmatpush2.msra.mxu0 %v11335_v22 }
0x19ff   :  { %6689 = vmatprep.subr.mxu0 %v12545_v34 }
0x1a6a   :  { %v5536_v28 = vpop.f32.mrf.mxu1 }
0x1a6b   :  { %v5543_v30 = vrot.slane %v5536_v28, 6  ;;  %v11346_v28 = vld [vmem:[%s9998_s21 + $0xf0] sm:$0xff] }
0x1a6c   :  { %v5538_v43 = vpop.f32.mrf.mxu1 }
0x1a6d   :  { %v5547_v27 = vadd.f32 %v5543_v30, %v10675_v49  ;;  %v5544_v46 = vrot.slane %v5538_v43, 6 }
0x1a6f   :  { %v5548_v29 = vadd.f32 %v5544_v46, %v10677_v42  ;;  %8087 = vtanh.f32 %v5547_v27  ;;  %v11350_v46 = vld [vmem:[%s9998_s21 + $0xe8] sm:$0xff]  ;;  %v11354_v42 = vld [vmem:[%s9998_s21 + $0xe0] sm:$0xff] }
0x1a70   :  { %12547 = vst [vmem:[#allocation31_spill] sm:$0xff] %v11354_v42 }
0x1a71   :  { %8089 = vtanh.f32 %v5548_v29 }
0x1a7c   :  { %v8088_v22 = vpop.eup %8087 }
0x1a7d   :  { %v5808_v59 = vrot.slane %v8088_v22, 2 }
0x1a7e   :  { %v8090_v7 = vpop.eup %8089 }
0x1a7f   :  { %v5575_v34 = vcombine.low %v8088_v22, %v8090_v7  ;;  %v6073_v3 = vpop.f32.mrf.mxu0  ;;  %v5809_v10 = vrot.slane %v8090_v7, 2  ;;  %v11359_v7 = vld [vmem:[%s9998_s21 + $0xd8] sm:$0xff]  ;;  %v11364_v22 = vld [vmem:[%s9998_s21 + $0xd0] sm:$0xff] }
0x1a80   :  { %v6080_v63 = vrot.slane %v6073_v3, 4  ;;  %12548 = vst [vmem:[#allocation32_spill] sm:$0xff] %v11359_v7  ;;  %12549 = vst [vmem:[#allocation33_spill] sm:$0xff] %v11364_v22 }
0x1a81   :  { %v5582_v30 = vrot.slane %v5575_v34, %v9990_v37  ;;  %5876 = vmatprep.mubr.f32.mxu1 %v5809_v10  ;;  %v6075_v43 = vpop.f32.mrf.mxu0  ;;  %v11372_v34 = vld [vmem:[%s9998_s21 + $0xc0] sm:$0xff] }
0x1a82   :  { %v6084_v27 = vadd.f32 %v6080_v63, %v9983_v31  ;;  %v6081_v29 = vrot.slane %v6075_v43, 4  ;;  %5877 = vmatmul.mubr.f32.vlgmr.msra.gmra.mxu1 %v5808_v59  ;;  %v11368_v59 = vld [vmem:[%s9998_s21 + $0xc8] sm:$0xff]  ;;  %12551 = vst [vmem:[#allocation35_spill] sm:$0xff] %v11372_v34  ;;  %v11382_v43 = vld [vmem:[%s9998_s21 + $0xb0] sm:$0xff] }
0x1a83   :  { %v5589_v3 = vrot.slane %v5582_v30, %v9990_v37  ;;  %6157 = vmatpush1.msra.mxu1 %v11346_v28  ;;  %12550 = vst [vmem:[#allocation34_spill] sm:$0xff] %v11368_v59  ;;  %v11378_v30 = vld [vmem:[%s9998_s21 + $0xb8] sm:$0xff]  ;;  %12553 = vst [vmem:[#allocation37_spill] sm:$0xff] %v11382_v43 }
0x1a84   :  { %v6085_v10 = vadd.f32 %v6081_v29, %v9985_v38  ;;  %6158 = vmatprep.subr.mxu1 %v11350_v46  ;;  %8091 = vtanh.f32 %v6084_v27  ;;  %12552 = vst [vmem:[#allocation36_spill] sm:$0xff] %v11378_v30  ;;  %v11386_v27 = vld [vmem:[%s9998_s21 + $0xa8] sm:$0xff]  ;;  %v11390_v29 = vld [vmem:[%s9998_s21 + $0xa0] sm:$0xff] }
0x1a85   :  { %v5590_v63 = vcombine.high %v5589_v3, %v5589_v3  ;;  %6159 = vmatpush1.msra.mxu1 %v11354_v42  ;;  %12554 = vst [vmem:[#allocation38_spill] sm:$0xff] %v11386_v27  ;;  %12555 = vst [vmem:[#allocation39_spill] sm:$0xff] %v11390_v29  ;;  %v11394_v3 = vld [vmem:[%s9998_s21 + $0x98] sm:$0xff] }
0x1a86   :  { %8093 = vtanh.f32 %v6085_v10  ;;  %6160 = vmatprep.subr.mxu1 %v11359_v7  ;;  %12556 = vst [vmem:[#allocation40_spill] sm:$0xff] %v11394_v3  ;;  %v11398_v10 = vld [vmem:[%s9998_s21 + $0x90] sm:$0xff] }
0x1a87   :  { %5593 = vst.msk [vmem:[#allocation3 + $0x2] ss:$8 sm:$0x3] %vm10003_vm2, %v5590_v63  ;;  %6161 = vmatpush1.msra.mxu1 %v11364_v22  ;;  %12557 = vst [vmem:[#allocation18_spill] sm:$0xff] %v11398_v10  ;;  %v11402_v63 = vld [vmem:[%s9998_s21 + $0x88] sm:$0xff] }
0x1a88   :  { %6162 = vmatprep.subr.mxu1 %v11368_v59  ;;  %12558 = vst [vmem:[#allocation19_spill] sm:$0xff] %v11402_v63 }
0x1a89   :  { %6163 = vmatpush1.msra.mxu1 %v11372_v34  ;;  %v11406_v34 = vld [vmem:[%s9998_s21 + $0x80] sm:$0xff] }
0x1a8a   :  { %6164 = vmatprep.subr.mxu1 %v11378_v30  ;;  %12559 = vst [vmem:[#allocation20_spill] sm:$0xff] %v11406_v34  ;;  %v11418_v30 = vld [vmem:[%s9998_s21 + $0x68] sm:$0xff] }
0x1a8b   :  { %6165 = vmatpush1.msra.mxu1 %v11382_v43  ;;  %v11410_v43 = vld [vmem:[%s9998_s21 + $0x78] sm:$0xff] }
0x1a8c   :  { %6166 = vmatprep.subr.mxu1 %v11386_v27  ;;  %12560 = vst [vmem:[#allocation21_spill] sm:$0xff] %v11410_v43  ;;  %v11414_v27 = vld [vmem:[%s9998_s21 + $0x70] sm:$0xff] }
0x1a8d   :  { %6167 = vmatpush1.msra.mxu1 %v11390_v29  ;;  %12561 = vst [vmem:[#allocation22_spill] sm:$0xff] %v11414_v27 }
0x1a8e   :  { %6168 = vmatprep.subr.mxu1 %v11394_v3  ;;  %v11422_v3 = vld [vmem:[%s9998_s21 + $0x60] sm:$0xff] }
0x1a8f   :  { %6169 = vmatpush1.msra.mxu1 %v11398_v10  ;;  %v11426_v10 = vld [vmem:[%s9998_s21 + $0x58] sm:$0xff] }
0x1a90   :  { %6170 = vmatprep.subr.mxu1 %v11402_v63 }
0x1a91   :  { %6171 = vmatpush1.msra.mxu1 %v11406_v34  ;;  %v8092_v29 = vpop.eup %8091  ;;  %v11430_v34 = vld [vmem:[%s9998_s21 + $0x50] sm:$0xff] }
0x1a92   :  { %6172 = vmatprep.subr.mxu1 %v11410_v43  ;;  %v6343_v7 = vrot.slane %v8092_v29, 4  ;;  %v11434_v43 = vld [vmem:[%s9998_s21 + $0x48] sm:$0xff] }
0x1a93   :  { %v8094_v59 = vpop.eup %8093  ;;  %6173 = vmatpush1.msra.mxu1 %v11414_v27  ;;  %v11439_v27 = vld [vmem:[%s9998_s21 + $0x40] sm:$0xff] }
0x1a94   :  { %v6239_v63 = vcombine.high %v8092_v29, %v8094_v59  ;;  %v6344_v22 = vrot.slane %v8094_v59, 4  ;;  %6174 = vmatprep.subr.mxu1 %v11418_v30  ;;  %v11443_v59 = vld [vmem:[%s9998_s21 + $0x38] sm:$0xff] }
0x1a95   :  { %6175 = vmatpush1.msra.mxu1 %v11422_v3 }
0x1a96   :  { %v6246_v42 = vrot.slane %v6239_v63, %v9990_v37  ;;  %6411 = vmatprep.mubr.f32.mxu0 %v6344_v22  ;;  %6176 = vmatprep.subr.mxu1 %v11426_v10  ;;  %v11449_v63 = vld [vmem:[%s9998_s21 + $0x30] sm:$0xff]  ;;  %v11516_v22 = vld [vmem:[%s9998_s21 + $0x1c8] sm:$0xff] }
0x1a97   :  { %6412 = vmatmul.mubr.f32.vlgmr.msra.gmra.mxu0 %v6343_v7  ;;  %6177 = vmatpush1.msra.mxu1 %v11430_v34  ;;  %v11454_v7 = vld [vmem:[%s9998_s21 + $0x28] sm:$0xff] }
0x1a98   :  { %v6253_v29 = vrot.slane %v6246_v42, %v9990_v37  ;;  %6178 = vmatprep.subr.mxu1 %v11434_v43  ;;  %6690 = vmatpush1.msra.mxu0 %v11039_v19  ;;  %v11461_v42 = vld [vmem:[%s9998_s21 + $0x20] sm:$0xff]  ;;  %v11466_v19 = vld [vmem:[%s9998_s21 + $0x18] sm:$0xff] }
0x1a99   :  { %6179 = vmatpush1.msra.mxu1 %v11439_v27  ;;  %6691 = vmatprep.subr.mxu0 %v11044_v17  ;;  %v11471_v17 = vld [vmem:[%s9998_s21 + $0x10] sm:$0xff] }
0x1a9a   :  { %6256 = vst.msk [vmem:[#allocation2 + $0x4] ss:$8 sm:$0x3] %vm10003_vm2, %v6253_v29  ;;  %6180 = vmatprep.subr.mxu1 %v11443_v59  ;;  %6692 = vmatpush1.msra.mxu0 %v11048_v52  ;;  %v11476_v52 = vld [vmem:[%s9998_s21 + $0x8] sm:$0xff]  ;;  %v11648_v29 = vld [vmem:[%s9998_s21 + $0x120] sm:$0xff] }
0x1a9b   :  { %6181 = vmatpush1.msra.mxu1 %v11449_v63  ;;  %6693 = vmatprep.subr.mxu0 %v11053_v8  ;;  %v11481_v8 = vld [vmem:[%s9998_s21] sm:$0xff] }
0x1a9c   :  { %6182 = vmatprep.subr.mxu1 %v11454_v7  ;;  %6694 = vmatpush1.msra.mxu0 %v11058_v11  ;;  %v11486_v11 = vld [vmem:[%s9998_s21 + $0x1f8] sm:$0xff] }
0x1a9d   :  { %6183 = vmatpush1.msra.mxu1 %v11461_v42  ;;  %6695 = vmatprep.subr.mxu0 %v11064_v45  ;;  %v11491_v45 = vld [vmem:[%s9998_s21 + $0x1f0] sm:$0xff] }
0x1a9e   :  { %6184 = vmatprep.subr.mxu1 %v11466_v19  ;;  %6696 = vmatpush1.msra.mxu0 %v11069_v48  ;;  %v11496_v48 = vld [vmem:[%s9998_s21 + $0x1e8] sm:$0xff] }
0x1a9f   :  { %6185 = vmatpush1.msra.mxu1 %v11471_v17  ;;  %6697 = vmatprep.subr.mxu0 %v11074_v20  ;;  %v11501_v20 = vld [vmem:[%s9998_s21 + $0x1e0] sm:$0xff] }
0x1aa0   :  { %6186 = vmatprep.subr.mxu1 %v11476_v52  ;;  %6698 = vmatpush1.msra.mxu0 %v11079_v51  ;;  %v11506_v51 = vld [vmem:[%s9998_s21 + $0x1d8] sm:$0xff] }
0x1aa1   :  { %6187 = vmatpush1.msra.mxu1 %v11481_v8  ;;  %6699 = vmatprep.subr.mxu0 %v11086_v47  ;;  %v11511_v47 = vld [vmem:[%s9998_s21 + $0x1d0] sm:$0xff] }
0x1aa2   :  { %6188 = vmatprep.subr.mxu1 %v11486_v11  ;;  %6700 = vmatpush1.msra.mxu0 %v11091_v15  ;;  %v11521_v15 = vld [vmem:[%s9998_s21 + $0x1c0] sm:$0xff] }
0x1aa3   :  { %6189 = vmatpush2.msra.mxu1 %v11491_v45  ;;  %6701 = vmatprep.subr.mxu0 %v11096_v44  ;;  %v11553_v44 = vld [vmem:[%s9998_s21 + $0x1b8] sm:$0xff] }
0x1aa4   :  { %6190 = vmatprep.subr.mxu1 %v11496_v48  ;;  %6702 = vmatpush1.msra.mxu0 %v11101_v9  ;;  %v11558_v9 = vld [vmem:[%s9998_s21 + $0x1b0] sm:$0xff] }
0x1aa5   :  { %6191 = vmatpush2.msra.mxu1 %v11501_v20  ;;  %6703 = vmatprep.subr.mxu0 %v11106_v12  ;;  %v11563_v12 = vld [vmem:[%s9998_s21 + $0x1a8] sm:$0xff] }
0x1aa6   :  { %6192 = vmatprep.subr.mxu1 %v11506_v51  ;;  %6704 = vmatpush1.msra.mxu0 %v11111_v13  ;;  %v11568_v13 = vld [vmem:[%s9998_s21 + $0x1a0] sm:$0xff] }
0x1aa7   :  { %6193 = vmatpush2.msra.mxu1 %v11511_v47  ;;  %6705 = vmatprep.subr.mxu0 %v11116_v23  ;;  %v11573_v23 = vld [vmem:[%s9998_s21 + $0x198] sm:$0xff] }
0x1aa8   :  { %6194 = vmatprep.subr.mxu1 %v11516_v22  ;;  %6706 = vmatpush1.msra.mxu0 %v11121_v24  ;;  %v12562_v24 = vld [vmem:[#allocation24_spill] sm:$0xff] }
0x1aa9   :  { %6195 = vmatpush2.msra.mxu1 %v11521_v15  ;;  %6707 = vmatprep.subr.mxu0 %v11126_v25  ;;  %v11578_v25 = vld [vmem:[%s9998_s21 + $0x190] sm:$0xff]  ;;  %12578 = vst [vmem:[#allocation24_spill] sm:$0xff] %v11648_v29 }
0x1aaa   :  { %6708 = vmatpush1.msra.mxu0 %v11158_v50  ;;  %6196 = vmatprep.subr.mxu1 %v11553_v44  ;;  %v12563_v50 = vld [vmem:[#allocation25_spill] sm:$0xff] }
0x1aab   :  { %6709 = vmatprep.subr.mxu0 %v11163_v36  ;;  %6197 = vmatpush2.msra.mxu1 %v11558_v9  ;;  %v11583_v36 = vld [vmem:[%s9998_s21 + $0x188] sm:$0xff] }
0x1aac   :  { %6710 = vmatpush1.msra.mxu0 %v11167_v35  ;;  %6198 = vmatprep.subr.mxu1 %v11563_v12  ;;  %v12564_v35 = vld [vmem:[#allocation6_spill] sm:$0xff] }
0x1aad   :  { %6711 = vmatprep.subr.mxu0 %v11171_v26  ;;  %6199 = vmatpush2.msra.mxu1 %v11568_v13  ;;  %v11588_v26 = vld [vmem:[%s9998_s21 + $0x180] sm:$0xff] }
0x1aae   :  { %6712 = vmatpush1.msra.mxu0 %v11175_v41  ;;  %6200 = vmatprep.subr.mxu1 %v11573_v23  ;;  %v12565_v41 = vld [vmem:[#allocation8_spill] sm:$0xff] }
0x1aaf   :  { %6713 = vmatprep.subr.mxu0 %v11179_v21  ;;  %6201 = vmatpush2.msra.mxu1 %v11578_v25  ;;  %v11593_v21 = vld [vmem:[%s9998_s21 + $0x178] sm:$0xff] }
0x1ab0   :  { %6714 = vmatpush1.msra.mxu0 %v11183_v6  ;;  %6202 = vmatprep.subr.mxu1 %v11583_v36  ;;  %v12566_v6 = vld [vmem:[#allocation7_spill] sm:$0xff] }
0x1ab1   :  { %6715 = vmatprep.subr.mxu0 %v11187_v18  ;;  %6203 = vmatpush2.msra.mxu1 %v11588_v26  ;;  %v11598_v18 = vld [vmem:[%s9998_s21 + $0x170] sm:$0xff] }
0x1ab2   :  { %6716 = vmatpush1.msra.mxu0 %v11191_v33  ;;  %6204 = vmatprep.subr.mxu1 %v11593_v21  ;;  %v12567_v33 = vld [vmem:[#allocation10_spill] sm:$0xff] }
0x1ab3   :  { %6717 = vmatprep.subr.mxu0 %v11195_v53  ;;  %6205 = vmatpush2.msra.mxu1 %v11598_v18  ;;  %v11603_v53 = vld [vmem:[%s9998_s21 + $0x168] sm:$0xff] }
0x1ab4   :  { %6718 = vmatpush1.msra.mxu0 %v11199_v4  ;;  %v12568_v4 = vld [vmem:[#allocation11_spill] sm:$0xff]  ;;  %6206 = vmatprep.subr.mxu1 %v11603_v53 }
0x1ab5   :  { %6719 = vmatprep.subr.mxu0 %v11203_v39  ;;  %v11608_v39 = vld [vmem:[%s9998_s21 + $0x160] sm:$0xff] }
0x1ab6   :  { %6720 = vmatpush1.msra.mxu0 %v11207_v14  ;;  %v12569_v14 = vld [vmem:[#allocation12_spill] sm:$0xff]  ;;  %6207 = vmatpush2.msra.mxu1 %v11608_v39 }
0x1ab7   :  { %6721 = vmatprep.subr.mxu0 %v11211_v58  ;;  %v11613_v58 = vld [vmem:[%s9998_s21 + $0x158] sm:$0xff] }
0x1ab8   :  { %6722 = vmatpush2.msra.mxu0 %v11215_v61  ;;  %v12570_v61 = vld [vmem:[#allocation13_spill] sm:$0xff]  ;;  %6208 = vmatprep.subr.mxu1 %v11613_v58 }
0x1ab9   :  { %6723 = vmatprep.subr.mxu0 %v11219_v56  ;;  %v11618_v56 = vld [vmem:[%s9998_s21 + $0x150] sm:$0xff] }
0x1aba   :  { %6724 = vmatpush2.msra.mxu0 %v11223_v54  ;;  %v12571_v54 = vld [vmem:[#allocation14_spill] sm:$0xff]  ;;  %6209 = vmatpush2.msra.mxu1 %v11618_v56 }
0x1abb   :  { %6725 = vmatprep.subr.mxu0 %v11227_v62  ;;  %v11623_v62 = vld [vmem:[%s9998_s21 + $0x148] sm:$0xff] }
0x1abc   :  { %6726 = vmatpush2.msra.mxu0 %v11231_v40  ;;  %v12572_v40 = vld [vmem:[#allocation15_spill] sm:$0xff]  ;;  %6210 = vmatprep.subr.mxu1 %v11623_v62 }
0x1abd   :  { %6727 = vmatprep.subr.mxu0 %v11235_v5  ;;  %v11628_v5 = vld [vmem:[%s9998_s21 + $0x140] sm:$0xff] }
0x1abe   :  { %6728 = vmatpush2.msra.mxu0 %v11239_v32  ;;  %v12573_v32 = vld [vmem:[#allocation16_spill] sm:$0xff]  ;;  %6211 = vmatpush2.msra.mxu1 %v11628_v5 }
0x1abf   :  { %6729 = vmatprep.subr.mxu0 %v11243_v60  ;;  %v11633_v60 = vld [vmem:[%s9998_s21 + $0x138] sm:$0xff] }
0x1ac0   :  { %6730 = vmatpush2.msra.mxu0 %v11247_v55  ;;  %v12574_v55 = vld [vmem:[#allocation17_spill] sm:$0xff]  ;;  %6212 = vmatprep.subr.mxu1 %v11633_v60 }
0x1ac1   :  { %6731 = vmatprep.subr.mxu0 %v11251_v16  ;;  %v11638_v16 = vld [vmem:[%s9998_s21 + $0x130] sm:$0xff] }
0x1ac2   :  { %6732 = vmatpush2.msra.mxu0 %v11255_v1  ;;  %v12575_v1 = vld [vmem:[#allocation9_spill] sm:$0xff]  ;;  %6213 = vmatpush2.msra.mxu1 %v11638_v16 }
0x1ac3   :  { %6733 = vmatprep.subr.mxu0 %v11259_v2  ;;  %v11643_v2 = vld [vmem:[%s9998_s21 + $0x128] sm:$0xff] }
0x1ac4   :  { %6734 = vmatpush2.msra.mxu0 %v11263_v57  ;;  %12576 = vst [vmem:[#allocation23_spill] sm:$0xff] %v11643_v2  ;;  %v12577_v57 = vld [vmem:[#allocation26_spill] sm:$0xff]  ;;  %6214 = vmatprep.subr.mxu1 %v11643_v2 }
0x1ac5   :  { %6735 = vmatprep.subr.mxu0 %v12562_v24  ;;  %v12579_v24 = vld [vmem:[#allocation27_spill] sm:$0xff]  ;;  %6215 = vmatpush2.msra.mxu1 %v11648_v29 }
0x1ac6   :  { %6736 = vmatpush2.msra.mxu0 %v12563_v50  ;;  %v11653_v50 = vld [vmem:[%s9998_s21 + $0x118] sm:$0xff] }
0x1ac7   :  { %6737 = vmatprep.subr.mxu0 %v12564_v35  ;;  %12580 = vst [vmem:[#allocation25_spill] sm:$0xff] %v11653_v50  ;;  %v12581_v35 = vld [vmem:[#allocation28_spill] sm:$0xff]  ;;  %6216 = vmatprep.subr.mxu1 %v11653_v50 }
0x1ac8   :  { %6738 = vmatpush2.msra.mxu0 %v12565_v41  ;;  %v11658_v41 = vld [vmem:[%s9998_s21 + $0x110] sm:$0xff] }
0x1ac9   :  { %6739 = vmatprep.subr.mxu0 %v12566_v6  ;;  %12582 = vst [vmem:[#allocation6_spill] sm:$0xff] %v11658_v41  ;;  %v12583_v6 = vld [vmem:[#allocation29_spill] sm:$0xff]  ;;  %6217 = vmatpush2.msra.mxu1 %v11658_v41 }
0x1aca   :  { %6740 = vmatpush2.msra.mxu0 %v12567_v33  ;;  %v11663_v33 = vld [vmem:[%s9998_s21 + $0x108] sm:$0xff] }
0x1acb   :  { %6741 = vmatprep.subr.mxu0 %v12568_v4  ;;  %12584 = vst [vmem:[#allocation8_spill] sm:$0xff] %v11663_v33  ;;  %6218 = vmatprep.subr.mxu1 %v11663_v33  ;;  %v11667_v4 = vld [vmem:[%s9998_s21 + $0x100] sm:$0xff] }
0x1acc   :  { %6742 = vmatpush2.msra.mxu0 %v12569_v14  ;;  %12585 = vst [vmem:[#allocation7_spill] sm:$0xff] %v11667_v4  ;;  %6219 = vmatpush2.msra.mxu1 %v11667_v4  ;;  %v12586_v14 = vld [vmem:[#allocation30_spill] sm:$0xff] }
0x1acd   :  { %6743 = vmatprep.subr.mxu0 %v12570_v61  ;;  %6496 = vmatprep.subr.mxu1 %v12586_v14  ;;  %v6994_v61 = vld [vmem:[%s9645_s9 + $0xf8] sm:$0xff] }
0x1ace   :  { %6744 = vmatpush2.msra.mxu0 %v12571_v54 }
0x1acf   :  { %6745 = vmatprep.subr.mxu0 %v12572_v40 }
0x1ad0   :  { %6746 = vmatpush2.msra.mxu0 %v12573_v32 }
0x1ad1   :  { %6747 = vmatprep.subr.mxu0 %v12574_v55 }
0x1ad2   :  { %6748 = vmatpush2.msra.mxu0 %v12575_v1 }
0x1ad3   :  { %6749 = vmatprep.subr.mxu0 %v12577_v57  ;;  %v12587_v57 = vld [vmem:[#allocation5_spill] sm:$0xff] }
0x1ad4   :  { %6750 = vmatpush2.msra.mxu0 %v12579_v24 }
0x1ad5   :  { %6751 = vmatprep.subr.mxu0 %v12581_v35 }
0x1ad6   :  { %6752 = vmatpush2.msra.mxu0 %v12583_v6 }
0x1ad7   :  { %7031 = vmatprep.subr.mxu0 %v6994_v61 }
0x1b42   :  { %v5878_v54 = vpop.f32.mrf.mxu1 }
0x1b43   :  { %v5885_v40 = vrot.slane %v5878_v54, 5 }
0x1b44   :  { %v5880_v32 = vpop.f32.mrf.mxu1 }
0x1b45   :  { %v5889_v55 = vadd.f32 %v5885_v40, %v10675_v49  ;;  %v5886_v1 = vrot.slane %v5880_v32, 5 }
0x1b47   :  { %v5890_v24 = vadd.f32 %v5886_v1, %v12587_v57  ;;  %8095 = vtanh.f32 %v5889_v55  ;;  %v12590_v1 = vld [vmem:[#allocation33_spill] sm:$0xff] }
0x1b49   :  { %8097 = vtanh.f32 %v5890_v24  ;;  %v12596_v24 = vld [vmem:[#allocation39_spill] sm:$0xff] }
0x1b54   :  { %v8096_v35 = vpop.eup %8095 }
0x1b55   :  { %v6152_v29 = vrot.slane %v8096_v35, 3 }
0x1b56   :  { %v8098_v6 = vpop.eup %8097 }
0x1b57   :  { %v5918_v33 = vcombine.low %v8096_v35, %v8098_v6  ;;  %v6413_v41 = vpop.f32.mrf.mxu0  ;;  %v6153_v50 = vrot.slane %v8098_v6, 3  ;;  %v12597_v35 = vld [vmem:[#allocation40_spill] sm:$0xff]  ;;  %v12598_v6 = vld [vmem:[#allocation18_spill] sm:$0xff] }
0x1b58   :  { %v6420_v4 = vrot.slane %v6413_v41, 3  ;;  %v12588_v41 = vld [vmem:[#allocation31_spill] sm:$0xff] }
0x1b59   :  { %v5925_v14 = vrot.slane %v5918_v33, %v9990_v37  ;;  %6220 = vmatprep.mubr.f32.mxu1 %v6153_v50  ;;  %v6415_v61 = vpop.f32.mrf.mxu0  ;;  %v12589_v33 = vld [vmem:[#allocation32_spill] sm:$0xff] }
0x1b5a   :  { %v6424_v54 = vadd.f32 %v6420_v4, %v9983_v31  ;;  %v6421_v2 = vrot.slane %v6415_v61, 3  ;;  %6221 = vmatmul.mubr.f32.vlgmr.msra.gmra.mxu1 %v6152_v29  ;;  %v12591_v4 = vld [vmem:[#allocation34_spill] sm:$0xff]  ;;  %v12600_v61 = vld [vmem:[#allocation20_spill] sm:$0xff] }
0x1b5b   :  { %v5926_v40 = vcombine.high %v5925_v14, %v5925_v14  ;;  %6497 = vmatpush1.msra.mxu1 %v11346_v28  ;;  %v12592_v28 = vld [vmem:[#allocation35_spill] sm:$0xff]  ;;  %v12595_v29 = vld [vmem:[#allocation38_spill] sm:$0xff] }
0x1b5c   :  { %v6425_v32 = vadd.f32 %v6421_v2, %v9985_v38  ;;  %6498 = vmatprep.subr.mxu1 %v11350_v46  ;;  %8099 = vtanh.f32 %v6424_v54  ;;  %v12593_v2 = vld [vmem:[#allocation36_spill] sm:$0xff]  ;;  %v12594_v46 = vld [vmem:[#allocation37_spill] sm:$0xff]  ;;  %v12599_v14 = vld [vmem:[#allocation19_spill] sm:$0xff] }
0x1b5d   :  { %v5933_v55 = vrot.slane %v5926_v40, %v9990_v37  ;;  %6499 = vmatpush1.msra.mxu1 %v12588_v41  ;;  %v12601_v40 = vld [vmem:[#allocation21_spill] sm:$0xff] }
0x1b5e   :  { %8101 = vtanh.f32 %v6425_v32  ;;  %6500 = vmatprep.subr.mxu1 %v12589_v33 }
0x1b5f   :  { %v5934_v50 = vcombine.high %v5933_v55, %v5933_v55  ;;  %6501 = vmatpush1.msra.mxu1 %v12590_v1  ;;  %v12602_v55 = vld [vmem:[#allocation22_spill] sm:$0xff] }
0x1b60   :  { %6502 = vmatprep.subr.mxu1 %v12591_v4  ;;  %v6993_v1 = vld [vmem:[%s9645_s9 + $0xf0] sm:$0xff] }
0x1b61   :  { %5937 = vst.msk [vmem:[#allocation3 + $0x3] ss:$8 sm:$0x3] %vm10003_vm2, %v5934_v50  ;;  %6503 = vmatpush1.msra.mxu1 %v12592_v28  ;;  %v6992_v28 = vld [vmem:[%s9645_s9 + $0xe8] sm:$0xff] }
0x1b62   :  { %6504 = vmatprep.subr.mxu1 %v12593_v2  ;;  %v6991_v2 = vld [vmem:[%s9645_s9 + $0xe0] sm:$0xff] }
0x1b63   :  { %6505 = vmatpush1.msra.mxu1 %v12594_v46 }
0x1b64   :  { %6506 = vmatprep.subr.mxu1 %v12595_v29 }
0x1b65   :  { %6507 = vmatpush1.msra.mxu1 %v12596_v24  ;;  %v6977_v24 = vld [vmem:[%s9645_s9 + $0x70] sm:$0xff] }
0x1b66   :  { %6508 = vmatprep.subr.mxu1 %v12597_v35  ;;  %v7022_v35 = vld [vmem:[%s9645_s9 + $0x1d8] sm:$0xff] }
0x1b67   :  { %6509 = vmatpush1.msra.mxu1 %v12598_v6  ;;  %v7021_v6 = vld [vmem:[%s9645_s9 + $0x1d0] sm:$0xff] }
0x1b68   :  { %6510 = vmatprep.subr.mxu1 %v12599_v14  ;;  %v7020_v14 = vld [vmem:[%s9645_s9 + $0x1c8] sm:$0xff] }
0x1b69   :  { %6511 = vmatpush1.msra.mxu1 %v12600_v61  ;;  %v8100_v54 = vpop.eup %8099  ;;  %v7019_v61 = vld [vmem:[%s9645_s9 + $0x1c0] sm:$0xff] }
0x1b6a   :  { %6512 = vmatprep.subr.mxu1 %v12601_v40  ;;  %v6685_v50 = vrot.slane %v8100_v54, 5  ;;  %v7017_v40 = vld [vmem:[%s9645_s9 + $0x1b0] sm:$0xff] }
0x1b6b   :  { %v8102_v32 = vpop.eup %8101  ;;  %6513 = vmatpush1.msra.mxu1 %v12602_v55  ;;  %v7015_v55 = vld [vmem:[%s9645_s9 + $0x1a0] sm:$0xff] }
0x1b6c   :  { %v6579_v41 = vcombine.high %v8100_v54, %v8102_v32  ;;  %v6686_v33 = vrot.slane %v8102_v32, 5  ;;  %6514 = vmatprep.subr.mxu1 %v11418_v30  ;;  %v6990_v30 = vld [vmem:[%s9645_s9 + $0xd8] sm:$0xff]  ;;  %v7016_v32 = vld [vmem:[%s9645_s9 + $0x1a8] sm:$0xff] }
0x1b6d   :  { %6515 = vmatpush1.msra.mxu1 %v11422_v3  ;;  %v6989_v3 = vld [vmem:[%s9645_s9 + $0xd0] sm:$0xff]  ;;  %v7018_v54 = vld [vmem:[%s9645_s9 + $0x1b8] sm:$0xff] }
0x1b6e   :  { %v6586_v4 = vrot.slane %v6579_v41, %v9990_v37  ;;  %6753 = vmatprep.mubr.f32.mxu0 %v6686_v33  ;;  %6516 = vmatprep.subr.mxu1 %v11426_v10  ;;  %v6988_v10 = vld [vmem:[%s9645_s9 + $0xc8] sm:$0xff]  ;;  %v7014_v41 = vld [vmem:[%s9645_s9 + $0x198] sm:$0xff]  ;;  %v7013_v33 = vld [vmem:[%s9645_s9 + $0x190] sm:$0xff] }
0x1b6f   :  { %6754 = vmatmul.mubr.f32.vlgmr.msra.gmra.mxu0 %v6685_v50  ;;  %6517 = vmatpush1.msra.mxu1 %v11430_v34  ;;  %v6987_v34 = vld [vmem:[%s9645_s9 + $0xc0] sm:$0xff]  ;;  %v7012_v50 = vld [vmem:[%s9645_s9 + $0x188] sm:$0xff] }
0x1b70   :  { %v6587_v46 = vcombine.high %v6586_v4, %v6586_v4  ;;  %6518 = vmatprep.subr.mxu1 %v11434_v43  ;;  %7032 = vmatpush1.msra.mxu0 %v6993_v1  ;;  %v6986_v43 = vld [vmem:[%s9645_s9 + $0xb8] sm:$0xff]  ;;  %v7011_v1 = vld [vmem:[%s9645_s9 + $0x180] sm:$0xff] }
0x1b71   :  { %6519 = vmatpush1.msra.mxu1 %v11439_v27  ;;  %7033 = vmatprep.subr.mxu0 %v6992_v28  ;;  %v6985_v27 = vld [vmem:[%s9645_s9 + $0xb0] sm:$0xff]  ;;  %v7010_v4 = vld [vmem:[%s9645_s9 + $0x178] sm:$0xff] }
0x1b72   :  { %v6594_v29 = vrot.slane %v6587_v46, %v9990_v37  ;;  %6520 = vmatprep.subr.mxu1 %v11443_v59  ;;  %7034 = vmatpush1.msra.mxu0 %v6991_v2  ;;  %v6984_v59 = vld [vmem:[%s9645_s9 + $0xa8] sm:$0xff]  ;;  %v7009_v28 = vld [vmem:[%s9645_s9 + $0x170] sm:$0xff]  ;;  %v7007_v46 = vld [vmem:[%s9645_s9 + $0x160] sm:$0xff] }
0x1b73   :  { %6521 = vmatpush1.msra.mxu1 %v11449_v63  ;;  %7035 = vmatprep.subr.mxu0 %v6990_v30  ;;  %v6983_v63 = vld [vmem:[%s9645_s9 + $0xa0] sm:$0xff]  ;;  %v7008_v2 = vld [vmem:[%s9645_s9 + $0x168] sm:$0xff]  ;;  %v7006_v30 = vld [vmem:[%s9645_s9 + $0x158] sm:$0xff] }
0x1b74   :  { %6597 = vst.msk [vmem:[#allocation2 + $0x5] ss:$8 sm:$0x3] %vm10003_vm2, %v6594_v29  ;;  %6522 = vmatprep.subr.mxu1 %v11454_v7  ;;  %7036 = vmatpush1.msra.mxu0 %v6989_v3  ;;  %v6982_v7 = vld [vmem:[%s9645_s9 + $0x98] sm:$0xff]  ;;  %v7005_v3 = vld [vmem:[%s9645_s9 + $0x150] sm:$0xff]  ;;  %v7004_v29 = vld [vmem:[%s9645_s9 + $0x148] sm:$0xff] }
0x1b75   :  { %6523 = vmatpush1.msra.mxu1 %v11461_v42  ;;  %7037 = vmatprep.subr.mxu0 %v6988_v10  ;;  %v6981_v42 = vld [vmem:[%s9645_s9 + $0x90] sm:$0xff]  ;;  %v7003_v10 = vld [vmem:[%s9645_s9 + $0x140] sm:$0xff] }
0x1b76   :  { %6524 = vmatprep.subr.mxu1 %v11466_v19  ;;  %7038 = vmatpush1.msra.mxu0 %v6987_v34  ;;  %v6980_v19 = vld [vmem:[%s9645_s9 + $0x88] sm:$0xff]  ;;  %v7002_v34 = vld [vmem:[%s9645_s9 + $0x138] sm:$0xff] }
0x1b77   :  { %6525 = vmatpush1.msra.mxu1 %v11471_v17  ;;  %7039 = vmatprep.subr.mxu0 %v6986_v43  ;;  %v6979_v17 = vld [vmem:[%s9645_s9 + $0x80] sm:$0xff]  ;;  %v7001_v43 = vld [vmem:[%s9645_s9 + $0x130] sm:$0xff] }
0x1b78   :  { %6526 = vmatprep.subr.mxu1 %v11476_v52  ;;  %7040 = vmatpush1.msra.mxu0 %v6985_v27  ;;  %v6978_v52 = vld [vmem:[%s9645_s9 + $0x78] sm:$0xff]  ;;  %v7000_v27 = vld [vmem:[%s9645_s9 + $0x128] sm:$0xff] }
0x1b79   :  { %6527 = vmatpush1.msra.mxu1 %v11481_v8  ;;  %7041 = vmatprep.subr.mxu0 %v6984_v59  ;;  %v6976_v8 = vld [vmem:[%s9645_s9 + $0x68] sm:$0xff]  ;;  %v6999_v59 = vld [vmem:[%s9645_s9 + $0x120] sm:$0xff] }
0x1b7a   :  { %6528 = vmatprep.subr.mxu1 %v11486_v11  ;;  %7042 = vmatpush1.msra.mxu0 %v6983_v63  ;;  %v12603_v11 = vld [vmem:[#allocation23_spill] sm:$0xff] }
0x1b7b   :  { %6529 = vmatpush2.msra.mxu1 %v11491_v45  ;;  %7043 = vmatprep.subr.mxu0 %v6982_v7  ;;  %v12604_v45 = vld [vmem:[#allocation24_spill] sm:$0xff]  ;;  %v6997_v7 = vld [vmem:[%s9645_s9 + $0x110] sm:$0xff] }
0x1b7c   :  { %6530 = vmatprep.subr.mxu1 %v11496_v48  ;;  %7044 = vmatpush1.msra.mxu0 %v6981_v42  ;;  %v12605_v48 = vld [vmem:[#allocation25_spill] sm:$0xff]  ;;  %v6998_v63 = vld [vmem:[%s9645_s9 + $0x118] sm:$0xff] }
0x1b7d   :  { %6531 = vmatpush2.msra.mxu1 %v11501_v20  ;;  %7045 = vmatprep.subr.mxu0 %v6980_v19  ;;  %v12606_v20 = vld [vmem:[#allocation6_spill] sm:$0xff]  ;;  %v6995_v19 = vld [vmem:[%s9645_s9 + $0x100] sm:$0xff] }
0x1b7e   :  { %6532 = vmatprep.subr.mxu1 %v11506_v51  ;;  %7046 = vmatpush1.msra.mxu0 %v6979_v17  ;;  %v12607_v51 = vld [vmem:[#allocation8_spill] sm:$0xff]  ;;  %v6996_v42 = vld [vmem:[%s9645_s9 + $0x108] sm:$0xff] }
0x1b7f   :  { %6533 = vmatpush2.msra.mxu1 %v11511_v47  ;;  %7047 = vmatprep.subr.mxu0 %v6978_v52  ;;  %v6975_v47 = vld [vmem:[%s9645_s9 + $0x60] sm:$0xff]  ;;  %v11811_v17 = vld [vmem:[%s9998_s21 + $0xf8] sm:$0xff] }
0x1b80   :  { %6534 = vmatprep.subr.mxu1 %v11516_v22  ;;  %7048 = vmatpush1.msra.mxu0 %v6977_v24  ;;  %v12608_v22 = vld [vmem:[#allocation7_spill] sm:$0xff] }
0x1b81   :  { %6535 = vmatpush2.msra.mxu1 %v11521_v15  ;;  %7049 = vmatprep.subr.mxu0 %v6976_v8  ;;  %v6974_v15 = vld [vmem:[%s9645_s9 + $0x58] sm:$0xff] }
0x1b82   :  { %6536 = vmatprep.subr.mxu1 %v11553_v44  ;;  %7050 = vmatpush1.msra.mxu0 %v6975_v47  ;;  %v6973_v44 = vld [vmem:[%s9645_s9 + $0x50] sm:$0xff] }
0x1b83   :  { %6537 = vmatpush2.msra.mxu1 %v11558_v9  ;;  %7051 = vmatprep.subr.mxu0 %v6974_v15  ;;  %v6972_v9 = vld [vmem:[%s9645_s9 + $0x48] sm:$0xff] }
0x1b84   :  { %6538 = vmatprep.subr.mxu1 %v11563_v12  ;;  %7052 = vmatpush1.msra.mxu0 %v6973_v44  ;;  %v6971_v12 = vld [vmem:[%s9645_s9 + $0x40] sm:$0xff] }
0x1b85   :  { %6539 = vmatpush2.msra.mxu1 %v11568_v13  ;;  %7053 = vmatprep.subr.mxu0 %v6972_v9  ;;  %v6970_v13 = vld [vmem:[%s9645_s9 + $0x38] sm:$0xff] }
0x1b86   :  { %6540 = vmatprep.subr.mxu1 %v11573_v23  ;;  %7054 = vmatpush1.msra.mxu0 %v6971_v12  ;;  %v6969_v23 = vld [vmem:[%s9645_s9 + $0x30] sm:$0xff] }
0x1b87   :  { %6541 = vmatpush2.msra.mxu1 %v11578_v25  ;;  %7055 = vmatprep.subr.mxu0 %v6970_v13  ;;  %v6968_v25 = vld [vmem:[%s9645_s9 + $0x28] sm:$0xff] }
0x1b88   :  { %6542 = vmatprep.subr.mxu1 %v11583_v36  ;;  %7056 = vmatpush1.msra.mxu0 %v6969_v23  ;;  %v6967_v36 = vld [vmem:[%s9645_s9 + $0x20] sm:$0xff] }
0x1b89   :  { %6543 = vmatpush2.msra.mxu1 %v11588_v26  ;;  %7057 = vmatprep.subr.mxu0 %v6968_v25  ;;  %v6966_v26 = vld [vmem:[%s9645_s9 + $0x18] sm:$0xff] }
0x1b8a   :  { %6544 = vmatprep.subr.mxu1 %v11593_v21  ;;  %7058 = vmatpush1.msra.mxu0 %v6967_v36  ;;  %v6965_v21 = vld [vmem:[%s9645_s9 + $0x10] sm:$0xff] }
0x1b8b   :  { %6545 = vmatpush2.msra.mxu1 %v11598_v18  ;;  %7059 = vmatprep.subr.mxu0 %v6966_v26  ;;  %v6964_v18 = vld [vmem:[%s9645_s9 + $0x8] sm:$0xff] }
0x1b8c   :  { %6546 = vmatprep.subr.mxu1 %v11603_v53  ;;  %7060 = vmatpush1.msra.mxu0 %v6965_v21  ;;  %v6963_v53 = vld [vmem:[%s9645_s9] sm:$0xff]  ;;  %v11817_v21 = vld [vmem:[%s9998_s21 + $0xf0] sm:$0xff] }
0x1b8d   :  { %6547 = vmatpush2.msra.mxu1 %v11608_v39  ;;  %7061 = vmatprep.subr.mxu0 %v6964_v18  ;;  %v7026_v39 = vld [vmem:[%s9645_s9 + $0x1f8] sm:$0xff] }
0x1b8e   :  { %6548 = vmatprep.subr.mxu1 %v11613_v58  ;;  %7062 = vmatpush1.msra.mxu0 %v6963_v53  ;;  %v7025_v58 = vld [vmem:[%s9645_s9 + $0x1f0] sm:$0xff] }
0x1b8f   :  { %6549 = vmatpush2.msra.mxu1 %v11618_v56  ;;  %7063 = vmatprep.subr.mxu0 %v7026_v39  ;;  %v7024_v56 = vld [vmem:[%s9645_s9 + $0x1e8] sm:$0xff] }
0x1b90   :  { %6550 = vmatprep.subr.mxu1 %v11623_v62  ;;  %7064 = vmatpush2.msra.mxu0 %v7025_v58  ;;  %v7023_v62 = vld [vmem:[%s9645_s9 + $0x1e0] sm:$0xff]  ;;  %v11821_v39 = vld [vmem:[%s9998_s21 + $0xe8] sm:$0xff] }
0x1b91   :  { %6551 = vmatpush2.msra.mxu1 %v11628_v5  ;;  %7065 = vmatprep.subr.mxu0 %v7024_v56 }
0x1b92   :  { %6552 = vmatprep.subr.mxu1 %v11633_v60  ;;  %7066 = vmatpush2.msra.mxu0 %v7023_v62  ;;  %v11825_v62 = vld [vmem:[%s9998_s21 + $0xe0] sm:$0xff] }
0x1b93   :  { %6553 = vmatpush2.msra.mxu1 %v11638_v16  ;;  %7067 = vmatprep.subr.mxu0 %v7022_v35 }
0x1b94   :  { %6554 = vmatprep.subr.mxu1 %v12603_v11  ;;  %7068 = vmatpush2.msra.mxu0 %v7021_v6  ;;  %v11830_v6 = vld [vmem:[%s9998_s21 + $0xd8] sm:$0xff] }
0x1b95   :  { %6555 = vmatpush2.msra.mxu1 %v12604_v45  ;;  %7069 = vmatprep.subr.mxu0 %v7020_v14 }
0x1b96   :  { %6556 = vmatprep.subr.mxu1 %v12605_v48  ;;  %7070 = vmatpush2.msra.mxu0 %v7019_v61  ;;  %v11835_v61 = vld [vmem:[%s9998_s21 + $0xd0] sm:$0xff] }
0x1b97   :  { %6557 = vmatpush2.msra.mxu1 %v12606_v20  ;;  %7071 = vmatprep.subr.mxu0 %v7018_v54  ;;  %v11841_v54 = vld [vmem:[%s9998_s21 + $0xc8] sm:$0xff] }
0x1b98   :  { %6558 = vmatprep.subr.mxu1 %v12607_v51  ;;  %7072 = vmatpush2.msra.mxu0 %v7017_v40  ;;  %v11845_v40 = vld [vmem:[%s9998_s21 + $0xc0] sm:$0xff] }
0x1b99   :  { %6559 = vmatpush2.msra.mxu1 %v12608_v22  ;;  %7073 = vmatprep.subr.mxu0 %v7016_v32  ;;  %v11849_v32 = vld [vmem:[%s9998_s21 + $0xb8] sm:$0xff] }
0x1b9a   :  { %7074 = vmatpush2.msra.mxu0 %v7015_v55  ;;  %6838 = vmatprep.subr.mxu1 %v11811_v17  ;;  %v11853_v55 = vld [vmem:[%s9998_s21 + $0xb0] sm:$0xff] }
0x1b9b   :  { %7075 = vmatprep.subr.mxu0 %v7014_v41  ;;  %v11857_v41 = vld [vmem:[%s9998_s21 + $0xa8] sm:$0xff] }
0x1b9c   :  { %7076 = vmatpush2.msra.mxu0 %v7013_v33  ;;  %v11861_v33 = vld [vmem:[%s9998_s21 + $0xa0] sm:$0xff] }
0x1b9d   :  { %7077 = vmatprep.subr.mxu0 %v7012_v50  ;;  %v11865_v50 = vld [vmem:[%s9998_s21 + $0x98] sm:$0xff] }
0x1b9e   :  { %7078 = vmatpush2.msra.mxu0 %v7011_v1  ;;  %v11869_v1 = vld [vmem:[%s9998_s21 + $0x90] sm:$0xff] }
0x1b9f   :  { %7079 = vmatprep.subr.mxu0 %v7010_v4  ;;  %v11873_v4 = vld [vmem:[%s9998_s21 + $0x88] sm:$0xff] }
0x1ba0   :  { %7080 = vmatpush2.msra.mxu0 %v7009_v28  ;;  %v11877_v28 = vld [vmem:[%s9998_s21 + $0x80] sm:$0xff] }
0x1ba1   :  { %7081 = vmatprep.subr.mxu0 %v7008_v2  ;;  %v11881_v2 = vld [vmem:[%s9998_s21 + $0x78] sm:$0xff] }
0x1ba2   :  { %7082 = vmatpush2.msra.mxu0 %v7007_v46  ;;  %v11885_v46 = vld [vmem:[%s9998_s21 + $0x70] sm:$0xff] }
0x1ba3   :  { %7083 = vmatprep.subr.mxu0 %v7006_v30  ;;  %v11889_v30 = vld [vmem:[%s9998_s21 + $0x68] sm:$0xff] }
0x1ba4   :  { %7084 = vmatpush2.msra.mxu0 %v7005_v3 }
0x1ba5   :  { %7085 = vmatprep.subr.mxu0 %v7004_v29  ;;  %v11893_v29 = vld [vmem:[%s9998_s21 + $0x60] sm:$0xff] }
0x1ba6   :  { %7086 = vmatpush2.msra.mxu0 %v7003_v10 }
0x1ba7   :  { %7087 = vmatprep.subr.mxu0 %v7002_v34  ;;  %v11897_v34 = vld [vmem:[%s9998_s21 + $0x58] sm:$0xff] }
0x1ba8   :  { %7088 = vmatpush2.msra.mxu0 %v7001_v43 }
0x1ba9   :  { %7089 = vmatprep.subr.mxu0 %v7000_v27 }
0x1baa   :  { %7090 = vmatpush2.msra.mxu0 %v6999_v59  ;;  %v11901_v59 = vld [vmem:[%s9998_s21 + $0x50] sm:$0xff] }
0x1bab   :  { %7091 = vmatprep.subr.mxu0 %v6998_v63 }
0x1bac   :  { %7092 = vmatpush2.msra.mxu0 %v6997_v7  ;;  %v11905_v7 = vld [vmem:[%s9998_s21 + $0x48] sm:$0xff] }
0x1bad   :  { %7093 = vmatprep.subr.mxu0 %v6996_v42 }
0x1bae   :  { %7094 = vmatpush2.msra.mxu0 %v6995_v19  ;;  %v11910_v19 = vld [vmem:[%s9998_s21 + $0x40] sm:$0xff] }
0x1c1a   :  { %v6222_v52 = vpop.f32.mrf.mxu1 }
0x1c1b   :  { %v6229_v24 = vrot.slane %v6222_v52, 4  ;;  %v11914_v52 = vld [vmem:[%s9998_s21 + $0x38] sm:$0xff] }
0x1c1c   :  { %v6224_v8 = vpop.f32.mrf.mxu1 }
0x1c1d   :  { %v6233_v47 = vadd.f32 %v6229_v24, %v10675_v49  ;;  %v6230_v15 = vrot.slane %v6224_v8, 4  ;;  %v11919_v8 = vld [vmem:[%s9998_s21 + $0x30] sm:$0xff] }
0x1c1f   :  { %v6234_v44 = vadd.f32 %v6230_v15, %v12587_v57  ;;  %8103 = vtanh.f32 %v6233_v47  ;;  %v11923_v47 = vld [vmem:[%s9998_s21 + $0x28] sm:$0xff] }
0x1c21   :  { %8105 = vtanh.f32 %v6234_v44  ;;  %v11927_v44 = vld [vmem:[%s9998_s21 + $0x20] sm:$0xff] }
0x1c2c   :  { %v8104_v9 = vpop.eup %8103 }
0x1c2d   :  { %v6492_v26 = vrot.slane %v8104_v9, 4 }
0x1c2e   :  { %v8106_v12 = vpop.eup %8105 }
0x1c2f   :  { %v6260_v13 = vcombine.high %v8104_v9, %v8106_v12  ;;  %v6755_v23 = vpop.f32.mrf.mxu0  ;;  %v6493_v25 = vrot.slane %v8106_v12, 4  ;;  %v11931_v9 = vld [vmem:[%s9998_s21 + $0x18] sm:$0xff]  ;;  %v11937_v12 = vld [vmem:[%s9998_s21 + $0x10] sm:$0xff] }
0x1c30   :  { %v6762_v36 = vrot.slane %v6755_v23, 2  ;;  %v11945_v23 = vld [vmem:[%s9998_s21] sm:$0xff] }
0x1c31   :  { %v6267_v18 = vrot.slane %v6260_v13, %v9990_v37  ;;  %6560 = vmatprep.mubr.f32.mxu1 %v6493_v25  ;;  %v6757_v53 = vpop.f32.mrf.mxu0  ;;  %v11941_v13 = vld [vmem:[%s9998_s21 + $0x8] sm:$0xff]  ;;  %v11949_v25 = vld [vmem:[%s9998_s21 + $0x1f8] sm:$0xff] }
0x1c32   :  { %v6766_v58 = vadd.f32 %v6762_v36, %v9983_v31  ;;  %v6763_v56 = vrot.slane %v6757_v53, 2  ;;  %6561 = vmatmul.mubr.f32.vlgmr.msra.gmra.mxu1 %v6492_v26  ;;  %v11953_v36 = vld [vmem:[%s9998_s21 + $0x1f0] sm:$0xff]  ;;  %v11957_v26 = vld [vmem:[%s9998_s21 + $0x1e8] sm:$0xff]  ;;  %v11965_v53 = vld [vmem:[%s9998_s21 + $0x1d8] sm:$0xff] }
0x1c33   :  { %v6274_v35 = vrot.slane %v6267_v18, %v9990_v37  ;;  %6839 = vmatpush1.msra.mxu1 %v11817_v21  ;;  %v11961_v18 = vld [vmem:[%s9998_s21 + $0x1e0] sm:$0xff] }
0x1c34   :  { %v6767_v14 = vadd.f32 %v6763_v56, %v9985_v38  ;;  %6840 = vmatprep.subr.mxu1 %v11821_v39  ;;  %8107 = vtanh.f32 %v6766_v58  ;;  %v11969_v58 = vld [vmem:[%s9998_s21 + $0x1d0] sm:$0xff]  ;;  %v11973_v56 = vld [vmem:[%s9998_s21 + $0x1c8] sm:$0xff] }
0x1c35   :  { %6277 = vst.msk [vmem:[#allocation3 + $0x4] ss:$8 sm:$0x3] %vm10003_vm2, %v6274_v35  ;;  %6841 = vmatpush1.msra.mxu1 %v11825_v62  ;;  %v11977_v35 = vld [vmem:[%s9998_s21 + $0x1c0] sm:$0xff] }
0x1c36   :  { %8109 = vtanh.f32 %v6767_v14  ;;  %6842 = vmatprep.subr.mxu1 %v11830_v6  ;;  %v11983_v14 = vld [vmem:[%s9998_s21 + $0x1b8] sm:$0xff] }
0x1c37   :  { %6843 = vmatpush1.msra.mxu1 %v11835_v61 }
0x1c38   :  { %6844 = vmatprep.subr.mxu1 %v11841_v54 }
0x1c39   :  { %6845 = vmatpush1.msra.mxu1 %v11845_v40 }
0x1c3a   :  { %6846 = vmatprep.subr.mxu1 %v11849_v32 }
0x1c3b   :  { %6847 = vmatpush1.msra.mxu1 %v11853_v55 }
0x1c3c   :  { %6848 = vmatprep.subr.mxu1 %v11857_v41 }
0x1c3d   :  { %6849 = vmatpush1.msra.mxu1 %v11861_v33 }
0x1c3e   :  { %6850 = vmatprep.subr.mxu1 %v11865_v50 }
0x1c3f   :  { %6851 = vmatpush1.msra.mxu1 %v11869_v1 }
0x1c40   :  { %6852 = vmatprep.subr.mxu1 %v11873_v4 }
0x1c41   :  { %6853 = vmatpush1.msra.mxu1 %v11877_v28  ;;  %v8108_v3 = vpop.eup %8107 }
0x1c42   :  { %6854 = vmatprep.subr.mxu1 %v11881_v2  ;;  %v7027_v63 = vrot.slane %v8108_v3, 6 }
0x1c43   :  { %v8110_v10 = vpop.eup %8109  ;;  %6855 = vmatpush1.msra.mxu1 %v11885_v46 }
0x1c44   :  { %v6921_v43 = vcombine.high %v8108_v3, %v8110_v10  ;;  %v7028_v27 = vrot.slane %v8110_v10, 6  ;;  %6856 = vmatprep.subr.mxu1 %v11889_v30  ;;  %v11987_v3 = vld [vmem:[%s9998_s21 + $0x1b0] sm:$0xff]  ;;  %v11991_v10 = vld [vmem:[%s9998_s21 + $0x1a8] sm:$0xff] }
0x1c45   :  { %6857 = vmatpush1.msra.mxu1 %v11893_v29 }
0x1c46   :  { %v6928_v42 = vrot.slane %v6921_v43, %v9990_v37  ;;  %7095 = vmatprep.mubr.f32.mxu0 %v7028_v27  ;;  %6858 = vmatprep.subr.mxu1 %v11897_v34  ;;  %v11995_v43 = vld [vmem:[%s9998_s21 + $0x1a0] sm:$0xff]  ;;  %v11999_v27 = vld [vmem:[%s9998_s21 + $0x198] sm:$0xff] }
0x1c47   :  { %7096 = vmatmul.mubr.f32.vlgmr.msra.gmra.mxu0 %v7027_v63  ;;  %6859 = vmatpush1.msra.mxu1 %v11901_v59  ;;  %12609 = vst [vmem:[#allocation10_spill] sm:$0xff] %v11995_v43  ;;  %12610 = vst [vmem:[#allocation11_spill] sm:$0xff] %v11999_v27  ;;  %v12003_v63 = vld [vmem:[%s9998_s21 + $0x190] sm:$0xff] }
0x1c48   :  { %v6935_v24 = vrot.slane %v6928_v42, %v9990_v37  ;;  %6860 = vmatprep.subr.mxu1 %v11905_v7  ;;  %12611 = vst [vmem:[#allocation12_spill] sm:$0xff] %v12003_v63  ;;  %v12007_v42 = vld [vmem:[%s9998_s21 + $0x188] sm:$0xff] }
0x1c49   :  { %6861 = vmatpush1.msra.mxu1 %v11910_v19  ;;  %12612 = vst [vmem:[#allocation13_spill] sm:$0xff] %v12007_v42 }
0x1c4a   :  { %v6936_v15 = vcombine.high %v6935_v24, %v6935_v24  ;;  %6862 = vmatprep.subr.mxu1 %v11914_v52  ;;  %v12011_v24 = vld [vmem:[%s9998_s21 + $0x180] sm:$0xff] }
0x1c4b   :  { %6863 = vmatpush1.msra.mxu1 %v11919_v8  ;;  %12613 = vst [vmem:[#allocation14_spill] sm:$0xff] %v12011_v24 }
0x1c4c   :  { %6939 = vst.msk [vmem:[#allocation2 + $0x6] ss:$8 sm:$0x3] %vm10003_vm2, %v6936_v15  ;;  %6864 = vmatprep.subr.mxu1 %v11923_v47  ;;  %v12015_v15 = vld [vmem:[%s9998_s21 + $0x178] sm:$0xff] }
0x1c4d   :  { %6865 = vmatpush1.msra.mxu1 %v11927_v44  ;;  %12614 = vst [vmem:[#allocation15_spill] sm:$0xff] %v12015_v15 }
0x1c4e   :  { %6866 = vmatprep.subr.mxu1 %v11931_v9 }
0x1c4f   :  { %6867 = vmatpush1.msra.mxu1 %v11937_v12 }
0x1c50   :  { %6868 = vmatprep.subr.mxu1 %v11941_v13 }
0x1c51   :  { %6869 = vmatpush1.msra.mxu1 %v11945_v23 }
0x1c52   :  { %6870 = vmatprep.subr.mxu1 %v11949_v25 }
0x1c53   :  { %6871 = vmatpush2.msra.mxu1 %v11953_v36 }
0x1c54   :  { %6872 = vmatprep.subr.mxu1 %v11957_v26 }
0x1c55   :  { %6873 = vmatpush2.msra.mxu1 %v11961_v18 }
0x1c56   :  { %6874 = vmatprep.subr.mxu1 %v11965_v53 }
0x1c57   :  { %6875 = vmatpush2.msra.mxu1 %v11969_v58 }
0x1c58   :  { %6876 = vmatprep.subr.mxu1 %v11973_v56 }
0x1c59   :  { %6877 = vmatpush2.msra.mxu1 %v11977_v35 }
0x1c5a   :  { %6878 = vmatprep.subr.mxu1 %v11983_v14 }
0x1c5b   :  { %6879 = vmatpush2.msra.mxu1 %v11987_v3 }
0x1c5c   :  { %6880 = vmatprep.subr.mxu1 %v11991_v10 }
0x1c5d   :  { %6881 = vmatpush2.msra.mxu1 %v11995_v43  ;;  %v12019_v43 = vld [vmem:[%s9998_s21 + $0x170] sm:$0xff] }
0x1c5e   :  { %6882 = vmatprep.subr.mxu1 %v11999_v27  ;;  %12615 = vst [vmem:[#allocation16_spill] sm:$0xff] %v12019_v43  ;;  %v12023_v27 = vld [vmem:[%s9998_s21 + $0x168] sm:$0xff] }
0x1c5f   :  { %6883 = vmatpush2.msra.mxu1 %v12003_v63  ;;  %12616 = vst [vmem:[#allocation17_spill] sm:$0xff] %v12023_v27  ;;  %v12027_v63 = vld [vmem:[%s9998_s21 + $0x160] sm:$0xff] }
0x1c60   :  { %6884 = vmatprep.subr.mxu1 %v12007_v42  ;;  %12617 = vst [vmem:[#allocation9_spill] sm:$0xff] %v12027_v63  ;;  %v12031_v42 = vld [vmem:[%s9998_s21 + $0x158] sm:$0xff] }
0x1c61   :  { %6885 = vmatpush2.msra.mxu1 %v12011_v24  ;;  %12618 = vst [vmem:[#allocation26_spill] sm:$0xff] %v12031_v42  ;;  %v12035_v24 = vld [vmem:[%s9998_s21 + $0x150] sm:$0xff] }
0x1c62   :  { %6886 = vmatprep.subr.mxu1 %v12015_v15  ;;  %12619 = vst [vmem:[#allocation27_spill] sm:$0xff] %v12035_v24  ;;  %v12039_v15 = vld [vmem:[%s9998_s21 + $0x148] sm:$0xff] }
0x1c63   :  { %6887 = vmatpush2.msra.mxu1 %v12019_v43  ;;  %12620 = vst [vmem:[#allocation28_spill] sm:$0xff] %v12039_v15 }
0x1c64   :  { %6888 = vmatprep.subr.mxu1 %v12023_v27 }
0x1c65   :  { %6889 = vmatpush2.msra.mxu1 %v12027_v63 }
0x1c66   :  { %6890 = vmatprep.subr.mxu1 %v12031_v42 }
0x1c67   :  { %6891 = vmatpush2.msra.mxu1 %v12035_v24 }
0x1c68   :  { %6892 = vmatprep.subr.mxu1 %v12039_v15 }
0x1c69   :  { %6893 = vmatpush2.msra.mxu1 %v11628_v5 }
0x1c6a   :  { %6894 = vmatprep.subr.mxu1 %v11633_v60 }
0x1c6b   :  { %6895 = vmatpush2.msra.mxu1 %v11638_v16 }
0x1c6c   :  { %6896 = vmatprep.subr.mxu1 %v12603_v11 }
0x1c6d   :  { %6897 = vmatpush2.msra.mxu1 %v12604_v45 }
0x1c6e   :  { %6898 = vmatprep.subr.mxu1 %v12605_v48 }
0x1c6f   :  { %6899 = vmatpush2.msra.mxu1 %v12606_v20 }
0x1c70   :  { %6900 = vmatprep.subr.mxu1 %v12607_v51 }
0x1c71   :  { %6901 = vmatpush2.msra.mxu1 %v12608_v22 }
0x1c72   :  { %7180 = vmatprep.subr.mxu1 %v11811_v17 }
0x1cf2   :  { %v6562_v15 = vpop.f32.mrf.mxu1 }
0x1cf3   :  { %v6569_v5 = vrot.slane %v6562_v15, 3 }
0x1cf4   :  { %v6564_v24 = vpop.f32.mrf.mxu1 }
0x1cf5   :  { %v6573_v60 = vadd.f32 %v6569_v5, %v10675_v49  ;;  %v6570_v16 = vrot.slane %v6564_v24, 3 }
0x1cf7   :  { %v6574_v11 = vadd.f32 %v6570_v16, %v12587_v57  ;;  %8111 = vtanh.f32 %v6573_v60 }
0x1cf9   :  { %8113 = vtanh.f32 %v6574_v11  ;;  %v7337_v11 = vld [vmem:[%s12125_s7 + $0xe0] sm:$0xff] }
0x1d04   :  { %v8112_v45 = vpop.eup %8111 }
0x1d05   :  { %v6834_v27 = vrot.slane %v8112_v45, 5 }
0x1d06   :  { %v8114_v48 = vpop.eup %8113 }
0x1d07   :  { %v6601_v42 = vcombine.high %v8112_v45, %v8114_v48  ;;  %v7097_v20 = vpop.f32.mrf.mxu0  ;;  %v6835_v63 = vrot.slane %v8114_v48, 5  ;;  %v7321_v45 = vld [vmem:[%s12125_s7 + $0x60] sm:$0xff]  ;;  %v7336_v48 = vld [vmem:[%s12125_s7 + $0xd8] sm:$0xff] }
0x1d08   :  { %v7104_v51 = vrot.slane %v7097_v20, 1  ;;  %v7320_v20 = vld [vmem:[%s12125_s7 + $0x58] sm:$0xff] }
0x1d09   :  { %v6608_v22 = vrot.slane %v6601_v42, %v9990_v37  ;;  %6902 = vmatprep.mubr.f32.mxu1 %v6835_v63  ;;  %v7099_v17 = vpop.f32.mrf.mxu0  ;;  %v7338_v63 = vld [vmem:[%s12125_s7 + $0xe8] sm:$0xff] }
0x1d0a   :  { %v7108_v15 = vadd.f32 %v7104_v51, %v9983_v31  ;;  %v7105_v43 = vrot.slane %v7099_v17, 1  ;;  %6903 = vmatmul.mubr.f32.vlgmr.msra.gmra.mxu1 %v6834_v27  ;;  %v7322_v42 = vld [vmem:[%s12125_s7 + $0x68] sm:$0xff]  ;;  %v7335_v51 = vld [vmem:[%s12125_s7 + $0xd0] sm:$0xff] }
0x1d0b   :  { %v6609_v24 = vcombine.high %v6608_v22, %v6608_v22  ;;  %7181 = vmatpush1.msra.mxu1 %v11817_v21  ;;  %v7319_v22 = vld [vmem:[%s12125_s7 + $0x50] sm:$0xff]  ;;  %v7334_v17 = vld [vmem:[%s12125_s7 + $0xc8] sm:$0xff] }
0x1d0c   :  { %v7109_v5 = vadd.f32 %v7105_v43, %v9985_v38  ;;  %7182 = vmatprep.subr.mxu1 %v11821_v39  ;;  %8115 = vtanh.f32 %v7108_v15  ;;  %v7323_v43 = vld [vmem:[%s12125_s7 + $0x70] sm:$0xff]  ;;  %v7318_v15 = vld [vmem:[%s12125_s7 + $0x48] sm:$0xff] }
0x1d0d   :  { %v6616_v60 = vrot.slane %v6609_v24, %v9990_v37  ;;  %7183 = vmatpush1.msra.mxu1 %v11825_v62  ;;  %v7333_v24 = vld [vmem:[%s12125_s7 + $0xc0] sm:$0xff] }
0x1d0e   :  { %8117 = vtanh.f32 %v7109_v5  ;;  %7184 = vmatprep.subr.mxu1 %v11830_v6  ;;  %v7317_v5 = vld [vmem:[%s12125_s7 + $0x40] sm:$0xff] }
0x1d0f   :  { %6619 = vst.msk [vmem:[#allocation3 + $0x5] ss:$8 sm:$0x3] %vm10003_vm2, %v6616_v60  ;;  %7185 = vmatpush1.msra.mxu1 %v11835_v61  ;;  %v7332_v60 = vld [vmem:[%s12125_s7 + $0xb8] sm:$0xff] }
0x1d10   :  { %7186 = vmatprep.subr.mxu1 %v11841_v54  ;;  %v12621_v54 = vld [vmem:[#allocation10_spill] sm:$0xff] }
0x1d11   :  { %7187 = vmatpush1.msra.mxu1 %v11845_v40  ;;  %v12622_v40 = vld [vmem:[#allocation11_spill] sm:$0xff] }
0x1d12   :  { %7188 = vmatprep.subr.mxu1 %v11849_v32  ;;  %v12623_v32 = vld [vmem:[#allocation12_spill] sm:$0xff] }
0x1d13   :  { %7189 = vmatpush1.msra.mxu1 %v11853_v55  ;;  %v12624_v55 = vld [vmem:[#allocation13_spill] sm:$0xff] }
0x1d14   :  { %7190 = vmatprep.subr.mxu1 %v11857_v41  ;;  %v12625_v41 = vld [vmem:[#allocation14_spill] sm:$0xff] }
0x1d15   :  { %7191 = vmatpush1.msra.mxu1 %v11861_v33  ;;  %v12626_v33 = vld [vmem:[#allocation15_spill] sm:$0xff] }
0x1d16   :  { %7192 = vmatprep.subr.mxu1 %v11865_v50  ;;  %v12627_v50 = vld [vmem:[#allocation16_spill] sm:$0xff] }
0x1d17   :  { %7193 = vmatpush1.msra.mxu1 %v11869_v1  ;;  %v12628_v1 = vld [vmem:[#allocation17_spill] sm:$0xff] }
0x1d18   :  { %7194 = vmatprep.subr.mxu1 %v11873_v4  ;;  %v12629_v4 = vld [vmem:[#allocation9_spill] sm:$0xff] }
0x1d19   :  { %7195 = vmatpush1.msra.mxu1 %v11877_v28  ;;  %v8116_v31 = vpop.eup %8115  ;;  %v12630_v28 = vld [vmem:[#allocation26_spill] sm:$0xff] }
0x1d1a   :  { %7196 = vmatprep.subr.mxu1 %v11881_v2  ;;  %v12631_v2 = vld [vmem:[#allocation27_spill] sm:$0xff] }
0x1d1b   :  { %v8118_v38 = vpop.eup %8117  ;;  %7197 = vmatpush1.msra.mxu1 %v11885_v46  ;;  %v12632_v46 = vld [vmem:[#allocation28_spill] sm:$0xff] }
0x1d1c   :  { %v7263_v21 = vcombine.high %v8116_v31, %v8118_v38  ;;  %7198 = vmatprep.subr.mxu1 %v11889_v30  ;;  %v7152_v30 = vld [vmem:[%s9998_s21 + $0x140] sm:$0xff]  ;;  %v7316_v31 = vld [vmem:[%s12125_s7 + $0x38] sm:$0xff]  ;;  %v7331_v38 = vld [vmem:[%s12125_s7 + $0xb0] sm:$0xff] }
0x1d1d   :  { %7199 = vmatpush1.msra.mxu1 %v11893_v29  ;;  %v7151_v29 = vld [vmem:[%s9998_s21 + $0x138] sm:$0xff] }
0x1d1e   :  { %v7270_v39 = vrot.slane %v7263_v21, %v9990_v37  ;;  %7200 = vmatprep.subr.mxu1 %v11897_v34  ;;  %v7150_v34 = vld [vmem:[%s9998_s21 + $0x130] sm:$0xff] }
0x1d1f   :  { %7201 = vmatpush1.msra.mxu1 %v11901_v59  ;;  %v7149_v59 = vld [vmem:[%s9998_s21 + $0x128] sm:$0xff]  ;;  %v7315_v21 = vld [vmem:[%s12125_s7 + $0x30] sm:$0xff] }
0x1d20   :  { %v7271_v62 = vcombine.high %v7270_v39, %v7270_v39  ;;  %7202 = vmatprep.subr.mxu1 %v11905_v7  ;;  %v7148_v7 = vld [vmem:[%s9998_s21 + $0x120] sm:$0xff]  ;;  %v7330_v39 = vld [vmem:[%s12125_s7 + $0xa8] sm:$0xff] }
0x1d21   :  { %7203 = vmatpush1.msra.mxu1 %v11910_v19  ;;  %v7147_v19 = vld [vmem:[%s9998_s21 + $0x118] sm:$0xff] }
0x1d22   :  { %v7278_v6 = vrot.slane %v7271_v62, %v9990_v37  ;;  %7204 = vmatprep.subr.mxu1 %v11914_v52  ;;  %v7146_v52 = vld [vmem:[%s9998_s21 + $0x110] sm:$0xff]  ;;  %v7314_v62 = vld [vmem:[%s12125_s7 + $0x28] sm:$0xff] }
0x1d23   :  { %7205 = vmatpush1.msra.mxu1 %v11919_v8  ;;  %v7145_v8 = vld [vmem:[%s9998_s21 + $0x108] sm:$0xff] }
0x1d24   :  { %v7279_v61 = vcombine.high %v7278_v6, %v7278_v6  ;;  %7206 = vmatprep.subr.mxu1 %v11923_v47  ;;  %v7144_v47 = vld [vmem:[%s9998_s21 + $0x100] sm:$0xff] }
0x1d25   :  { %7207 = vmatpush1.msra.mxu1 %v11927_v44  ;;  %v7340_v44 = vld [vmem:[%s12125_s7 + $0xf8] sm:$0xff]  ;;  %v7329_v6 = vld [vmem:[%s12125_s7 + $0xa0] sm:$0xff] }
0x1d26   :  { %7282 = vst.msk [vmem:[#allocation2 + $0x7] ss:$8 sm:$0x3] %vm10003_vm2, %v7279_v61  ;;  %7208 = vmatprep.subr.mxu1 %v11931_v9  ;;  %v7313_v61 = vld [vmem:[%s12125_s7 + $0x20] sm:$0xff] }
0x1d27   :  { %7209 = vmatpush1.msra.mxu1 %v11937_v12 }
0x1d28   :  { %7210 = vmatprep.subr.mxu1 %v11941_v13 }
0x1d29   :  { %7211 = vmatpush1.msra.mxu1 %v11945_v23 }
0x1d2a   :  { %7212 = vmatprep.subr.mxu1 %v11949_v25 }
0x1d2b   :  { %7213 = vmatpush2.msra.mxu1 %v11953_v36 }
0x1d2c   :  { %7214 = vmatprep.subr.mxu1 %v11957_v26 }
0x1d2d   :  { %7215 = vmatpush2.msra.mxu1 %v11961_v18 }
0x1d2e   :  { %7216 = vmatprep.subr.mxu1 %v11965_v53 }
0x1d2f   :  { %7217 = vmatpush2.msra.mxu1 %v11969_v58 }
0x1d30   :  { %7218 = vmatprep.subr.mxu1 %v11973_v56 }
0x1d31   :  { %7219 = vmatpush2.msra.mxu1 %v11977_v35  ;;  %v7324_v35 = vld [vmem:[%s12125_s7 + $0x78] sm:$0xff] }
0x1d32   :  { %7220 = vmatprep.subr.mxu1 %v11983_v14 }
0x1d33   :  { %7221 = vmatpush2.msra.mxu1 %v11987_v3  ;;  %v7339_v3 = vld [vmem:[%s12125_s7 + $0xf0] sm:$0xff] }
0x1d34   :  { %7222 = vmatprep.subr.mxu1 %v11991_v10  ;;  %v7308_v10 = vld [vmem:[#allocation2 + $0x8] sm:$0xff] }
0x1d35   :  { %7223 = vmatpush2.msra.mxu1 %v12621_v54  ;;  %v7328_v54 = vld [vmem:[%s12125_s7 + $0x98] sm:$0xff] }
0x1d36   :  { %7224 = vmatprep.subr.mxu1 %v12622_v40  ;;  %v7312_v40 = vld [vmem:[%s12125_s7 + $0x18] sm:$0xff] }
0x1d37   :  { %7225 = vmatpush2.msra.mxu1 %v12623_v32  ;;  %v7327_v32 = vld [vmem:[%s12125_s7 + $0x90] sm:$0xff] }
0x1d38   :  { %7226 = vmatprep.subr.mxu1 %v12624_v55  ;;  %v7311_v55 = vld [vmem:[%s12125_s7 + $0x10] sm:$0xff] }
0x1d39   :  { %7227 = vmatpush2.msra.mxu1 %v12625_v41  ;;  %v7326_v41 = vld [vmem:[%s12125_s7 + $0x88] sm:$0xff] }
0x1d3a   :  { %7228 = vmatprep.subr.mxu1 %v12626_v33  ;;  %v7310_v33 = vld [vmem:[%s12125_s7 + $0x8] sm:$0xff] }
0x1d3b   :  { %7229 = vmatpush2.msra.mxu1 %v12627_v50  ;;  %v7325_v50 = vld [vmem:[%s12125_s7 + $0x80] sm:$0xff] }
0x1d3c   :  { %7230 = vmatprep.subr.mxu1 %v12628_v1  ;;  %v7309_v1 = vld [vmem:[%s12125_s7] sm:$0xff] }
0x1d3d   :  { %7231 = vmatpush2.msra.mxu1 %v12629_v4  ;;  %v7307_v4 = vld [vmem:[#allocation2] sm:$0xff] }
0x1d3e   :  { %7232 = vmatprep.subr.mxu1 %v12630_v28  ;;  %v7374_v28 = vld [vmem:[%s12173_s11 + $0xf8] sm:$0xff] }
0x1d3f   :  { %7233 = vmatpush2.msra.mxu1 %v12631_v2  ;;  %7768 = vmatprep.subr.mxu0 %v7374_v28  ;;  %v7358_v2 = vld [vmem:[%s12173_s11 + $0x78] sm:$0xff] }
0x1d40   :  { %7234 = vmatprep.subr.mxu1 %v12632_v46  ;;  %7769 = vmatpush3.msra.mxu0 %v7358_v2  ;;  %v7373_v46 = vld [vmem:[%s12173_s11 + $0xf0] sm:$0xff] }
0x1d41   :  { %7235 = vmatpush2.msra.mxu1 %v7152_v30  ;;  %7770 = vmatprep.subr.mxu0 %v7373_v46  ;;  %v7357_v30 = vld [vmem:[%s12173_s11 + $0x70] sm:$0xff] }
0x1d42   :  { %7236 = vmatprep.subr.mxu1 %v7151_v29  ;;  %7771 = vmatpush3.msra.mxu0 %v7357_v30  ;;  %v7372_v29 = vld [vmem:[%s12173_s11 + $0xe8] sm:$0xff] }
0x1d43   :  { %7237 = vmatpush2.msra.mxu1 %v7150_v34  ;;  %7772 = vmatprep.subr.mxu0 %v7372_v29  ;;  %v7356_v34 = vld [vmem:[%s12173_s11 + $0x68] sm:$0xff] }
0x1d44   :  { %7238 = vmatprep.subr.mxu1 %v7149_v59  ;;  %7773 = vmatpush3.msra.mxu0 %v7356_v34  ;;  %v7371_v59 = vld [vmem:[%s12173_s11 + $0xe0] sm:$0xff] }
0x1d45   :  { %7239 = vmatpush2.msra.mxu1 %v7148_v7  ;;  %7774 = vmatprep.subr.mxu0 %v7371_v59  ;;  %v7355_v7 = vld [vmem:[%s12173_s11 + $0x60] sm:$0xff] }
0x1d46   :  { %7240 = vmatprep.subr.mxu1 %v7147_v19  ;;  %7775 = vmatpush3.msra.mxu0 %v7355_v7  ;;  %v7370_v19 = vld [vmem:[%s12173_s11 + $0xd8] sm:$0xff] }
0x1d47   :  { %7241 = vmatpush2.msra.mxu1 %v7146_v52  ;;  %7776 = vmatprep.subr.mxu0 %v7370_v19  ;;  %v7354_v52 = vld [vmem:[%s12173_s11 + $0x58] sm:$0xff] }
0x1d48   :  { %7242 = vmatprep.subr.mxu1 %v7145_v8  ;;  %7777 = vmatpush3.msra.mxu0 %v7354_v52  ;;  %v7369_v8 = vld [vmem:[%s12173_s11 + $0xd0] sm:$0xff] }
0x1d49   :  { %7243 = vmatpush2.msra.mxu1 %v7144_v47  ;;  %7778 = vmatprep.subr.mxu0 %v7369_v8  ;;  %v7353_v47 = vld [vmem:[%s12173_s11 + $0x50] sm:$0xff] }
0x1d4a   :  { %7803 = vmatprep.subr.mxu1 %v7340_v44  ;;  %7779 = vmatpush3.msra.mxu0 %v7353_v47  ;;  %v7368_v44 = vld [vmem:[%s12173_s11 + $0xc8] sm:$0xff] }
0x1d4b   :  { %7780 = vmatprep.subr.mxu0 %v7368_v44 }
0x1dca   :  { %v6904_v9 = vpop.f32.mrf.mxu1 }
0x1dcb   :  { %v6911_v12 = vrot.slane %v6904_v9, 2  ;;  %v7352_v9 = vld [vmem:[%s12173_s11 + $0x48] sm:$0xff] }
0x1dcc   :  { %v6906_v13 = vpop.f32.mrf.mxu1  ;;  %7781 = vmatpush3.msra.mxu0 %v7352_v9 }
0x1dcd   :  { %v6915_v23 = vadd.f32 %v6911_v12, %v10675_v49  ;;  %v6912_v25 = vrot.slane %v6906_v13, 2  ;;  %v7367_v12 = vld [vmem:[%s12173_s11 + $0xc0] sm:$0xff] }
0x1dce   :  { %7782 = vmatprep.subr.mxu0 %v7367_v12  ;;  %v7351_v13 = vld [vmem:[%s12173_s11 + $0x40] sm:$0xff] }
0x1dcf   :  { %v6916_v36 = vadd.f32 %v6912_v25, %v12587_v57  ;;  %8119 = vtanh.f32 %v6915_v23  ;;  %7783 = vmatpush3.msra.mxu0 %v7351_v13  ;;  %v7366_v23 = vld [vmem:[%s12173_s11 + $0xb8] sm:$0xff] }
0x1dd0   :  { %7784 = vmatprep.subr.mxu0 %v7366_v23  ;;  %v7350_v25 = vld [vmem:[%s12173_s11 + $0x38] sm:$0xff] }
0x1dd1   :  { %8121 = vtanh.f32 %v6916_v36  ;;  %7785 = vmatpush3.msra.mxu0 %v7350_v25  ;;  %v7365_v36 = vld [vmem:[%s12173_s11 + $0xb0] sm:$0xff] }
0x1dd2   :  { %7786 = vmatprep.subr.mxu0 %v7365_v36 }
0x1ddc   :  { %v8120_v26 = vpop.eup %8119 }
0x1ddd   :  { %v7176_v56 = vrot.slane %v8120_v26, 6 }
0x1dde   :  { %v8122_v18 = vpop.eup %8121 }
0x1ddf   :  { %v6943_v53 = vcombine.high %v8120_v26, %v8122_v18  ;;  %v7177_v58 = vrot.slane %v8122_v18, 6  ;;  %v7349_v26 = vld [vmem:[%s12173_s11 + $0x30] sm:$0xff]  ;;  %v7364_v18 = vld [vmem:[%s12173_s11 + $0xa8] sm:$0xff] }
0x1de0   :  { %7787 = vmatpush3.msra.mxu0 %v7349_v26 }
0x1de1   :  { %v6950_v14 = vrot.slane %v6943_v53, %v9990_v37  ;;  %7244 = vmatprep.mubr.f32.mxu1 %v7177_v58  ;;  %7788 = vmatprep.subr.mxu0 %v7364_v18  ;;  %v7348_v53 = vld [vmem:[%s12173_s11 + $0x28] sm:$0xff]  ;;  %v7363_v58 = vld [vmem:[%s12173_s11 + $0xa0] sm:$0xff] }
0x1de2   :  { %7245 = vmatmul.mubr.f32.vlgmr.msra.gmra.mxu1 %v7176_v56  ;;  %7789 = vmatpush3.msra.mxu0 %v7348_v53  ;;  %v7347_v56 = vld [vmem:[%s12173_s11 + $0x20] sm:$0xff] }
0x1de3   :  { %v6957_v27 = vrot.slane %v6950_v14, %v9990_v37  ;;  %7804 = vmatpush3.msra.mxu1 %v7324_v35  ;;  %7509 = vmatprep.mubr.f32.mxu1 %v7308_v10  ;;  %v7362_v35 = vld [vmem:[%s12173_s11 + $0x98] sm:$0xff]  ;;  %v7345_v10 = vld [vmem:[%s12173_s11 + $0x10] sm:$0xff] }
0x1de4   :  { %7805 = vmatprep.subr.mxu1 %v7339_v3  ;;  %7790 = vmatprep.subr.mxu0 %v7363_v58  ;;  %v7346_v14 = vld [vmem:[%s12173_s11 + $0x18] sm:$0xff]  ;;  %v7361_v3 = vld [vmem:[%s12173_s11 + $0x90] sm:$0xff] }
0x1de5   :  { %v6958_v16 = vcombine.high %v6957_v27, %v6957_v27  ;;  %7806 = vmatpush3.msra.mxu1 %v7323_v43  ;;  %7791 = vmatpush3.msra.mxu0 %v7347_v56  ;;  %v7360_v43 = vld [vmem:[%s12173_s11 + $0x88] sm:$0xff] }
0x1de6   :  { %7807 = vmatprep.subr.mxu1 %v7338_v63  ;;  %7792 = vmatprep.subr.mxu0 %v7362_v35  ;;  %v7344_v27 = vld [vmem:[%s12173_s11 + $0x8] sm:$0xff]  ;;  %v7359_v63 = vld [vmem:[%s12173_s11 + $0x80] sm:$0xff] }
0x1de7   :  { %6961 = vst.msk [vmem:[#allocation3 + $0x6] ss:$8 sm:$0x3] %vm10003_vm2, %v6958_v16  ;;  %7808 = vmatpush3.msra.mxu1 %v7322_v42  ;;  %7793 = vmatpush3.msra.mxu0 %v7346_v14  ;;  %v7343_v42 = vld [vmem:[%s12173_s11] sm:$0xff] }
0x1de8   :  { %7809 = vmatprep.subr.mxu1 %v7337_v11  ;;  %7794 = vmatprep.subr.mxu0 %v7361_v3 }
0x1de9   :  { %7810 = vmatpush3.msra.mxu1 %v7321_v45  ;;  %7795 = vmatpush3.msra.mxu0 %v7345_v10 }
0x1dea   :  { %7811 = vmatprep.subr.mxu1 %v7336_v48  ;;  %7796 = vmatprep.subr.mxu0 %v7360_v43 }
0x1deb   :  { %7812 = vmatpush3.msra.mxu1 %v7320_v20  ;;  %7797 = vmatpush3.msra.mxu0 %v7344_v27 }
0x1dec   :  { %7813 = vmatprep.subr.mxu1 %v7335_v51  ;;  %7798 = vmatprep.subr.mxu0 %v7359_v63 }
0x1ded   :  { %7814 = vmatpush3.msra.mxu1 %v7319_v22  ;;  %7799 = vmatpush3.msra.mxu0 %v7343_v42 }
0x1dee   :  { %7815 = vmatprep.subr.mxu1 %v7334_v17 }
0x1def   :  { %7816 = vmatpush3.msra.mxu1 %v7318_v15 }
0x1df0   :  { %7817 = vmatprep.subr.mxu1 %v7333_v24 }
0x1df1   :  { %7818 = vmatpush3.msra.mxu1 %v7317_v5 }
0x1df2   :  { %7819 = vmatprep.subr.mxu1 %v7332_v60 }
0x1df3   :  { %7820 = vmatpush3.msra.mxu1 %v7316_v31 }
0x1df4   :  { %7821 = vmatprep.subr.mxu1 %v7331_v38 }
0x1df5   :  { %7822 = vmatpush3.msra.mxu1 %v7315_v21 }
0x1df6   :  { %7823 = vmatprep.subr.mxu1 %v7330_v39 }
0x1df7   :  { %7824 = vmatpush3.msra.mxu1 %v7314_v62 }
0x1df8   :  { %7825 = vmatprep.subr.mxu1 %v7329_v6 }
0x1df9   :  { %7826 = vmatpush3.msra.mxu1 %v7313_v61 }
0x1dfa   :  { %7827 = vmatprep.subr.mxu1 %v7328_v54 }
0x1dfb   :  { %7828 = vmatpush3.msra.mxu1 %v7312_v40 }
0x1dfc   :  { %7829 = vmatprep.subr.mxu1 %v7327_v32 }
0x1dfd   :  { %7830 = vmatpush3.msra.mxu1 %v7311_v55 }
0x1dfe   :  { %7831 = vmatprep.subr.mxu1 %v7326_v41 }
0x1dff   :  { %7832 = vmatpush3.msra.mxu1 %v7310_v33 }
0x1e00   :  { %7833 = vmatprep.subr.mxu1 %v7325_v50 }
0x1e01   :  { %7834 = vmatpush3.msra.mxu1 %v7309_v1 }
0x1e02   :  { %7510 = vmatmul.mubr.f32.vlgmr.msra.gmra.mxu1 %v7307_v4 }
0x1ea2   :  { %v7246_v16 = vpop.f32.mrf.mxu1 }
0x1ea3   :  { %v7253_v11 = vrot.slane %v7246_v16, 1 }
0x1ea4   :  { %v7248_v45 = vpop.f32.mrf.mxu1 }
0x1ea5   :  { %v7257_v48 = vadd.f32 %v7253_v11, %v10675_v49  ;;  %v7254_v20 = vrot.slane %v7248_v45, 1  ;;  %v88_v49 = vstv %s7574_s15 }
0x1ea6   :  { %89 = vst [vmem:[#allocation4] sm:$0x1] %v88_v49 }
0x1ea7   :  { %v7258_v51 = vadd.f32 %v7254_v20, %v12587_v57  ;;  %8123 = vtanh.f32 %v7257_v48 }
0x1ea9   :  { %8125 = vtanh.f32 %v7258_v51 }
0x1ead   :  { %v7622_v54 = vld [vmem:[#allocation4] ss:$0 sm:$0xff] }
0x1eb4   :  { %v8124_v22 = vpop.eup %8123 }
0x1eb6   :  { %v8126_v17 = vpop.eup %8125 }
0x1eb7   :  { %v7286_v15 = vcombine.high %v8124_v22, %v8126_v17 }
0x1eb9   :  { %v7293_v24 = vrot.slane %v7286_v15, %v9990_v37 }
0x1ebb   :  { %v7294_v5 = vcombine.high %v7293_v24, %v7293_v24 }
0x1ebd   :  { %v7301_v60 = vrot.slane %v7294_v5, %v9990_v37 }
0x1ebf   :  { %v7302_v31 = vcombine.high %v7301_v60, %v7301_v60 }
0x1ec1   :  { %7305 = vst.msk [vmem:[#allocation3 + $0x7] ss:$8 sm:$0x3] %vm10003_vm2, %v7302_v31 }
0x1ec2   :  { %v7835_v57 = vpop.f32.mrf.mxu1 }
0x1ec4   :  { %v7836_v39 = vpop.f32.mrf.mxu1 }
0x1ec5   :  { %v7837_v37 = vadd.f32 %v7836_v39, %v7835_v57 }
0x1ec8   :  { %v7342_v38 = vld [vmem:[#allocation3 + $0x8] sm:$0xff]  ;;  %v7341_v21 = vld [vmem:[#allocation3] sm:$0xff] }
0x1ec9   :  { %7439 = vmatprep.mubr.f32.mxu0 %v7342_v38 }
0x1eca   :  { %7440 = vmatmul.mubr.f32.vlgmr.msra.gmra.mxu0 %v7341_v21 }
0x1f8a   :  { %v7800_v62 = vpop.f32.mrf.mxu0 }
0x1f8c   :  { %v7801_v6 = vpop.f32.mrf.mxu0 }
0x1f8d   :  { %v7802_v61 = vadd.f32 %v7801_v6, %v7800_v62 }
0x1f8f   :  { %v7512_v0 = vadd.f32 %v7837_v37, %v7802_v61 }
0x1f91   :  { %v7522_v40 = vadd.f32 %v7622_v54, %v7512_v0 }
0x1f93   :  { %v7523_v32 = vsub.f32 0.0, %v7522_v40 }
0x1f95   :  { %v7524_v55 = vmul.f32 1.442695, %v7523_v32 }
0x1f97   :  { %8127 = vpow2.f32 %v7524_v55 }
0x1fa4   :  { %v8128_v41 = vpop.eup %8127 }
0x1fa5   :  { %v7526_v33 = vadd.f32 1.0, %v8128_v41 }
0x1fa7   :  { %8129 = vrcp.f32 %v7526_v33 }
0x1fb4   :  { %v8130_v50 = vpop.eup %8129 }
0x1fb5   :  { %7530 = vst.msk [vmem:[%s7575_s19] sm:$0xff] %vm7529_vm0, %v8130_v50 }

</bundles_post_ra>
